<compile_context>
chip_gen: v6e
topology: v6e:2x2x1
jax: 0.10.0
libtpu: 0.0.40
codegen_flags: <defaults>
</compile_context>

<pallas_src>
import jax
import jax.numpy as jnp
from jax.experimental import pallas as pl
from jax.experimental.pallas import tpu as pltpu


C_FEAT = 2208  # densenet161 feature channels (classifier in_features)


# --------------------------------- kernel ------------------------------------

def _net_head_kernel(
    x_ref,                  # [bt, HW, C] feature-map tile, C on the lane axis
    w_cls_ref, b_cls_ref,   # [C, 1000] bf16 (BN1 + 1/HW folded), [1, 1000] f32
    w1_ref, b1_ref,         # [1000, 512] bf16 (BN2 folded),      [1, 512]  f32
    w2_ref, b2_ref,         # [512, 256]  bf16 (BN3 folded),      [1, 256]  f32
    w3_ref, b3_ref,         # [256, 5]    bf16,                   [1, 5]    f32
    o_ref,                  # [bt, 5] f32
):
    # densenet161 tail: ReLU -> adaptive_avg_pool2d((1,1)).  1/HW is folded into
    # w_cls, so a plain sum-pool suffices.  HW is on the sublane axis -> cheap
    # reduce over fully-packed lane vectors; accumulation is f32 even for bf16 x.
    feat = jnp.maximum(x_ref[...], 0.0)                       # [bt, HW, C]
    pooled = jnp.sum(feat.astype(jnp.float32), axis=1)        # [bt, C]

    # classifier Linear(2208 -> 1000); BN1(eval) + mean factor pre-folded.
    h = jnp.dot(pooled.astype(jnp.bfloat16), w_cls_ref[...],
                preferred_element_type=jnp.float32) + b_cls_ref[...]
    h = jnp.maximum(h, 0.0)                                   # ReLU
    # Linear(1000 -> 512); Dropout2d(p=0.4) is identity in eval; BN2 pre-folded.
    h = jnp.dot(h.astype(jnp.bfloat16), w1_ref[...],
                preferred_element_type=jnp.float32) + b1_ref[...]
    h = jnp.maximum(h, 0.0)                                   # ReLU
    # Linear(512 -> 256); BN3 pre-folded.
    h = jnp.dot(h.astype(jnp.bfloat16), w2_ref[...],
                preferred_element_type=jnp.float32) + b2_ref[...]
    h = jnp.maximum(h, 0.0)                                   # ReLU
    # Linear(256 -> 5)
    out = jnp.dot(h.astype(jnp.bfloat16), w3_ref[...],
                  preferred_element_type=jnp.float32) + b3_ref[...]
    o_ref[...] = out.astype(o_ref.dtype)


# ------------------------------ tiling policy ---------------------------------

def _hw_config():
    """Generation-dependent (VMEM limit, batch-tile cap, tensorcores/chip).
    Falls back to conservative v7x-safe values if the query is unavailable."""
    vmem_phys = 64 * 1024 * 1024
    try:
        info = pltpu.get_tpu_info()
        v = getattr(info, "vmem_capacity_bytes", None)
        if v:
            vmem_phys = int(v)
    except Exception:
        pass
    if vmem_phys <= 96 * 1024 * 1024:
        # v7x-class: 64 MiB physical per TensorCore, 2 TCs per chip.
        return 48 * 1024 * 1024, 64, 2
    # v5e / v6e: 128 MiB physical, 1 TC.  bt=128 already fills the v5e MXU rows.
    return 96 * 1024 * 1024, 128, 1


def _choose_tiling(B, HW, x_itemsize, weight_bytes, vmem_limit, bt_cap, num_cores):
    """Batch tile (multiple of 8, or ==B when B<=8) and the padded batch size."""
    if B <= 8:
        return B, B                      # single full-batch tile, no padding
    bytes_per_image = HW * C_FEAT * x_itemsize
    # Budget: double-buffered feature tile + (conservatively) double-buffered
    # resident weights + slack for activations / compiler scratch.
    slack = 6 * 1024 * 1024
    avail = vmem_limit - 2 * weight_bytes - slack
    bt_vmem = max(8, (avail // (2 * bytes_per_image)) // 8 * 8)
    b8 = (B + 7) // 8 * 8
    bt = min(bt_cap, int(bt_vmem), b8)
    if num_cores >= 2 and B >= 16:
        # Guarantee >= 2 grid steps so both v7x TensorCores get a tile.
        half = (((B + 1) // 2) + 7) // 8 * 8
        bt = min(bt, max(8, half))
    bt = max(8, (bt // 8) * 8)
    padded_B = ((B + bt - 1) // bt) * bt
    return bt, padded_B


# -------------------------------- wrapper -------------------------------------

@jax.jit
def net_forward(x_nhwc, kp):
    """x_nhwc: [B, H, W, 2208] densenet161 feature maps (channel-last; f32 or bf16).
    kp: prepared (folded, bf16-weight) kernel params from prepare_kernel_params."""
    B, H, W, C = x_nhwc.shape
    HW = H * W
    x = x_nhwc.reshape(B, HW, C)          # free (contiguous) reshape, C stays last

    weights = (kp["w_cls"], kp["b_cls"], kp["w1"], kp["b1"],
               kp["w2"], kp["b2"], kp["w3"], kp["b3"])
    weight_bytes = sum(int(w.size) * w.dtype.itemsize for w in weights)

    vmem_limit, bt_cap, num_cores = _hw_config()
    bt, padded_B = _choose_tiling(B, HW, x.dtype.itemsize, weight_bytes,
                                  vmem_limit, bt_cap, num_cores)
    if padded_B != B:
        x = jnp.pad(x, ((0, padded_B - B), (0, 0), (0, 0)))

    grid = (padded_B // bt,)

    def resident(arr):
        # Constant index_map -> weight block stays in VMEM across grid steps.
        # TODO(synk): pipeline_mode=pl.Buffered(1) would drop the second weight
        #             buffer (~5.7 MB) on v7x; the VMEM budget above already
        #             assumes double-buffered residents, so this is only a bonus.
        nd = arr.ndim
        return pl.BlockSpec(arr.shape, lambda i, _nd=nd: (0,) * _nd)

    in_specs = [
        pl.BlockSpec((bt, HW, C), lambda i: (i, 0, 0)),   # batch-tiled features
        resident(kp["w_cls"]), resident(kp["b_cls"]),
        resident(kp["w1"]), resident(kp["b1"]),
        resident(kp["w2"]), resident(kp["b2"]),
        resident(kp["w3"]), resident(kp["b3"]),
    ]
    out_specs = pl.BlockSpec((bt, 5), lambda i: (i, 0))

    flops = 2 * padded_B * (HW * C                       # relu + sum-pool
                            + C * 1000 + 1000 * 512 + 512 * 256 + 256 * 5)
    bytes_accessed = (int(x.size) * x.dtype.itemsize + weight_bytes
                      + padded_B * 5 * 4)

    out = pl.pallas_call(
        _net_head_kernel,
        grid=grid,
        in_specs=in_specs,
        out_specs=out_specs,
        out_shape=jax.ShapeDtypeStruct((padded_B, 5), jnp.float32),
        compiler_params=pltpu.CompilerParams(
            dimension_semantics=("parallel",),           # split tiles across TCs
            vmem_limit_bytes=vmem_limit,
        ),
        cost_estimate=pl.CostEstimate(flops=flops, transcendentals=0,
                                      bytes_accessed=bytes_accessed),
    )(x, kp["w_cls"], kp["b_cls"], kp["w1"], kp["b1"],
      kp["w2"], kp["b2"], kp["w3"], kp["b3"])

    return out[:B] if padded_B != B else out


# --------------------------- parameter preparation ---------------------------

def _fold_bn(gamma, beta, mean, var, eps=1e-5):
    scale = gamma / jnp.sqrt(var + eps)
    shift = beta - mean * scale
    return scale.reshape(1, -1), shift.reshape(1, -1)


def make_params(key):
    """Deterministic synthetic parameters (shapes match the PyTorch module),
    kept in f32 'original' form: transposed Linear weights + eval-mode BN affine."""
    ks = jax.random.split(key, 16)
    f32 = jnp.float32

    def linear(kw, kb, n_in, n_out):
        # torch Linear weight is [out, in]; pre-transpose to [in, out].
        w = jax.random.normal(kw, (n_out, n_in), f32) * 0.02
        b = jax.random.normal(kb, (n_out,), f32) * 0.01
        return jnp.transpose(w), b.reshape(1, -1)

    def bn(kg, kb, n):
        gamma = 1.0 + 0.1 * jax.random.normal(kg, (n,), f32)
        beta = 0.1 * jax.random.normal(kb, (n,), f32)
        mean = 0.05 * jax.random.normal(jax.random.fold_in(kg, 1), (n,), f32)
        var = jnp.abs(1.0 + 0.1 * jax.random.normal(jax.random.fold_in(kb, 1), (n,), f32))
        return _fold_bn(gamma, beta, mean, var)

    w_cls, b_cls = linear(ks[0], ks[1], C_FEAT, 1000)   # densenet161 classifier
    s1, t1 = bn(ks[2], ks[3], 1000)
    w1, b1 = linear(ks[4], ks[5], 1000, 512)
    s2, t2 = bn(ks[6], ks[7], 512)
    w2, b2 = linear(ks[8], ks[9], 512, 256)
    s3, t3 = bn(ks[10], ks[11], 256)
    w3, b3 = linear(ks[12], ks[13], 256, 5)
    return dict(w_cls=w_cls, b_cls=b_cls, s1=s1, t1=t1, w1=w1, b1=b1,
                s2=s2, t2=t2, w2=w2, b2=b2, s3=s3, t3=t3, w3=w3, b3=b3)


def prepare_kernel_params(p, hw):
    """One-time fold: eval BN affine + 1/HW mean factor into f32 master weights,
    then cast weights to bf16 (biases stay f32)."""
    f32, bf16 = jnp.float32, jnp.bfloat16
    # BN scales act on output features == columns of the [in, out] weight.
    w_cls = (p["w_cls"] * p["s1"] * (1.0 / hw)).astype(bf16)
    b_cls = (p["b_cls"] * p["s1"] + p["t1"]).astype(f32)
    w1 = (p["w1"] * p["s2"]).astype(bf16)
    b1 = (p["b1"] * p["s2"] + p["t2"]).astype(f32)
    w2 = (p["w2"] * p["s3"]).astype(bf16)
    b2 = (p["b2"] * p["s3"] + p["t3"]).astype(f32)
    w3 = p["w3"].astype(bf16)
    b3 = p["b3"].astype(f32)
    return dict(w_cls=w_cls, b_cls=b_cls, w1=w1, b1=b1, w2=w2, b2=b2, w3=w3, b3=b3)


# --------------------------------- reference ---------------------------------

def _reference(x_nhwc, p):
    """Plain-JAX f32 reference with the original (unfolded) module semantics."""
    pooled = jnp.mean(jnp.maximum(x_nhwc, 0.0), axis=(1, 2))   # [B, C]
    h = pooled @ p["w_cls"] + p["b_cls"]
    h = jnp.maximum(h * p["s1"] + p["t1"], 0.0)
    h = h @ p["w1"] + p["b1"]
    h = jnp.maximum(h * p["s2"] + p["t2"], 0.0)
    h = h @ p["w2"] + p["b2"]
    h = jnp.maximum(h * p["s3"] + p["t3"], 0.0)
    return h @ p["w3"] + p["b3"]


if __name__ == "__main__":
    key = jax.random.PRNGKey(0)
    k_x, k_p = jax.random.split(key)

    # Small synthetic densenet161 feature-map output (NHWC): [B=2, H=4, W=4, C=2208]
    x = jax.random.normal(k_x, (2, 4, 4, C_FEAT), jnp.float32)
    params = make_params(k_p)
    kparams = prepare_kernel_params(params, hw=4 * 4)

    out = jax.block_until_ready(net_forward(x, kparams))

    ref = _reference(x, params)
    assert out.shape == (2, 5)
    # bf16 weights/activations in the matmuls (f32 accumulation) vs. pure-f32 ref.
    assert jnp.allclose(out, ref, atol=2e-3, rtol=1e-2), (out, ref)
    print("KERNEL_OK")
</pallas_src>

<mosaic_0001>
module attributes {stable_mosaic.version = 11 : i64} {
  func.func @_net_head_kernel(%arg0: i32, %arg1: memref<2x16x2208xf32, #tpu.memory_space<vmem>>, %arg2: memref<2208x1000xbf16, #tpu.memory_space<vmem>>, %arg3: memref<1x1000xf32, #tpu.memory_space<vmem>>, %arg4: memref<1000x512xbf16, #tpu.memory_space<vmem>>, %arg5: memref<1x512xf32, #tpu.memory_space<vmem>>, %arg6: memref<512x256xbf16, #tpu.memory_space<vmem>>, %arg7: memref<1x256xf32, #tpu.memory_space<vmem>>, %arg8: memref<256x5xbf16, #tpu.memory_space<vmem>>, %arg9: memref<1x5xf32, #tpu.memory_space<vmem>>, %arg10: memref<2x5xf32, #tpu.memory_space<vmem>>) attributes {dimension_semantics = [#tpu.dimension_semantics<parallel>], iteration_bounds = array<i64: 1>, scalar_prefetch = 0 : i64, scratch_operands = 0 : i64, tpu.core_type = #tpu.core_type<tc>, window_params = [{transform_indices = @transform_0, window_bounds = array<i64: 2, 16, 2208>}, {pipeline_mode = #tpu.pipeline_mode<synchronous>, transform_indices = @transform_1, window_bounds = array<i64: 2208, 1000>}, {pipeline_mode = #tpu.pipeline_mode<synchronous>, transform_indices = @transform_2, window_bounds = array<i64: 1, 1000>}, {pipeline_mode = #tpu.pipeline_mode<synchronous>, transform_indices = @transform_3, window_bounds = array<i64: 1000, 512>}, {pipeline_mode = #tpu.pipeline_mode<synchronous>, transform_indices = @transform_4, window_bounds = array<i64: 1, 512>}, {pipeline_mode = #tpu.pipeline_mode<synchronous>, transform_indices = @transform_5, window_bounds = array<i64: 512, 256>}, {pipeline_mode = #tpu.pipeline_mode<synchronous>, transform_indices = @transform_6, window_bounds = array<i64: 1, 256>}, {pipeline_mode = #tpu.pipeline_mode<synchronous>, transform_indices = @transform_7, window_bounds = array<i64: 256, 5>}, {pipeline_mode = #tpu.pipeline_mode<synchronous>, transform_indices = @transform_8, window_bounds = array<i64: 1, 5>}, {transform_indices = @transform_9, window_bounds = array<i64: 2, 5>}]} {
    %c0 = arith.constant 0 : index
    %c0_0 = arith.constant 0 : index
    %c0_1 = arith.constant 0 : index
    %0 = vector.load %arg1[%c0, %c0_0, %c0_1] : memref<2x16x2208xf32, #tpu.memory_space<vmem>>, vector<2x16x2208xf32>
    %cst = arith.constant 0.000000e+00 : f32
    %1 = vector.broadcast %cst : f32 to vector<2x16x2208xf32>
    %2 = arith.maximumf %0, %1 : vector<2x16x2208xf32>
    %cst_2 = arith.constant dense<0.000000e+00> : vector<2x2208xf32>
    %3 = vector.multi_reduction <add>, %2, %cst_2 [1] : vector<2x16x2208xf32> to vector<2x2208xf32>
    %4 = arith.truncf %3 : vector<2x2208xf32> to vector<2x2208xbf16>
    %c0_3 = arith.constant 0 : index
    %c0_4 = arith.constant 0 : index
    %5 = vector.load %arg2[%c0_3, %c0_4] : memref<2208x1000xbf16, #tpu.memory_space<vmem>>, vector<2208x1000xbf16>
    %cst_5 = arith.constant dense<0.000000e+00> : vector<2x1000xf32>
    %6 = tpu.matmul %4, %5, %cst_5 {dimension_numbers = #tpu.dot_dimension_numbers<[1], [0], [0], [1], [0, 0, 1, 1], [], []>} : vector<2x2208xbf16>, vector<2208x1000xbf16>, vector<2x1000xf32> -> vector<2x1000xf32>
    %c0_6 = arith.constant 0 : index
    %c0_7 = arith.constant 0 : index
    %7 = vector.load %arg3[%c0_6, %c0_7] : memref<1x1000xf32, #tpu.memory_space<vmem>>, vector<1x1000xf32>
    %8 = vector.broadcast %7 : vector<1x1000xf32> to vector<2x1000xf32>
    %9 = arith.addf %6, %8 : vector<2x1000xf32>
    %cst_8 = arith.constant 0.000000e+00 : f32
    %10 = vector.broadcast %cst_8 : f32 to vector<2x1000xf32>
    %11 = arith.maximumf %9, %10 : vector<2x1000xf32>
    %12 = arith.truncf %11 : vector<2x1000xf32> to vector<2x1000xbf16>
    %c0_9 = arith.constant 0 : index
    %c0_10 = arith.constant 0 : index
    %13 = vector.load %arg4[%c0_9, %c0_10] : memref<1000x512xbf16, #tpu.memory_space<vmem>>, vector<1000x512xbf16>
    %cst_11 = arith.constant dense<0.000000e+00> : vector<2x512xf32>
    %14 = tpu.matmul %12, %13, %cst_11 {dimension_numbers = #tpu.dot_dimension_numbers<[1], [0], [0], [1], [0, 0, 1, 1], [], []>} : vector<2x1000xbf16>, vector<1000x512xbf16>, vector<2x512xf32> -> vector<2x512xf32>
    %c0_12 = arith.constant 0 : index
    %c0_13 = arith.constant 0 : index
    %15 = vector.load %arg5[%c0_12, %c0_13] : memref<1x512xf32, #tpu.memory_space<vmem>>, vector<1x512xf32>
    %16 = vector.broadcast %15 : vector<1x512xf32> to vector<2x512xf32>
    %17 = arith.addf %14, %16 : vector<2x512xf32>
    %cst_14 = arith.constant 0.000000e+00 : f32
    %18 = vector.broadcast %cst_14 : f32 to vector<2x512xf32>
    %19 = arith.maximumf %17, %18 : vector<2x512xf32>
    %20 = arith.truncf %19 : vector<2x512xf32> to vector<2x512xbf16>
    %c0_15 = arith.constant 0 : index
    %c0_16 = arith.constant 0 : index
    %21 = vector.load %arg6[%c0_15, %c0_16] : memref<512x256xbf16, #tpu.memory_space<vmem>>, vector<512x256xbf16>
    %cst_17 = arith.constant dense<0.000000e+00> : vector<2x256xf32>
    %22 = tpu.matmul %20, %21, %cst_17 {dimension_numbers = #tpu.dot_dimension_numbers<[1], [0], [0], [1], [0, 0, 1, 1], [], []>} : vector<2x512xbf16>, vector<512x256xbf16>, vector<2x256xf32> -> vector<2x256xf32>
    %c0_18 = arith.constant 0 : index
    %c0_19 = arith.constant 0 : index
    %23 = vector.load %arg7[%c0_18, %c0_19] : memref<1x256xf32, #tpu.memory_space<vmem>>, vector<1x256xf32>
    %24 = vector.broadcast %23 : vector<1x256xf32> to vector<2x256xf32>
    %25 = arith.addf %22, %24 : vector<2x256xf32>
    %cst_20 = arith.constant 0.000000e+00 : f32
    %26 = vector.broadcast %cst_20 : f32 to vector<2x256xf32>
    %27 = arith.maximumf %25, %26 : vector<2x256xf32>
    %28 = arith.truncf %27 : vector<2x256xf32> to vector<2x256xbf16>
    %c0_21 = arith.constant 0 : index
    %c0_22 = arith.constant 0 : index
    %29 = vector.load %arg8[%c0_21, %c0_22] : memref<256x5xbf16, #tpu.memory_space<vmem>>, vector<256x5xbf16>
    %cst_23 = arith.constant dense<0.000000e+00> : vector<2x5xf32>
    %30 = tpu.matmul %28, %29, %cst_23 {dimension_numbers = #tpu.dot_dimension_numbers<[1], [0], [0], [1], [0, 0, 1, 1], [], []>} : vector<2x256xbf16>, vector<256x5xbf16>, vector<2x5xf32> -> vector<2x5xf32>
    %c0_24 = arith.constant 0 : index
    %c0_25 = arith.constant 0 : index
    %31 = vector.load %arg9[%c0_24, %c0_25] : memref<1x5xf32, #tpu.memory_space<vmem>>, vector<1x5xf32>
    %32 = vector.broadcast %31 : vector<1x5xf32> to vector<2x5xf32>
    %33 = arith.addf %30, %32 : vector<2x5xf32>
    %c0_26 = arith.constant 0 : index
    %c0_27 = arith.constant 0 : index
    %34 = vector.load %arg10[%c0_26, %c0_27] : memref<2x5xf32, #tpu.memory_space<vmem>>, vector<2x5xf32>
    tpu.vector_store %arg10[%c0_26, %c0_27], %33 {strides = array<i32>} : memref<2x5xf32, #tpu.memory_space<vmem>>, vector<2x5xf32>,
    return
  }
  func.func @transform_0(%arg0: i32) -> (i32, i32, i32) {
    %c0_i32 = arith.constant 0 : i32
    %c0_i32_0 = arith.constant 0 : i32
    %c0_i32_1 = arith.constant 0 : i32
    return %arg0, %c0_i32, %c0_i32_0 : i32, i32, i32
  }
  func.func @transform_1(%arg0: i32) -> (i32, i32) {
    %c0_i32 = arith.constant 0 : i32
    %c0_i32_0 = arith.constant 0 : i32
    %c0_i32_1 = arith.constant 0 : i32
    return %c0_i32, %c0_i32_0 : i32, i32
  }
  func.func @transform_2(%arg0: i32) -> (i32, i32) {
    %c0_i32 = arith.constant 0 : i32
    %c0_i32_0 = arith.constant 0 : i32
    %c0_i32_1 = arith.constant 0 : i32
    return %c0_i32, %c0_i32_0 : i32, i32
  }
  func.func @transform_3(%arg0: i32) -> (i32, i32) {
    %c0_i32 = arith.constant 0 : i32
    %c0_i32_0 = arith.constant 0 : i32
    %c0_i32_1 = arith.constant 0 : i32
    return %c0_i32, %c0_i32_0 : i32, i32
  }
  func.func @transform_4(%arg0: i32) -> (i32, i32) {
    %c0_i32 = arith.constant 0 : i32
    %c0_i32_0 = arith.constant 0 : i32
    %c0_i32_1 = arith.constant 0 : i32
    return %c0_i32, %c0_i32_0 : i32, i32
  }
  func.func @transform_5(%arg0: i32) -> (i32, i32) {
    %c0_i32 = arith.constant 0 : i32
    %c0_i32_0 = arith.constant 0 : i32
    %c0_i32_1 = arith.constant 0 : i32
    return %c0_i32, %c0_i32_0 : i32, i32
  }
  func.func @transform_6(%arg0: i32) -> (i32, i32) {
    %c0_i32 = arith.constant 0 : i32
    %c0_i32_0 = arith.constant 0 : i32
    %c0_i32_1 = arith.constant 0 : i32
    return %c0_i32, %c0_i32_0 : i32, i32
  }
  func.func @transform_7(%arg0: i32) -> (i32, i32) {
    %c0_i32 = arith.constant 0 : i32
    %c0_i32_0 = arith.constant 0 : i32
    %c0_i32_1 = arith.constant 0 : i32
    return %c0_i32, %c0_i32_0 : i32, i32
  }
  func.func @transform_8(%arg0: i32) -> (i32, i32) {
    %c0_i32 = arith.constant 0 : i32
    %c0_i32_0 = arith.constant 0 : i32
    %c0_i32_1 = arith.constant 0 : i32
    return %c0_i32, %c0_i32_0 : i32, i32
  }
  func.func @transform_9(%arg0: i32) -> (i32, i32) {
    %c0_i32 = arith.constant 0 : i32
    %c0_i32_0 = arith.constant 0 : i32
    return %arg0, %c0_i32 : i32, i32
  }
}

</mosaic_0001>

<bundles_post_ra>
// kernel: net_forward.1
= control target key start
LH: loop header
LB: loop body
LE: loop exit
PB: predicated region body
PF: predicated region fallthrough
CT: control target
= control target key end

     0   :  { %14 = vsyncpa [#allocation3], 0  ;;  %s14471_s0 = inlined_call_operand.vmem [shape: f32[2,16,2208], index: 0, kind: input, shape index: {}]   ;;  %s14472_s1 = inlined_call_operand.hbm [shape: bf16[2208,1000], index: 1, kind: input, shape index: {}]   ;;  %s14473_s2 = inlined_call_operand.hbm [shape: f32[1,1000], index: 2, kind: input, shape index: {}]   ;;  %s14474_s3 = inlined_call_operand.hbm [shape: bf16[1000,512], index: 3, kind: input, shape index: {}]   ;;  %s14475_s4 = inlined_call_operand.hbm [shape: f32[1,512], index: 4, kind: input, shape index: {}]   ;;  %s14476_s5 = inlined_call_operand.hbm [shape: bf16[512,256], index: 5, kind: input, shape index: {}]   ;;  %s14477_s6 = inlined_call_operand.hbm [shape: f32[1,256], index: 6, kind: input, shape index: {}]   ;;  %s14478_s7 = inlined_call_operand.vmem [shape: bf16[256,5], index: 7, kind: input, shape index: {}]   ;;  %s14479_s8 = inlined_call_operand.hbm [shape: f32[1,5], index: 8, kind: input, shape index: {}]   ;;  %s14480_s9 = inlined_call_operand.hbm [shape: f32[2,5], index: 9, kind: output, shape index: {}]  }
   0x1   :  { %15 = vsyncpa [#allocation6], 0 }
   0x2   :  { %16 = vsyncpa [#allocation9], 0 }
   0x3   :  { %17 = vsyncpa [#allocation12], 0 }
   0x4   :  { %18 = vsyncpa [#allocation4], 0  ;;  %s13539_s30 = smov [#allocation5]   ;;  %s13540_s11 = smov [#allocation8]  }
   0x5   :  { %s39_s10 = sshll.u32 %s13539_s30, 4  ;;  %s61_s12 = sshll.u32 %s13540_s11, 4  ;;  %s40_s10 = int_to_ptr.vmem [resolvable:$true] %s39_s10  ;;  %s62_s12 = int_to_ptr.vmem [resolvable:$true] %s61_s12 }
   0x6   :  { %s13377_s13 = scalar_lea.vmem %s40_s10, 128  ;;  %p13382_p1 = scmp.lt.s32.totalorder %s40_s10, %s40_s10 }
   0x7   :  { %p13378_p0 = scmp.ne.s32.totalorder %s40_s10, %s13377_s13  ;;  %p13383_p2 = scmp.lt.s32.totalorder %s13377_s13, %s13377_s13 }
   0x9   :  { %p13384_p3 = por %p13383_p2, %p13382_p1 }
   0xb   :  { %p13385_p4 = pnand %p13384_p3, %p13378_p0 }
   0xd   :  { %13388 = shalt.err (!%p13385_p4)
}
   0xe   :  { %42 = dma.hbm_to_vmem [thread:$0]  %s14473_s2, 128, %s40_s10, [#allocation6]  }
   0xf   :  { %s13397_s16 = scalar_lea.vmem %s62_s12, 64  ;;  %p13402_p6 = scmp.lt.s32.totalorder %s62_s12, %s62_s12 }
  0x10   :  { %p13398_p5 = scmp.ne.s32.totalorder %s62_s12, %s13397_s16  ;;  %p13403_p7 = scmp.lt.s32.totalorder %s13397_s16, %s13397_s16 }
  0x12   :  { %p13404_p8 = por %p13403_p7, %p13402_p6 }
  0x14   :  { %p13405_p9 = pnand %p13404_p8, %p13398_p5 }
  0x16   :  { %13408 = shalt.err (!%p13405_p9)
}
  0x17   :  { %64 = dma.hbm_to_vmem [thread:$0]  %s14475_s4, 64, %s62_s12, [#allocation9]  }
  0x18   :  { %s13541_s19 = smov [#allocation11]   ;;  %s13542_s21 = smov [#allocation2]  }
  0x19   :  { %s83_s20 = sshll.u32 %s13541_s19, 4  ;;  %s26_s22 = sshll.u32 %s13542_s21, 4  ;;  %s84_s20 = int_to_ptr.vmem [resolvable:$true] %s83_s20  ;;  %s27_s22 = int_to_ptr.vmem [resolvable:$true] %s26_s22 }
  0x1a   :  { %s13417_s23 = scalar_lea.vmem %s84_s20, 32  ;;  %p13422_p11 = scmp.lt.s32.totalorder %s84_s20, %s84_s20 }
  0x1b   :  { %p13418_p10 = scmp.ne.s32.totalorder %s84_s20, %s13417_s23  ;;  %p13423_p12 = scmp.lt.s32.totalorder %s13417_s23, %s13417_s23 }
  0x1d   :  { %p13424_p13 = por %p13423_p12, %p13422_p11 }
  0x1f   :  { %p13425_p0 = pnand %p13424_p13, %p13418_p10 }
  0x21   :  { %13428 = shalt.err (!%p13425_p0)
}
  0x22   :  { %86 = dma.hbm_to_vmem [thread:$0]  %s14477_s6, 32, %s84_s20, [#allocation12]  }
  0x23   :  { %s13437_s25 = scalar_lea.vmem %s27_s22, 141312  ;;  %p13442_p2 = scmp.lt.s32.totalorder %s27_s22, %s27_s22 }
  0x24   :  { %p13438_p1 = scmp.ne.s32.totalorder %s27_s22, %s13437_s25  ;;  %p13443_p3 = scmp.lt.s32.totalorder %s13437_s25, %s13437_s25 }
  0x26   :  { %p13444_p4 = por %p13443_p3, %p13442_p2 }
  0x28   :  { %p13445_p5 = pnand %p13444_p4, %p13438_p1 }
  0x2a   :  { %13448 = shalt.err (!%p13445_p5)
}
  0x2b   :  { %s13543_s4 = smov 512   ;;  %s13544_s26 = smov 32  }
  0x2c   :  { %32 = dma.hbm_to_vmem [thread:$0]  %s14472_s1, 141312, %s27_s22, [#allocation3], %s13543_s4, %s13543_s4, %s13544_s26  }
  0x2d   :  { %s13545_s29 = smov [#allocation7]  }
  0x2e   :  { %s48_s30 = sshll.u32 %s13545_s29, 4  ;;  %s49_s30 = int_to_ptr.vmem [resolvable:$true] %s48_s30 }
  0x2f   :  { %s13457_s10 = scalar_lea.vmem %s49_s30, 32000  ;;  %p13462_p7 = scmp.lt.s32.totalorder %s49_s30, %s49_s30 }
  0x30   :  { %p13458_p6 = scmp.ne.s32.totalorder %s49_s30, %s13457_s10  ;;  %p13463_p8 = scmp.lt.s32.totalorder %s13457_s10, %s13457_s10 }
  0x32   :  { %p13464_p9 = por %p13463_p8, %p13462_p7 }
  0x34   :  { %p13465_p10 = pnand %p13464_p9, %p13458_p6 }
  0x36   :  { %13468 = shalt.err (!%p13465_p10)
}
  0x37   :  { %s13546_s6 = smov 256   ;;  %s13547_s11 = smov 16  }
  0x38   :  { %54 = dma.hbm_to_vmem [thread:$0]  %s14474_s3, 32000, %s49_s30, [#allocation6], %s13546_s6, %s13546_s6, %s13547_s11  }
  0x39   :  { %s13548_s14 = smov [#allocation10]  }
  0x3a   :  { %s70_s15 = sshll.u32 %s13548_s14, 4  ;;  %s71_s15 = int_to_ptr.vmem [resolvable:$true] %s70_s15 }
  0x3b   :  { %s13477_s1 = scalar_lea.vmem %s71_s15, 8192  ;;  %p13482_p12 = scmp.lt.s32.totalorder %s71_s15, %s71_s15 }
  0x3c   :  { %p13478_p11 = scmp.ne.s32.totalorder %s71_s15, %s13477_s1  ;;  %p13483_p13 = scmp.lt.s32.totalorder %s13477_s1, %s13477_s1 }
  0x3e   :  { %p13484_p0 = por %p13483_p13, %p13482_p12 }
  0x40   :  { %p13485_p1 = pnand %p13484_p0, %p13478_p11 }
  0x42   :  { %13488 = shalt.err (!%p13485_p1)
}
  0x43   :  { %s13549_s16 = smov 128   ;;  %s13550_s17 = smov 8  }
  0x44   :  { %76 = dma.hbm_to_vmem [thread:$0]  %s14476_s5, 8192, %s71_s15, [#allocation9], %s13549_s16, %s13549_s16, %s13550_s17  }
  0x45   :  { %s13551_s20 = smov [#allocation13]  }
  0x46   :  { %s95_s21 = sshll.u32 %s13551_s20, 4  ;;  %s96_s21 = int_to_ptr.vmem [resolvable:$true] %s95_s21 }
  0x47   :  { %s13497_s3 = scalar_lea.vmem %s96_s21, 16  ;;  %s13501_s22 = scalar_lea.vmem %s96_s21, 32 }
  0x48   :  { %p13498_p2 = scmp.ne.s32.totalorder %s96_s21, %s13497_s3  ;;  %p13502_p3 = scmp.lt.s32.totalorder %s96_s21, %s96_s21 }
  0x49   :  { %p13503_p4 = scmp.lt.s32.totalorder %s13501_s22, %s13497_s3 }
  0x4b   :  { %p13504_p5 = por %p13503_p4, %p13502_p3 }
  0x4d   :  { %p13505_p6 = pnand %p13504_p5, %p13498_p2 }
  0x4f   :  { %13508 = shalt.err (!%p13505_p6)
}
  0x50   :  { %98 = dma.hbm_to_vmem [thread:$0]  %s14479_s8, 16, %s96_s21, [#allocation12]  }
  0x51   :  { %13529 = dma.done.wait [#allocation3], 141312  }
  0x52   :  { %13530 = vsyncadd [#allocation3], 4294825984 }
  0x53   :  { %13531 = dma.done.wait [#allocation6], 32128  }
  0x54   :  { %13532 = vsyncadd [#allocation6], 4294935168 }
  0x55   :  { %13533 = dma.done.wait [#allocation9], 8256  }
  0x56   :  { %13534 = vsyncadd [#allocation9], 4294959040 }
  0x57   :  { %13535 = dma.done.wait [#allocation12], 48  }
  0x58   :  { %13536 = vsyncadd [#allocation12], 4294967248  ;;  %v614_v0 = vld [vmem:[#allocation2 + $0x1c0] sm:$0xff]  ;;  %vm1776_vm0 = vcmask 1041409   ;;  %vm384_vm1 = vcmask 261120   ;;  %vm10371_vm2 = vcmask 1043456  }
  0x59   :  { %v618_v1 = vld [vmem:[#allocation2 + $0x1e0] sm:$0xff]  ;;  %vm10367_vm3 = vcmask 850944   ;;  %vm11377_vm4 = vcmask 33792  }
  0x5a   :  { %v742_v2 = vld [vmem:[#allocation2 + $0x5c0] sm:$0xff]  ;;  %v11454_v3 = vcombine.high %v614_v0, %v618_v1  ;;  %v11453_v5 = vcombine.low %v614_v0, %v618_v1 }
  0x5b   :  { %v746_v4 = vld [vmem:[#allocation2 + $0x5e0] sm:$0xff] }
  0x5c   :  { %v606_v6 = vld [vmem:[#allocation2 + $0x180] sm:$0xff]  ;;  %v11582_v8 = vcombine.high %v742_v2, %v746_v4  ;;  %v11581_v9 = vcombine.low %v742_v2, %v746_v4  ;;  %7353 = vmatprep.subr.bf16.mxu0 %v11454_v3 }
  0x5d   :  { %v610_v7 = vld [vmem:[#allocation2 + $0x1a0] sm:$0xff]  ;;  %7354 = vmatpush1.bf16.msra.mxu0 %v11453_v5 }
  0x5e   :  { %v11446_v10 = vcombine.high %v606_v6, %v610_v7  ;;  %v734_v11 = vld [vmem:[#allocation2 + $0x580] sm:$0xff]  ;;  %7394 = vmatprep.subr.bf16.mxu1 %v11582_v8  ;;  %v11445_v18 = vcombine.low %v606_v6, %v610_v7 }
  0x5f   :  { %v738_v12 = vld [vmem:[#allocation2 + $0x5a0] sm:$0xff]  ;;  %7395 = vmatpush1.bf16.msra.mxu1 %v11581_v9  ;;  %v122_v9 = vld [vmem:[%s14471_s0 + $0x8] sm:$0xff] }
  0x60   :  { %v598_v13 = vld [vmem:[#allocation2 + $0x140] sm:$0xff]  ;;  %v11574_v14 = vcombine.high %v734_v11, %v738_v12  ;;  %7355 = vmatprep.subr.bf16.mxu0 %v11446_v10  ;;  %v11573_v19 = vcombine.low %v734_v11, %v738_v12  ;;  %v140_v10 = vld [vmem:[%s14471_s0 + $0x98] sm:$0xff] }
  0x61   :  { %v602_v15 = vld [vmem:[#allocation2 + $0x160] sm:$0xff]  ;;  %7356 = vmatpush1.bf16.msra.mxu0 %v11445_v18 }
  0x62   :  { %v726_v16 = vld [vmem:[#allocation2 + $0x540] sm:$0xff]  ;;  %v11438_v20 = vcombine.high %v598_v13, %v602_v15  ;;  %7396 = vmatprep.subr.bf16.mxu1 %v11574_v14  ;;  %v11437_v26 = vcombine.low %v598_v13, %v602_v15  ;;  %v158_v13 = vld [vmem:[%s14471_s0 + $0x128] sm:$0xff]  ;;  %v176_v14 = vld [vmem:[%s14471_s0 + $0x1b8] sm:$0xff]  ;;  %v194_v15 = vmax.f32 %v122_v9, 0.0 }
  0x63   :  { %v730_v17 = vld [vmem:[#allocation2 + $0x560] sm:$0xff]  ;;  %7397 = vmatpush1.bf16.msra.mxu1 %v11573_v19  ;;  %v230_v19 = vmax.f32 %v158_v13, 0.0 }
  0x64   :  { %v11566_v21 = vcombine.high %v726_v16, %v730_v17  ;;  %v590_v22 = vld [vmem:[#allocation2 + $0x100] sm:$0xff]  ;;  %7357 = vmatprep.subr.bf16.mxu0 %v11438_v20  ;;  %v11565_v27 = vcombine.low %v726_v16, %v730_v17  ;;  %v212_v16 = vmax.f32 %v140_v10, 0.0  ;;  %v124_v17 = vld [vmem:[%s14471_s0 + $0x18] sm:$0xff]  ;;  %v248_v20 = vmax.f32 %v176_v14, 0.0 }
  0x65   :  { %v594_v23 = vld [vmem:[#allocation2 + $0x120] sm:$0xff]  ;;  %7358 = vmatpush1.bf16.msra.mxu0 %v11437_v26 }
  0x66   :  { %v718_v24 = vld [vmem:[#allocation2 + $0x500] sm:$0xff]  ;;  %v11430_v28 = vcombine.high %v590_v22, %v594_v23  ;;  %7398 = vmatprep.subr.bf16.mxu1 %v11566_v21  ;;  %v11429_v34 = vcombine.low %v590_v22, %v594_v23  ;;  %v142_v21 = vld [vmem:[%s14471_s0 + $0xa8] sm:$0xff]  ;;  %v160_v22 = vld [vmem:[%s14471_s0 + $0x138] sm:$0xff] }
  0x67   :  { %v722_v25 = vld [vmem:[#allocation2 + $0x520] sm:$0xff]  ;;  %7399 = vmatpush1.bf16.msra.mxu1 %v11565_v27  ;;  %v178_v23 = vld [vmem:[%s14471_s0 + $0x1c8] sm:$0xff]  ;;  %v214_v26 = vmax.f32 %v142_v21, 0.0  ;;  %v232_v27 = vmax.f32 %v160_v22, 0.0 }
  0x68   :  { %v11558_v29 = vcombine.high %v718_v24, %v722_v25  ;;  %v582_v30 = vld [vmem:[#allocation2 + $0xc0] sm:$0xff]  ;;  %7359 = vmatprep.subr.bf16.mxu0 %v11430_v28  ;;  %v11557_v35 = vcombine.low %v718_v24, %v722_v25  ;;  %v196_v24 = vmax.f32 %v124_v17, 0.0  ;;  %v272_v25 = vadd.f32 %v212_v16, %v194_v15 }
  0x69   :  { %v586_v31 = vld [vmem:[#allocation2 + $0xe0] sm:$0xff]  ;;  %7360 = vmatpush1.bf16.msra.mxu0 %v11429_v34  ;;  %v250_v28 = vmax.f32 %v178_v23, 0.0 }
  0x6a   :  { %v710_v32 = vld [vmem:[#allocation2 + $0x4c0] sm:$0xff]  ;;  %v11422_v36 = vcombine.high %v582_v30, %v586_v31  ;;  %7400 = vmatprep.subr.bf16.mxu1 %v11558_v29  ;;  %v11421_v45 = vcombine.low %v582_v30, %v586_v31  ;;  %v139_v30 = vld [vmem:[%s14471_s0 + $0x90] sm:$0xff] }
  0x6b   :  { %v714_v33 = vld [vmem:[#allocation2 + $0x4e0] sm:$0xff]  ;;  %7401 = vmatpush1.bf16.msra.mxu1 %v11557_v35  ;;  %v211_v35 = vmax.f32 %v139_v30, 0.0 }
  0x6c   :  { %v574_v37 = vld [vmem:[#allocation2 + $0x80] sm:$0xff]  ;;  %v11550_v38 = vcombine.high %v710_v32, %v714_v33  ;;  %7361 = vmatprep.subr.bf16.mxu0 %v11422_v36  ;;  %v11549_v49 = vcombine.low %v710_v32, %v714_v33  ;;  %v401_v32 = vadd.f32 %v248_v20, %v230_v19  ;;  %v175_v33 = vld [vmem:[%s14471_s0 + $0x1b0] sm:$0xff] }
  0x6d   :  { %v578_v39 = vld [vmem:[#allocation2 + $0xa0] sm:$0xff]  ;;  %7362 = vmatpush1.bf16.msra.mxu0 %v11421_v45 }
  0x6e   :  { %v13624_v40 = vld [vmem:[#allocation2 + $0x480] sm:$0xff]  ;;  %v11414_v50 = vcombine.high %v574_v37, %v578_v39  ;;  %7402 = vmatprep.subr.bf16.mxu1 %v11550_v38  ;;  %v11413_v55 = vcombine.low %v574_v37, %v578_v39  ;;  %v123_v37 = vld [vmem:[%s14471_s0 + $0x10] sm:$0xff]  ;;  %v273_v39 = vrot.slane %v272_v25, 4 }
  0x6f   :  { %v13626_v41 = vld [vmem:[#allocation2 + $0x4a0] sm:$0xff]  ;;  %7403 = vmatpush1.bf16.msra.mxu1 %v11549_v49  ;;  %v402_v49 = vrot.slane %v401_v32, 4 }
  0x70   :  { %v13628_v42 = vld [vmem:[#allocation2 + $0x40] sm:$0xff]  ;;  %v11542_v54 = vcombine.high %v13624_v40, %v13626_v41  ;;  %v11541_v56 = vcombine.low %v13624_v40, %v13626_v41  ;;  %7363 = vmatprep.subr.bf16.mxu0 %v11414_v50  ;;  %v286_v40 = vadd.f32 %v214_v26, %v196_v24  ;;  %v415_v41 = vadd.f32 %v250_v28, %v232_v27 }
  0x71   :  { %v13630_v43 = vld [vmem:[#allocation2 + $0x60] sm:$0xff]  ;;  %7364 = vmatpush1.bf16.msra.mxu0 %v11413_v55  ;;  %v403_v10 = vadd.f32 %v402_v49, %v401_v32 }
  0x72   :  { %v13632_v44 = vld [vmem:[#allocation2 + $0x440] sm:$0xff]  ;;  %v11406_v60 = vcombine.high %v13628_v42, %v13630_v43  ;;  %v11405_v62 = vcombine.low %v13628_v42, %v13630_v43  ;;  %7404 = vmatprep.subr.bf16.mxu1 %v11542_v54  ;;  %v247_v42 = vmax.f32 %v175_v33, 0.0  ;;  %v159_v43 = vld [vmem:[%s14471_s0 + $0x130] sm:$0xff]  ;;  %v195_v54 = vmax.f32 %v123_v37, 0.0 }
  0x73   :  { %v13634_v46 = vld [vmem:[#allocation2 + $0x460] sm:$0xff]  ;;  %7405 = vmatpush1.bf16.msra.mxu1 %v11541_v56  ;;  %v274_v56 = vadd.f32 %v273_v39, %v272_v25  ;;  %v231_v14 = vmax.f32 %v159_v43, 0.0  ;;  %v404_v22 = vrot.slane %v403_v10, 2 }
  0x74   :  { %v13636_v47 = vld [vmem:[#allocation2] sm:$0xff]  ;;  %v11534_v61 = vcombine.high %v13632_v44, %v13634_v46  ;;  %v11533_v63 = vcombine.low %v13632_v44, %v13634_v46  ;;  %7365 = vmatprep.subr.bf16.mxu0 %v11406_v60  ;;  %v287_v60 = vrot.slane %v286_v40, 4 }
  0x75   :  { %v13638_v48 = vld [vmem:[#allocation2 + $0x20] sm:$0xff]  ;;  %7366 = vmatpush1.bf16.msra.mxu0 %v11405_v62  ;;  %v275_v17 = vrot.slane %v274_v56, 2  ;;  %v405_v26 = vadd.f32 %v404_v22, %v403_v10 }
  0x76   :  { %v13640_v51 = vld [vmem:[#allocation2 + $0x400] sm:$0xff]  ;;  %v11398_v2 = vcombine.high %v13636_v47, %v13638_v48  ;;  %v11397_v4 = vcombine.low %v13636_v47, %v13638_v48  ;;  %7406 = vmatprep.subr.bf16.mxu1 %v11534_v61  ;;  %v416_v61 = vrot.slane %v415_v41, 4  ;;  %v288_v19 = vadd.f32 %v287_v60, %v286_v40 }
  0x77   :  { %v13642_v52 = vld [vmem:[#allocation2 + $0x420] sm:$0xff]  ;;  %7407 = vmatpush1.bf16.msra.mxu1 %v11533_v63  ;;  %v406_v30 = vrot.slane %v405_v26, 1 }
  0x78   :  { %v13644_v53 = vld [vmem:[#allocation2 + $0x3c0] sm:$0xff]  ;;  %v11526_v3 = vcombine.high %v13640_v51, %v13642_v52  ;;  %v11525_v5 = vcombine.low %v13640_v51, %v13642_v52  ;;  %7367 = vmatprep.subr.bf16.mxu0 %v11398_v2  ;;  %v417_v20 = vadd.f32 %v416_v61, %v415_v41  ;;  %v276_v2 = vadd.f32 %v275_v17, %v274_v56 }
  0x79   :  { %v13650_v57 = vld [vmem:[#allocation2 + $0x3e0] sm:$0xff]  ;;  %7368 = vmatpush1.bf16.msra.mxu0 %v11397_v4  ;;  %v289_v23 = vrot.slane %v288_v19, 2 }
  0x7a   :  { %v13652_v58 = vld [vmem:[#allocation2 + $0x7c0] sm:$0xff]  ;;  %v11518_v6 = vcombine.high %v13644_v53, %v13650_v57  ;;  %v11517_v8 = vcombine.low %v13644_v53, %v13650_v57  ;;  %7408 = vmatprep.subr.bf16.mxu1 %v11526_v3  ;;  %v418_v3 = vrot.slane %v417_v20, 2  ;;  %v277_v52 = vrot.slane %v276_v2, 1 }
  0x7b   :  { %v13654_v59 = vld [vmem:[#allocation2 + $0x7e0] sm:$0xff]  ;;  %7409 = vmatpush1.bf16.msra.mxu1 %v11525_v5  ;;  %v290_v5 = vadd.f32 %v289_v23, %v288_v19 }
  0x7c   :  { %v13664_v0 = vld [vmem:[#allocation2 + $0x380] sm:$0xff]  ;;  %v11646_v7 = vcombine.high %v13652_v58, %v13654_v59  ;;  %v11645_v11 = vcombine.low %v13652_v58, %v13654_v59  ;;  %7369 = vmatprep.subr.bf16.mxu0 %v11518_v6  ;;  %v419_v28 = vadd.f32 %v418_v3, %v417_v20 }
  0x7d   :  { %v13666_v1 = vld [vmem:[#allocation2 + $0x3a0] sm:$0xff]  ;;  %7370 = vmatpush2.bf16.msra.mxu0 %v11517_v8 }
  0x7e   :  { %v11510_v12 = vcombine.high %v13664_v0, %v13666_v1  ;;  %v11509_v18 = vcombine.low %v13664_v0, %v13666_v1  ;;  %v121_v29 = vld [vmem:[%s14471_s0] sm:$0xff]  ;;  %7410 = vmatprep.subr.bf16.mxu1 %v11646_v7  ;;  %v291_v7 = vrot.slane %v290_v5, 1 }
  0x7f   :  { %v157_v31 = vld [vmem:[%s14471_s0 + $0x120] sm:$0xff]  ;;  %v193_v34 = vmax.f32 %v121_v29, 0.0  ;;  %7411 = vmatpush2.bf16.msra.mxu1 %v11645_v11 }
  0x80   :  { %v229_v36 = vmax.f32 %v157_v31, 0.0  ;;  %v141_v38 = vld [vmem:[%s14471_s0 + $0xa0] sm:$0xff]  ;;  %7371 = vmatprep.subr.bf16.mxu0 %v11510_v12 }
  0x81   :  { %v177_v45 = vld [vmem:[%s14471_s0 + $0x1c0] sm:$0xff]  ;;  %v265_v50 = vadd.f32 %v211_v35, %v193_v34  ;;  %v213_v55 = vmax.f32 %v141_v38, 0.0  ;;  %v278_v34 = vadd.f32 %v277_v52, %v276_v2  ;;  %v420_v35 = vrot.slane %v419_v28, 1  ;;  %7372 = vmatpush2.bf16.msra.mxu0 %v11509_v18 }
  0x82   :  { %v394_v9 = vadd.f32 %v247_v42, %v229_v36  ;;  %v249_v15 = vmax.f32 %v177_v45, 0.0  ;;  %v13742_v16 = vld [vmem:[#allocation2 + $0x780] sm:$0xff]  ;;  %v407_v38 = vadd.f32 %v406_v30, %v405_v26  ;;  %v292_v42 = vadd.f32 %v291_v7, %v290_v5 }
  0x83   :  { %v266_v13 = vrot.slane %v265_v50, 4  ;;  %v13744_v62 = vld [vmem:[#allocation2 + $0x7a0] sm:$0xff]  ;;  %v279_v46 = vadd.f32 %v213_v55, %v195_v54  ;;  %v523_v8 = vpack.c.bf16 %v278_v34, %v278_v34  ;;  %v421_v43 = vadd.f32 %v420_v35, %v419_v28 }
  0x84   :  { %v395_v21 = vrot.slane %v394_v9, 4  ;;  %v408_v63 = vadd.f32 %v249_v15, %v231_v14  ;;  %v11638_v25 = vcombine.high %v13742_v16, %v13744_v62  ;;  %v11637_v48 = vcombine.low %v13742_v16, %v13744_v62  ;;  %v662_v4 = vld [vmem:[#allocation2 + $0x340] sm:$0xff] }
  0x85   :  { %v267_v44 = vadd.f32 %v266_v13, %v265_v50  ;;  %v280_v27 = vrot.slane %v279_v46, 4  ;;  %v666_v51 = vld [vmem:[#allocation2 + $0x360] sm:$0xff]  ;;  %v541_v59 = vpack.c.bf16 %v407_v38, %v407_v38  ;;  %v1741_v12 = vunpack.c.l.b16 %v523_v8 }
  0x86   :  { %v396_v24 = vadd.f32 %v395_v21, %v394_v9  ;;  %v409_v47 = vrot.slane %v408_v63, 4  ;;  %v790_v29 = vld [vmem:[#allocation2 + $0x740] sm:$0xff]  ;;  %v11502_v37 = vcombine.high %v662_v4, %v666_v51  ;;  %7412 = vmatprep.subr.bf16.mxu1 %v11638_v25  ;;  %v11501_v45 = vcombine.low %v662_v4, %v666_v51 }
  0x87   :  { %v794_v6 = vld [vmem:[#allocation2 + $0x760] sm:$0xff]  ;;  %v268_v31 = vrot.slane %v267_v44, 2  ;;  %v281_v32 = vadd.f32 %v280_v27, %v279_v46  ;;  %v525_v54 = vpack.c.bf16 %v292_v42, %v292_v42  ;;  %v543_v55 = vpack.c.bf16 %v421_v43, %v421_v43  ;;  %7413 = vmatpush2.bf16.msra.mxu1 %v11637_v48 }
  0x88   :  { %v410_v33 = vadd.f32 %v409_v47, %v408_v63  ;;  %v397_v36 = vrot.slane %v396_v24, 2  ;;  %v11630_v41 = vcombine.high %v790_v29, %v794_v6  ;;  %v654_v53 = vld [vmem:[#allocation2 + $0x300] sm:$0xff]  ;;  %v11629_v49 = vcombine.low %v790_v29, %v794_v6  ;;  %7373 = vmatprep.subr.bf16.mxu0 %v11502_v37 }
  0x89   :  { %v282_v39 = vrot.slane %v281_v32, 2  ;;  %v658_v57 = vld [vmem:[#allocation2 + $0x320] sm:$0xff]  ;;  %v269_v11 = vadd.f32 %v268_v31, %v267_v44  ;;  %v1759_v61 = vunpack.c.l.b16 %v541_v59  ;;  %v1743_v16 = vunpack.c.l.b16 %v525_v54  ;;  %7374 = vmatpush2.bf16.msra.mxu0 %v11501_v45  ;;  %v126_v59 = vld [vmem:[%s14471_s0 + $0x28] sm:$0xff] }
  0x8a   :  { %v411_v40 = vrot.slane %v410_v33, 2  ;;  %v782_v50 = vld [vmem:[#allocation2 + $0x700] sm:$0xff]  ;;  %v398_v56 = vadd.f32 %v397_v36, %v396_v24  ;;  %v11494_v60 = vcombine.high %v654_v53, %v658_v57  ;;  %7414 = vmatprep.subr.bf16.mxu1 %v11630_v41  ;;  %v1761_v62 = vunpack.c.l.b16 %v543_v55 }
  0x8b   :  { %v786_v58 = vld [vmem:[#allocation2 + $0x720] sm:$0xff]  ;;  %v283_v9 = vadd.f32 %v282_v39, %v281_v32  ;;  %v11493_v17 = vcombine.low %v654_v53, %v658_v57  ;;  %v1778_v18 = vsel %vm1776_vm0, %v1759_v61, %v1741_v12  ;;  %v270_v22 = vrot.slane %v269_v11, 1  ;;  %7415 = vmatpush2.bf16.msra.mxu1 %v11629_v49  ;;  %v162_v12 = vld [vmem:[%s14471_s0 + $0x148] sm:$0xff] }
  0x8c   :  { %v412_v10 = vadd.f32 %v411_v40, %v410_v33  ;;  %v11622_v13 = vcombine.high %v782_v50, %v786_v58  ;;  %v646_v14 = vld [vmem:[#allocation2 + $0x2c0] sm:$0xff]  ;;  %v11621_v19 = vcombine.low %v782_v50, %v786_v58  ;;  %v13775_v20 = vpack.c.b16 %v1778_v18, %v1778_v18  ;;  %7375 = vmatprep.subr.bf16.mxu0 %v11494_v60  ;;  %v180_v60 = vld [vmem:[%s14471_s0 + $0x1d8] sm:$0xff] }
  0x8d   :  { %v650_v15 = vld [vmem:[#allocation2 + $0x2e0] sm:$0xff]  ;;  %v1780_v21 = vsel %vm1776_vm0, %v1761_v62, %v1743_v16  ;;  %v399_v44 = vrot.slane %v398_v56, 1  ;;  %v284_v2 = vrot.slane %v283_v9, 1  ;;  %7376 = vmatpush2.bf16.msra.mxu0 %v11493_v17  ;;  %v271_v4 = vadd.f32 %v270_v22, %v269_v11  ;;  %v144_v11 = vld [vmem:[%s14471_s0 + $0xb8] sm:$0xff] }
  0x8e   :  { %v774_v0 = vld [vmem:[#allocation2 + $0x6c0] sm:$0xff]  ;;  %v11486_v46 = vcombine.high %v646_v14, %v650_v15  ;;  %v13778_v63 = vpack.c.b16 %v1780_v21, %v1780_v21  ;;  %v413_v23 = vrot.slane %v412_v10, 1  ;;  %7416 = vmatprep.subr.bf16.mxu1 %v11622_v13  ;;  %7385 = vmatprep.mubr.bf16.mxu0 %v13775_v20  ;;  %v11485_v47 = vcombine.low %v646_v14, %v650_v15  ;;  %v128_v21 = vld [vmem:[%s14471_s0 + $0x38] sm:$0xff] }
  0x8f   :  { %v778_v1 = vld [vmem:[#allocation2 + $0x6e0] sm:$0xff]  ;;  %v400_v51 = vadd.f32 %v399_v44, %v398_v56  ;;  %7417 = vmatpush2.bf16.msra.mxu1 %v11621_v19  ;;  %v285_v5 = vadd.f32 %v284_v2, %v283_v9  ;;  %v522_v7 = vpack.c.bf16 %v271_v4, %v271_v4  ;;  %v198_v14 = vmax.f32 %v126_v59, 0.0  ;;  %v146_v44 = vld [vmem:[%s14471_s0 + $0xc8] sm:$0xff] }
  0x90   :  { %v11614_v3 = vcombine.high %v774_v0, %v778_v1  ;;  %v638_v24 = vld [vmem:[#allocation2 + $0x280] sm:$0xff]  ;;  %7426 = vmatprep.mubr.bf16.mxu1 %v13778_v63  ;;  %v11613_v48 = vcombine.low %v774_v0, %v778_v1  ;;  %7377 = vmatprep.subr.bf16.mxu0 %v11486_v46  ;;  %v414_v28 = vadd.f32 %v413_v23, %v412_v10  ;;  %v216_v15 = vmax.f32 %v144_v11, 0.0  ;;  %v164_v46 = vld [vmem:[%s14471_s0 + $0x158] sm:$0xff]  ;;  %v182_v2 = vld [vmem:[%s14471_s0 + $0x1e8] sm:$0xff] }
  0x91   :  { %v642_v25 = vld [vmem:[#allocation2 + $0x2a0] sm:$0xff]  ;;  %7378 = vmatpush2.bf16.msra.mxu0 %v11485_v47  ;;  %v540_v35 = vpack.c.bf16 %v400_v51, %v400_v51  ;;  %v524_v37 = vpack.c.bf16 %v285_v5, %v285_v5  ;;  %v1740_v42 = vunpack.c.l.b16 %v522_v7  ;;  %v234_v16 = vmax.f32 %v162_v12, 0.0 }
  0x92   :  { %v766_v26 = vld [vmem:[#allocation2 + $0x680] sm:$0xff]  ;;  %v11478_v52 = vcombine.high %v638_v24, %v642_v25  ;;  %7418 = vmatprep.subr.bf16.mxu1 %v11614_v3  ;;  %v11477_v33 = vcombine.low %v638_v24, %v642_v25  ;;  %v542_v38 = vpack.c.bf16 %v414_v28, %v414_v28  ;;  %v252_v18 = vmax.f32 %v180_v60, 0.0 }
  0x93   :  { %v770_v27 = vld [vmem:[#allocation2 + $0x6a0] sm:$0xff]  ;;  %7419 = vmatpush2.bf16.msra.mxu1 %v11613_v48  ;;  %v1758_v43 = vunpack.c.l.b16 %v540_v35  ;;  %v1742_v50 = vunpack.c.l.b16 %v524_v37  ;;  %v300_v47 = vadd.f32 %v216_v15, %v198_v14  ;;  %v200_v4 = vmax.f32 %v128_v21, 0.0 }
  0x94   :  { %v11606_v29 = vcombine.high %v766_v26, %v770_v27  ;;  %v630_v6 = vld [vmem:[#allocation2 + $0x240] sm:$0xff]  ;;  %v11605_v34 = vcombine.low %v766_v26, %v770_v27  ;;  %7379 = vmatprep.subr.bf16.mxu0 %v11478_v52  ;;  %v1760_v58 = vunpack.c.l.b16 %v542_v38  ;;  %v429_v48 = vadd.f32 %v252_v18, %v234_v16 }
  0x95   :  { %v634_v30 = vld [vmem:[#allocation2 + $0x260] sm:$0xff]  ;;  %7380 = vmatpush2.bf16.msra.mxu0 %v11477_v33  ;;  %v1777_v13 = vsel %vm1776_vm0, %v1758_v43, %v1740_v42  ;;  %v218_v52 = vmax.f32 %v146_v44, 0.0  ;;  %v236_v5 = vmax.f32 %v164_v46, 0.0  ;;  %v254_v28 = vmax.f32 %v182_v2, 0.0 }
  0x96   :  { %v758_v31 = vld [vmem:[#allocation2 + $0x640] sm:$0xff]  ;;  %v11470_v36 = vcombine.high %v630_v6, %v634_v30  ;;  %7420 = vmatprep.subr.bf16.mxu1 %v11606_v29  ;;  %v11469_v8 = vcombine.low %v630_v6, %v634_v30  ;;  %v1779_v17 = vsel %vm1776_vm0, %v1760_v58, %v1742_v50  ;;  %v13808_v23 = vpack.c.b16 %v1777_v13, %v1777_v13 }
  0x97   :  { %v762_v32 = vld [vmem:[#allocation2 + $0x660] sm:$0xff]  ;;  %7421 = vmatpush2.bf16.msra.mxu1 %v11605_v34  ;;  %v13810_v27 = vpack.c.b16 %v1779_v17, %v1779_v17  ;;  %v314_v7 = vadd.f32 %v218_v52, %v200_v4  ;;  %v443_v35 = vadd.f32 %v254_v28, %v236_v5 }
  0x98   :  { %v11598_v39 = vcombine.high %v758_v31, %v762_v32  ;;  %v622_v40 = vld [vmem:[#allocation2 + $0x200] sm:$0xff]  ;;  %7381 = vmatprep.subr.bf16.mxu0 %v11470_v36  ;;  %v11597_v45 = vcombine.low %v758_v31, %v762_v32  ;;  %v301_v31 = vrot.slane %v300_v47, 4  ;;  %v430_v32 = vrot.slane %v429_v48, 4 }
  0x99   :  { %v626_v41 = vld [vmem:[#allocation2 + $0x220] sm:$0xff]  ;;  %7382 = vmatpush2.bf16.msra.mxu0 %v11469_v8 }
  0x9a   :  { %v750_v53 = vld [vmem:[#allocation2 + $0x600] sm:$0xff]  ;;  %v11462_v49 = vcombine.high %v622_v40, %v626_v41  ;;  %7422 = vmatprep.subr.bf16.mxu1 %v11598_v39  ;;  %v11461_v61 = vcombine.low %v622_v40, %v626_v41  ;;  %v302_v37 = vadd.f32 %v301_v31, %v300_v47  ;;  %v431_v38 = vadd.f32 %v430_v32, %v429_v48  ;;  %v127_v31 = vld [vmem:[%s14471_s0 + $0x30] sm:$0xff] }
  0x9b   :  { %v754_v57 = vld [vmem:[#allocation2 + $0x620] sm:$0xff]  ;;  %7423 = vmatpush2.bf16.msra.mxu1 %v11597_v45  ;;  %v315_v41 = vrot.slane %v314_v7, 4 }
  0x9c   :  { %v11590_v54 = vcombine.high %v750_v53, %v754_v57  ;;  %v870_v55 = vld [vmem:[#allocation2 + $0x9c0] sm:$0xff]  ;;  %7383 = vmatprep.subr.bf16.mxu0 %v11462_v49  ;;  %v11589_v62 = vcombine.low %v750_v53, %v754_v57  ;;  %v444_v53 = vrot.slane %v443_v35, 4  ;;  %v303_v43 = vrot.slane %v302_v37, 2 }
  0x9d   :  { %v874_v56 = vld [vmem:[#allocation2 + $0x9e0] sm:$0xff]  ;;  %7384 = vmatpush2.bf16.msra.mxu0 %v11461_v61  ;;  %v432_v45 = vrot.slane %v431_v38, 2  ;;  %v316_v58 = vadd.f32 %v315_v41, %v314_v7 }
  0x9e   :  { %v998_v9 = vld [vmem:[#allocation2 + $0xdc0] sm:$0xff]  ;;  %v11710_v19 = vcombine.high %v870_v55, %v874_v56  ;;  %7424 = vmatprep.subr.bf16.mxu1 %v11590_v54  ;;  %v11709_v3 = vcombine.low %v870_v55, %v874_v56  ;;  %v445_v59 = vadd.f32 %v444_v53, %v443_v35  ;;  %v304_v12 = vadd.f32 %v303_v43, %v302_v37 }
  0x9f   :  { %v1002_v10 = vld [vmem:[#allocation2 + $0xde0] sm:$0xff]  ;;  %7425 = vmatpush2.bf16.msra.mxu1 %v11589_v62  ;;  %v433_v54 = vadd.f32 %v432_v45, %v431_v38  ;;  %v317_v60 = vrot.slane %v316_v58, 2  ;;  %v199_v45 = vmax.f32 %v127_v31, 0.0 }
  0xa0   :  { %v862_v0 = vld [vmem:[#allocation2 + $0x980] sm:$0xff]  ;;  %v11838_v22 = vcombine.high %v998_v9, %v1002_v10  ;;  %v11837_v24 = vcombine.low %v998_v9, %v1002_v10  ;;  %7435 = vmatprep.subr.bf16.mxu0 %v11710_v19  ;;  %7386 = vmatmul.mubr.bf16.vlgmr.msra.gmra.mxu0 %v13808_v23  ;;  %v446_v61 = vrot.slane %v445_v59, 2  ;;  %v305_v14 = vrot.slane %v304_v12, 1 }
  0xa1   :  { %v866_v1 = vld [vmem:[#allocation2 + $0x9a0] sm:$0xff]  ;;  %7436 = vmatpush1.bf16.msra.mxu0 %v11709_v3  ;;  %v434_v15 = vrot.slane %v433_v54, 1  ;;  %v318_v17 = vadd.f32 %v317_v60, %v316_v58 }
  0xa2   :  { %v990_v25 = vld [vmem:[#allocation2 + $0xd80] sm:$0xff]  ;;  %v11702_v51 = vcombine.high %v862_v0, %v866_v1  ;;  %7476 = vmatprep.subr.bf16.mxu1 %v11838_v22  ;;  %7427 = vmatmul.mubr.bf16.vlgmr.msra.gmra.mxu1 %v13810_v27  ;;  %v11701_v36 = vcombine.low %v862_v0, %v866_v1  ;;  %v447_v19 = vadd.f32 %v446_v61, %v445_v59 }
  0xa3   :  { %v994_v26 = vld [vmem:[#allocation2 + $0xda0] sm:$0xff]  ;;  %7477 = vmatpush1.bf16.msra.mxu1 %v11837_v24  ;;  %v306_v18 = vadd.f32 %v305_v14, %v304_v12  ;;  %v435_v21 = vadd.f32 %v434_v15, %v433_v54  ;;  %v319_v24 = vrot.slane %v318_v17, 1 }
  0xa4   :  { %v11830_v29 = vcombine.high %v990_v25, %v994_v26  ;;  %v854_v6 = vld [vmem:[#allocation2 + $0x940] sm:$0xff]  ;;  %7437 = vmatprep.subr.bf16.mxu0 %v11702_v51  ;;  %v11829_v39 = vcombine.low %v990_v25, %v994_v26  ;;  %v448_v25 = vrot.slane %v447_v19, 1  ;;  %v143_v51 = vld [vmem:[%s14471_s0 + $0xb0] sm:$0xff] }
  0xa5   :  { %v858_v30 = vld [vmem:[#allocation2 + $0x960] sm:$0xff]  ;;  %7438 = vmatpush1.bf16.msra.mxu0 %v11701_v36  ;;  %v527_v47 = vpack.c.bf16 %v306_v18, %v306_v18  ;;  %v545_v48 = vpack.c.bf16 %v435_v21, %v435_v21  ;;  %v320_v28 = vadd.f32 %v319_v24, %v318_v17 }
  0xa6   :  { %v982_v33 = vld [vmem:[#allocation2 + $0xd40] sm:$0xff]  ;;  %v11694_v40 = vcombine.high %v854_v6, %v858_v30  ;;  %7478 = vmatprep.subr.bf16.mxu1 %v11830_v29  ;;  %v11693_v11 = vcombine.low %v854_v6, %v858_v30  ;;  %v449_v29 = vadd.f32 %v448_v25, %v447_v19  ;;  %v179_v30 = vld [vmem:[%s14471_s0 + $0x1d0] sm:$0xff] }
  0xa7   :  { %v986_v34 = vld [vmem:[#allocation2 + $0xd60] sm:$0xff]  ;;  %7479 = vmatpush1.bf16.msra.mxu1 %v11829_v39  ;;  %v1763_v7 = vunpack.c.l.b16 %v545_v48  ;;  %v529_v37 = vpack.c.bf16 %v320_v28, %v320_v28 }
  0xa8   :  { %v11822_v57 = vcombine.high %v982_v33, %v986_v34  ;;  %v846_v8 = vld [vmem:[#allocation2 + $0x900] sm:$0xff]  ;;  %7439 = vmatprep.subr.bf16.mxu0 %v11694_v40  ;;  %v11821_v55 = vcombine.low %v982_v33, %v986_v34  ;;  %v1745_v34 = vunpack.c.l.b16 %v527_v47  ;;  %v547_v38 = vpack.c.bf16 %v449_v29, %v449_v29 }
  0xa9   :  { %v850_v42 = vld [vmem:[#allocation2 + $0x920] sm:$0xff]  ;;  %7440 = vmatpush1.bf16.msra.mxu0 %v11693_v11  ;;  %v215_v40 = vmax.f32 %v143_v51, 0.0  ;;  %v1747_v59 = vunpack.c.l.b16 %v529_v37 }
  0xaa   :  { %v974_v49 = vld [vmem:[#allocation2 + $0xd00] sm:$0xff]  ;;  %v11686_v56 = vcombine.high %v846_v8, %v850_v42  ;;  %7480 = vmatprep.subr.bf16.mxu1 %v11822_v57  ;;  %v11685_v0 = vcombine.low %v846_v8, %v850_v42  ;;  %v1782_v53 = vsel %vm1776_vm0, %v1763_v7, %v1745_v34  ;;  %v251_v8 = vmax.f32 %v179_v30, 0.0  ;;  %v163_v42 = vld [vmem:[%s14471_s0 + $0x150] sm:$0xff] }
  0xab   :  { %v978_v50 = vld [vmem:[#allocation2 + $0xd20] sm:$0xff]  ;;  %7481 = vmatpush1.bf16.msra.mxu1 %v11821_v55  ;;  %v13851_v58 = vpack.c.b16 %v1782_v53, %v1782_v53  ;;  %v1765_v11 = vunpack.c.l.b16 %v547_v38  ;;  %v235_v61 = vmax.f32 %v163_v42, 0.0  ;;  %v148_v53 = vld [vmem:[%s14471_s0 + $0xd8] sm:$0xff] }
  0xac   :  { %v11814_v9 = vcombine.high %v974_v49, %v978_v50  ;;  %v838_v10 = vld [vmem:[#allocation2 + $0x8c0] sm:$0xff]  ;;  %7441 = vmatprep.subr.bf16.mxu0 %v11686_v56  ;;  %v11813_v22 = vcombine.low %v974_v49, %v978_v50 }
  0xad   :  { %v842_v13 = vld [vmem:[#allocation2 + $0x8e0] sm:$0xff]  ;;  %7442 = vmatpush1.bf16.msra.mxu0 %v11685_v0  ;;  %v1784_v60 = vsel %vm1776_vm0, %v1765_v11, %v1747_v59  ;;  %7467 = vmatprep.mubr.bf16.mxu0 %v13851_v58 }
  0xae   :  { %v966_v16 = vld [vmem:[#allocation2 + $0xcc0] sm:$0xff]  ;;  %v11678_v44 = vcombine.high %v838_v10, %v842_v13  ;;  %7482 = vmatprep.subr.bf16.mxu1 %v11814_v9  ;;  %v11677_v52 = vcombine.low %v838_v10, %v842_v13  ;;  %v13859_v15 = vpack.c.b16 %v1784_v60, %v1784_v60 }
  0xaf   :  { %v970_v62 = vld [vmem:[#allocation2 + $0xce0] sm:$0xff]  ;;  %7483 = vmatpush1.bf16.msra.mxu1 %v11813_v22 }
  0xb0   :  { %v13814_v1 = vld [vmem:[#allocation2 + $0x880] sm:$0xff]  ;;  %v11806_v26 = vcombine.high %v966_v16, %v970_v62  ;;  %v11805_v5 = vcombine.low %v966_v16, %v970_v62  ;;  %7443 = vmatprep.subr.bf16.mxu0 %v11678_v44  ;;  %7508 = vmatprep.mubr.bf16.mxu1 %v13859_v15 }
  0xb1   :  { %v13816_v46 = vld [vmem:[#allocation2 + $0x8a0] sm:$0xff]  ;;  %7444 = vmatpush1.bf16.msra.mxu0 %v11677_v52 }
  0xb2   :  { %v13818_v2 = vld [vmem:[#allocation2 + $0xc80] sm:$0xff]  ;;  %v11670_v32 = vcombine.high %v13814_v1, %v13816_v46  ;;  %7484 = vmatprep.subr.bf16.mxu1 %v11806_v26  ;;  %v11669_v54 = vcombine.low %v13814_v1, %v13816_v46 }
  0xb3   :  { %v13820_v3 = vld [vmem:[#allocation2 + $0xca0] sm:$0xff]  ;;  %7485 = vmatpush1.bf16.msra.mxu1 %v11805_v5 }
  0xb4   :  { %v125_v4 = vld [vmem:[%s14471_s0 + $0x20] sm:$0xff]  ;;  %v11798_v33 = vcombine.high %v13818_v2, %v13820_v3  ;;  %v11797_v55 = vcombine.low %v13818_v2, %v13820_v3  ;;  %7445 = vmatprep.subr.bf16.mxu0 %v11670_v32  ;;  %v130_v32 = vld [vmem:[%s14471_s0 + $0x48] sm:$0xff] }
  0xb5   :  { %v161_v6 = vld [vmem:[%s14471_s0 + $0x140] sm:$0xff]  ;;  %v197_v39 = vmax.f32 %v125_v4, 0.0  ;;  %7446 = vmatpush1.bf16.msra.mxu0 %v11669_v54 }
  0xb6   :  { %v145_v35 = vld [vmem:[%s14471_s0 + $0xc0] sm:$0xff]  ;;  %v233_v57 = vmax.f32 %v161_v6, 0.0  ;;  %7486 = vmatprep.subr.bf16.mxu1 %v11798_v33 }
  0xb7   :  { %v822_v36 = vld [vmem:[#allocation2 + $0x840] sm:$0xff]  ;;  %v217_v12 = vmax.f32 %v145_v35, 0.0  ;;  %v293_v16 = vadd.f32 %v215_v40, %v197_v39  ;;  %7487 = vmatpush1.bf16.msra.mxu1 %v11797_v55  ;;  %v220_v55 = vmax.f32 %v148_v53, 0.0 }
  0xb8   :  { %v826_v41 = vld [vmem:[#allocation2 + $0x860] sm:$0xff]  ;;  %v422_v19 = vadd.f32 %v251_v8, %v233_v57  ;;  %v166_v57 = vld [vmem:[%s14471_s0 + $0x168] sm:$0xff]  ;;  %v184_v8 = vld [vmem:[%s14471_s0 + $0x1f8] sm:$0xff] }
  0xb9   :  { %v181_v43 = vld [vmem:[%s14471_s0 + $0x1e0] sm:$0xff]  ;;  %v11662_v56 = vcombine.high %v822_v36, %v826_v41  ;;  %v307_v0 = vadd.f32 %v217_v12, %v199_v45  ;;  %v11661_v1 = vcombine.low %v822_v36, %v826_v41  ;;  %v294_v25 = vrot.slane %v293_v16, 4 }
  0xba   :  { %v950_v49 = vld [vmem:[#allocation2 + $0xc40] sm:$0xff]  ;;  %v253_v9 = vmax.f32 %v181_v43, 0.0  ;;  %v423_v26 = vrot.slane %v422_v19, 4  ;;  %v202_v12 = vmax.f32 %v130_v32, 0.0  ;;  %v256_v60 = vmax.f32 %v184_v8, 0.0 }
  0xbb   :  { %v954_v50 = vld [vmem:[#allocation2 + $0xc60] sm:$0xff]  ;;  %7447 = vmatprep.subr.bf16.mxu0 %v11662_v56  ;;  %v308_v47 = vrot.slane %v307_v0, 4  ;;  %v295_v31 = vadd.f32 %v294_v25, %v293_v16  ;;  %v238_v56 = vmax.f32 %v166_v57, 0.0  ;;  %v150_v16 = vld [vmem:[%s14471_s0 + $0xe8] sm:$0xff] }
  0xbc   :  { %v11790_v10 = vcombine.high %v950_v49, %v954_v50  ;;  %v814_v13 = vld [vmem:[#allocation2 + $0x800] sm:$0xff]  ;;  %v11789_v18 = vcombine.low %v950_v49, %v954_v50  ;;  %v436_v46 = vadd.f32 %v253_v9, %v235_v61  ;;  %7448 = vmatpush1.bf16.msra.mxu0 %v11661_v1  ;;  %v424_v33 = vadd.f32 %v423_v26, %v422_v19  ;;  %v132_v50 = vld [vmem:[%s14471_s0 + $0x58] sm:$0xff] }
  0xbd   :  { %v818_v14 = vld [vmem:[#allocation2 + $0x820] sm:$0xff]  ;;  %v309_v34 = vadd.f32 %v308_v47, %v307_v0  ;;  %v296_v49 = vrot.slane %v295_v31, 2  ;;  %v457_v25 = vadd.f32 %v256_v60, %v238_v56  ;;  %v222_v47 = vmax.f32 %v150_v16, 0.0 }
  0xbe   :  { %v942_v62 = vld [vmem:[#allocation2 + $0xc00] sm:$0xff]  ;;  %v11654_v21 = vcombine.high %v814_v13, %v818_v14  ;;  %7488 = vmatprep.subr.bf16.mxu1 %v11790_v10  ;;  %v11653_v48 = vcombine.low %v814_v13, %v818_v14  ;;  %v437_v6 = vrot.slane %v436_v46, 4  ;;  %v425_v59 = vrot.slane %v424_v33, 2 }
  0xbf   :  { %v946_v17 = vld [vmem:[#allocation2 + $0xc20] sm:$0xff]  ;;  %7489 = vmatpush1.bf16.msra.mxu1 %v11789_v18  ;;  %v310_v11 = vrot.slane %v309_v34, 2  ;;  %v186_v18 = vld [vmem:[%s14471_s0 + $0x208] sm:$0xff] }
  0xc0   :  { %v934_v22 = vld [vmem:[#allocation2 + $0xbc0] sm:$0xff]  ;;  %v11782_v2 = vcombine.high %v942_v62, %v946_v17  ;;  %7449 = vmatprep.subr.bf16.mxu0 %v11654_v21  ;;  %v11781_v51 = vcombine.low %v942_v62, %v946_v17  ;;  %v438_v41 = vadd.f32 %v437_v6, %v436_v46  ;;  %v168_v62 = vld [vmem:[%s14471_s0 + $0x178] sm:$0xff]  ;;  %v204_v46 = vmax.f32 %v132_v50, 0.0 }
  0xc1   :  { %v938_v44 = vld [vmem:[#allocation2 + $0xbe0] sm:$0xff]  ;;  %7450 = vmatpush1.bf16.msra.mxu0 %v11653_v48  ;;  %v240_v48 = vmax.f32 %v168_v62, 0.0 }
  0xc2   :  { %v1062_v3 = vld [vmem:[#allocation2 + $0xfc0] sm:$0xff]  ;;  %v11774_v52 = vcombine.high %v934_v22, %v938_v44  ;;  %7490 = vmatprep.subr.bf16.mxu1 %v11782_v2  ;;  %v11773_v7 = vcombine.low %v934_v22, %v938_v44  ;;  %v439_v14 = vrot.slane %v438_v41, 2  ;;  %v297_v44 = vadd.f32 %v296_v49, %v295_v31 }
  0xc3   :  { %v1066_v24 = vld [vmem:[#allocation2 + $0xfe0] sm:$0xff]  ;;  %7491 = vmatpush1.bf16.msra.mxu1 %v11781_v51  ;;  %v426_v2 = vadd.f32 %v425_v59, %v424_v33  ;;  %v342_v32 = vadd.f32 %v222_v47, %v204_v46 }
  0xc4   :  { %v926_v4 = vld [vmem:[#allocation2 + $0xb80] sm:$0xff]  ;;  %v11902_v30 = vcombine.high %v1062_v3, %v1066_v24  ;;  %7451 = vmatprep.subr.bf16.mxu0 %v11774_v52  ;;  %v11901_v37 = vcombine.low %v1062_v3, %v1066_v24  ;;  %v311_v3 = vadd.f32 %v310_v11, %v309_v34  ;;  %v328_v24 = vadd.f32 %v220_v55, %v202_v12 }
  0xc5   :  { %v930_v5 = vld [vmem:[#allocation2 + $0xba0] sm:$0xff]  ;;  %7452 = vmatpush2.bf16.msra.mxu0 %v11773_v7  ;;  %v440_v26 = vadd.f32 %v439_v14, %v438_v41  ;;  %v343_v41 = vrot.slane %v342_v32, 4 }
  0xc6   :  { %v1054_v28 = vld [vmem:[#allocation2 + $0xf80] sm:$0xff]  ;;  %v11766_v38 = vcombine.high %v926_v4, %v930_v5  ;;  %7492 = vmatprep.subr.bf16.mxu1 %v11902_v30  ;;  %v11765_v54 = vcombine.low %v926_v4, %v930_v5  ;;  %v258_v4 = vmax.f32 %v186_v18, 0.0  ;;  %v329_v5 = vrot.slane %v328_v24, 4 }
  0xc7   :  { %v1058_v29 = vld [vmem:[#allocation2 + $0xfa0] sm:$0xff]  ;;  %7493 = vmatpush2.bf16.msra.mxu1 %v11901_v37  ;;  %v344_v11 = vadd.f32 %v343_v41, %v342_v32 }
  0xc8   :  { %v13865_v35 = vld [vmem:[#allocation2 + $0xb40] sm:$0xff]  ;;  %v11894_v42 = vcombine.high %v1054_v28, %v1058_v29  ;;  %7453 = vmatprep.subr.bf16.mxu0 %v11766_v38  ;;  %v11893_v61 = vcombine.low %v1054_v28, %v1058_v29  ;;  %v458_v28 = vrot.slane %v457_v25, 4  ;;  %v471_v33 = vadd.f32 %v258_v4, %v240_v48 }
  0xc9   :  { %v13867_v36 = vld [vmem:[#allocation2 + $0xb60] sm:$0xff]  ;;  %7454 = vmatpush2.bf16.msra.mxu0 %v11765_v54  ;;  %v330_v37 = vadd.f32 %v329_v5, %v328_v24  ;;  %v345_v14 = vrot.slane %v344_v11, 2 }
  0xca   :  { %v13869_v39 = vld [vmem:[#allocation2 + $0xf40] sm:$0xff]  ;;  %v11758_v9 = vcombine.high %v13865_v35, %v13867_v36  ;;  %7494 = vmatprep.subr.bf16.mxu1 %v11894_v42  ;;  %v11757_v17 = vcombine.low %v13865_v35, %v13867_v36  ;;  %v298_v35 = vrot.slane %v297_v44, 1  ;;  %v427_v36 = vrot.slane %v426_v2, 1 }
  0xcb   :  { %v13871_v40 = vld [vmem:[#allocation2 + $0xf60] sm:$0xff]  ;;  %7495 = vmatpush2.bf16.msra.mxu1 %v11893_v61  ;;  %v459_v38 = vadd.f32 %v458_v28, %v457_v25  ;;  %v472_v53 = vrot.slane %v471_v33, 4  ;;  %v331_v42 = vrot.slane %v330_v37, 2 }
  0xcc   :  { %v13882_v43 = vld [vmem:[#allocation2 + $0xb00] sm:$0xff]  ;;  %v11886_v19 = vcombine.high %v13869_v39, %v13871_v40  ;;  %v11885_v21 = vcombine.low %v13869_v39, %v13871_v40  ;;  %7455 = vmatprep.subr.bf16.mxu0 %v11758_v9  ;;  %v312_v39 = vrot.slane %v311_v3, 1  ;;  %v441_v40 = vrot.slane %v440_v26, 1 }
  0xcd   :  { %v13884_v45 = vld [vmem:[#allocation2 + $0xb20] sm:$0xff]  ;;  %7456 = vmatpush2.bf16.msra.mxu0 %v11757_v17  ;;  %v473_v12 = vadd.f32 %v472_v53, %v471_v33  ;;  %v299_v56 = vadd.f32 %v298_v35, %v297_v44  ;;  %v428_v60 = vadd.f32 %v427_v36, %v426_v2  ;;  %v332_v61 = vadd.f32 %v331_v42, %v330_v37 }
  0xce   :  { %v13891_v10 = vld [vmem:[#allocation2 + $0xf00] sm:$0xff]  ;;  %v11750_v22 = vcombine.high %v13882_v43, %v13884_v45  ;;  %7496 = vmatprep.subr.bf16.mxu1 %v11886_v19  ;;  %v11749_v51 = vcombine.low %v13882_v43, %v13884_v45  ;;  %v460_v43 = vrot.slane %v459_v38, 2  ;;  %v346_v44 = vadd.f32 %v345_v14, %v344_v11 }
  0xcf   :  { %v13893_v13 = vld [vmem:[#allocation2 + $0xf20] sm:$0xff]  ;;  %7497 = vmatpush2.bf16.msra.mxu1 %v11885_v21  ;;  %v474_v16 = vrot.slane %v473_v12, 2  ;;  %v333_v19 = vrot.slane %v332_v61, 1  ;;  %v526_v2 = vpack.c.bf16 %v299_v56, %v299_v56 }
  0xd0   :  { %v13905_v0 = vld [vmem:[#allocation2 + $0xac0] sm:$0xff]  ;;  %v11878_v52 = vcombine.high %v13891_v10, %v13893_v13  ;;  %v11877_v29 = vcombine.low %v13891_v10, %v13893_v13  ;;  %7457 = vmatprep.subr.bf16.mxu0 %v11750_v22  ;;  %v461_v9 = vadd.f32 %v460_v43, %v459_v38  ;;  %v313_v10 = vadd.f32 %v312_v39, %v311_v3 }
  0xd1   :  { %v13907_v1 = vld [vmem:[#allocation2 + $0xae0] sm:$0xff]  ;;  %7458 = vmatpush2.bf16.msra.mxu0 %v11749_v51  ;;  %v442_v13 = vadd.f32 %v441_v40, %v440_v26  ;;  %v475_v46 = vadd.f32 %v474_v16, %v473_v12  ;;  %v544_v3 = vpack.c.bf16 %v428_v60, %v428_v60  ;;  %v334_v24 = vadd.f32 %v333_v19, %v332_v61 }
  0xd2   :  { %v11742_v6 = vcombine.high %v13905_v0, %v13907_v1  ;;  %v1030_v30 = vld [vmem:[#allocation2 + $0xec0] sm:$0xff]  ;;  %7498 = vmatprep.subr.bf16.mxu1 %v11878_v52  ;;  %v11741_v57 = vcombine.low %v13905_v0, %v13907_v1  ;;  %v462_v0 = vrot.slane %v461_v9, 1  ;;  %v528_v4 = vpack.c.bf16 %v313_v10, %v313_v10 }
  0xd3   :  { %v1034_v31 = vld [vmem:[#allocation2 + $0xee0] sm:$0xff]  ;;  %7499 = vmatpush2.bf16.msra.mxu1 %v11877_v29  ;;  %v546_v51 = vpack.c.bf16 %v442_v13, %v442_v13  ;;  %v347_v52 = vrot.slane %v346_v44, 1  ;;  %v476_v5 = vrot.slane %v475_v46, 1  ;;  %v1744_v35 = vunpack.c.l.b16 %v526_v2 }
  0xd4   :  { %v13924_v34 = vld [vmem:[#allocation2 + $0xa80] sm:$0xff]  ;;  %v11870_v8 = vcombine.high %v1030_v30, %v1034_v31  ;;  %v11869_v45 = vcombine.low %v1030_v30, %v1034_v31  ;;  %7459 = vmatprep.subr.bf16.mxu0 %v11742_v6  ;;  %v463_v25 = vadd.f32 %v462_v0, %v461_v9  ;;  %v531_v30 = vpack.c.bf16 %v334_v24, %v334_v24 }
  0xd5   :  { %v13926_v7 = vld [vmem:[#allocation2 + $0xaa0] sm:$0xff]  ;;  %7460 = vmatpush2.bf16.msra.mxu0 %v11741_v57  ;;  %v348_v32 = vadd.f32 %v347_v52, %v346_v44  ;;  %v477_v33 = vadd.f32 %v476_v5, %v475_v46  ;;  %v1762_v36 = vunpack.c.l.b16 %v544_v3  ;;  %v1746_v37 = vunpack.c.l.b16 %v528_v4 }
  0xd6   :  { %v11734_v49 = vcombine.high %v13924_v34, %v13926_v7  ;;  %v1022_v50 = vld [vmem:[#allocation2 + $0xe80] sm:$0xff]  ;;  %7500 = vmatprep.subr.bf16.mxu1 %v11870_v8  ;;  %v11733_v62 = vcombine.low %v13924_v34, %v13926_v7  ;;  %v549_v31 = vpack.c.bf16 %v463_v25, %v463_v25  ;;  %v1764_v38 = vunpack.c.l.b16 %v546_v51 }
  0xd7   :  { %v1026_v59 = vld [vmem:[#allocation2 + $0xea0] sm:$0xff]  ;;  %7501 = vmatpush2.bf16.msra.mxu1 %v11869_v45  ;;  %v533_v53 = vpack.c.bf16 %v348_v32, %v348_v32  ;;  %v551_v57 = vpack.c.bf16 %v477_v33, %v477_v33  ;;  %v1749_v43 = vunpack.c.l.b16 %v531_v30 }
  0xd8   :  { %v13932_v54 = vld [vmem:[#allocation2 + $0xa40] sm:$0xff]  ;;  %v11862_v17 = vcombine.high %v1022_v50, %v1026_v59  ;;  %v11861_v1 = vcombine.low %v1022_v50, %v1026_v59  ;;  %7461 = vmatprep.subr.bf16.mxu0 %v11734_v49  ;;  %v1767_v45 = vunpack.c.l.b16 %v549_v31  ;;  %v1781_v50 = vsel %vm1776_vm0, %v1762_v36, %v1744_v35 }
  0xd9   :  { %v13934_v55 = vld [vmem:[#allocation2 + $0xa60] sm:$0xff]  ;;  %7462 = vmatpush2.bf16.msra.mxu0 %v11733_v62  ;;  %v1751_v59 = vunpack.c.l.b16 %v533_v53  ;;  %v1769_v11 = vunpack.c.l.b16 %v551_v57  ;;  %v13944_v13 = vpack.c.b16 %v1781_v50, %v1781_v50 }
  0xda   :  { %v11726_v18 = vcombine.high %v13932_v54, %v13934_v55  ;;  %v1014_v21 = vld [vmem:[#allocation2 + $0xe40] sm:$0xff]  ;;  %7502 = vmatprep.subr.bf16.mxu1 %v11862_v17  ;;  %v11725_v28 = vcombine.low %v13932_v54, %v13934_v55  ;;  %v1783_v54 = vsel %vm1776_vm0, %v1764_v38, %v1746_v37  ;;  %v1786_v14 = vsel %vm1776_vm0, %v1767_v45, %v1749_v43 }
  0xdb   :  { %v1018_v22 = vld [vmem:[#allocation2 + $0xe60] sm:$0xff]  ;;  %7503 = vmatpush2.bf16.msra.mxu1 %v11861_v1  ;;  %v13947_v16 = vpack.c.b16 %v1783_v54, %v1783_v54  ;;  %v1788_v17 = vsel %vm1776_vm0, %v1769_v11, %v1751_v59  ;;  %v13950_v46 = vpack.c.b16 %v1786_v14, %v1786_v14  ;;  %v183_v59 = vld [vmem:[%s14471_s0 + $0x1f0] sm:$0xff]  ;;  %v134_v14 = vld [vmem:[%s14471_s0 + $0x68] sm:$0xff] }
  0xdc   :  { %v878_v26 = vld [vmem:[#allocation2 + $0xa00] sm:$0xff]  ;;  %v11854_v29 = vcombine.high %v1014_v21, %v1018_v22  ;;  %v11853_v34 = vcombine.low %v1014_v21, %v1018_v22  ;;  %7463 = vmatprep.subr.bf16.mxu0 %v11726_v18  ;;  %v13953_v2 = vpack.c.b16 %v1788_v17, %v1788_v17  ;;  %v131_v11 = vld [vmem:[%s14471_s0 + $0x50] sm:$0xff] }
  0xdd   :  { %v882_v47 = vld [vmem:[#allocation2 + $0xa20] sm:$0xff]  ;;  %7464 = vmatpush2.bf16.msra.mxu0 %v11725_v28 }
  0xde   :  { %v1006_v48 = vld [vmem:[#allocation2 + $0xe00] sm:$0xff]  ;;  %v11718_v7 = vcombine.high %v878_v26, %v882_v47  ;;  %7504 = vmatprep.subr.bf16.mxu1 %v11854_v29  ;;  %v11717_v49 = vcombine.low %v878_v26, %v882_v47 }
  0xdf   :  { %v1010_v6 = vld [vmem:[#allocation2 + $0xe20] sm:$0xff]  ;;  %7505 = vmatpush2.bf16.msra.mxu1 %v11853_v34 }
  0xe0   :  { %v1126_v39 = vld [vmem:[#allocation2 + $0x11c0] sm:$0xff]  ;;  %v11846_v8 = vcombine.high %v1006_v48, %v1010_v6  ;;  %7465 = vmatprep.subr.bf16.mxu0 %v11718_v7  ;;  %v11845_v12 = vcombine.low %v1006_v48, %v1010_v6 }
  0xe1   :  { %v1130_v40 = vld [vmem:[#allocation2 + $0x11e0] sm:$0xff]  ;;  %7466 = vmatpush2.bf16.msra.mxu0 %v11717_v49 }
  0xe2   :  { %v1254_v41 = vld [vmem:[#allocation2 + $0x15c0] sm:$0xff]  ;;  %v11966_v55 = vcombine.high %v1126_v39, %v1130_v40  ;;  %7506 = vmatprep.subr.bf16.mxu1 %v11846_v8  ;;  %v11965_v62 = vcombine.low %v1126_v39, %v1130_v40 }
  0xe3   :  { %v1258_v42 = vld [vmem:[#allocation2 + $0x15e0] sm:$0xff]  ;;  %7507 = vmatpush2.bf16.msra.mxu1 %v11845_v12 }
  0xe4   :  { %v1118_v56 = vld [vmem:[#allocation2 + $0x1180] sm:$0xff]  ;;  %v12094_v9 = vcombine.high %v1254_v41, %v1258_v42  ;;  %7517 = vmatprep.subr.bf16.mxu0 %v11966_v55  ;;  %v12093_v19 = vcombine.low %v1254_v41, %v1258_v42  ;;  %7468 = vmatmul.mubr.bf16.vlgmr.msra.gmra.mxu0 %v13944_v13  ;;  %v147_v41 = vld [vmem:[%s14471_s0 + $0xd0] sm:$0xff] }
  0xe5   :  { %v1122_v60 = vld [vmem:[#allocation2 + $0x11a0] sm:$0xff]  ;;  %7518 = vmatpush1.bf16.msra.mxu0 %v11965_v62  ;;  %7549 = vmatprep.mubr.bf16.mxu0 %v13950_v46  ;;  %v167_v55 = vld [vmem:[%s14471_s0 + $0x170] sm:$0xff]  ;;  %v152_v62 = vld [vmem:[%s14471_s0 + $0xf8] sm:$0xff] }
  0xe6   :  { %v1246_v61 = vld [vmem:[#allocation2 + $0x1580] sm:$0xff]  ;;  %v11958_v0 = vcombine.high %v1118_v56, %v1122_v60  ;;  %7558 = vmatprep.subr.bf16.mxu1 %v12094_v9  ;;  %7509 = vmatmul.mubr.bf16.vlgmr.msra.gmra.mxu1 %v13947_v16  ;;  %v11957_v3 = vcombine.low %v1118_v56, %v1122_v60 }
  0xe7   :  { %v1250_v10 = vld [vmem:[#allocation2 + $0x15a0] sm:$0xff]  ;;  %7559 = vmatpush1.bf16.msra.mxu1 %v12093_v19  ;;  %7590 = vmatprep.mubr.bf16.mxu1 %v13953_v2 }
  0xe8   :  { %v1110_v1 = vld [vmem:[#allocation2 + $0x1140] sm:$0xff]  ;;  %v12086_v21 = vcombine.high %v1246_v61, %v1250_v10  ;;  %7519 = vmatprep.subr.bf16.mxu0 %v11958_v0  ;;  %v12085_v24 = vcombine.low %v1246_v61, %v1250_v10  ;;  %v219_v10 = vmax.f32 %v147_v41, 0.0 }
  0xe9   :  { %v1114_v18 = vld [vmem:[#allocation2 + $0x1160] sm:$0xff]  ;;  %7520 = vmatpush1.bf16.msra.mxu0 %v11957_v3  ;;  %v136_v3 = vld [vmem:[%s14471_s0 + $0x78] sm:$0xff] }
  0xea   :  { %v1238_v22 = vld [vmem:[#allocation2 + $0x1540] sm:$0xff]  ;;  %v11950_v25 = vcombine.high %v1110_v1, %v1114_v18  ;;  %7560 = vmatprep.subr.bf16.mxu1 %v12086_v21  ;;  %v11949_v52 = vcombine.low %v1110_v1, %v1114_v18  ;;  %v255_v18 = vmax.f32 %v183_v59, 0.0  ;;  %v203_v21 = vmax.f32 %v131_v11, 0.0 }
  0xeb   :  { %v1242_v44 = vld [vmem:[#allocation2 + $0x1560] sm:$0xff]  ;;  %7561 = vmatpush1.bf16.msra.mxu1 %v12085_v24 }
  0xec   :  { %v1102_v26 = vld [vmem:[#allocation2 + $0x1100] sm:$0xff]  ;;  %v12078_v4 = vcombine.high %v1238_v22, %v1242_v44  ;;  %7521 = vmatprep.subr.bf16.mxu0 %v11950_v25  ;;  %v12077_v5 = vcombine.low %v1238_v22, %v1242_v44  ;;  %v170_v22 = vld [vmem:[%s14471_s0 + $0x188] sm:$0xff]  ;;  %v188_v44 = vld [vmem:[%s14471_s0 + $0x218] sm:$0xff] }
  0xed   :  { %v1106_v47 = vld [vmem:[#allocation2 + $0x1120] sm:$0xff]  ;;  %7522 = vmatpush1.bf16.msra.mxu0 %v11949_v52 }
  0xee   :  { %v1230_v48 = vld [vmem:[#allocation2 + $0x1500] sm:$0xff]  ;;  %v11942_v28 = vcombine.high %v1102_v26, %v1106_v47  ;;  %7562 = vmatprep.subr.bf16.mxu1 %v12078_v4  ;;  %v11941_v33 = vcombine.low %v1102_v26, %v1106_v47  ;;  %v239_v26 = vmax.f32 %v167_v55, 0.0  ;;  %v172_v4 = vld [vmem:[%s14471_s0 + $0x198] sm:$0xff] }
  0xef   :  { %v1234_v51 = vld [vmem:[#allocation2 + $0x1520] sm:$0xff]  ;;  %7563 = vmatpush1.bf16.msra.mxu1 %v12077_v5 }
  0xf0   :  { %v1094_v29 = vld [vmem:[#allocation2 + $0x10c0] sm:$0xff]  ;;  %v12070_v31 = vcombine.high %v1230_v48, %v1234_v51  ;;  %7523 = vmatprep.subr.bf16.mxu0 %v11942_v28  ;;  %v12069_v7 = vcombine.low %v1230_v48, %v1234_v51  ;;  %v154_v48 = vld [vmem:[%s14471_s0 + $0x108] sm:$0xff] }
  0xf1   :  { %v1098_v6 = vld [vmem:[#allocation2 + $0x10e0] sm:$0xff]  ;;  %7524 = vmatpush1.bf16.msra.mxu0 %v11941_v33  ;;  %v190_v51 = vld [vmem:[%s14471_s0 + $0x228] sm:$0xff]  ;;  %v260_v33 = vmax.f32 %v188_v44, 0.0 }
  0xf2   :  { %v1222_v30 = vld [vmem:[#allocation2 + $0x14c0] sm:$0xff]  ;;  %v11934_v35 = vcombine.high %v1094_v29, %v1098_v6  ;;  %7564 = vmatprep.subr.bf16.mxu1 %v12070_v31  ;;  %v11933_v8 = vcombine.low %v1094_v29, %v1098_v6  ;;  %v206_v6 = vmax.f32 %v134_v14, 0.0 }
  0xf3   :  { %v1226_v32 = vld [vmem:[#allocation2 + $0x14e0] sm:$0xff]  ;;  %7565 = vmatpush1.bf16.msra.mxu1 %v12069_v7 }
  0xf4   :  { %v13958_v34 = vld [vmem:[#allocation2 + $0x1080] sm:$0xff]  ;;  %v12062_v39 = vcombine.high %v1222_v30, %v1226_v32  ;;  %7525 = vmatprep.subr.bf16.mxu0 %v11934_v35  ;;  %v12061_v42 = vcombine.low %v1222_v30, %v1226_v32  ;;  %v224_v30 = vmax.f32 %v152_v62, 0.0  ;;  %v242_v32 = vmax.f32 %v170_v22, 0.0 }
  0xf5   :  { %v1090_v36 = vld [vmem:[#allocation2 + $0x10a0] sm:$0xff]  ;;  %7526 = vmatpush1.bf16.msra.mxu0 %v11933_v8  ;;  %v226_v35 = vmax.f32 %v154_v48, 0.0 }
  0xf6   :  { %v13960_v37 = vld [vmem:[#allocation2 + $0x1480] sm:$0xff]  ;;  %v11926_v43 = vcombine.high %v13958_v34, %v1090_v36  ;;  %7566 = vmatprep.subr.bf16.mxu1 %v12062_v39  ;;  %v11925_v60 = vcombine.low %v13958_v34, %v1090_v36  ;;  %v208_v34 = vmax.f32 %v136_v3, 0.0  ;;  %v244_v36 = vmax.f32 %v172_v4, 0.0 }
  0xf7   :  { %v13962_v38 = vld [vmem:[#allocation2 + $0x14a0] sm:$0xff]  ;;  %7567 = vmatpush1.bf16.msra.mxu1 %v12061_v42 }
  0xf8   :  { %v129_v40 = vld [vmem:[%s14471_s0 + $0x40] sm:$0xff]  ;;  %v12054_v12 = vcombine.high %v13960_v37, %v13962_v38  ;;  %v12053_v61 = vcombine.low %v13960_v37, %v13962_v38  ;;  %7527 = vmatprep.subr.bf16.mxu0 %v11926_v43  ;;  %v262_v37 = vmax.f32 %v190_v51, 0.0  ;;  %v370_v11 = vadd.f32 %v226_v35, %v208_v34 }
  0xf9   :  { %v13970_v53 = vld [vmem:[#allocation2 + $0x1040] sm:$0xff]  ;;  %v201_v9 = vmax.f32 %v129_v40, 0.0  ;;  %7528 = vmatpush1.bf16.msra.mxu0 %v11925_v60 }
  0xfa   :  { %v13972_v57 = vld [vmem:[#allocation2 + $0x1060] sm:$0xff]  ;;  %7568 = vmatprep.subr.bf16.mxu1 %v12054_v12  ;;  %v499_v12 = vadd.f32 %v262_v37, %v244_v36  ;;  %v371_v22 = vrot.slane %v370_v11, 4 }
  0xfb   :  { %v13975_v45 = vld [vmem:[#allocation2 + $0x1440] sm:$0xff]  ;;  %v11917_v17 = vcombine.low %v13970_v53, %v13972_v57  ;;  %v11918_v24 = vcombine.high %v13970_v53, %v13972_v57  ;;  %v321_v31 = vadd.f32 %v219_v10, %v201_v9  ;;  %7569 = vmatpush1.bf16.msra.mxu1 %v12053_v61 }
  0xfc   :  { %v13977_v49 = vld [vmem:[#allocation2 + $0x1460] sm:$0xff]  ;;  %v500_v44 = vrot.slane %v499_v12, 4 }
  0xfd   :  { %v165_v50 = vld [vmem:[%s14471_s0 + $0x160] sm:$0xff]  ;;  %v12045_v52 = vcombine.low %v13975_v45, %v13977_v49  ;;  %v12046_v5 = vcombine.high %v13975_v45, %v13977_v49  ;;  %7529 = vmatprep.subr.bf16.mxu0 %v11918_v24  ;;  %v356_v45 = vadd.f32 %v224_v30, %v206_v6  ;;  %v485_v49 = vadd.f32 %v260_v33, %v242_v32 }
  0xfe   :  { %v149_v54 = vld [vmem:[%s14471_s0 + $0xe0] sm:$0xff]  ;;  %v237_v1 = vmax.f32 %v165_v50, 0.0  ;;  %7530 = vmatpush1.bf16.msra.mxu0 %v11917_v17  ;;  %v322_v50 = vrot.slane %v321_v31, 4  ;;  %v372_v30 = vadd.f32 %v371_v22, %v370_v11 }
  0xff   :  { %v185_v56 = vld [vmem:[%s14471_s0 + $0x200] sm:$0xff]  ;;  %v221_v25 = vmax.f32 %v149_v54, 0.0  ;;  %7570 = vmatprep.subr.bf16.mxu1 %v12046_v5  ;;  %v486_v17 = vrot.slane %v485_v49, 4 }
 0x100   :  { %v14010_v19 = vld [vmem:[#allocation2 + $0x1000] sm:$0xff]  ;;  %v257_v47 = vmax.f32 %v185_v56, 0.0  ;;  %v450_v7 = vadd.f32 %v255_v18, %v237_v1  ;;  %7571 = vmatpush1.bf16.msra.mxu1 %v12045_v52  ;;  %v357_v1 = vrot.slane %v356_v45, 4  ;;  %v323_v18 = vadd.f32 %v322_v50, %v321_v31 }
 0x101   :  { %v14012_v0 = vld [vmem:[#allocation2 + $0x1020] sm:$0xff]  ;;  %v335_v53 = vadd.f32 %v221_v25, %v203_v21  ;;  %v501_v31 = vadd.f32 %v500_v44, %v499_v12 }
 0x102   :  { %v1198_v28 = vld [vmem:[#allocation2 + $0x1400] sm:$0xff]  ;;  %v11910_v38 = vcombine.high %v14010_v19, %v14012_v0  ;;  %v464_v57 = vadd.f32 %v257_v47, %v239_v26  ;;  %v11909_v43 = vcombine.low %v14010_v19, %v14012_v0  ;;  %v451_v59 = vrot.slane %v450_v7, 4 }
 0x103   :  { %v1202_v29 = vld [vmem:[#allocation2 + $0x1420] sm:$0xff]  ;;  %v336_v9 = vrot.slane %v335_v53, 4  ;;  %v358_v5 = vadd.f32 %v357_v1, %v356_v45  ;;  %v502_v45 = vrot.slane %v501_v31, 2 }
 0x104   :  { %v1190_v39 = vld [vmem:[#allocation2 + $0x13c0] sm:$0xff]  ;;  %v12038_v8 = vcombine.high %v1198_v28, %v1202_v29  ;;  %7531 = vmatprep.subr.bf16.mxu0 %v11910_v38  ;;  %v12037_v54 = vcombine.low %v1198_v28, %v1202_v29  ;;  %v465_v10 = vrot.slane %v464_v57, 4  ;;  %v452_v21 = vadd.f32 %v451_v59, %v450_v7 }
 0x105   :  { %v1194_v40 = vld [vmem:[#allocation2 + $0x13e0] sm:$0xff]  ;;  %7532 = vmatpush1.bf16.msra.mxu0 %v11909_v43  ;;  %v337_v47 = vadd.f32 %v336_v9, %v335_v53  ;;  %v487_v28 = vadd.f32 %v486_v17, %v485_v49  ;;  %v324_v29 = vrot.slane %v323_v18, 2  ;;  %v359_v53 = vrot.slane %v358_v5, 2 }
 0x106   :  { %v1318_v41 = vld [vmem:[#allocation2 + $0x17c0] sm:$0xff]  ;;  %v12030_v55 = vcombine.high %v1190_v39, %v1194_v40  ;;  %7572 = vmatprep.subr.bf16.mxu1 %v12038_v8  ;;  %v12029_v19 = vcombine.low %v1190_v39, %v1194_v40  ;;  %v466_v48 = vadd.f32 %v465_v10, %v464_v57  ;;  %v453_v6 = vrot.slane %v452_v21, 2 }
 0x107   :  { %v1322_v42 = vld [vmem:[#allocation2 + $0x17e0] sm:$0xff]  ;;  %7573 = vmatpush1.bf16.msra.mxu1 %v12037_v54  ;;  %v338_v36 = vrot.slane %v337_v47, 2  ;;  %v488_v57 = vrot.slane %v487_v28, 2  ;;  %v325_v8 = vadd.f32 %v324_v29, %v323_v18  ;;  %v373_v43 = vrot.slane %v372_v30, 2 }
 0x108   :  { %v1182_v56 = vld [vmem:[#allocation2 + $0x1380] sm:$0xff]  ;;  %v12158_v14 = vcombine.high %v1318_v41, %v1322_v42  ;;  %v12157_v0 = vcombine.low %v1318_v41, %v1322_v42  ;;  %7533 = vmatprep.subr.bf16.mxu0 %v12030_v55  ;;  %v467_v37 = vrot.slane %v466_v48, 2  ;;  %v454_v42 = vadd.f32 %v453_v6, %v452_v21 }
 0x109   :  { %v1186_v60 = vld [vmem:[#allocation2 + $0x13a0] sm:$0xff]  ;;  %7534 = vmatpush2.bf16.msra.mxu0 %v12029_v19  ;;  %v339_v12 = vadd.f32 %v338_v36, %v337_v47  ;;  %v489_v9 = vadd.f32 %v488_v57, %v487_v28  ;;  %v326_v10 = vrot.slane %v325_v8, 1  ;;  %v503_v19 = vadd.f32 %v502_v45, %v501_v31 }
 0x10a   :  { %v1310_v61 = vld [vmem:[#allocation2 + $0x1780] sm:$0xff]  ;;  %v12022_v3 = vcombine.high %v1182_v56, %v1186_v60  ;;  %7574 = vmatprep.subr.bf16.mxu1 %v12158_v14  ;;  %v12021_v52 = vcombine.low %v1182_v56, %v1186_v60  ;;  %v468_v54 = vadd.f32 %v467_v37, %v466_v48  ;;  %v455_v14 = vrot.slane %v454_v42, 1 }
 0x10b   :  { %v1314_v62 = vld [vmem:[#allocation2 + $0x17a0] sm:$0xff]  ;;  %7575 = vmatpush2.bf16.msra.mxu1 %v12157_v0  ;;  %v340_v22 = vrot.slane %v339_v12, 1  ;;  %v490_v48 = vrot.slane %v489_v9, 1 }
 0x10c   :  { %v1174_v24 = vld [vmem:[#allocation2 + $0x1340] sm:$0xff]  ;;  %v12150_v4 = vcombine.high %v1310_v61, %v1314_v62  ;;  %7535 = vmatprep.subr.bf16.mxu0 %v12022_v3  ;;  %v12149_v32 = vcombine.low %v1310_v61, %v1314_v62  ;;  %v360_v61 = vadd.f32 %v359_v53, %v358_v5  ;;  %v374_v62 = vadd.f32 %v373_v43, %v372_v30 }
 0x10d   :  { %v1178_v25 = vld [vmem:[#allocation2 + $0x1360] sm:$0xff]  ;;  %7536 = vmatpush2.bf16.msra.mxu0 %v12021_v52  ;;  %v469_v44 = vrot.slane %v468_v54, 1  ;;  %v504_v5 = vrot.slane %v503_v19, 1  ;;  %v341_v31 = vadd.f32 %v340_v22, %v339_v12  ;;  %v491_v37 = vadd.f32 %v490_v48, %v489_v9 }
 0x10e   :  { %v1302_v26 = vld [vmem:[#allocation2 + $0x1740] sm:$0xff]  ;;  %v12014_v33 = vcombine.high %v1174_v24, %v1178_v25  ;;  %7576 = vmatprep.subr.bf16.mxu1 %v12150_v4  ;;  %v12013_v40 = vcombine.low %v1174_v24, %v1178_v25  ;;  %v361_v47 = vrot.slane %v360_v61, 1  ;;  %v327_v4 = vadd.f32 %v326_v10, %v325_v8 }
 0x10f   :  { %v1306_v51 = vld [vmem:[#allocation2 + $0x1760] sm:$0xff]  ;;  %7577 = vmatpush2.bf16.msra.mxu1 %v12149_v32  ;;  %v375_v52 = vrot.slane %v374_v62, 1  ;;  %v470_v32 = vadd.f32 %v469_v44, %v468_v54  ;;  %v532_v43 = vpack.c.bf16 %v341_v31, %v341_v31  ;;  %v553_v12 = vpack.c.bf16 %v491_v37, %v491_v37 }
 0x110   :  { %v1166_v34 = vld [vmem:[#allocation2 + $0x1300] sm:$0xff]  ;;  %v12142_v38 = vcombine.high %v1302_v26, %v1306_v51  ;;  %v12141_v41 = vcombine.low %v1302_v26, %v1306_v51  ;;  %7537 = vmatprep.subr.bf16.mxu0 %v12014_v33  ;;  %v456_v51 = vadd.f32 %v455_v14, %v454_v42  ;;  %v362_v36 = vadd.f32 %v361_v47, %v360_v61 }
 0x111   :  { %v1170_v7 = vld [vmem:[#allocation2 + $0x1320] sm:$0xff]  ;;  %7538 = vmatpush2.bf16.msra.mxu0 %v12013_v40  ;;  %v376_v40 = vadd.f32 %v375_v52, %v374_v62  ;;  %v550_v45 = vpack.c.bf16 %v470_v32, %v470_v32  ;;  %v1750_v10 = vunpack.c.l.b16 %v532_v43 }
 0x112   :  { %v1294_v35 = vld [vmem:[#allocation2 + $0x1700] sm:$0xff]  ;;  %v12006_v49 = vcombine.high %v1166_v34, %v1170_v7  ;;  %7578 = vmatprep.subr.bf16.mxu1 %v12142_v38  ;;  %v12005_v60 = vcombine.low %v1166_v34, %v1170_v7  ;;  %v530_v38 = vpack.c.bf16 %v327_v4, %v327_v4 }
 0x113   :  { %v1298_v39 = vld [vmem:[#allocation2 + $0x1720] sm:$0xff]  ;;  %7579 = vmatpush2.bf16.msra.mxu1 %v12141_v41  ;;  %v505_v41 = vadd.f32 %v504_v5, %v503_v19  ;;  %v1768_v14 = vunpack.c.l.b16 %v550_v45 }
 0x114   :  { %v1158_v50 = vld [vmem:[#allocation2 + $0x12c0] sm:$0xff]  ;;  %v12134_v55 = vcombine.high %v1294_v35, %v1298_v39  ;;  %7539 = vmatprep.subr.bf16.mxu0 %v12006_v49  ;;  %v12133_v0 = vcombine.low %v1294_v35, %v1298_v39  ;;  %v548_v39 = vpack.c.bf16 %v456_v51, %v456_v51  ;;  %v1748_v54 = vunpack.c.l.b16 %v530_v38 }
 0x115   :  { %v1162_v59 = vld [vmem:[#allocation2 + $0x12e0] sm:$0xff]  ;;  %7540 = vmatpush2.bf16.msra.mxu0 %v12005_v60  ;;  %v555_v60 = vpack.c.bf16 %v505_v41, %v505_v41 }
 0x116   :  { %v1286_v11 = vld [vmem:[#allocation2 + $0x16c0] sm:$0xff]  ;;  %v11998_v1 = vcombine.high %v1158_v50, %v1162_v59  ;;  %7580 = vmatprep.subr.bf16.mxu1 %v12134_v55  ;;  %v11997_v25 = vcombine.low %v1158_v50, %v1162_v59  ;;  %v1766_v55 = vunpack.c.l.b16 %v548_v39 }
 0x117   :  { %v1290_v56 = vld [vmem:[#allocation2 + $0x16e0] sm:$0xff]  ;;  %7581 = vmatpush2.bf16.msra.mxu1 %v12133_v0 }
 0x118   :  { %v1150_v17 = vld [vmem:[#allocation2 + $0x1280] sm:$0xff]  ;;  %v12126_v3 = vcombine.high %v1286_v11, %v1290_v56  ;;  %v12125_v26 = vcombine.low %v1286_v11, %v1290_v56  ;;  %7541 = vmatprep.subr.bf16.mxu0 %v11998_v1  ;;  %v535_v11 = vpack.c.bf16 %v362_v36, %v362_v36  ;;  %v537_v56 = vpack.c.bf16 %v376_v40, %v376_v40 }
 0x119   :  { %v1154_v18 = vld [vmem:[#allocation2 + $0x12a0] sm:$0xff]  ;;  %7542 = vmatpush2.bf16.msra.mxu0 %v11997_v25  ;;  %v1785_v44 = vsel %vm1776_vm0, %v1766_v55, %v1748_v54 }
 0x11a   :  { %v1278_v21 = vld [vmem:[#allocation2 + $0x1680] sm:$0xff]  ;;  %v11990_v28 = vcombine.high %v1150_v17, %v1154_v18  ;;  %7582 = vmatprep.subr.bf16.mxu1 %v12126_v3  ;;  %v11989_v7 = vcombine.low %v1150_v17, %v1154_v18  ;;  %v1753_v18 = vunpack.c.l.b16 %v535_v11  ;;  %v1755_v3 = vunpack.c.l.b16 %v537_v56 }
 0x11b   :  { %v1282_v24 = vld [vmem:[#allocation2 + $0x16a0] sm:$0xff]  ;;  %7583 = vmatpush2.bf16.msra.mxu1 %v12125_v26  ;;  %v1787_v26 = vsel %vm1776_vm0, %v1768_v14, %v1750_v10 }
 0x11c   :  { %v1142_v29 = vld [vmem:[#allocation2 + $0x1240] sm:$0xff]  ;;  %v12118_v33 = vcombine.high %v1278_v21, %v1282_v24  ;;  %v12117_v35 = vcombine.low %v1278_v21, %v1282_v24  ;;  %7543 = vmatprep.subr.bf16.mxu0 %v11990_v28  ;;  %v1771_v21 = vunpack.c.l.b16 %v553_v12  ;;  %v1773_v24 = vunpack.c.l.b16 %v555_v60 }
 0x11d   :  { %v1146_v6 = vld [vmem:[#allocation2 + $0x1260] sm:$0xff]  ;;  %7544 = vmatpush2.bf16.msra.mxu0 %v11989_v7  ;;  %v14044_v28 = vpack.c.b16 %v1785_v44, %v1785_v44  ;;  %v156_v44 = vld [vmem:[%s14471_s0 + $0x118] sm:$0xff] }
 0x11e   :  { %v1270_v30 = vld [vmem:[#allocation2 + $0x1640] sm:$0xff]  ;;  %v11982_v53 = vcombine.high %v1142_v29, %v1146_v6  ;;  %7584 = vmatprep.subr.bf16.mxu1 %v12118_v33  ;;  %v11981_v59 = vcombine.low %v1142_v29, %v1146_v6  ;;  %v1790_v29 = vsel %vm1776_vm0, %v1771_v21, %v1753_v18  ;;  %v14047_v6 = vpack.c.b16 %v1787_v26, %v1787_v26  ;;  %v187_v21 = vld [vmem:[%s14471_s0 + $0x210] sm:$0xff] }
 0x11f   :  { %v1274_v34 = vld [vmem:[#allocation2 + $0x1660] sm:$0xff]  ;;  %7585 = vmatpush2.bf16.msra.mxu1 %v12117_v35  ;;  %v1792_v31 = vsel %vm1776_vm0, %v1773_v24, %v1755_v3  ;;  %v14050_v38 = vpack.c.b16 %v1790_v29, %v1790_v29  ;;  %v135_v26 = vld [vmem:[%s14471_s0 + $0x70] sm:$0xff] }
 0x120   :  { %v1134_v57 = vld [vmem:[#allocation2 + $0x1200] sm:$0xff]  ;;  %v12110_v49 = vcombine.high %v1270_v30, %v1274_v34  ;;  %7545 = vmatprep.subr.bf16.mxu0 %v11982_v53  ;;  %v12109_v61 = vcombine.low %v1270_v30, %v1274_v34  ;;  %v14053_v39 = vpack.c.b16 %v1792_v31, %v1792_v31  ;;  %v171_v29 = vld [vmem:[%s14471_s0 + $0x190] sm:$0xff]  ;;  %v192_v31 = vld [vmem:[%s14471_s0 + $0x238] sm:$0xff] }
 0x121   :  { %v1138_v8 = vld [vmem:[#allocation2 + $0x1220] sm:$0xff]  ;;  %7546 = vmatpush2.bf16.msra.mxu0 %v11981_v59 }
 0x122   :  { %v1262_v42 = vld [vmem:[#allocation2 + $0x1600] sm:$0xff]  ;;  %v11974_v9 = vcombine.high %v1134_v57, %v1138_v8  ;;  %7586 = vmatprep.subr.bf16.mxu1 %v12110_v49  ;;  %v11973_v22 = vcombine.low %v1134_v57, %v1138_v8 }
 0x123   :  { %v1266_v50 = vld [vmem:[#allocation2 + $0x1620] sm:$0xff]  ;;  %7587 = vmatpush2.bf16.msra.mxu1 %v12109_v61 }
 0x124   :  { %v1382_v62 = vld [vmem:[#allocation2 + $0x19c0] sm:$0xff]  ;;  %v12102_v1 = vcombine.high %v1262_v42, %v1266_v50  ;;  %7547 = vmatprep.subr.bf16.mxu0 %v11974_v9  ;;  %v12101_v25 = vcombine.low %v1262_v42, %v1266_v50 }
 0x125   :  { %v1386_v19 = vld [vmem:[#allocation2 + $0x19e0] sm:$0xff]  ;;  %7548 = vmatpush2.bf16.msra.mxu0 %v11973_v22  ;;  %v138_v22 = vld [vmem:[%s14471_s0 + $0x88] sm:$0xff] }
 0x126   :  { %v1510_v0 = vld [vmem:[#allocation2 + $0x1dc0] sm:$0xff]  ;;  %v12222_v47 = vcombine.high %v1382_v62, %v1386_v19  ;;  %7588 = vmatprep.subr.bf16.mxu1 %v12102_v1  ;;  %v12221_v30 = vcombine.low %v1382_v62, %v1386_v19  ;;  %v151_v1 = vld [vmem:[%s14471_s0 + $0xf0] sm:$0xff] }
 0x127   :  { %v1514_v17 = vld [vmem:[#allocation2 + $0x1de0] sm:$0xff]  ;;  %7589 = vmatpush2.bf16.msra.mxu1 %v12101_v25 }
 0x128   :  { %v1374_v48 = vld [vmem:[#allocation2 + $0x1980] sm:$0xff]  ;;  %v12350_v52 = vcombine.high %v1510_v0, %v1514_v17  ;;  %7599 = vmatprep.subr.bf16.mxu0 %v12222_v47  ;;  %v12349_v32 = vcombine.low %v1510_v0, %v1514_v17  ;;  %7550 = vmatmul.mubr.bf16.vlgmr.msra.gmra.mxu0 %v14044_v28 }
 0x129   :  { %v1378_v4 = vld [vmem:[#allocation2 + $0x19a0] sm:$0xff]  ;;  %7600 = vmatpush1.bf16.msra.mxu0 %v12221_v30  ;;  %7631 = vmatprep.mubr.bf16.mxu0 %v14050_v38  ;;  %v174_v30 = vld [vmem:[%s14471_s0 + $0x1a8] sm:$0xff] }
 0x12a   :  { %v1502_v51 = vld [vmem:[#allocation2 + $0x1d80] sm:$0xff]  ;;  %v12214_v33 = vcombine.high %v1374_v48, %v1378_v4  ;;  %7640 = vmatprep.subr.bf16.mxu1 %v12350_v52  ;;  %7591 = vmatmul.mubr.bf16.vlgmr.msra.gmra.mxu1 %v14047_v6  ;;  %v12213_v40 = vcombine.low %v1374_v48, %v1378_v4 }
 0x12b   :  { %v1506_v5 = vld [vmem:[#allocation2 + $0x1da0] sm:$0xff]  ;;  %7641 = vmatpush1.bf16.msra.mxu1 %v12349_v32  ;;  %7672 = vmatprep.mubr.bf16.mxu1 %v14053_v39 }
 0x12c   :  { %v1366_v34 = vld [vmem:[#allocation2 + $0x1940] sm:$0xff]  ;;  %v12342_v36 = vcombine.high %v1502_v51, %v1506_v5  ;;  %7601 = vmatprep.subr.bf16.mxu0 %v12214_v33  ;;  %v12341_v41 = vcombine.low %v1502_v51, %v1506_v5 }
 0x12d   :  { %v1370_v7 = vld [vmem:[#allocation2 + $0x1960] sm:$0xff]  ;;  %7602 = vmatpush1.bf16.msra.mxu0 %v12213_v40  ;;  %v210_v40 = vmax.f32 %v138_v22, 0.0 }
 0x12e   :  { %v1494_v35 = vld [vmem:[#allocation2 + $0x1d40] sm:$0xff]  ;;  %v12206_v53 = vcombine.high %v1366_v34, %v1370_v7  ;;  %7642 = vmatprep.subr.bf16.mxu1 %v12342_v36  ;;  %v12205_v49 = vcombine.low %v1366_v34, %v1370_v7  ;;  %v223_v34 = vmax.f32 %v151_v1, 0.0 }
 0x12f   :  { %v1498_v37 = vld [vmem:[#allocation2 + $0x1d60] sm:$0xff]  ;;  %7643 = vmatpush1.bf16.msra.mxu1 %v12341_v41  ;;  %v228_v41 = vmax.f32 %v156_v44, 0.0 }
 0x130   :  { %v1358_v57 = vld [vmem:[#allocation2 + $0x1900] sm:$0xff]  ;;  %v12334_v43 = vcombine.high %v1494_v35, %v1498_v37  ;;  %7603 = vmatprep.subr.bf16.mxu0 %v12206_v53  ;;  %v12333_v50 = vcombine.low %v1494_v35, %v1498_v37  ;;  %v259_v37 = vmax.f32 %v187_v21, 0.0 }
 0x131   :  { %v1362_v8 = vld [vmem:[#allocation2 + $0x1920] sm:$0xff]  ;;  %7604 = vmatpush1.bf16.msra.mxu0 %v12205_v49  ;;  %v207_v49 = vmax.f32 %v135_v26, 0.0 }
 0x132   :  { %v1486_v42 = vld [vmem:[#allocation2 + $0x1d00] sm:$0xff]  ;;  %v12198_v59 = vcombine.high %v1358_v57, %v1362_v8  ;;  %7644 = vmatprep.subr.bf16.mxu1 %v12334_v43  ;;  %v12197_v60 = vcombine.low %v1358_v57, %v1362_v8  ;;  %v246_v8 = vmax.f32 %v174_v30, 0.0 }
 0x133   :  { %v1490_v45 = vld [vmem:[#allocation2 + $0x1d20] sm:$0xff]  ;;  %7645 = vmatpush1.bf16.msra.mxu1 %v12333_v50 }
 0x134   :  { %v1350_v11 = vld [vmem:[#allocation2 + $0x18c0] sm:$0xff]  ;;  %v12326_v55 = vcombine.high %v1486_v42, %v1490_v45  ;;  %7605 = vmatprep.subr.bf16.mxu0 %v12198_v59  ;;  %v12325_v10 = vcombine.low %v1486_v42, %v1490_v45  ;;  %v264_v42 = vmax.f32 %v192_v31, 0.0  ;;  %v243_v59 = vmax.f32 %v171_v29, 0.0 }
 0x135   :  { %v1354_v12 = vld [vmem:[#allocation2 + $0x18e0] sm:$0xff]  ;;  %7606 = vmatpush1.bf16.msra.mxu0 %v12197_v60 }
 0x136   :  { %v1478_v54 = vld [vmem:[#allocation2 + $0x1cc0] sm:$0xff]  ;;  %v12190_v14 = vcombine.high %v1350_v11, %v1354_v12  ;;  %7646 = vmatprep.subr.bf16.mxu1 %v12326_v55  ;;  %v12189_v25 = vcombine.low %v1350_v11, %v1354_v12 }
 0x137   :  { %v1482_v56 = vld [vmem:[#allocation2 + $0x1ce0] sm:$0xff]  ;;  %7647 = vmatpush1.bf16.msra.mxu1 %v12325_v10  ;;  %v386_v10 = vsel %vm384_vm1, %v228_v41, 0.0 }
 0x138   :  { %v14058_v61 = vld [vmem:[#allocation2 + $0x1880] sm:$0xff]  ;;  %v12318_v18 = vcombine.high %v1478_v54, %v1482_v56  ;;  %7607 = vmatprep.subr.bf16.mxu0 %v12190_v14  ;;  %v12317_v48 = vcombine.low %v1478_v54, %v1482_v56  ;;  %v513_v14 = vsel %vm384_vm1, %v246_v8, 0.0 }
 0x139   :  { %v1346_v9 = vld [vmem:[#allocation2 + $0x18a0] sm:$0xff]  ;;  %7608 = vmatpush1.bf16.msra.mxu0 %v12189_v25 }
 0x13a   :  { %v1470_v62 = vld [vmem:[#allocation2 + $0x1c80] sm:$0xff]  ;;  %v12181_v4 = vcombine.low %v14058_v61, %v1346_v9  ;;  %v12182_v51 = vcombine.high %v14058_v61, %v1346_v9  ;;  %7648 = vmatprep.subr.bf16.mxu1 %v12318_v18  ;;  %v385_v61 = vsel %vm384_vm1, %v210_v40, 0.0 }
 0x13b   :  { %v1474_v19 = vld [vmem:[#allocation2 + $0x1ca0] sm:$0xff]  ;;  %7649 = vmatpush1.bf16.msra.mxu1 %v12317_v48 }
 0x13c   :  { %v133_v0 = vld [vmem:[%s14471_s0 + $0x60] sm:$0xff]  ;;  %v12310_v32 = vcombine.high %v1470_v62, %v1474_v19  ;;  %v12309_v36 = vcombine.low %v1470_v62, %v1474_v19  ;;  %7609 = vmatprep.subr.bf16.mxu0 %v12182_v51  ;;  %v514_v62 = vsel %vm384_vm1, %v264_v42, 0.0 }
 0x13d   :  { %v169_v17 = vld [vmem:[%s14471_s0 + $0x180] sm:$0xff]  ;;  %v205_v33 = vmax.f32 %v133_v0, 0.0  ;;  %7610 = vmatpush1.bf16.msra.mxu0 %v12181_v4 }
 0x13e   :  { %v14078_v3 = vld [vmem:[#allocation2 + $0x1840] sm:$0xff]  ;;  %v241_v7 = vmax.f32 %v169_v17, 0.0  ;;  %7650 = vmatprep.subr.bf16.mxu1 %v12310_v32 }
 0x13f   :  { %v14080_v24 = vld [vmem:[#allocation2 + $0x1860] sm:$0xff]  ;;  %v349_v60 = vadd.f32 %v223_v34, %v205_v33  ;;  %7651 = vmatpush1.bf16.msra.mxu1 %v12309_v36 }
 0x140   :  { %v153_v47 = vld [vmem:[%s14471_s0 + $0x100] sm:$0xff]  ;;  %v12174_v53 = vcombine.high %v14078_v3, %v14080_v24  ;;  %v12173_v55 = vcombine.low %v14078_v3, %v14080_v24  ;;  %v478_v9 = vadd.f32 %v259_v37, %v241_v7  ;;  %v387_v3 = vadd.f32 %v386_v10, %v385_v61 }
 0x141   :  { %v1462_v52 = vld [vmem:[#allocation2 + $0x1c40] sm:$0xff]  ;;  %v225_v50 = vmax.f32 %v153_v47, 0.0  ;;  %v515_v24 = vadd.f32 %v514_v62, %v513_v14  ;;  %v350_v26 = vrot.slane %v349_v60, 4 }
 0x142   :  { %v1466_v5 = vld [vmem:[#allocation2 + $0x1c60] sm:$0xff]  ;;  %7611 = vmatprep.subr.bf16.mxu0 %v12174_v53  ;;  %v479_v47 = vrot.slane %v478_v9, 4  ;;  %v388_v33 = vrot.slane %v387_v3, 4 }
 0x143   :  { %v189_v35 = vld [vmem:[%s14471_s0 + $0x220] sm:$0xff]  ;;  %v12302_v12 = vcombine.high %v1462_v52, %v1466_v5  ;;  %v12301_v56 = vcombine.low %v1462_v52, %v1466_v5  ;;  %v363_v18 = vadd.f32 %v225_v50, %v207_v49  ;;  %7612 = vmatpush1.bf16.msra.mxu0 %v12173_v55  ;;  %v516_v34 = vrot.slane %v515_v24, 4 }
 0x144   :  { %v1326_v57 = vld [vmem:[#allocation2 + $0x1800] sm:$0xff]  ;;  %v261_v11 = vmax.f32 %v189_v35, 0.0  ;;  %v351_v36 = vadd.f32 %v350_v26, %v349_v60  ;;  %v480_v37 = vadd.f32 %v479_v47, %v478_v9  ;;  %v389_v49 = vadd.f32 %v388_v33, %v387_v3 }
 0x145   :  { %v1330_v43 = vld [vmem:[#allocation2 + $0x1820] sm:$0xff]  ;;  %7652 = vmatprep.subr.bf16.mxu1 %v12302_v12  ;;  %v364_v29 = vrot.slane %v363_v18, 4  ;;  %v517_v50 = vadd.f32 %v516_v34, %v515_v24 }
 0x146   :  { %v1454_v45 = vld [vmem:[#allocation2 + $0x1c00] sm:$0xff]  ;;  %v12166_v19 = vcombine.high %v1326_v57, %v1330_v43  ;;  %v492_v21 = vadd.f32 %v261_v11, %v243_v59  ;;  %v12165_v25 = vcombine.low %v1326_v57, %v1330_v43  ;;  %7653 = vmatpush1.bf16.msra.mxu1 %v12301_v56  ;;  %v352_v11 = vrot.slane %v351_v36, 2 }
 0x147   :  { %v1458_v54 = vld [vmem:[#allocation2 + $0x1c20] sm:$0xff]  ;;  %v365_v8 = vadd.f32 %v364_v29, %v363_v18  ;;  %v481_v12 = vrot.slane %v480_v37, 2 }
 0x148   :  { %v1446_v0 = vld [vmem:[#allocation2 + $0x1bc0] sm:$0xff]  ;;  %v12294_v22 = vcombine.high %v1454_v45, %v1458_v54  ;;  %7613 = vmatprep.subr.bf16.mxu0 %v12166_v19  ;;  %v12293_v48 = vcombine.low %v1454_v45, %v1458_v54  ;;  %v493_v30 = vrot.slane %v492_v21, 4  ;;  %v390_v19 = vrot.slane %v389_v49, 2 }
 0x149   :  { %v1450_v1 = vld [vmem:[#allocation2 + $0x1be0] sm:$0xff]  ;;  %7614 = vmatpush1.bf16.msra.mxu0 %v12165_v25  ;;  %v366_v9 = vrot.slane %v365_v8, 2  ;;  %v353_v18 = vadd.f32 %v352_v11, %v351_v36 }
 0x14a   :  { %v1574_v17 = vld [vmem:[#allocation2 + $0x1fc0] sm:$0xff]  ;;  %v12286_v4 = vcombine.high %v1446_v0, %v1450_v1  ;;  %7654 = vmatprep.subr.bf16.mxu1 %v12294_v22  ;;  %v12285_v7 = vcombine.low %v1446_v0, %v1450_v1  ;;  %v494_v42 = vadd.f32 %v493_v30, %v492_v21  ;;  %v518_v0 = vrot.slane %v517_v50, 2 }
 0x14b   :  { %v1578_v44 = vld [vmem:[#allocation2 + $0x1fe0] sm:$0xff]  ;;  %7655 = vmatpush1.bf16.msra.mxu1 %v12293_v48  ;;  %v482_v21 = vadd.f32 %v481_v12, %v480_v37  ;;  %v367_v25 = vadd.f32 %v366_v9, %v365_v8 }
 0x14c   :  { %v1438_v51 = vld [vmem:[#allocation2 + $0x1b80] sm:$0xff]  ;;  %v12414_v31 = vcombine.high %v1574_v17, %v1578_v44  ;;  %v12413_v35 = vcombine.low %v1574_v17, %v1578_v44  ;;  %7615 = vmatprep.subr.bf16.mxu0 %v12286_v4  ;;  %v495_v10 = vrot.slane %v494_v42, 2  ;;  %v391_v4 = vadd.f32 %v390_v19, %v389_v49 }
 0x14d   :  { %v1442_v52 = vld [vmem:[#allocation2 + $0x1ba0] sm:$0xff]  ;;  %7616 = vmatpush2.bf16.msra.mxu0 %v12285_v7  ;;  %v483_v29 = vrot.slane %v482_v21, 1  ;;  %v368_v7 = vrot.slane %v367_v25, 1 }
 0x14e   :  { %v1566_v5 = vld [vmem:[#allocation2 + $0x1f80] sm:$0xff]  ;;  %v12278_v40 = vcombine.high %v1438_v51, %v1442_v52  ;;  %7656 = vmatprep.subr.bf16.mxu1 %v12414_v31  ;;  %v12277_v59 = vcombine.low %v1438_v51, %v1442_v52  ;;  %v496_v26 = vadd.f32 %v495_v10, %v494_v42  ;;  %v519_v51 = vadd.f32 %v518_v0, %v517_v50 }
 0x14f   :  { %v1570_v32 = vld [vmem:[#allocation2 + $0x1fa0] sm:$0xff]  ;;  %7657 = vmatpush2.bf16.msra.mxu1 %v12413_v35  ;;  %v484_v42 = vadd.f32 %v483_v29, %v482_v21 }
 0x150   :  { %v1430_v41 = vld [vmem:[#allocation2 + $0x1b40] sm:$0xff]  ;;  %v12406_v43 = vcombine.high %v1566_v5, %v1570_v32  ;;  %7617 = vmatprep.subr.bf16.mxu0 %v12278_v40  ;;  %v12405_v54 = vcombine.low %v1566_v5, %v1570_v32  ;;  %v354_v5 = vrot.slane %v353_v18, 1  ;;  %v497_v35 = vrot.slane %v496_v26, 1 }
 0x151   :  { %v1434_v53 = vld [vmem:[#allocation2 + $0x1b60] sm:$0xff]  ;;  %7618 = vmatpush2.bf16.msra.mxu0 %v12277_v59  ;;  %v392_v40 = vrot.slane %v391_v4, 1  ;;  %v369_v59 = vadd.f32 %v368_v7, %v367_v25  ;;  %v552_v19 = vpack.c.bf16 %v484_v42, %v484_v42  ;;  %v191_v25 = vld [vmem:[%s14471_s0 + $0x230] sm:$0xff] }
 0x152   :  { %v1558_v57 = vld [vmem:[#allocation2 + $0x1f40] sm:$0xff]  ;;  %v12270_v55 = vcombine.high %v1430_v41, %v1434_v53  ;;  %7658 = vmatprep.subr.bf16.mxu1 %v12406_v43  ;;  %v12269_v1 = vcombine.low %v1430_v41, %v1434_v53  ;;  %v520_v41 = vrot.slane %v519_v51, 1  ;;  %v355_v8 = vadd.f32 %v354_v5, %v353_v18 }
 0x153   :  { %v1562_v45 = vld [vmem:[#allocation2 + $0x1f60] sm:$0xff]  ;;  %7659 = vmatpush2.bf16.msra.mxu1 %v12405_v54  ;;  %v498_v11 = vadd.f32 %v497_v35, %v496_v26  ;;  %v536_v18 = vpack.c.bf16 %v369_v59, %v369_v59  ;;  %v1770_v29 = vunpack.c.l.b16 %v552_v19 }
 0x154   :  { %v1422_v56 = vld [vmem:[#allocation2 + $0x1b00] sm:$0xff]  ;;  %v12398_v14 = vcombine.high %v1558_v57, %v1562_v45  ;;  %v12397_v17 = vcombine.low %v1558_v57, %v1562_v45  ;;  %7619 = vmatprep.subr.bf16.mxu0 %v12270_v55  ;;  %v521_v9 = vadd.f32 %v520_v41, %v519_v51  ;;  %v263_v41 = vmax.f32 %v191_v25, 0.0  ;;  %v603_v25 = vld [vmem:[#allocation2 + $0x168] sm:$0xff] }
 0x155   :  { %v1426_v60 = vld [vmem:[#allocation2 + $0x1b20] sm:$0xff]  ;;  %7620 = vmatpush2.bf16.msra.mxu0 %v12269_v1  ;;  %v554_v21 = vpack.c.bf16 %v498_v11, %v498_v11 }
 0x156   :  { %v1550_v61 = vld [vmem:[#allocation2 + $0x1f00] sm:$0xff]  ;;  %v12262_v22 = vcombine.high %v1422_v56, %v1426_v60  ;;  %7660 = vmatprep.subr.bf16.mxu1 %v12398_v14  ;;  %v12261_v52 = vcombine.low %v1422_v56, %v1426_v60  ;;  %v1664_v14 = vlaneseq }
 0x157   :  { %v1554_v62 = vld [vmem:[#allocation2 + $0x1f20] sm:$0xff]  ;;  %7661 = vmatpush2.bf16.msra.mxu1 %v12397_v17 }
 0x158   :  { %v1414_v44 = vld [vmem:[#allocation2 + $0x1ac0] sm:$0xff]  ;;  %v12390_v47 = vcombine.high %v1550_v61, %v1554_v62  ;;  %7621 = vmatprep.subr.bf16.mxu0 %v12262_v22  ;;  %v12389_v30 = vcombine.low %v1550_v61, %v1554_v62  ;;  %v393_v61 = vadd.f32 %v392_v40, %v391_v4  ;;  %v534_v62 = vpack.c.bf16 %v355_v8, %v355_v8 }
 0x159   :  { %v1418_v3 = vld [vmem:[#allocation2 + $0x1ae0] sm:$0xff]  ;;  %7622 = vmatpush2.bf16.msra.mxu0 %v12261_v52  ;;  %v557_v4 = vpack.c.bf16 %v521_v9, %v521_v9  ;;  %v14128_v52 = vshrl.u32 %v1664_v14, 7 }
 0x15a   :  { %v1542_v24 = vld [vmem:[#allocation2 + $0x1ec0] sm:$0xff]  ;;  %v12254_v31 = vcombine.high %v1414_v44, %v1418_v3  ;;  %7662 = vmatprep.subr.bf16.mxu1 %v12390_v47  ;;  %v12253_v53 = vcombine.low %v1414_v44, %v1418_v3  ;;  %v155_v44 = vld [vmem:[%s14471_s0 + $0x110] sm:$0xff]  ;;  %v1752_v5 = vunpack.c.l.b16 %v534_v62 }
 0x15b   :  { %v1546_v48 = vld [vmem:[#allocation2 + $0x1ee0] sm:$0xff]  ;;  %7663 = vmatpush2.bf16.msra.mxu1 %v12389_v30  ;;  %v1754_v30 = vunpack.c.l.b16 %v536_v18  ;;  %v227_v35 = vmax.f32 %v155_v44, 0.0  ;;  %v1775_v8 = vunpack.c.l.b16 %v557_v4  ;;  %v14138_v9 = vsub.s32 1, %v14128_v52 }
 0x15c   :  { %v1406_v32 = vld [vmem:[#allocation2 + $0x1a80] sm:$0xff]  ;;  %v12382_v36 = vcombine.high %v1542_v24, %v1546_v48  ;;  %v12381_v57 = vcombine.low %v1542_v24, %v1546_v48  ;;  %7623 = vmatprep.subr.bf16.mxu0 %v12254_v31  ;;  %v539_v48 = vpack.c.bf16 %v393_v61, %v393_v61  ;;  %v1772_v31 = vunpack.c.l.b16 %v554_v21 }
 0x15d   :  { %v1410_v33 = vld [vmem:[#allocation2 + $0x1aa0] sm:$0xff]  ;;  %7624 = vmatpush2.bf16.msra.mxu0 %v12253_v53 }
 0x15e   :  { %v1534_v34 = vld [vmem:[#allocation2 + $0x1e80] sm:$0xff]  ;;  %v12246_v43 = vcombine.high %v1406_v32, %v1410_v33  ;;  %7664 = vmatprep.subr.bf16.mxu1 %v12382_v36  ;;  %v12245_v55 = vcombine.low %v1406_v32, %v1410_v33 }
 0x15f   :  { %v1538_v37 = vld [vmem:[#allocation2 + $0x1ea0] sm:$0xff]  ;;  %7665 = vmatpush2.bf16.msra.mxu1 %v12381_v57  ;;  %v1757_v57 = vunpack.c.l.b16 %v539_v48 }
 0x160   :  { %v1398_v45 = vld [vmem:[#allocation2 + $0x1a40] sm:$0xff]  ;;  %v12374_v12 = vcombine.high %v1534_v34, %v1538_v37  ;;  %v12373_v10 = vcombine.low %v1534_v34, %v1538_v37  ;;  %7625 = vmatprep.subr.bf16.mxu0 %v12246_v43  ;;  %v615_v34 = vld [vmem:[#allocation2 + $0x1c8] sm:$0xff]  ;;  %v7387_v48 = vpop.f32.mrf.mxu0 }
 0x161   :  { %v1402_v49 = vld [vmem:[#allocation2 + $0x1a60] sm:$0xff]  ;;  %7626 = vmatpush2.bf16.msra.mxu0 %v12245_v55  ;;  %v619_v37 = vld [vmem:[#allocation2 + $0x1e8] sm:$0xff]  ;;  %v1794_v14 = vsel %vm1776_vm0, %v1775_v8, %v1757_v57 }
 0x162   :  { %v1526_v50 = vld [vmem:[#allocation2 + $0x1e40] sm:$0xff]  ;;  %v12238_v0 = vcombine.high %v1398_v45, %v1402_v49  ;;  %7666 = vmatprep.subr.bf16.mxu1 %v12374_v12  ;;  %v12237_v26 = vcombine.low %v1398_v45, %v1402_v49  ;;  %v14133_v45 = vsub.s32 0, %v14128_v52  ;;  %v1789_v49 = vsel %vm1776_vm0, %v1770_v29, %v1752_v5 }
 0x163   :  { %v1530_v54 = vld [vmem:[#allocation2 + $0x1e60] sm:$0xff]  ;;  %7667 = vmatpush2.bf16.msra.mxu1 %v12373_v10  ;;  %v11456_v61 = vcombine.high %v615_v34, %v619_v37  ;;  %v14140_v10 = vpack.c.b16 %v1789_v49, %v1789_v49 }
 0x164   :  { %v14110_v56 = vld [vmem:[#allocation2 + $0x1a00] sm:$0xff]  ;;  %v12366_v24 = vcombine.high %v1526_v50, %v1530_v54  ;;  %v12365_v47 = vcombine.low %v1526_v50, %v1530_v54  ;;  %7627 = vmatprep.subr.bf16.mxu0 %v12238_v0  ;;  %v1791_v50 = vsel %vm1776_vm0, %v1772_v31, %v1754_v30  ;;  %v607_v54 = vld [vmem:[#allocation2 + $0x188] sm:$0xff]  ;;  %v7389_v30 = vpop.f32.mrf.mxu0 }
 0x165   :  { %v14112_v60 = vld [vmem:[#allocation2 + $0x1a20] sm:$0xff]  ;;  %7628 = vmatpush2.bf16.msra.mxu0 %v12237_v26  ;;  %v14144_v19 = vpack.c.b16 %v1791_v50, %v1791_v50  ;;  %v14147_v26 = vpack.c.b16 %v1794_v14, %v1794_v14 }
 0x166   :  { %v1518_v1 = vld [vmem:[#allocation2 + $0x1e00] sm:$0xff]  ;;  %v12230_v51 = vcombine.high %v14110_v56, %v14112_v60  ;;  %7668 = vmatprep.subr.bf16.mxu1 %v12366_v24  ;;  %v12229_v42 = vcombine.low %v14110_v56, %v14112_v60  ;;  %v611_v56 = vld [vmem:[#allocation2 + $0x1a8] sm:$0xff]  ;;  %v7391_v57 = vpop.f32.mrf.mxu0 }
 0x167   :  { %v1522_v17 = vld [vmem:[#allocation2 + $0x1e20] sm:$0xff]  ;;  %7669 = vmatpush2.bf16.msra.mxu1 %v12365_v47  ;;  %v11448_v24 = vcombine.high %v607_v54, %v611_v56  ;;  %v11447_v29 = vcombine.low %v607_v54, %v611_v56  ;;  %v583_v54 = vld [vmem:[#allocation2 + $0xc8] sm:$0xff] }
 0x168   :  { %v137_v22 = vld [vmem:[%s14471_s0 + $0x80] sm:$0xff]  ;;  %v12358_v36 = vcombine.high %v1518_v1, %v1522_v17  ;;  %v12357_v43 = vcombine.low %v1518_v1, %v1522_v17  ;;  %7629 = vmatprep.subr.bf16.mxu0 %v12230_v51  ;;  %v11455_v1 = vcombine.low %v615_v34, %v619_v37  ;;  %v7428_v51 = vpop.f32.mrf.mxu1  ;;  %v7392_v50 = vpop.f32.mrf.mxu0 }
 0x169   :  { %v173_v3 = vld [vmem:[%s14471_s0 + $0x1a0] sm:$0xff]  ;;  %v209_v7 = vmax.f32 %v137_v22, 0.0  ;;  %7630 = vmatpush2.bf16.msra.mxu0 %v12229_v42  ;;  %v599_v22 = vld [vmem:[#allocation2 + $0x148] sm:$0xff] }
 0x16a   :  { %v1638_v32 = vld [vmem:[#allocation2 + $0x21c0] sm:$0xff]  ;;  %v245_v40 = vmax.f32 %v173_v3, 0.0  ;;  %7670 = vmatprep.subr.bf16.mxu1 %v12358_v36 }
 0x16b   :  { %v1642_v33 = vld [vmem:[#allocation2 + $0x21e0] sm:$0xff]  ;;  %v377_v55 = vadd.f32 %v227_v35, %v209_v7  ;;  %7671 = vmatpush2.bf16.msra.mxu1 %v12357_v43  ;;  %v591_v7 = vld [vmem:[#allocation2 + $0x108] sm:$0xff] }
 0x16c   :  { %v1662_v53 = vld [vmem:[#allocation5] sm:$0xff]  ;;  %v12478_v59 = vcombine.high %v1638_v32, %v1642_v33  ;;  %v506_v60 = vadd.f32 %v263_v41, %v245_v40  ;;  %v12477_v0 = vcombine.low %v1638_v32, %v1642_v33  ;;  %7722 = vmatprep.subr.bf16.mxu1 %v11456_v61  ;;  %7632 = vmatmul.mubr.bf16.vlgmr.msra.gmra.mxu0 %v14140_v10  ;;  %v7430_v40 = vpop.f32.mrf.mxu1  ;;  %v595_v41 = vld [vmem:[#allocation2 + $0x128] sm:$0xff] }
 0x16d   :  { %v1630_v11 = vld [vmem:[#allocation2 + $0x2180] sm:$0xff]  ;;  %v1667_v62 = vrot.slane %v1662_v53, %v14133_v45  ;;  %v378_v44 = vrot.slane %v377_v55, 4  ;;  %v1671_v3 = vrot.slane %v1662_v53, %v14138_v9  ;;  %v11440_v32 = vcombine.high %v599_v22, %v603_v25  ;;  %12501 = vmatprep.mubr.msk.bf16.mxu0 %vm384_vm1, %v14147_v26 }
 0x16e   :  { %v1634_v12 = vld [vmem:[#allocation2 + $0x21a0] sm:$0xff]  ;;  %7681 = vmatprep.subr.bf16.mxu0 %v12478_v59  ;;  %v507_v47 = vrot.slane %v506_v60, 4  ;;  %7673 = vmatmul.mubr.bf16.vlgmr.msra.gmra.mxu1 %v14144_v19  ;;  %v7432_v42 = vpop.f32.mrf.mxu1  ;;  %v11439_v59 = vcombine.low %v599_v22, %v603_v25  ;;  %v11432_v56 = vcombine.high %v591_v7, %v595_v41 }
 0x16f   :  { %v12470_v17 = vcombine.high %v1630_v11, %v1634_v12  ;;  %v1622_v18 = vld [vmem:[#allocation2 + $0x2140] sm:$0xff]  ;;  %v7388_v4 = vadd.f32 %v7387_v48, %v1667_v62  ;;  %7682 = vmatpush1.bf16.msra.mxu0 %v12477_v0  ;;  %v12469_v5 = vcombine.low %v1630_v11, %v1634_v12  ;;  %7723 = vmatpush1.bf16.msra.mxu1 %v11455_v1 }
 0x170   :  { %v1626_v21 = vld [vmem:[#allocation2 + $0x2160] sm:$0xff]  ;;  %v379_v35 = vadd.f32 %v378_v44, %v377_v55  ;;  %v7390_v37 = vadd.f32 %v7389_v30, %v1671_v3  ;;  %7724 = vmatprep.subr.bf16.mxu1 %v11448_v24  ;;  %v508_v53 = vadd.f32 %v507_v47, %v506_v60  ;;  %7754 = vmatprep.mubr.bf16.mxu1 %v13775_v20  ;;  %v587_v55 = vld [vmem:[#allocation2 + $0xe8] sm:$0xff]  ;;  %v7433_v61 = vpop.f32.mrf.mxu1 }
 0x171   :  { %7683 = vmatprep.subr.bf16.mxu0 %v12470_v17  ;;  %v12462_v31 = vcombine.high %v1622_v18, %v1626_v21  ;;  %v1614_v33 = vld [vmem:[#allocation2 + $0x2100] sm:$0xff]  ;;  %v14151_v36 = vadd.f32 %v7428_v51, %v7388_v4  ;;  %v12461_v43 = vcombine.low %v1622_v18, %v1626_v21  ;;  %v11431_v0 = vcombine.low %v591_v7, %v595_v41  ;;  %v575_v21 = vld [vmem:[#allocation2 + $0x88] sm:$0xff] }
 0x172   :  { %v1618_v34 = vld [vmem:[#allocation2 + $0x2120] sm:$0xff]  ;;  %v14156_v8 = vadd.f32 %v7430_v40, %v7390_v37  ;;  %v380_v60 = vrot.slane %v379_v35, 2  ;;  %v509_v14 = vrot.slane %v508_v53, 2  ;;  %v11424_v22 = vcombine.high %v583_v54, %v587_v55  ;;  %v579_v44 = vld [vmem:[#allocation2 + $0xa8] sm:$0xff] }
 0x173   :  { %7684 = vmatpush1.bf16.msra.mxu0 %v12469_v5  ;;  %v1606_v49 = vld [vmem:[#allocation2 + $0x20c0] sm:$0xff]  ;;  %7725 = vmatpush1.bf16.msra.mxu1 %v11447_v29  ;;  %v12454_v11 = vcombine.high %v1614_v33, %v1618_v34  ;;  %v12453_v62 = vcombine.low %v1614_v33, %v1618_v34  ;;  %v11423_v47 = vcombine.low %v583_v54, %v587_v55  ;;  %v567_v5 = vld [vmem:[#allocation2 + $0x48] sm:$0xff] }
 0x174   :  { %7685 = vmatprep.subr.bf16.mxu0 %v12462_v31  ;;  %v1610_v12 = vld [vmem:[#allocation2 + $0x20e0] sm:$0xff]  ;;  %7726 = vmatprep.subr.bf16.mxu1 %v11440_v32  ;;  %v381_v24 = vadd.f32 %v380_v60, %v379_v35  ;;  %v510_v25 = vadd.f32 %v509_v14, %v508_v53  ;;  %v11416_v29 = vcombine.high %v575_v21, %v579_v44  ;;  %v571_v30 = vld [vmem:[#allocation2 + $0x68] sm:$0xff] }
 0x175   :  { %v12446_v1 = vcombine.high %v1606_v49, %v1610_v12  ;;  %v1598_v17 = vld [vmem:[#allocation2 + $0x2080] sm:$0xff]  ;;  %v12445_v3 = vcombine.low %v1606_v49, %v1610_v12  ;;  %v11415_v34 = vcombine.low %v575_v21, %v579_v44  ;;  %v11408_v35 = vcombine.high %v567_v5, %v571_v30  ;;  %v559_v41 = vld [vmem:[#allocation2 + $0x8] sm:$0xff] }
 0x176   :  { %v1602_v18 = vld [vmem:[#allocation2 + $0x20a0] sm:$0xff]  ;;  %v382_v32 = vrot.slane %v381_v24, 1  ;;  %v511_v33 = vrot.slane %v510_v25, 1  ;;  %v563_v53 = vld [vmem:[#allocation2 + $0x28] sm:$0xff]  ;;  %v11407_v49 = vcombine.low %v567_v5, %v571_v30 }
 0x177   :  { %7686 = vmatpush1.bf16.msra.mxu0 %v12461_v43  ;;  %7727 = vmatpush1.bf16.msra.mxu1 %v11439_v59  ;;  %v12438_v48 = vcombine.high %v1598_v17, %v1602_v18  ;;  %v1590_v4 = vld [vmem:[#allocation2 + $0x2040] sm:$0xff]  ;;  %v12437_v31 = vcombine.low %v1598_v17, %v1602_v18  ;;  %v11400_v59 = vcombine.high %v559_v41, %v563_v53  ;;  %v679_v54 = vld [vmem:[#allocation2 + $0x3c8] sm:$0xff] }
 0x178   :  { %7687 = vmatprep.subr.bf16.mxu0 %v12454_v11  ;;  %7728 = vmatprep.subr.bf16.mxu1 %v11432_v56  ;;  %v1594_v51 = vld [vmem:[#allocation2 + $0x2060] sm:$0xff]  ;;  %v383_v42 = vadd.f32 %v382_v32, %v381_v24  ;;  %v512_v43 = vadd.f32 %v511_v33, %v510_v25  ;;  %v683_v55 = vld [vmem:[#allocation2 + $0x3e8] sm:$0xff]  ;;  %v11399_v14 = vcombine.low %v559_v41, %v563_v53 }
 0x179   :  { %v12430_v7 = vcombine.high %v1590_v4, %v1594_v51  ;;  %v1582_v37 = vld [vmem:[#allocation2 + $0x2000] sm:$0xff]  ;;  %v12429_v57 = vcombine.low %v1590_v4, %v1594_v51  ;;  %v671_v18 = vld [vmem:[#allocation2 + $0x388] sm:$0xff]  ;;  %v11519_v24 = vcombine.low %v679_v54, %v683_v55 }
 0x17a   :  { %v1586_v40 = vld [vmem:[#allocation2 + $0x2020] sm:$0xff]  ;;  %v538_v56 = vpack.c.bf16 %v383_v42, %v383_v42  ;;  %v556_v60 = vpack.c.bf16 %v512_v43, %v512_v43  ;;  %v675_v21 = vld [vmem:[#allocation2 + $0x3a8] sm:$0xff] }
 0x17b   :  { %7688 = vmatpush1.bf16.msra.mxu0 %v12453_v62  ;;  %7729 = vmatpush1.bf16.msra.mxu1 %v11431_v0  ;;  %v12422_v50 = vcombine.high %v1582_v37, %v1586_v40  ;;  %v1654_v11 = vld [vmem:[#allocation2 + $0x2240] sm:$0xff]  ;;  %v12421_v61 = vcombine.low %v1582_v37, %v1586_v40  ;;  %v11520_v0 = vcombine.high %v679_v54, %v683_v55  ;;  %v747_v4 = vld [vmem:[#allocation2 + $0x5e8] sm:$0xff] }
 0x17c   :  { %7689 = vmatprep.subr.bf16.mxu0 %v12446_v1  ;;  %7730 = vmatprep.subr.bf16.mxu1 %v11424_v22  ;;  %v1658_v12 = vld [vmem:[#allocation2 + $0x2260] sm:$0xff]  ;;  %v1756_v44 = vunpack.c.l.b16 %v538_v56  ;;  %v663_v51 = vld [vmem:[#allocation2 + $0x348] sm:$0xff] }
 0x17d   :  { %v12494_v62 = vcombine.high %v1654_v11, %v1658_v12  ;;  %v1646_v1 = vld [vmem:[#allocation2 + $0x2200] sm:$0xff]  ;;  %v12493_v22 = vcombine.low %v1654_v11, %v1658_v12  ;;  %v667_v5 = vld [vmem:[#allocation2 + $0x368] sm:$0xff] }
 0x17e   :  { %v1650_v17 = vld [vmem:[#allocation2 + $0x2220] sm:$0xff]  ;;  %v11504_v33 = vcombine.high %v663_v51, %v667_v5  ;;  %v655_v37 = vld [vmem:[#allocation2 + $0x308] sm:$0xff]  ;;  %v11503_v53 = vcombine.low %v663_v51, %v667_v5 }
 0x17f   :  { %7690 = vmatpush1.bf16.msra.mxu0 %v12445_v3  ;;  %7731 = vmatpush1.bf16.msra.mxu1 %v11423_v47  ;;  %v1774_v3 = vunpack.c.l.b16 %v556_v60  ;;  %v12486_v25 = vcombine.high %v1646_v1, %v1650_v17  ;;  %v11512_v47 = vcombine.high %v671_v18, %v675_v21  ;;  %v659_v40 = vld [vmem:[#allocation2 + $0x328] sm:$0xff] }
 0x180   :  { %7691 = vmatprep.subr.bf16.mxu0 %v12438_v48  ;;  %7732 = vmatprep.subr.bf16.mxu1 %v11416_v29  ;;  %v743_v48 = vld [vmem:[#allocation2 + $0x5c8] sm:$0xff]  ;;  %v12485_v29 = vcombine.low %v1646_v1, %v1650_v17  ;;  %v11496_v42 = vcombine.high %v655_v37, %v659_v40  ;;  %v11495_v12 = vcombine.low %v655_v37, %v659_v40 }
 0x181   :  { %v1793_v30 = vsel %vm1776_vm0, %v1774_v3, %v1756_v44  ;;  %v11584_v32 = vcombine.high %v743_v48, %v747_v4  ;;  %v11583_v41 = vcombine.low %v743_v48, %v747_v4  ;;  %v727_v43 = vld [vmem:[#allocation2 + $0x548] sm:$0xff] }
 0x182   :  { %v723_v56 = vld [vmem:[#allocation2 + $0x528] sm:$0xff] }
 0x183   :  { %7692 = vmatpush1.bf16.msra.mxu0 %v12437_v31  ;;  %7733 = vmatpush1.bf16.msra.mxu1 %v11415_v34  ;;  %v11511_v31 = vcombine.low %v671_v18, %v675_v21  ;;  %v735_v34 = vld [vmem:[#allocation2 + $0x588] sm:$0xff] }
 0x184   :  { %7693 = vmatprep.subr.bf16.mxu0 %v12430_v7  ;;  %7734 = vmatprep.subr.bf16.mxu1 %v11408_v35  ;;  %v739_v7 = vld [vmem:[#allocation2 + $0x5a8] sm:$0xff]  ;;  %v14159_v35 = vpack.c.b16 %v1793_v30, %v1793_v30 }
 0x185   :  { %v11575_v11 = vcombine.low %v735_v34, %v739_v7  ;;  %v639_v60 = vld [vmem:[#allocation2 + $0x288] sm:$0xff] }
 0x186   :  { %v711_v18 = vld [vmem:[#allocation2 + $0x4c8] sm:$0xff] }
 0x187   :  { %7694 = vmatpush1.bf16.msra.mxu0 %v12429_v57  ;;  %7735 = vmatpush1.bf16.msra.mxu1 %v11407_v49  ;;  %v11576_v57 = vcombine.high %v735_v34, %v739_v7  ;;  %v731_v49 = vld [vmem:[#allocation2 + $0x568] sm:$0xff] }
 0x188   :  { %7695 = vmatprep.subr.bf16.mxu0 %v12422_v50  ;;  %7736 = vmatprep.subr.bf16.mxu1 %v11400_v59  ;;  %v647_v50 = vld [vmem:[#allocation2 + $0x2c8] sm:$0xff]  ;;  %v11568_v54 = vcombine.high %v727_v43, %v731_v49 }
 0x189   :  { %v651_v59 = vld [vmem:[#allocation2 + $0x2e8] sm:$0xff] }
 0x18a   :  { %v11488_v55 = vcombine.high %v647_v50, %v651_v59  ;;  %v715_v21 = vld [vmem:[#allocation2 + $0x4e8] sm:$0xff] }
 0x18b   :  { %7696 = vmatpush1.bf16.msra.mxu0 %v12421_v61  ;;  %7737 = vmatpush1.bf16.msra.mxu1 %v11399_v14  ;;  %v719_v61 = vld [vmem:[#allocation2 + $0x508] sm:$0xff] }
 0x18c   :  { %7709 = vmatprep.subr.bf16.mxu0 %v12494_v62  ;;  %7738 = vmatprep.subr.bf16.mxu1 %v11520_v0  ;;  %v643_v14 = vld [vmem:[#allocation2 + $0x2a8] sm:$0xff]  ;;  %v11567_v62 = vcombine.low %v727_v43, %v731_v49  ;;  %v11487_v0 = vcombine.low %v647_v50, %v651_v59  ;;  %v11560_v1 = vcombine.high %v719_v61, %v723_v56 }
 0x18d   :  { %v11480_v17 = vcombine.high %v639_v60, %v643_v14  ;;  %v635_v44 = vld [vmem:[#allocation2 + $0x268] sm:$0xff]  ;;  %v11559_v3 = vcombine.low %v719_v61, %v723_v56 }
 0x18e   :  { %v703_v48 = vld [vmem:[#allocation2 + $0x488] sm:$0xff] }
 0x18f   :  { %7710 = vmatpush2.bf16.msra.mxu0 %v12493_v22  ;;  %7739 = vmatpush2.bf16.msra.mxu1 %v11519_v24  ;;  %v631_v22 = vld [vmem:[#allocation2 + $0x248] sm:$0xff]  ;;  %v11479_v24 = vcombine.low %v639_v60, %v643_v14 }
 0x190   :  { %7711 = vmatprep.subr.bf16.mxu0 %v12486_v25  ;;  %7740 = vmatprep.subr.bf16.mxu1 %v11512_v47  ;;  %v11552_v25 = vcombine.high %v711_v18, %v715_v21  ;;  %v11472_v47 = vcombine.high %v631_v22, %v635_v44  ;;  %v707_v4 = vld [vmem:[#allocation2 + $0x4a8] sm:$0xff]  ;;  %v11471_v30 = vcombine.low %v631_v22, %v635_v44 }
 0x191   :  { %v623_v51 = vld [vmem:[#allocation2 + $0x208] sm:$0xff]  ;;  %v11543_v40 = vcombine.low %v703_v48, %v707_v4 }
 0x192   :  { %v627_v5 = vld [vmem:[#allocation2 + $0x228] sm:$0xff] }
 0x193   :  { %7712 = vmatpush2.bf16.msra.mxu0 %v12485_v29  ;;  %7741 = vmatpush2.bf16.msra.mxu1 %v11511_v31  ;;  %v11551_v29 = vcombine.low %v711_v18, %v715_v21  ;;  %v11544_v31 = vcombine.high %v703_v48, %v707_v4  ;;  %v699_v34 = vld [vmem:[#allocation2 + $0x468] sm:$0xff] }
 0x194   :  { %7763 = vmatprep.subr.bf16.mxu0 %v11584_v32  ;;  %7742 = vmatprep.subr.bf16.mxu1 %v11504_v33  ;;  %v11464_v32 = vcombine.high %v623_v51, %v627_v5  ;;  %v695_v33 = vld [vmem:[#allocation2 + $0x448] sm:$0xff] }
 0x195   :  { %v871_v7 = vld [vmem:[#allocation2 + $0x9c8] sm:$0xff]  ;;  %v11535_v59 = vcombine.low %v695_v33, %v699_v34 }
 0x196   :  { %7714 = vmatmul.mubr.bf16.vlgmr.msra.gmra.mxu0 %v14159_v35  ;;  %v875_v37 = vld [vmem:[#allocation2 + $0x9e8] sm:$0xff] }
 0x197   :  { %7764 = vmatpush1.bf16.msra.mxu0 %v11583_v41  ;;  %7795 = vmatprep.mubr.bf16.mxu0 %v13778_v63  ;;  %v11463_v41 = vcombine.low %v623_v51, %v627_v5  ;;  %v691_v43 = vld [vmem:[#allocation2 + $0x428] sm:$0xff] }
 0x198   :  { %7743 = vmatpush2.bf16.msra.mxu1 %v11503_v53  ;;  %7765 = vmatprep.subr.bf16.mxu0 %v11576_v57  ;;  %v11536_v53 = vcombine.high %v695_v33, %v699_v34  ;;  %v11712_v57 = vcombine.high %v871_v7, %v875_v37  ;;  %v863_v49 = vld [vmem:[#allocation2 + $0x988] sm:$0xff] }
 0x199   :  { %7744 = vmatprep.subr.bf16.mxu1 %v11496_v42  ;;  %v687_v42 = vld [vmem:[#allocation2 + $0x408] sm:$0xff] }
 0x19a   :  { %v867_v50 = vld [vmem:[#allocation2 + $0x9a8] sm:$0xff] }
 0x19b   :  { %7766 = vmatpush1.bf16.msra.mxu0 %v11575_v11  ;;  %v11711_v11 = vcombine.low %v871_v7, %v875_v37  ;;  %v811_v61 = vld [vmem:[#allocation2 + $0x7e8] sm:$0xff]  ;;  %v11703_v18 = vcombine.low %v863_v49, %v867_v50 }
 0x19c   :  { %7745 = vmatpush2.bf16.msra.mxu1 %v11495_v12  ;;  %7767 = vmatprep.subr.bf16.mxu0 %v11568_v54  ;;  %v11528_v12 = vcombine.high %v687_v42, %v691_v43  ;;  %v11704_v54 = vcombine.high %v863_v49, %v867_v50  ;;  %v855_v60 = vld [vmem:[#allocation2 + $0x948] sm:$0xff] }
 0x19d   :  { %7746 = vmatprep.subr.bf16.mxu1 %v11488_v55  ;;  %v807_v55 = vld [vmem:[#allocation2 + $0x7c8] sm:$0xff] }
 0x19e   :  { %v859_v14 = vld [vmem:[#allocation2 + $0x968] sm:$0xff]  ;;  %v11648_v21 = vcombine.high %v807_v55, %v811_v61 }
 0x19f   :  { %7768 = vmatpush1.bf16.msra.mxu0 %v11567_v62  ;;  %v847_v48 = vld [vmem:[#allocation2 + $0x908] sm:$0xff] }
 0x1a0   :  { %7747 = vmatpush2.bf16.msra.mxu1 %v11487_v0  ;;  %7769 = vmatprep.subr.bf16.mxu0 %v11560_v1  ;;  %v11527_v1 = vcombine.low %v687_v42, %v691_v43  ;;  %v851_v4 = vld [vmem:[#allocation2 + $0x928] sm:$0xff] }
 0x1a1   :  { %7748 = vmatprep.subr.bf16.mxu1 %v11480_v17  ;;  %v11688_v33 = vcombine.high %v847_v48, %v851_v4  ;;  %v791_v34 = vld [vmem:[#allocation2 + $0x748] sm:$0xff] }
 0x1a2   :  { %v795_v7 = vld [vmem:[#allocation2 + $0x768] sm:$0xff] }
 0x1a3   :  { %7770 = vmatpush1.bf16.msra.mxu0 %v11559_v3  ;;  %v839_v37 = vld [vmem:[#allocation2 + $0x8c8] sm:$0xff] }
 0x1a4   :  { %7749 = vmatpush2.bf16.msra.mxu1 %v11479_v24  ;;  %7771 = vmatprep.subr.bf16.mxu0 %v11552_v25  ;;  %v7469_v56 = vpop.f32.mrf.mxu0  ;;  %v11696_v24 = vcombine.high %v855_v60, %v859_v14  ;;  %v799_v25 = vld [vmem:[#allocation2 + $0x788] sm:$0xff] }
 0x1a5   :  { %7750 = vmatprep.subr.bf16.mxu1 %v11472_v47  ;;  %v7470_v62 = vadd.f32 %v7469_v56, %v14151_v36  ;;  %v803_v47 = vld [vmem:[#allocation2 + $0x7a8] sm:$0xff] }
 0x1a6   :  { %v7510_v0 = vpop.f32.mrf.mxu1  ;;  %v7471_v17 = vpop.f32.mrf.mxu0  ;;  %v783_v43 = vld [vmem:[#allocation2 + $0x708] sm:$0xff] }
 0x1a7   :  { %7772 = vmatpush1.bf16.msra.mxu0 %v11551_v29  ;;  %v14165_v22 = vadd.f32 %v7510_v0, %v7470_v62  ;;  %v7472_v44 = vadd.f32 %v7471_v17, %v14156_v8  ;;  %v11647_v29 = vcombine.low %v807_v55, %v811_v61  ;;  %v11640_v8 = vcombine.high %v799_v25, %v803_v47  ;;  %v787_v49 = vld [vmem:[#allocation2 + $0x728] sm:$0xff] }
 0x1a8   :  { %7751 = vmatpush2.bf16.msra.mxu1 %v11471_v30  ;;  %7773 = vmatprep.subr.bf16.mxu0 %v11544_v31  ;;  %v7512_v3 = vpop.f32.mrf.mxu1  ;;  %v7473_v36 = vpop.f32.mrf.mxu0  ;;  %v11695_v31 = vcombine.low %v855_v60, %v859_v14  ;;  %v831_v50 = vld [vmem:[#allocation2 + $0x888] sm:$0xff]  ;;  %v11623_v62 = vcombine.low %v783_v43, %v787_v49 }
 0x1a9   :  { %7752 = vmatprep.subr.bf16.mxu1 %v11464_v32  ;;  %v14169_v51 = vadd.f32 %v7512_v3, %v7472_v44  ;;  %v775_v61 = vld [vmem:[#allocation2 + $0x6c8] sm:$0xff] }
 0x1aa   :  { %v7514_v5 = vpop.f32.mrf.mxu1  ;;  %v7474_v30 = vpop.f32.mrf.mxu0  ;;  %v779_v56 = vld [vmem:[#allocation2 + $0x6e8] sm:$0xff] }
 0x1ab   :  { %7774 = vmatpush1.bf16.msra.mxu0 %v11543_v40  ;;  %v843_v40 = vld [vmem:[#allocation2 + $0x8e8] sm:$0xff] }
 0x1ac   :  { %7753 = vmatpush2.bf16.msra.mxu1 %v11463_v41  ;;  %7775 = vmatprep.subr.bf16.mxu0 %v11536_v53  ;;  %v7515_v32 = vpop.f32.mrf.mxu1  ;;  %v11639_v41 = vcombine.low %v799_v25, %v803_v47  ;;  %v11687_v53 = vcombine.low %v847_v48, %v851_v4  ;;  %v11680_v42 = vcombine.high %v839_v37, %v843_v40  ;;  %v823_v60 = vld [vmem:[#allocation2 + $0x848] sm:$0xff] }
 0x1ad   :  { %7804 = vmatprep.subr.bf16.mxu1 %v11712_v57  ;;  %v11632_v57 = vcombine.high %v791_v34, %v795_v7  ;;  %v827_v14 = vld [vmem:[#allocation2 + $0x868] sm:$0xff] }
 0x1ae   :  { %v11664_v17 = vcombine.high %v823_v60, %v827_v14  ;;  %v815_v44 = vld [vmem:[#allocation2 + $0x808] sm:$0xff]  ;;  %v11663_v25 = vcombine.low %v823_v60, %v827_v14 }
 0x1af   :  { %7755 = vmatmul.mubr.bf16.vlgmr.msra.gmra.mxu1 %v13808_v23  ;;  %7776 = vmatpush1.bf16.msra.mxu0 %v11535_v59  ;;  %v835_v59 = vld [vmem:[#allocation2 + $0x8a8] sm:$0xff] }
 0x1b0   :  { %7805 = vmatpush1.bf16.msra.mxu1 %v11711_v11  ;;  %7777 = vmatprep.subr.bf16.mxu0 %v11528_v12  ;;  %v11631_v11 = vcombine.low %v791_v34, %v795_v7  ;;  %v11679_v12 = vcombine.low %v839_v37, %v843_v40  ;;  %v11672_v55 = vcombine.high %v831_v50, %v835_v59  ;;  %v819_v3 = vld [vmem:[#allocation2 + $0x828] sm:$0xff] }
 0x1b1   :  { %7806 = vmatprep.subr.bf16.mxu1 %v11704_v54  ;;  %7836 = vmatprep.mubr.bf16.mxu1 %v13851_v58  ;;  %v11624_v54 = vcombine.high %v783_v43, %v787_v49  ;;  %v11671_v0 = vcombine.low %v831_v50, %v835_v59  ;;  %v11656_v36 = vcombine.high %v815_v44, %v819_v3  ;;  %v759_v48 = vld [vmem:[#allocation2 + $0x648] sm:$0xff] }
 0x1b2   :  { %v763_v4 = vld [vmem:[#allocation2 + $0x668] sm:$0xff] }
 0x1b3   :  { %7778 = vmatpush1.bf16.msra.mxu0 %v11527_v1  ;;  %v11616_v1 = vcombine.high %v775_v61, %v779_v56  ;;  %v935_v5 = vld [vmem:[#allocation2 + $0xbc8] sm:$0xff]  ;;  %v11599_v40 = vcombine.low %v759_v48, %v763_v4 }
 0x1b4   :  { %7807 = vmatpush1.bf16.msra.mxu1 %v11703_v18  ;;  %7779 = vmatprep.subr.bf16.mxu0 %v11648_v21  ;;  %v767_v18 = vld [vmem:[#allocation2 + $0x688] sm:$0xff] }
 0x1b5   :  { %7808 = vmatprep.subr.bf16.mxu1 %v11696_v24  ;;  %v771_v21 = vld [vmem:[#allocation2 + $0x6a8] sm:$0xff]  ;;  %v11615_v24 = vcombine.low %v775_v61, %v779_v56 }
 0x1b6   :  { %v11608_v47 = vcombine.high %v767_v18, %v771_v21  ;;  %v11607_v30 = vcombine.low %v767_v18, %v771_v21  ;;  %v755_v34 = vld [vmem:[#allocation2 + $0x628] sm:$0xff] }
 0x1b7   :  { %7780 = vmatpush2.bf16.msra.mxu0 %v11647_v29  ;;  %v939_v29 = vld [vmem:[#allocation2 + $0xbe8] sm:$0xff] }
 0x1b8   :  { %7809 = vmatpush1.bf16.msra.mxu1 %v11695_v31  ;;  %7781 = vmatprep.subr.bf16.mxu0 %v11640_v8  ;;  %v11655_v31 = vcombine.low %v815_v44, %v819_v3  ;;  %v11600_v8 = vcombine.high %v759_v48, %v763_v4  ;;  %v11776_v32 = vcombine.high %v935_v5, %v939_v29  ;;  %v927_v7 = vld [vmem:[#allocation2 + $0xb88] sm:$0xff] }
 0x1b9   :  { %7810 = vmatprep.subr.bf16.mxu1 %v11688_v33  ;;  %v751_v33 = vld [vmem:[#allocation2 + $0x608] sm:$0xff] }
 0x1ba   :  { %v931_v37 = vld [vmem:[#allocation2 + $0xba8] sm:$0xff]  ;;  %v11591_v59 = vcombine.low %v751_v33, %v755_v34 }
 0x1bb   :  { %7782 = vmatpush2.bf16.msra.mxu0 %v11639_v41  ;;  %v11775_v41 = vcombine.low %v935_v5, %v939_v29  ;;  %v1003_v43 = vld [vmem:[#allocation2 + $0xde8] sm:$0xff] }
 0x1bc   :  { %7811 = vmatpush1.bf16.msra.mxu1 %v11687_v53  ;;  %7783 = vmatprep.subr.bf16.mxu0 %v11632_v57  ;;  %v11592_v53 = vcombine.high %v751_v33, %v755_v34  ;;  %v11768_v57 = vcombine.high %v927_v7, %v931_v37  ;;  %v919_v49 = vld [vmem:[#allocation2 + $0xb48] sm:$0xff] }
 0x1bd   :  { %7812 = vmatprep.subr.bf16.mxu1 %v11680_v42  ;;  %v999_v42 = vld [vmem:[#allocation2 + $0xdc8] sm:$0xff] }
 0x1be   :  { %v923_v50 = vld [vmem:[#allocation2 + $0xb68] sm:$0xff]  ;;  %v11839_v14 = vcombine.low %v999_v42, %v1003_v43 }
 0x1bf   :  { %7784 = vmatpush2.bf16.msra.mxu0 %v11631_v11  ;;  %v11767_v11 = vcombine.low %v927_v7, %v931_v37  ;;  %v995_v61 = vld [vmem:[#allocation2 + $0xda8] sm:$0xff] }
 0x1c0   :  { %7813 = vmatpush1.bf16.msra.mxu1 %v11679_v12  ;;  %7785 = vmatprep.subr.bf16.mxu0 %v11624_v54  ;;  %v11840_v12 = vcombine.high %v999_v42, %v1003_v43  ;;  %v11760_v54 = vcombine.high %v919_v49, %v923_v50  ;;  %v911_v56 = vld [vmem:[#allocation2 + $0xb08] sm:$0xff] }
 0x1c1   :  { %7814 = vmatprep.subr.bf16.mxu1 %v11672_v55  ;;  %v991_v55 = vld [vmem:[#allocation2 + $0xd88] sm:$0xff] }
 0x1c2   :  { %v915_v60 = vld [vmem:[#allocation2 + $0xb28] sm:$0xff]  ;;  %v11831_v3 = vcombine.low %v991_v55, %v995_v61 }
 0x1c3   :  { %7786 = vmatpush2.bf16.msra.mxu0 %v11623_v62  ;;  %v11759_v62 = vcombine.low %v919_v49, %v923_v50  ;;  %v987_v18 = vld [vmem:[#allocation2 + $0xd68] sm:$0xff] }
 0x1c4   :  { %7815 = vmatpush1.bf16.msra.mxu1 %v11671_v0  ;;  %7787 = vmatprep.subr.bf16.mxu0 %v11616_v1  ;;  %v11832_v0 = vcombine.high %v991_v55, %v995_v61  ;;  %v11752_v1 = vcombine.high %v911_v56, %v915_v60  ;;  %v903_v21 = vld [vmem:[#allocation2 + $0xac8] sm:$0xff] }
 0x1c5   :  { %7816 = vmatprep.subr.bf16.mxu1 %v11664_v17  ;;  %v983_v17 = vld [vmem:[#allocation2 + $0xd48] sm:$0xff] }
 0x1c6   :  { %v907_v44 = vld [vmem:[#allocation2 + $0xae8] sm:$0xff]  ;;  %v11823_v29 = vcombine.low %v983_v17, %v987_v18 }
 0x1c7   :  { %7788 = vmatpush2.bf16.msra.mxu0 %v11615_v24  ;;  %v11751_v24 = vcombine.low %v911_v56, %v915_v60  ;;  %v979_v48 = vld [vmem:[#allocation2 + $0xd28] sm:$0xff] }
 0x1c8   :  { %7817 = vmatpush1.bf16.msra.mxu1 %v11663_v25  ;;  %7789 = vmatprep.subr.bf16.mxu0 %v11608_v47  ;;  %v11824_v25 = vcombine.high %v983_v17, %v987_v18  ;;  %v11744_v47 = vcombine.high %v903_v21, %v907_v44  ;;  %v895_v4 = vld [vmem:[#allocation2 + $0xa88] sm:$0xff] }
 0x1c9   :  { %7818 = vmatprep.subr.bf16.mxu1 %v11656_v36  ;;  %v975_v36 = vld [vmem:[#allocation2 + $0xd08] sm:$0xff] }
 0x1ca   :  { %v899_v5 = vld [vmem:[#allocation2 + $0xaa8] sm:$0xff]  ;;  %v11815_v37 = vcombine.low %v975_v36, %v979_v48 }
 0x1cb   :  { %7790 = vmatpush2.bf16.msra.mxu0 %v11607_v30  ;;  %v11743_v30 = vcombine.low %v903_v21, %v907_v44  ;;  %v971_v33 = vld [vmem:[#allocation2 + $0xce8] sm:$0xff] }
 0x1cc   :  { %7819 = vmatpush1.bf16.msra.mxu1 %v11655_v31  ;;  %7791 = vmatprep.subr.bf16.mxu0 %v11600_v8  ;;  %v11816_v31 = vcombine.high %v975_v36, %v979_v48  ;;  %v11736_v8 = vcombine.high %v895_v4, %v899_v5  ;;  %v887_v34 = vld [vmem:[#allocation2 + $0xa48] sm:$0xff] }
 0x1cd   :  { %7820 = vmatprep.subr.bf16.mxu1 %v11776_v32  ;;  %v967_v32 = vld [vmem:[#allocation2 + $0xcc8] sm:$0xff] }
 0x1ce   :  { %v891_v7 = vld [vmem:[#allocation2 + $0xa68] sm:$0xff]  ;;  %v11807_v50 = vcombine.low %v967_v32, %v971_v33 }
 0x1cf   :  { %7792 = vmatpush2.bf16.msra.mxu0 %v11599_v40  ;;  %v11735_v40 = vcombine.low %v895_v4, %v899_v5  ;;  %v963_v42 = vld [vmem:[#allocation2 + $0xca8] sm:$0xff] }
 0x1d0   :  { %7821 = vmatpush2.bf16.msra.mxu1 %v11775_v41  ;;  %7793 = vmatprep.subr.bf16.mxu0 %v11592_v53  ;;  %v11808_v41 = vcombine.high %v967_v32, %v971_v33  ;;  %v11728_v53 = vcombine.high %v887_v34, %v891_v7  ;;  %v879_v43 = vld [vmem:[#allocation2 + $0xa08] sm:$0xff] }
 0x1d1   :  { %7822 = vmatprep.subr.bf16.mxu1 %v11768_v57  ;;  %v959_v57 = vld [vmem:[#allocation2 + $0xc88] sm:$0xff] }
 0x1d2   :  { %v883_v49 = vld [vmem:[#allocation2 + $0xa28] sm:$0xff]  ;;  %v11799_v60 = vcombine.low %v959_v57, %v963_v42 }
 0x1d3   :  { %7794 = vmatpush2.bf16.msra.mxu0 %v11591_v59  ;;  %v11727_v59 = vcombine.low %v887_v34, %v891_v7  ;;  %v955_v55 = vld [vmem:[#allocation2 + $0xc68] sm:$0xff] }
 0x1d4   :  { %7823 = vmatpush2.bf16.msra.mxu1 %v11767_v11  ;;  %7845 = vmatprep.subr.bf16.mxu0 %v11840_v12  ;;  %v11800_v11 = vcombine.high %v959_v57, %v963_v42  ;;  %v11720_v12 = vcombine.high %v879_v43, %v883_v49  ;;  %v1127_v61 = vld [vmem:[#allocation2 + $0x11c8] sm:$0xff] }
 0x1d5   :  { %7824 = vmatprep.subr.bf16.mxu1 %v11760_v54  ;;  %v951_v54 = vld [vmem:[#allocation2 + $0xc48] sm:$0xff] }
 0x1d6   :  { %7796 = vmatmul.mubr.bf16.vlgmr.msra.gmra.mxu0 %v13810_v27  ;;  %v1131_v56 = vld [vmem:[#allocation2 + $0x11e8] sm:$0xff]  ;;  %v11791_v44 = vcombine.low %v951_v54, %v955_v55 }
 0x1d7   :  { %7846 = vmatpush1.bf16.msra.mxu0 %v11839_v14  ;;  %7877 = vmatprep.mubr.bf16.mxu0 %v13859_v15  ;;  %v11719_v14 = vcombine.low %v879_v43, %v883_v49  ;;  %v947_v17 = vld [vmem:[#allocation2 + $0xc28] sm:$0xff] }
 0x1d8   :  { %7825 = vmatpush2.bf16.msra.mxu1 %v11759_v62  ;;  %7847 = vmatprep.subr.bf16.mxu0 %v11832_v0  ;;  %v11792_v62 = vcombine.high %v951_v54, %v955_v55  ;;  %v11968_v0 = vcombine.high %v1127_v61, %v1131_v56  ;;  %v1119_v18 = vld [vmem:[#allocation2 + $0x1188] sm:$0xff] }
 0x1d9   :  { %7826 = vmatprep.subr.bf16.mxu1 %v11752_v1  ;;  %v943_v1 = vld [vmem:[#allocation2 + $0xc08] sm:$0xff] }
 0x1da   :  { %v1123_v21 = vld [vmem:[#allocation2 + $0x11a8] sm:$0xff] }
 0x1db   :  { %7848 = vmatpush1.bf16.msra.mxu0 %v11831_v3  ;;  %v11967_v3 = vcombine.low %v1127_v61, %v1131_v56  ;;  %v1067_v36 = vld [vmem:[#allocation2 + $0xfe8] sm:$0xff]  ;;  %v11959_v32 = vcombine.low %v1119_v18, %v1123_v21 }
 0x1dc   :  { %7827 = vmatpush2.bf16.msra.mxu1 %v11751_v24  ;;  %7849 = vmatprep.subr.bf16.mxu0 %v11824_v25  ;;  %v11784_v24 = vcombine.high %v943_v1, %v947_v17  ;;  %v11960_v25 = vcombine.high %v1119_v18, %v1123_v21  ;;  %v1111_v4 = vld [vmem:[#allocation2 + $0x1148] sm:$0xff] }
 0x1dd   :  { %7828 = vmatprep.subr.bf16.mxu1 %v11744_v47  ;;  %v1063_v47 = vld [vmem:[#allocation2 + $0xfc8] sm:$0xff] }
 0x1de   :  { %v1115_v5 = vld [vmem:[#allocation2 + $0x1168] sm:$0xff]  ;;  %v11904_v33 = vcombine.high %v1063_v47, %v1067_v36 }
 0x1df   :  { %7850 = vmatpush1.bf16.msra.mxu0 %v11823_v29  ;;  %v1103_v57 = vld [vmem:[#allocation2 + $0x1108] sm:$0xff] }
 0x1e0   :  { %7829 = vmatpush2.bf16.msra.mxu1 %v11743_v30  ;;  %7851 = vmatprep.subr.bf16.mxu0 %v11816_v31  ;;  %v11783_v31 = vcombine.low %v943_v1, %v947_v17  ;;  %v1107_v42 = vld [vmem:[#allocation2 + $0x1128] sm:$0xff] }
 0x1e1   :  { %7830 = vmatprep.subr.bf16.mxu1 %v11736_v8  ;;  %v11944_v54 = vcombine.high %v1103_v57, %v1107_v42  ;;  %v1047_v55 = vld [vmem:[#allocation2 + $0xf48] sm:$0xff] }
 0x1e2   :  { %v1051_v61 = vld [vmem:[#allocation2 + $0xf68] sm:$0xff] }
 0x1e3   :  { %7852 = vmatpush1.bf16.msra.mxu0 %v11815_v37  ;;  %v1095_v56 = vld [vmem:[#allocation2 + $0x10c8] sm:$0xff] }
 0x1e4   :  { %7831 = vmatpush2.bf16.msra.mxu1 %v11735_v40  ;;  %7853 = vmatprep.subr.bf16.mxu0 %v11808_v41  ;;  %v11952_v40 = vcombine.high %v1111_v4, %v1115_v5  ;;  %v1055_v41 = vld [vmem:[#allocation2 + $0xf88] sm:$0xff] }
 0x1e5   :  { %7832 = vmatprep.subr.bf16.mxu1 %v11728_v53  ;;  %v1059_v53 = vld [vmem:[#allocation2 + $0xfa8] sm:$0xff] }
 0x1e6   :  { %v1039_v17 = vld [vmem:[#allocation2 + $0xf08] sm:$0xff] }
 0x1e7   :  { %7854 = vmatpush1.bf16.msra.mxu0 %v11807_v50  ;;  %v11903_v50 = vcombine.low %v1063_v47, %v1067_v36  ;;  %v1043_v18 = vld [vmem:[#allocation2 + $0xf28] sm:$0xff] }
 0x1e8   :  { %7833 = vmatpush2.bf16.msra.mxu1 %v11727_v59  ;;  %7855 = vmatprep.subr.bf16.mxu0 %v11800_v11  ;;  %v7551_v48 = vpop.f32.mrf.mxu0  ;;  %v11951_v11 = vcombine.low %v1111_v4, %v1115_v5  ;;  %v1087_v21 = vld [vmem:[#allocation2 + $0x1088] sm:$0xff] }
 0x1e9   :  { %7834 = vmatprep.subr.bf16.mxu1 %v11720_v12  ;;  %v7552_v29 = vadd.f32 %v7551_v48, %v14165_v22  ;;  %v1031_v36 = vld [vmem:[#allocation2 + $0xec8] sm:$0xff] }
 0x1ea   :  { %v7592_v30 = vpop.f32.mrf.mxu1  ;;  %v7553_v8 = vpop.f32.mrf.mxu0  ;;  %v1035_v48 = vld [vmem:[#allocation2 + $0xee8] sm:$0xff] }
 0x1eb   :  { %7856 = vmatpush1.bf16.msra.mxu0 %v11799_v60  ;;  %v14175_v34 = vadd.f32 %v7592_v30, %v7552_v29  ;;  %v7554_v7 = vadd.f32 %v7553_v8, %v14169_v51  ;;  %v11896_v51 = vcombine.high %v1055_v41, %v1059_v53  ;;  %v1099_v60 = vld [vmem:[#allocation2 + $0x10e8] sm:$0xff]  ;;  %v11879_v29 = vcombine.low %v1039_v17, %v1043_v18 }
 0x1ec   :  { %7835 = vmatpush2.bf16.msra.mxu1 %v11719_v14  ;;  %7857 = vmatprep.subr.bf16.mxu0 %v11792_v62  ;;  %v7594_v37 = vpop.f32.mrf.mxu1  ;;  %v7555_v22 = vpop.f32.mrf.mxu0  ;;  %v11895_v14 = vcombine.low %v1055_v41, %v1059_v53  ;;  %v11943_v62 = vcombine.low %v1103_v57, %v1107_v42  ;;  %v11936_v1 = vcombine.high %v1095_v56, %v1099_v60  ;;  %v1079_v4 = vld [vmem:[#allocation2 + $0x1048] sm:$0xff] }
 0x1ed   :  { %7886 = vmatprep.subr.bf16.mxu1 %v11968_v0  ;;  %v14179_v43 = vadd.f32 %v7594_v37, %v7554_v7  ;;  %v11888_v0 = vcombine.high %v1047_v55, %v1051_v61  ;;  %v1083_v5 = vld [vmem:[#allocation2 + $0x1068] sm:$0xff] }
 0x1ee   :  { %v7596_v49 = vpop.f32.mrf.mxu1  ;;  %v7556_v59 = vpop.f32.mrf.mxu0  ;;  %v11920_v8 = vcombine.high %v1079_v4, %v1083_v5  ;;  %v1071_v7 = vld [vmem:[#allocation2 + $0x1008] sm:$0xff]  ;;  %v11919_v41 = vcombine.low %v1079_v4, %v1083_v5 }
 0x1ef   :  { %7837 = vmatmul.mubr.bf16.vlgmr.msra.gmra.mxu1 %v13944_v13  ;;  %7858 = vmatpush1.bf16.msra.mxu0 %v11791_v44  ;;  %v1091_v44 = vld [vmem:[#allocation2 + $0x10a8] sm:$0xff] }
 0x1f0   :  { %7887 = vmatpush1.bf16.msra.mxu1 %v11967_v3  ;;  %7859 = vmatprep.subr.bf16.mxu0 %v11784_v24  ;;  %v7597_v12 = vpop.f32.mrf.mxu1  ;;  %v11887_v3 = vcombine.low %v1047_v55, %v1051_v61  ;;  %v11935_v24 = vcombine.low %v1095_v56, %v1099_v60  ;;  %v11928_v47 = vcombine.high %v1087_v21, %v1091_v44  ;;  %v1075_v37 = vld [vmem:[#allocation2 + $0x1028] sm:$0xff] }
 0x1f1   :  { %7888 = vmatprep.subr.bf16.mxu1 %v11960_v25  ;;  %7918 = vmatprep.mubr.bf16.mxu1 %v13950_v46  ;;  %v11880_v25 = vcombine.high %v1039_v17, %v1043_v18  ;;  %v11927_v30 = vcombine.low %v1087_v21, %v1091_v44  ;;  %v11912_v22 = vcombine.high %v1071_v7, %v1075_v37  ;;  %v1015_v57 = vld [vmem:[#allocation2 + $0xe48] sm:$0xff] }
 0x1f2   :  { %v1019_v42 = vld [vmem:[#allocation2 + $0xe68] sm:$0xff] }
 0x1f3   :  { %7860 = vmatpush1.bf16.msra.mxu0 %v11783_v31  ;;  %v11872_v31 = vcombine.high %v1031_v36, %v1035_v48  ;;  %v1191_v49 = vld [vmem:[#allocation2 + $0x13c8] sm:$0xff]  ;;  %v11855_v60 = vcombine.low %v1015_v57, %v1019_v42 }
 0x1f4   :  { %7889 = vmatpush1.bf16.msra.mxu1 %v11959_v32  ;;  %7861 = vmatprep.subr.bf16.mxu0 %v11904_v33  ;;  %v1023_v32 = vld [vmem:[#allocation2 + $0xe88] sm:$0xff] }
 0x1f5   :  { %7890 = vmatprep.subr.bf16.mxu1 %v11952_v40  ;;  %v1027_v33 = vld [vmem:[#allocation2 + $0xea8] sm:$0xff]  ;;  %v11871_v40 = vcombine.low %v1031_v36, %v1035_v48 }
 0x1f6   :  { %v11864_v53 = vcombine.high %v1023_v32, %v1027_v33  ;;  %v11863_v59 = vcombine.low %v1023_v32, %v1027_v33  ;;  %v1011_v55 = vld [vmem:[#allocation2 + $0xe28] sm:$0xff] }
 0x1f7   :  { %7862 = vmatpush2.bf16.msra.mxu0 %v11903_v50  ;;  %v1195_v50 = vld [vmem:[#allocation2 + $0x13e8] sm:$0xff] }
 0x1f8   :  { %7891 = vmatpush1.bf16.msra.mxu1 %v11951_v11  ;;  %7863 = vmatprep.subr.bf16.mxu0 %v11896_v51  ;;  %v11911_v11 = vcombine.low %v1071_v7, %v1075_v37  ;;  %v11856_v51 = vcombine.high %v1015_v57, %v1019_v42  ;;  %v12032_v12 = vcombine.high %v1191_v49, %v1195_v50  ;;  %v1183_v61 = vld [vmem:[#allocation2 + $0x1388] sm:$0xff] }
 0x1f9   :  { %7892 = vmatprep.subr.bf16.mxu1 %v11944_v54  ;;  %v1007_v54 = vld [vmem:[#allocation2 + $0xe08] sm:$0xff] }
 0x1fa   :  { %v1187_v56 = vld [vmem:[#allocation2 + $0x13a8] sm:$0xff]  ;;  %v11847_v44 = vcombine.low %v1007_v54, %v1011_v55 }
 0x1fb   :  { %7864 = vmatpush2.bf16.msra.mxu0 %v11895_v14  ;;  %v12031_v14 = vcombine.low %v1191_v49, %v1195_v50  ;;  %v1259_v17 = vld [vmem:[#allocation2 + $0x15e8] sm:$0xff] }
 0x1fc   :  { %7893 = vmatpush1.bf16.msra.mxu1 %v11943_v62  ;;  %7865 = vmatprep.subr.bf16.mxu0 %v11888_v0  ;;  %v11848_v62 = vcombine.high %v1007_v54, %v1011_v55  ;;  %v12024_v0 = vcombine.high %v1183_v61, %v1187_v56  ;;  %v1175_v18 = vld [vmem:[#allocation2 + $0x1348] sm:$0xff] }
 0x1fd   :  { %7894 = vmatprep.subr.bf16.mxu1 %v11936_v1  ;;  %v1255_v1 = vld [vmem:[#allocation2 + $0x15c8] sm:$0xff] }
 0x1fe   :  { %v1179_v21 = vld [vmem:[#allocation2 + $0x1368] sm:$0xff]  ;;  %v12095_v5 = vcombine.low %v1255_v1, %v1259_v17 }
 0x1ff   :  { %7866 = vmatpush2.bf16.msra.mxu0 %v11887_v3  ;;  %v12023_v3 = vcombine.low %v1183_v61, %v1187_v56  ;;  %v1251_v36 = vld [vmem:[#allocation2 + $0x15a8] sm:$0xff] }
 0x200   :  { %7895 = vmatpush1.bf16.msra.mxu1 %v11935_v24  ;;  %7867 = vmatprep.subr.bf16.mxu0 %v11880_v25  ;;  %v12096_v24 = vcombine.high %v1255_v1, %v1259_v17  ;;  %v12016_v25 = vcombine.high %v1175_v18, %v1179_v21  ;;  %v1167_v48 = vld [vmem:[#allocation2 + $0x1308] sm:$0xff] }
 0x201   :  { %7896 = vmatprep.subr.bf16.mxu1 %v11928_v47  ;;  %v1247_v47 = vld [vmem:[#allocation2 + $0x1588] sm:$0xff] }
 0x202   :  { %v1171_v4 = vld [vmem:[#allocation2 + $0x1328] sm:$0xff]  ;;  %v12087_v37 = vcombine.low %v1247_v47, %v1251_v36 }
 0x203   :  { %7868 = vmatpush2.bf16.msra.mxu0 %v11879_v29  ;;  %v12015_v29 = vcombine.low %v1175_v18, %v1179_v21  ;;  %v1243_v32 = vld [vmem:[#allocation2 + $0x1568] sm:$0xff] }
 0x204   :  { %7897 = vmatpush1.bf16.msra.mxu1 %v11927_v30  ;;  %7869 = vmatprep.subr.bf16.mxu0 %v11872_v31  ;;  %v12088_v30 = vcombine.high %v1247_v47, %v1251_v36  ;;  %v12008_v31 = vcombine.high %v1167_v48, %v1171_v4  ;;  %v1159_v33 = vld [vmem:[#allocation2 + $0x12c8] sm:$0xff] }
 0x205   :  { %7898 = vmatprep.subr.bf16.mxu1 %v11920_v8  ;;  %v1239_v8 = vld [vmem:[#allocation2 + $0x1548] sm:$0xff] }
 0x206   :  { %v1163_v7 = vld [vmem:[#allocation2 + $0x12e8] sm:$0xff]  ;;  %v12079_v50 = vcombine.low %v1239_v8, %v1243_v32 }
 0x207   :  { %7870 = vmatpush2.bf16.msra.mxu0 %v11871_v40  ;;  %v12007_v40 = vcombine.low %v1167_v48, %v1171_v4  ;;  %v1235_v57 = vld [vmem:[#allocation2 + $0x1528] sm:$0xff] }
 0x208   :  { %7899 = vmatpush1.bf16.msra.mxu1 %v11919_v41  ;;  %7871 = vmatprep.subr.bf16.mxu0 %v11864_v53  ;;  %v12080_v41 = vcombine.high %v1239_v8, %v1243_v32  ;;  %v12000_v53 = vcombine.high %v1159_v33, %v1163_v7  ;;  %v1151_v42 = vld [vmem:[#allocation2 + $0x1288] sm:$0xff] }
 0x209   :  { %7900 = vmatprep.subr.bf16.mxu1 %v11912_v22  ;;  %v1231_v22 = vld [vmem:[#allocation2 + $0x1508] sm:$0xff] }
 0x20a   :  { %v1155_v49 = vld [vmem:[#allocation2 + $0x12a8] sm:$0xff]  ;;  %v12071_v56 = vcombine.low %v1231_v22, %v1235_v57 }
 0x20b   :  { %7872 = vmatpush2.bf16.msra.mxu0 %v11863_v59  ;;  %v11999_v59 = vcombine.low %v1159_v33, %v1163_v7  ;;  %v1227_v54 = vld [vmem:[#allocation2 + $0x14e8] sm:$0xff] }
 0x20c   :  { %7901 = vmatpush1.bf16.msra.mxu1 %v11911_v11  ;;  %7873 = vmatprep.subr.bf16.mxu0 %v11856_v51  ;;  %v12072_v11 = vcombine.high %v1231_v22, %v1235_v57  ;;  %v11992_v51 = vcombine.high %v1151_v42, %v1155_v49  ;;  %v1143_v55 = vld [vmem:[#allocation2 + $0x1248] sm:$0xff] }
 0x20d   :  { %7902 = vmatprep.subr.bf16.mxu1 %v12032_v12  ;;  %v1223_v12 = vld [vmem:[#allocation2 + $0x14c8] sm:$0xff] }
 0x20e   :  { %v1147_v61 = vld [vmem:[#allocation2 + $0x1268] sm:$0xff]  ;;  %v12063_v21 = vcombine.low %v1223_v12, %v1227_v54 }
 0x20f   :  { %7874 = vmatpush2.bf16.msra.mxu0 %v11855_v60  ;;  %v11991_v60 = vcombine.low %v1151_v42, %v1155_v49  ;;  %v1219_v1 = vld [vmem:[#allocation2 + $0x14a8] sm:$0xff] }
 0x210   :  { %7903 = vmatpush2.bf16.msra.mxu1 %v12031_v14  ;;  %7875 = vmatprep.subr.bf16.mxu0 %v11848_v62  ;;  %v12064_v14 = vcombine.high %v1223_v12, %v1227_v54  ;;  %v11984_v62 = vcombine.high %v1143_v55, %v1147_v61  ;;  %v1135_v17 = vld [vmem:[#allocation2 + $0x1208] sm:$0xff] }
 0x211   :  { %7904 = vmatprep.subr.bf16.mxu1 %v12024_v0  ;;  %v1215_v0 = vld [vmem:[#allocation2 + $0x1488] sm:$0xff] }
 0x212   :  { %v1139_v18 = vld [vmem:[#allocation2 + $0x1228] sm:$0xff]  ;;  %v12055_v4 = vcombine.low %v1215_v0, %v1219_v1 }
 0x213   :  { %7876 = vmatpush2.bf16.msra.mxu0 %v11847_v44  ;;  %v11983_v44 = vcombine.low %v1143_v55, %v1147_v61  ;;  %v1211_v47 = vld [vmem:[#allocation2 + $0x1468] sm:$0xff] }
 0x214   :  { %7905 = vmatpush2.bf16.msra.mxu1 %v12023_v3  ;;  %7927 = vmatprep.subr.bf16.mxu0 %v12096_v24  ;;  %v12056_v3 = vcombine.high %v1215_v0, %v1219_v1  ;;  %v11976_v24 = vcombine.high %v1135_v17, %v1139_v18  ;;  %v1383_v36 = vld [vmem:[#allocation2 + $0x19c8] sm:$0xff] }
 0x215   :  { %7906 = vmatprep.subr.bf16.mxu1 %v12016_v25  ;;  %v1207_v25 = vld [vmem:[#allocation2 + $0x1448] sm:$0xff] }
 0x216   :  { %7878 = vmatmul.mubr.bf16.vlgmr.msra.gmra.mxu0 %v13947_v16  ;;  %v1387_v48 = vld [vmem:[#allocation2 + $0x19e8] sm:$0xff]  ;;  %v12047_v7 = vcombine.low %v1207_v25, %v1211_v47 }
 0x217   :  { %7928 = vmatpush1.bf16.msra.mxu0 %v12095_v5  ;;  %7959 = vmatprep.mubr.bf16.mxu0 %v13953_v2  ;;  %v11975_v5 = vcombine.low %v1135_v17, %v1139_v18  ;;  %v1203_v8 = vld [vmem:[#allocation2 + $0x1428] sm:$0xff] }
 0x218   :  { %7907 = vmatpush2.bf16.msra.mxu1 %v12015_v29  ;;  %7929 = vmatprep.subr.bf16.mxu0 %v12088_v30  ;;  %v12048_v29 = vcombine.high %v1207_v25, %v1211_v47  ;;  %v12224_v30 = vcombine.high %v1383_v36, %v1387_v48  ;;  %v1375_v32 = vld [vmem:[#allocation2 + $0x1988] sm:$0xff] }
 0x219   :  { %7908 = vmatprep.subr.bf16.mxu1 %v12008_v31  ;;  %v1199_v31 = vld [vmem:[#allocation2 + $0x1408] sm:$0xff] }
 0x21a   :  { %v1379_v33 = vld [vmem:[#allocation2 + $0x19a8] sm:$0xff] }
 0x21b   :  { %7930 = vmatpush1.bf16.msra.mxu0 %v12087_v37  ;;  %v12223_v37 = vcombine.low %v1383_v36, %v1387_v48  ;;  %v1323_v22 = vld [vmem:[#allocation2 + $0x17e8] sm:$0xff]  ;;  %v12215_v12 = vcombine.low %v1375_v32, %v1379_v33 }
 0x21c   :  { %7909 = vmatpush2.bf16.msra.mxu1 %v12007_v40  ;;  %7931 = vmatprep.subr.bf16.mxu0 %v12080_v41  ;;  %v12040_v40 = vcombine.high %v1199_v31, %v1203_v8  ;;  %v12216_v41 = vcombine.high %v1375_v32, %v1379_v33  ;;  %v1367_v42 = vld [vmem:[#allocation2 + $0x1948] sm:$0xff] }
 0x21d   :  { %7910 = vmatprep.subr.bf16.mxu1 %v12000_v53  ;;  %v1319_v53 = vld [vmem:[#allocation2 + $0x17c8] sm:$0xff] }
 0x21e   :  { %v1371_v49 = vld [vmem:[#allocation2 + $0x1968] sm:$0xff]  ;;  %v12160_v54 = vcombine.high %v1319_v53, %v1323_v22 }
 0x21f   :  { %7932 = vmatpush1.bf16.msra.mxu0 %v12079_v50  ;;  %v1359_v0 = vld [vmem:[#allocation2 + $0x1908] sm:$0xff] }
 0x220   :  { %7911 = vmatpush2.bf16.msra.mxu1 %v11999_v59  ;;  %7933 = vmatprep.subr.bf16.mxu0 %v12072_v11  ;;  %v12039_v11 = vcombine.low %v1199_v31, %v1203_v8  ;;  %v1363_v1 = vld [vmem:[#allocation2 + $0x1928] sm:$0xff] }
 0x221   :  { %7912 = vmatprep.subr.bf16.mxu1 %v11992_v51  ;;  %v12200_v25 = vcombine.high %v1359_v0, %v1363_v1  ;;  %v1303_v47 = vld [vmem:[#allocation2 + $0x1748] sm:$0xff] }
 0x222   :  { %v1307_v36 = vld [vmem:[#allocation2 + $0x1768] sm:$0xff] }
 0x223   :  { %7934 = vmatpush1.bf16.msra.mxu0 %v12071_v56  ;;  %v1351_v48 = vld [vmem:[#allocation2 + $0x18c8] sm:$0xff] }
 0x224   :  { %7913 = vmatpush2.bf16.msra.mxu1 %v11991_v60  ;;  %7935 = vmatprep.subr.bf16.mxu0 %v12064_v14  ;;  %v12208_v60 = vcombine.high %v1367_v42, %v1371_v49  ;;  %v1311_v14 = vld [vmem:[#allocation2 + $0x1788] sm:$0xff] }
 0x225   :  { %7914 = vmatprep.subr.bf16.mxu1 %v11984_v62  ;;  %v1315_v62 = vld [vmem:[#allocation2 + $0x17a8] sm:$0xff] }
 0x226   :  { %v1295_v8 = vld [vmem:[#allocation2 + $0x1708] sm:$0xff] }
 0x227   :  { %7936 = vmatpush1.bf16.msra.mxu0 %v12063_v21  ;;  %v12159_v21 = vcombine.low %v1319_v53, %v1323_v22  ;;  %v1299_v32 = vld [vmem:[#allocation2 + $0x1728] sm:$0xff] }
 0x228   :  { %7915 = vmatpush2.bf16.msra.mxu1 %v11983_v44  ;;  %7937 = vmatprep.subr.bf16.mxu0 %v12056_v3  ;;  %v12207_v3 = vcombine.low %v1367_v42, %v1371_v49  ;;  %v1343_v33 = vld [vmem:[#allocation2 + $0x1888] sm:$0xff] }
 0x229   :  { %7916 = vmatprep.subr.bf16.mxu1 %v11976_v24  ;;  %v1287_v22 = vld [vmem:[#allocation2 + $0x16c8] sm:$0xff] }
 0x22a   :  { %v1335_v42 = vld [vmem:[#allocation2 + $0x1848] sm:$0xff] }
 0x22b   :  { %7938 = vmatpush1.bf16.msra.mxu0 %v12055_v4  ;;  %v1355_v4 = vld [vmem:[#allocation2 + $0x18e8] sm:$0xff] }
 0x22c   :  { %7917 = vmatpush2.bf16.msra.mxu1 %v11975_v5  ;;  %7939 = vmatprep.subr.bf16.mxu0 %v12048_v29  ;;  %v7633_v57 = vpop.f32.mrf.mxu0  ;;  %v12151_v5 = vcombine.low %v1311_v14, %v1315_v62  ;;  %v12199_v29 = vcombine.low %v1359_v0, %v1363_v1  ;;  %v12192_v31 = vcombine.high %v1351_v48, %v1355_v4  ;;  %v1339_v49 = vld [vmem:[#allocation2 + $0x1868] sm:$0xff] }
 0x22d   :  { %7968 = vmatprep.subr.bf16.mxu1 %v12224_v30  ;;  %v7634_v50 = vadd.f32 %v7633_v57, %v14175_v34  ;;  %v12144_v30 = vcombine.high %v1303_v47, %v1307_v36  ;;  %v1291_v57 = vld [vmem:[#allocation2 + $0x16e8] sm:$0xff] }
 0x22e   :  { %v7674_v59 = vpop.f32.mrf.mxu1  ;;  %v7635_v51 = vpop.f32.mrf.mxu0  ;;  %v1271_v0 = vld [vmem:[#allocation2 + $0x1648] sm:$0xff] }
 0x22f   :  { %7919 = vmatmul.mubr.bf16.vlgmr.msra.gmra.mxu1 %v14044_v28  ;;  %7940 = vmatpush1.bf16.msra.mxu0 %v12047_v7  ;;  %v14185_v55 = vadd.f32 %v7674_v59, %v7634_v50  ;;  %v7636_v61 = vadd.f32 %v7635_v51, %v14179_v43  ;;  %v12152_v43 = vcombine.high %v1311_v14, %v1315_v62  ;;  %v1347_v7 = vld [vmem:[#allocation2 + $0x18a8] sm:$0xff] }
 0x230   :  { %7969 = vmatpush1.bf16.msra.mxu1 %v12223_v37  ;;  %7941 = vmatprep.subr.bf16.mxu0 %v12040_v40  ;;  %v7676_v56 = vpop.f32.mrf.mxu1  ;;  %v7637_v34 = vpop.f32.mrf.mxu0  ;;  %v12143_v37 = vcombine.low %v1303_v47, %v1307_v36  ;;  %v12191_v40 = vcombine.low %v1351_v48, %v1355_v4  ;;  %v12184_v53 = vcombine.high %v1343_v33, %v1347_v7  ;;  %v1275_v1 = vld [vmem:[#allocation2 + $0x1668] sm:$0xff] }
 0x231   :  { %7970 = vmatprep.subr.bf16.mxu1 %v12216_v41  ;;  %8000 = vmatprep.mubr.bf16.mxu1 %v14050_v38  ;;  %v14189_v17 = vadd.f32 %v7676_v56, %v7636_v61  ;;  %v12136_v41 = vcombine.high %v1295_v8, %v1299_v32  ;;  %v12135_v50 = vcombine.low %v1295_v8, %v1299_v32  ;;  %v1327_v61 = vld [vmem:[#allocation2 + $0x1808] sm:$0xff] }
 0x232   :  { %v7678_v18 = vpop.f32.mrf.mxu1  ;;  %v7638_v44 = vpop.f32.mrf.mxu0  ;;  %v12183_v59 = vcombine.low %v1343_v33, %v1347_v7  ;;  %v12176_v51 = vcombine.high %v1335_v42, %v1339_v49  ;;  %v1331_v56 = vld [vmem:[#allocation2 + $0x1828] sm:$0xff]  ;;  %v12175_v14 = vcombine.low %v1335_v42, %v1339_v49  ;;  %v12111_v4 = vcombine.low %v1271_v0, %v1275_v1 }
 0x233   :  { %7942 = vmatpush1.bf16.msra.mxu0 %v12039_v11  ;;  %v12128_v11 = vcombine.high %v1287_v22, %v1291_v57  ;;  %v12168_v34 = vcombine.high %v1327_v61, %v1331_v56  ;;  %v1447_v18 = vld [vmem:[#allocation2 + $0x1bc8] sm:$0xff] }
 0x234   :  { %7971 = vmatpush1.bf16.msra.mxu1 %v12215_v12  ;;  %7943 = vmatprep.subr.bf16.mxu0 %v12160_v54  ;;  %v7679_v24 = vpop.f32.mrf.mxu1  ;;  %v1279_v12 = vld [vmem:[#allocation2 + $0x1688] sm:$0xff] }
 0x235   :  { %7972 = vmatprep.subr.bf16.mxu1 %v12208_v60  ;;  %v1283_v54 = vld [vmem:[#allocation2 + $0x16a8] sm:$0xff]  ;;  %v12127_v60 = vcombine.low %v1287_v22, %v1291_v57 }
 0x236   :  { %v12120_v62 = vcombine.high %v1279_v12, %v1283_v54  ;;  %v12119_v44 = vcombine.low %v1279_v12, %v1283_v54  ;;  %v1267_v47 = vld [vmem:[#allocation2 + $0x1628] sm:$0xff] }
 0x237   :  { %7944 = vmatpush2.bf16.msra.mxu0 %v12159_v21  ;;  %v1451_v21 = vld [vmem:[#allocation2 + $0x1be8] sm:$0xff] }
 0x238   :  { %7973 = vmatpush1.bf16.msra.mxu1 %v12207_v3  ;;  %7945 = vmatprep.subr.bf16.mxu0 %v12152_v43  ;;  %v12167_v3 = vcombine.low %v1327_v61, %v1331_v56  ;;  %v12112_v43 = vcombine.high %v1271_v0, %v1275_v1  ;;  %v12288_v24 = vcombine.high %v1447_v18, %v1451_v21  ;;  %v1439_v36 = vld [vmem:[#allocation2 + $0x1b88] sm:$0xff] }
 0x239   :  { %7974 = vmatprep.subr.bf16.mxu1 %v12200_v25  ;;  %v1263_v25 = vld [vmem:[#allocation2 + $0x1608] sm:$0xff] }
 0x23a   :  { %v1443_v48 = vld [vmem:[#allocation2 + $0x1ba8] sm:$0xff]  ;;  %v12103_v7 = vcombine.low %v1263_v25, %v1267_v47 }
 0x23b   :  { %7946 = vmatpush2.bf16.msra.mxu0 %v12151_v5  ;;  %v12287_v5 = vcombine.low %v1447_v18, %v1451_v21  ;;  %v1515_v8 = vld [vmem:[#allocation2 + $0x1de8] sm:$0xff] }
 0x23c   :  { %7975 = vmatpush1.bf16.msra.mxu1 %v12199_v29  ;;  %7947 = vmatprep.subr.bf16.mxu0 %v12144_v30  ;;  %v12104_v29 = vcombine.high %v1263_v25, %v1267_v47  ;;  %v12280_v30 = vcombine.high %v1439_v36, %v1443_v48  ;;  %v1431_v32 = vld [vmem:[#allocation2 + $0x1b48] sm:$0xff] }
 0x23d   :  { %7976 = vmatprep.subr.bf16.mxu1 %v12192_v31  ;;  %v1511_v31 = vld [vmem:[#allocation2 + $0x1dc8] sm:$0xff] }
 0x23e   :  { %v1435_v33 = vld [vmem:[#allocation2 + $0x1b68] sm:$0xff]  ;;  %v12351_v49 = vcombine.low %v1511_v31, %v1515_v8 }
 0x23f   :  { %7948 = vmatpush2.bf16.msra.mxu0 %v12143_v37  ;;  %v12279_v37 = vcombine.low %v1439_v36, %v1443_v48  ;;  %v1507_v22 = vld [vmem:[#allocation2 + $0x1da8] sm:$0xff] }
 0x240   :  { %7977 = vmatpush1.bf16.msra.mxu1 %v12191_v40  ;;  %7949 = vmatprep.subr.bf16.mxu0 %v12136_v41  ;;  %v12352_v40 = vcombine.high %v1511_v31, %v1515_v8  ;;  %v12272_v41 = vcombine.high %v1431_v32, %v1435_v33  ;;  %v1423_v57 = vld [vmem:[#allocation2 + $0x1b08] sm:$0xff] }
 0x241   :  { %7978 = vmatprep.subr.bf16.mxu1 %v12184_v53  ;;  %v1503_v53 = vld [vmem:[#allocation2 + $0x1d88] sm:$0xff] }
 0x242   :  { %v1427_v42 = vld [vmem:[#allocation2 + $0x1b28] sm:$0xff] }
 0x243   :  { %7950 = vmatpush2.bf16.msra.mxu0 %v12135_v50  ;;  %v12271_v50 = vcombine.low %v1431_v32, %v1435_v33  ;;  %v1499_v12 = vld [vmem:[#allocation2 + $0x1d68] sm:$0xff] }
 0x244   :  { %7979 = vmatpush1.bf16.msra.mxu1 %v12183_v59  ;;  %7951 = vmatprep.subr.bf16.mxu0 %v12128_v11  ;;  %v12344_v59 = vcombine.high %v1503_v53, %v1507_v22  ;;  %v12264_v11 = vcombine.high %v1423_v57, %v1427_v42  ;;  %v1415_v61 = vld [vmem:[#allocation2 + $0x1ac8] sm:$0xff] }
 0x245   :  { %7980 = vmatprep.subr.bf16.mxu1 %v12176_v51  ;;  %v1495_v51 = vld [vmem:[#allocation2 + $0x1d48] sm:$0xff] }
 0x246   :  { %v1419_v56 = vld [vmem:[#allocation2 + $0x1ae8] sm:$0xff]  ;;  %v12336_v0 = vcombine.high %v1495_v51, %v1499_v12 }
 0x247   :  { %7952 = vmatpush2.bf16.msra.mxu0 %v12127_v60  ;;  %v12256_v18 = vcombine.high %v1415_v61, %v1419_v56  ;;  %v1487_v21 = vld [vmem:[#allocation2 + $0x1d08] sm:$0xff]  ;;  %v12255_v47 = vcombine.low %v1415_v61, %v1419_v56 }
 0x248   :  { %7981 = vmatpush1.bf16.msra.mxu1 %v12175_v14  ;;  %7953 = vmatprep.subr.bf16.mxu0 %v12120_v62  ;;  %v12343_v14 = vcombine.low %v1503_v53, %v1507_v22  ;;  %v1471_v33 = vld [vmem:[#allocation2 + $0x1c88] sm:$0xff] }
 0x249   :  { %7982 = vmatprep.subr.bf16.mxu1 %v12168_v34  ;;  %v12263_v34 = vcombine.low %v1423_v57, %v1427_v42  ;;  %v1463_v42 = vld [vmem:[#allocation2 + $0x1c48] sm:$0xff] }
 0x24a   :  { %v1455_v61 = vld [vmem:[#allocation2 + $0x1c08] sm:$0xff] }
 0x24b   :  { %7954 = vmatpush2.bf16.msra.mxu0 %v12119_v44  ;;  %v1491_v44 = vld [vmem:[#allocation2 + $0x1d28] sm:$0xff] }
 0x24c   :  { %7983 = vmatpush1.bf16.msra.mxu1 %v12167_v3  ;;  %7955 = vmatprep.subr.bf16.mxu0 %v12112_v43  ;;  %v1407_v43 = vld [vmem:[#allocation2 + $0x1a88] sm:$0xff]  ;;  %v12328_v36 = vcombine.high %v1487_v21, %v1491_v44 }
 0x24d   :  { %7984 = vmatprep.subr.bf16.mxu1 %v12288_v24  ;;  %v12335_v24 = vcombine.low %v1495_v51, %v1499_v12  ;;  %v1459_v56 = vld [vmem:[#allocation2 + $0x1c28] sm:$0xff] }
 0x24f   :  { %7956 = vmatpush2.bf16.msra.mxu0 %v12111_v4  ;;  %v1479_v4 = vld [vmem:[#allocation2 + $0x1cc8] sm:$0xff] }
 0x250   :  { %7985 = vmatpush2.bf16.msra.mxu1 %v12287_v5  ;;  %7957 = vmatprep.subr.bf16.mxu0 %v12104_v29  ;;  %v1483_v5 = vld [vmem:[#allocation2 + $0x1ce8] sm:$0xff] }
 0x251   :  { %7986 = vmatprep.subr.bf16.mxu1 %v12280_v30  ;;  %v1403_v29 = vld [vmem:[#allocation2 + $0x1a68] sm:$0xff]  ;;  %v12327_v30 = vcombine.low %v1487_v21, %v1491_v44  ;;  %v12320_v8 = vcombine.high %v1479_v4, %v1483_v5 }
 0x252   :  { %v1575_v44 = vld [vmem:[#allocation2 + $0x1fc8] sm:$0xff] }
 0x253   :  { %7958 = vmatpush2.bf16.msra.mxu0 %v12103_v7  ;;  %v1475_v7 = vld [vmem:[#allocation2 + $0x1ca8] sm:$0xff] }
 0x254   :  { %7987 = vmatpush2.bf16.msra.mxu1 %v12279_v37  ;;  %8009 = vmatprep.subr.bf16.mxu0 %v12352_v40  ;;  %v1391_v37 = vld [vmem:[#allocation2 + $0x1a08] sm:$0xff]  ;;  %v12312_v22 = vcombine.high %v1471_v33, %v1475_v7 }
 0x255   :  { %7988 = vmatprep.subr.bf16.mxu1 %v12272_v41  ;;  %v1395_v40 = vld [vmem:[#allocation2 + $0x1a28] sm:$0xff]  ;;  %v12319_v41 = vcombine.low %v1479_v4, %v1483_v5 }
 0x256   :  { %v7715_v54 = vpop.f32.mrf.mxu0  ;;  %7960 = vmatmul.mubr.bf16.vlgmr.msra.gmra.mxu0 %v14047_v6  ;;  %v12232_v57 = vcombine.high %v1391_v37, %v1395_v40  ;;  %v12231_v51 = vcombine.low %v1391_v37, %v1395_v40  ;;  %v1567_v5 = vld [vmem:[#allocation2 + $0x1f88] sm:$0xff] }
 0x257   :  { %v14193_v60 = vadd.f32 %v7715_v54, %v14185_v55  ;;  %8010 = vmatpush1.bf16.msra.mxu0 %v12351_v49  ;;  %8041 = vmatprep.mubr.bf16.mxu0 %v14053_v39  ;;  %v1411_v55 = vld [vmem:[#allocation2 + $0x1aa8] sm:$0xff] }
 0x258   :  { %7989 = vmatpush2.bf16.msra.mxu1 %v12271_v50  ;;  %v7717_v62 = vpop.f32.mrf.mxu0  ;;  %8011 = vmatprep.subr.bf16.mxu0 %v12344_v59  ;;  %v12248_v48 = vcombine.high %v1407_v43, %v1411_v55  ;;  %v12247_v31 = vcombine.low %v1407_v43, %v1411_v55  ;;  %v1467_v49 = vld [vmem:[#allocation2 + $0x1c68] sm:$0xff] }
 0x259   :  { %v14197_v1 = vadd.f32 %v7717_v62, %v14189_v17  ;;  %7990 = vmatprep.subr.bf16.mxu1 %v12264_v11  ;;  %v1399_v17 = vld [vmem:[#allocation2 + $0x1a48] sm:$0xff]  ;;  %v12311_v11 = vcombine.low %v1471_v33, %v1475_v7  ;;  %v12304_v12 = vcombine.high %v1463_v42, %v1467_v49 }
 0x25a   :  { %v7719_v3 = vpop.f32.mrf.mxu0  ;;  %v12240_v32 = vcombine.high %v1399_v17, %v1403_v29  ;;  %v12239_v53 = vcombine.low %v1399_v17, %v1403_v29  ;;  %v1639_v50 = vld [vmem:[#allocation2 + $0x21c8] sm:$0xff] }
 0x25b   :  { %8012 = vmatpush1.bf16.msra.mxu0 %v12343_v14  ;;  %v1643_v59 = vld [vmem:[#allocation2 + $0x21e8] sm:$0xff] }
 0x25c   :  { %7991 = vmatpush2.bf16.msra.mxu1 %v12263_v34  ;;  %v7720_v25 = vpop.f32.mrf.mxu0  ;;  %8013 = vmatprep.subr.bf16.mxu0 %v12336_v0  ;;  %v12480_v54 = vcombine.high %v1639_v50, %v1643_v59  ;;  %v1631_v14 = vld [vmem:[#allocation2 + $0x2188] sm:$0xff]  ;;  %v12303_v34 = vcombine.low %v1463_v42, %v1467_v49  ;;  %v12479_v0 = vcombine.low %v1639_v50, %v1643_v59 }
 0x25d   :  { %7992 = vmatprep.subr.bf16.mxu1 %v12256_v18  ;;  %v1635_v62 = vld [vmem:[#allocation2 + $0x21a8] sm:$0xff]  ;;  %v12296_v18 = vcombine.high %v1455_v61, %v1459_v56  ;;  %v12295_v25 = vcombine.low %v1455_v61, %v1459_v56 }
 0x25e   :  { %v12472_v21 = vcombine.high %v1631_v14, %v1635_v62  ;;  %v1579_v3 = vld [vmem:[#allocation2 + $0x1fe8] sm:$0xff] }
 0x25f   :  { %8014 = vmatpush1.bf16.msra.mxu0 %v12335_v24  ;;  %v1623_v43 = vld [vmem:[#allocation2 + $0x2148] sm:$0xff] }
 0x260   :  { %7993 = vmatpush2.bf16.msra.mxu1 %v12255_v47  ;;  %8015 = vmatprep.subr.bf16.mxu0 %v12328_v36  ;;  %v1627_v55 = vld [vmem:[#allocation2 + $0x2168] sm:$0xff]  ;;  %v12471_v47 = vcombine.low %v1631_v14, %v1635_v62  ;;  %v12416_v36 = vcombine.high %v1575_v44, %v1579_v3 }
 0x261   :  { %7994 = vmatprep.subr.bf16.mxu1 %v12248_v48  ;;  %v12464_v4 = vcombine.high %v1623_v43, %v1627_v55  ;;  %v1571_v17 = vld [vmem:[#allocation2 + $0x1fa8] sm:$0xff] }
 0x262   :  { %v1615_v29 = vld [vmem:[#allocation2 + $0x2108] sm:$0xff]  ;;  %v12408_v33 = vcombine.high %v1567_v5, %v1571_v17 }
 0x263   :  { %8016 = vmatpush1.bf16.msra.mxu0 %v12327_v30  ;;  %v1619_v30 = vld [vmem:[#allocation2 + $0x2128] sm:$0xff] }
 0x264   :  { %7995 = vmatpush2.bf16.msra.mxu1 %v12247_v31  ;;  %8017 = vmatprep.subr.bf16.mxu0 %v12320_v8  ;;  %v12415_v8 = vcombine.low %v1575_v44, %v1579_v3  ;;  %v12456_v37 = vcombine.high %v1615_v29, %v1619_v30  ;;  %v1559_v40 = vld [vmem:[#allocation2 + $0x1f48] sm:$0xff]  ;;  %v12455_v42 = vcombine.low %v1615_v29, %v1619_v30 }
 0x265   :  { %7996 = vmatprep.subr.bf16.mxu1 %v12240_v32  ;;  %v12463_v32 = vcombine.low %v1623_v43, %v1627_v55  ;;  %v1551_v59 = vld [vmem:[#allocation2 + $0x1f08] sm:$0xff] }
 0x266   :  { %v1543_v62 = vld [vmem:[#allocation2 + $0x1ec8] sm:$0xff] }
 0x267   :  { %8018 = vmatpush1.bf16.msra.mxu0 %v12319_v41  ;;  %v1563_v41 = vld [vmem:[#allocation2 + $0x1f68] sm:$0xff] }
 0x268   :  { %7997 = vmatpush2.bf16.msra.mxu1 %v12239_v53  ;;  %8019 = vmatprep.subr.bf16.mxu0 %v12312_v22  ;;  %v1607_v53 = vld [vmem:[#allocation2 + $0x20c8] sm:$0xff]  ;;  %v12400_v49 = vcombine.high %v1559_v40, %v1563_v41 }
 0x269   :  { %7998 = vmatprep.subr.bf16.mxu1 %v12232_v57  ;;  %v1611_v22 = vld [vmem:[#allocation2 + $0x20e8] sm:$0xff]  ;;  %v12407_v57 = vcombine.low %v1567_v5, %v1571_v17 }
 0x26a   :  { %v12448_v50 = vcombine.high %v1607_v53, %v1611_v22  ;;  %v12447_v61 = vcombine.low %v1607_v53, %v1611_v22  ;;  %v1535_v55 = vld [vmem:[#allocation2 + $0x1e88] sm:$0xff] }
 0x26b   :  { %8020 = vmatpush1.bf16.msra.mxu0 %v12311_v11  ;;  %v1555_v11 = vld [vmem:[#allocation2 + $0x1f28] sm:$0xff] }
 0x26c   :  { %7999 = vmatpush2.bf16.msra.mxu1 %v12231_v51  ;;  %8021 = vmatprep.subr.bf16.mxu0 %v12304_v12  ;;  %v1599_v51 = vld [vmem:[#allocation2 + $0x2088] sm:$0xff]  ;;  %v12392_v56 = vcombine.high %v1551_v59, %v1555_v11 }
 0x26d   :  { %8050 = vmatprep.subr.bf16.mxu1 %v12480_v54  ;;  %v1603_v12 = vld [vmem:[#allocation2 + $0x20a8] sm:$0xff]  ;;  %v12399_v54 = vcombine.low %v1559_v40, %v1563_v41 }
 0x26e   :  { %v12440_v14 = vcombine.high %v1599_v51, %v1603_v12  ;;  %v12439_v44 = vcombine.low %v1599_v51, %v1603_v12  ;;  %v1527_v30 = vld [vmem:[#allocation2 + $0x1e48] sm:$0xff]  ;;  %v616_v51 = vld [vmem:[#allocation2 + $0x1d0] sm:$0xff] }
 0x26f   :  { %v14199_v24 = vpop.f32.mrf.mxu1  ;;  %8001 = vmatmul.mubr.bf16.vlgmr.msra.gmra.mxu1 %v14140_v10  ;;  %8022 = vmatpush1.bf16.msra.mxu0 %v12303_v34  ;;  %v1547_v34 = vld [vmem:[#allocation2 + $0x1ee8] sm:$0xff]  ;;  %v620_v12 = vld [vmem:[#allocation2 + $0x1f0] sm:$0xff] }
 0x270   :  { %8051 = vmatpush1.bf16.msra.mxu1 %v12479_v0  ;;  %8023 = vmatprep.subr.bf16.mxu0 %v12296_v18  ;;  %v1591_v0 = vld [vmem:[#allocation2 + $0x2048] sm:$0xff]  ;;  %v12384_v3 = vcombine.high %v1543_v62, %v1547_v34 }
 0x271   :  { %v14202_v48 = vpop.f32.mrf.mxu1  ;;  %8052 = vmatprep.subr.bf16.mxu1 %v12472_v21  ;;  %12502 = vmatprep.mubr.msk.bf16.mxu1 %vm384_vm1, %v14147_v26  ;;  %v1595_v18 = vld [vmem:[#allocation2 + $0x2068] sm:$0xff]  ;;  %v12391_v21 = vcombine.low %v1551_v59, %v1555_v11  ;;  %v1674_v59 = vsub.s32 2, %v14128_v52 }
 0x272   :  { %v12432_v43 = vcombine.high %v1591_v0, %v1595_v18  ;;  %v12431_v5 = vcombine.low %v1591_v0, %v1595_v18  ;;  %v1519_v41 = vld [vmem:[#allocation2 + $0x1e08] sm:$0xff]  ;;  %v13366_v0 = vld [vmem:[#allocation5] sm:$0xff] }
 0x273   :  { %v7760_v31 = vpop.f32.mrf.mxu1  ;;  %8024 = vmatpush1.bf16.msra.mxu0 %v12295_v25  ;;  %v1539_v25 = vld [vmem:[#allocation2 + $0x1ea8] sm:$0xff]  ;;  %v1675_v18 = vrot.slane %v13366_v0, %v1674_v59 }
 0x274   :  { %8053 = vmatpush1.bf16.msra.mxu1 %v12471_v47  ;;  %8025 = vmatprep.subr.bf16.mxu0 %v12416_v36  ;;  %v1583_v47 = vld [vmem:[#allocation2 + $0x2008] sm:$0xff]  ;;  %v12376_v17 = vcombine.high %v1535_v55, %v1539_v25 }
 0x275   :  { %v7761_v7 = vpop.f32.mrf.mxu1  ;;  %8054 = vmatprep.subr.bf16.mxu1 %v12464_v4  ;;  %v1587_v36 = vld [vmem:[#allocation2 + $0x2028] sm:$0xff]  ;;  %v12383_v4 = vcombine.low %v1543_v62, %v1547_v34  ;;  %v11458_v34 = vcombine.high %v616_v51, %v620_v12 }
 0x276   :  { %v12424_v29 = vcombine.high %v1583_v47, %v1587_v36  ;;  %v1531_v31 = vld [vmem:[#allocation2 + $0x1e68] sm:$0xff]  ;;  %v12423_v7 = vcombine.low %v1583_v47, %v1587_v36  ;;  %v11457_v47 = vcombine.low %v616_v51, %v620_v12 }
 0x277   :  { %8026 = vmatpush2.bf16.msra.mxu0 %v12415_v8  ;;  %v1655_v8 = vld [vmem:[#allocation2 + $0x2248] sm:$0xff] }
 0x278   :  { %8055 = vmatpush1.bf16.msra.mxu1 %v12463_v32  ;;  %8027 = vmatprep.subr.bf16.mxu0 %v12408_v33  ;;  %v1659_v32 = vld [vmem:[#allocation2 + $0x2268] sm:$0xff]  ;;  %v12375_v33 = vcombine.low %v1535_v55, %v1539_v25  ;;  %v740_v55 = vld [vmem:[#allocation2 + $0x5b0] sm:$0xff] }
 0x279   :  { %8056 = vmatprep.subr.bf16.mxu1 %v12456_v37  ;;  %v12368_v37 = vcombine.high %v1527_v30, %v1531_v31  ;;  %v12496_v40 = vcombine.high %v1655_v8, %v1659_v32  ;;  %v1523_v53 = vld [vmem:[#allocation2 + $0x1e28] sm:$0xff] }
 0x27a   :  { %v1647_v22 = vld [vmem:[#allocation2 + $0x2208] sm:$0xff] }
 0x27b   :  { %8028 = vmatpush2.bf16.msra.mxu0 %v12407_v57  ;;  %v1651_v57 = vld [vmem:[#allocation2 + $0x2228] sm:$0xff] }
 0x27c   :  { %8057 = vmatpush1.bf16.msra.mxu1 %v12455_v42  ;;  %8029 = vmatprep.subr.bf16.mxu0 %v12400_v49  ;;  %v12367_v42 = vcombine.low %v1527_v30, %v1531_v31  ;;  %v12495_v49 = vcombine.low %v1655_v8, %v1659_v32  ;;  %v12488_v11 = vcombine.high %v1647_v22, %v1651_v57  ;;  %v604_v30 = vld [vmem:[#allocation2 + $0x170] sm:$0xff] }
 0x27d   :  { %8058 = vmatprep.subr.bf16.mxu1 %v12448_v50  ;;  %v12360_v50 = vcombine.high %v1519_v41, %v1523_v53  ;;  %v12487_v62 = vcombine.low %v1647_v22, %v1651_v57  ;;  %v728_v8 = vld [vmem:[#allocation2 + $0x550] sm:$0xff] }
 0x27e   :  { %v732_v32 = vld [vmem:[#allocation2 + $0x570] sm:$0xff] }
 0x27f   :  { %8030 = vmatpush2.bf16.msra.mxu0 %v12399_v54  ;;  %v744_v54 = vld [vmem:[#allocation2 + $0x5d0] sm:$0xff]  ;;  %v11570_v22 = vcombine.high %v728_v8, %v732_v32  ;;  %v11569_v12 = vcombine.low %v728_v8, %v732_v32 }
 0x280   :  { %8059 = vmatpush1.bf16.msra.mxu1 %v12447_v61  ;;  %8031 = vmatprep.subr.bf16.mxu0 %v12392_v56  ;;  %v748_v61 = vld [vmem:[#allocation2 + $0x5f0] sm:$0xff]  ;;  %v1678_v56 = vsub.s32 3, %v14128_v52 }
 0x281   :  { %8060 = vmatprep.subr.bf16.mxu1 %v12440_v14  ;;  %v12359_v14 = vcombine.low %v1519_v41, %v1523_v53  ;;  %v11585_v36 = vcombine.low %v744_v54, %v748_v61  ;;  %v592_v57 = vld [vmem:[#allocation2 + $0x110] sm:$0xff] }
 0x282   :  { %v1679_v25 = vrot.slane %v13366_v0, %v1678_v56  ;;  %v716_v0 = vld [vmem:[#allocation2 + $0x4f0] sm:$0xff] }
 0x283   :  { %8032 = vmatpush2.bf16.msra.mxu0 %v12391_v21  ;;  %v11586_v21 = vcombine.high %v744_v54, %v748_v61  ;;  %v700_v8 = vld [vmem:[#allocation2 + $0x470] sm:$0xff] }
 0x284   :  { %8061 = vmatpush1.bf16.msra.mxu1 %v12439_v44  ;;  %8033 = vmatprep.subr.bf16.mxu0 %v12384_v3  ;;  %v608_v44 = vld [vmem:[#allocation2 + $0x190] sm:$0xff] }
 0x285   :  { %8062 = vmatprep.subr.bf16.mxu1 %v12432_v43  ;;  %v612_v3 = vld [vmem:[#allocation2 + $0x1b0] sm:$0xff] }
 0x286   :  { %v736_v43 = vld [vmem:[#allocation2 + $0x590] sm:$0xff] }
 0x287   :  { %8034 = vmatpush2.bf16.msra.mxu0 %v12383_v4  ;;  %v11450_v4 = vcombine.high %v608_v44, %v612_v3 }
 0x288   :  { %8063 = vmatpush1.bf16.msra.mxu1 %v12431_v5  ;;  %8035 = vmatprep.subr.bf16.mxu0 %v12376_v17  ;;  %v7757_v5 = vadd.f32 %v14199_v24, %v1675_v18  ;;  %v11578_v17 = vcombine.high %v736_v43, %v740_v55  ;;  %v11577_v24 = vcombine.low %v736_v43, %v740_v55  ;;  %v576_v43 = vld [vmem:[#allocation2 + $0x90] sm:$0xff] }
 0x289   :  { %8064 = vmatprep.subr.bf16.mxu1 %v12424_v29  ;;  %v600_v29 = vld [vmem:[#allocation2 + $0x150] sm:$0xff] }
 0x28a   :  { %v11442_v41 = vcombine.high %v600_v29, %v604_v30  ;;  %v580_v55 = vld [vmem:[#allocation2 + $0xb0] sm:$0xff] }
 0x28b   :  { %8036 = vmatpush2.bf16.msra.mxu0 %v12375_v33  ;;  %v7759_v33 = vadd.f32 %v14202_v48, %v1679_v25  ;;  %v704_v25 = vld [vmem:[#allocation2 + $0x490] sm:$0xff]  ;;  %v11417_v32 = vcombine.low %v576_v43, %v580_v55 }
 0x28c   :  { %8065 = vmatpush1.bf16.msra.mxu1 %v12423_v7  ;;  %8037 = vmatprep.subr.bf16.mxu0 %v12368_v37  ;;  %v11449_v37 = vcombine.low %v608_v44, %v612_v3 }
 0x28d   :  { %8078 = vmatprep.subr.bf16.mxu1 %v12496_v40 }
 0x28f   :  { %8038 = vmatpush2.bf16.msra.mxu0 %v12367_v42  ;;  %v596_v42 = vld [vmem:[#allocation2 + $0x130] sm:$0xff] }
 0x290   :  { %8079 = vmatpush2.bf16.msra.mxu1 %v12495_v49  ;;  %8039 = vmatprep.subr.bf16.mxu0 %v12360_v50  ;;  %v720_v49 = vld [vmem:[#allocation2 + $0x510] sm:$0xff]  ;;  %v11434_v54 = vcombine.high %v592_v57, %v596_v42  ;;  %v11433_v18 = vcombine.low %v592_v57, %v596_v42 }
 0x291   :  { %8080 = vmatprep.subr.bf16.mxu1 %v12488_v11  ;;  %v724_v50 = vld [vmem:[#allocation2 + $0x530] sm:$0xff]  ;;  %v11441_v11 = vcombine.low %v600_v29, %v604_v30 }
 0x292   :  { %v11562_v61 = vcombine.high %v720_v49, %v724_v50  ;;  %v568_v29 = vld [vmem:[#allocation2 + $0x50] sm:$0xff] }
 0x293   :  { %8040 = vmatpush2.bf16.msra.mxu0 %v12359_v14  ;;  %v584_v14 = vld [vmem:[#allocation2 + $0xd0] sm:$0xff] }
 0x294   :  { %8081 = vmatpush2.bf16.msra.mxu1 %v12487_v62  ;;  %8091 = vmatprep.subr.bf16.mxu0 %v11458_v34  ;;  %v588_v62 = vld [vmem:[#allocation2 + $0xf0] sm:$0xff] }
 0x295   :  { %8132 = vmatprep.subr.bf16.mxu1 %v11586_v21  ;;  %v712_v34 = vld [vmem:[#allocation2 + $0x4d0] sm:$0xff]  ;;  %v11561_v21 = vcombine.low %v720_v49, %v724_v50  ;;  %v11426_v44 = vcombine.high %v584_v14, %v588_v62 }
 0x296   :  { %v7797_v31 = vpop.f32.mrf.mxu0  ;;  %8042 = vmatmul.mubr.bf16.vlgmr.msra.gmra.mxu0 %v14144_v19  ;;  %v11554_v3 = vcombine.high %v712_v34, %v716_v0  ;;  %v572_v30 = vld [vmem:[#allocation2 + $0x70] sm:$0xff] }
 0x297   :  { %v14215_v7 = vadd.f32 %v7797_v31, %v7757_v5  ;;  %8083 = vmatmul.mubr.bf16.vlgmr.msra.gmra.mxu1 %v14159_v35  ;;  %8092 = vmatpush1.bf16.msra.mxu0 %v11457_v47  ;;  %v708_v47 = vld [vmem:[#allocation2 + $0x4b0] sm:$0xff]  ;;  %v11418_v5 = vcombine.high %v576_v43, %v580_v55  ;;  %v11409_v42 = vcombine.low %v568_v29, %v572_v30 }
 0x298   :  { %8133 = vmatpush1.bf16.msra.mxu1 %v11585_v36  ;;  %v7799_v40 = vpop.f32.mrf.mxu0  ;;  %8093 = vmatprep.subr.bf16.mxu0 %v11450_v4  ;;  %v11425_v36 = vcombine.low %v584_v14, %v588_v62  ;;  %v11553_v4 = vcombine.low %v712_v34, %v716_v0  ;;  %v696_v31 = vld [vmem:[#allocation2 + $0x450] sm:$0xff] }
 0x299   :  { %v14218_v53 = vadd.f32 %v7799_v40, %v7759_v33  ;;  %8134 = vmatprep.subr.bf16.mxu1 %v11578_v17  ;;  %8123 = vmatprep.mubr.bf16.mxu0 %v13775_v20  ;;  %v11546_v17 = vcombine.high %v704_v25, %v708_v47  ;;  %v11545_v33 = vcombine.low %v704_v25, %v708_v47  ;;  %v692_v57 = vld [vmem:[#allocation2 + $0x430] sm:$0xff] }
 0x29a   :  { %v7801_v48 = vpop.f32.mrf.mxu0  ;;  %8164 = vmatprep.mubr.bf16.mxu1 %v13778_v63  ;;  %v11538_v40 = vcombine.high %v696_v31, %v700_v8  ;;  %v800_v55 = vld [vmem:[#allocation2 + $0x790] sm:$0xff] }
 0x29b   :  { %8094 = vmatpush1.bf16.msra.mxu0 %v11449_v37  ;;  %v11410_v37 = vcombine.high %v568_v29, %v572_v30  ;;  %v11537_v48 = vcombine.low %v696_v31, %v700_v8  ;;  %v804_v25 = vld [vmem:[#allocation2 + $0x7b0] sm:$0xff] }
 0x29c   :  { %8135 = vmatpush1.bf16.msra.mxu1 %v11577_v24  ;;  %v7802_v51 = vpop.f32.mrf.mxu0  ;;  %8095 = vmatprep.subr.bf16.mxu0 %v11442_v41  ;;  %v560_v24 = vld [vmem:[#allocation2 + $0x10] sm:$0xff] }
 0x29d   :  { %8136 = vmatprep.subr.bf16.mxu1 %v11570_v22  ;;  %v564_v41 = vld [vmem:[#allocation2 + $0x30] sm:$0xff] }
 0x29e   :  { %v688_v22 = vld [vmem:[#allocation2 + $0x410] sm:$0xff]  ;;  %v11402_v49 = vcombine.high %v560_v24, %v564_v41  ;;  %v11401_v14 = vcombine.low %v560_v24, %v564_v41 }
 0x29f   :  { %8096 = vmatpush1.bf16.msra.mxu0 %v11441_v11  ;;  %v11530_v50 = vcombine.high %v688_v22, %v692_v57  ;;  %v680_v11 = vld [vmem:[#allocation2 + $0x3d0] sm:$0xff]  ;;  %v11529_v34 = vcombine.low %v688_v22, %v692_v57 }
 0x2a0   :  { %8137 = vmatpush1.bf16.msra.mxu1 %v11569_v12  ;;  %8097 = vmatprep.subr.bf16.mxu0 %v11434_v54  ;;  %v684_v51 = vld [vmem:[#allocation2 + $0x3f0] sm:$0xff] }
 0x2a1   :  { %8138 = vmatprep.subr.bf16.mxu1 %v11562_v61  ;;  %v808_v12 = vld [vmem:[#allocation2 + $0x7d0] sm:$0xff]  ;;  %v11522_v0 = vcombine.high %v680_v11, %v684_v51 }
 0x2a2   :  { %v812_v54 = vld [vmem:[#allocation2 + $0x7f0] sm:$0xff] }
 0x2a3   :  { %8098 = vmatpush1.bf16.msra.mxu0 %v11433_v18  ;;  %v664_v29 = vld [vmem:[#allocation2 + $0x350] sm:$0xff] }
 0x2a4   :  { %8139 = vmatpush1.bf16.msra.mxu1 %v11561_v21  ;;  %8099 = vmatprep.subr.bf16.mxu0 %v11426_v44  ;;  %v11650_v21 = vcombine.high %v808_v12, %v812_v54  ;;  %v672_v44 = vld [vmem:[#allocation2 + $0x390] sm:$0xff] }
 0x2a5   :  { %8140 = vmatprep.subr.bf16.mxu1 %v11554_v3  ;;  %v676_v3 = vld [vmem:[#allocation2 + $0x3b0] sm:$0xff] }
 0x2a6   :  { %v668_v30 = vld [vmem:[#allocation2 + $0x370] sm:$0xff] }
 0x2a7   :  { %8100 = vmatpush1.bf16.msra.mxu0 %v11425_v36  ;;  %v11521_v36 = vcombine.low %v680_v11, %v684_v51  ;;  %v792_v31 = vld [vmem:[#allocation2 + $0x750] sm:$0xff]  ;;  %v11505_v57 = vcombine.low %v664_v29, %v668_v30 }
 0x2a8   :  { %8141 = vmatpush1.bf16.msra.mxu1 %v11553_v4  ;;  %8101 = vmatprep.subr.bf16.mxu0 %v11418_v5  ;;  %v11514_v4 = vcombine.high %v672_v44, %v676_v3  ;;  %v796_v8 = vld [vmem:[#allocation2 + $0x770] sm:$0xff] }
 0x2a9   :  { %8142 = vmatprep.subr.bf16.mxu1 %v11546_v17  ;;  %v11642_v17 = vcombine.high %v800_v55, %v804_v25  ;;  %v660_v24 = vld [vmem:[#allocation2 + $0x330] sm:$0xff] }
 0x2aa   :  { %v784_v41 = vld [vmem:[#allocation2 + $0x710] sm:$0xff] }
 0x2ab   :  { %8102 = vmatpush1.bf16.msra.mxu0 %v11417_v32  ;;  %v11513_v32 = vcombine.low %v672_v44, %v676_v3  ;;  %v788_v22 = vld [vmem:[#allocation2 + $0x730] sm:$0xff] }
 0x2ac   :  { %8143 = vmatpush1.bf16.msra.mxu1 %v11545_v33  ;;  %8103 = vmatprep.subr.bf16.mxu0 %v11410_v37  ;;  %v11506_v33 = vcombine.high %v664_v29, %v668_v30  ;;  %v11634_v37 = vcombine.high %v792_v31, %v796_v8  ;;  %v652_v11 = vld [vmem:[#allocation2 + $0x2f0] sm:$0xff] }
 0x2ad   :  { %8144 = vmatprep.subr.bf16.mxu1 %v11538_v40  ;;  %v656_v40 = vld [vmem:[#allocation2 + $0x310] sm:$0xff] }
 0x2ae   :  { %v776_v51 = vld [vmem:[#allocation2 + $0x6d0] sm:$0xff] }
 0x2af   :  { %v7838_v61 = vpop.f32.mrf.mxu1  ;;  %8104 = vmatpush1.bf16.msra.mxu0 %v11409_v42  ;;  %v11633_v42 = vcombine.low %v792_v31, %v796_v8  ;;  %v772_v44 = vld [vmem:[#allocation2 + $0x6b0] sm:$0xff] }
 0x2b0   :  { %v14223_v62 = vadd.f32 %v7838_v61, %v14215_v7  ;;  %8145 = vmatpush1.bf16.msra.mxu1 %v11537_v48  ;;  %8105 = vmatprep.subr.bf16.mxu0 %v11402_v49  ;;  %v11649_v7 = vcombine.low %v808_v12, %v812_v54  ;;  %v11498_v48 = vcombine.high %v656_v40, %v660_v24  ;;  %v780_v12 = vld [vmem:[#allocation2 + $0x6f0] sm:$0xff] }
 0x2b1   :  { %v7840_v18 = vpop.f32.mrf.mxu1  ;;  %8146 = vmatprep.subr.bf16.mxu1 %v11530_v50  ;;  %v11626_v49 = vcombine.high %v784_v41, %v788_v22  ;;  %v648_v50 = vld [vmem:[#allocation2 + $0x2d0] sm:$0xff]  ;;  %v11497_v54 = vcombine.low %v656_v40, %v660_v24  ;;  %v11625_v61 = vcombine.low %v784_v41, %v788_v22 }
 0x2b2   :  { %v14226_v43 = vadd.f32 %v7840_v18, %v14218_v53  ;;  %v11641_v53 = vcombine.low %v800_v55, %v804_v25  ;;  %v644_v18 = vld [vmem:[#allocation2 + $0x2b0] sm:$0xff]  ;;  %v11489_v3 = vcombine.low %v648_v50, %v652_v11  ;;  %v11617_v55 = vcombine.low %v776_v51, %v780_v12 }
 0x2b3   :  { %v7842_v47 = vpop.f32.mrf.mxu1  ;;  %8106 = vmatpush1.bf16.msra.mxu0 %v11401_v14  ;;  %v11490_v14 = vcombine.high %v648_v50, %v652_v11  ;;  %v624_v8 = vld [vmem:[#allocation2 + $0x210] sm:$0xff] }
 0x2b4   :  { %8147 = vmatpush1.bf16.msra.mxu1 %v11529_v34  ;;  %8107 = vmatprep.subr.bf16.mxu0 %v11522_v0  ;;  %v11618_v34 = vcombine.high %v776_v51, %v780_v12  ;;  %v640_v0 = vld [vmem:[#allocation2 + $0x290] sm:$0xff] }
 0x2b5   :  { %v7843_v5 = vpop.f32.mrf.mxu1  ;;  %8148 = vmatprep.subr.bf16.mxu1 %v11650_v21  ;;  %v768_v21 = vld [vmem:[#allocation2 + $0x690] sm:$0xff]  ;;  %v11482_v25 = vcombine.high %v640_v0, %v644_v18 }
 0x2b6   :  { %v11610_v47 = vcombine.high %v768_v21, %v772_v44  ;;  %v764_v5 = vld [vmem:[#allocation2 + $0x670] sm:$0xff]  ;;  %v11609_v29 = vcombine.low %v768_v21, %v772_v44 }
 0x2b7   :  { %8108 = vmatpush2.bf16.msra.mxu0 %v11521_v36  ;;  %v632_v36 = vld [vmem:[#allocation2 + $0x250] sm:$0xff] }
 0x2b8   :  { %8149 = vmatpush2.bf16.msra.mxu1 %v11649_v7  ;;  %8109 = vmatprep.subr.bf16.mxu0 %v11514_v4  ;;  %v636_v7 = vld [vmem:[#allocation2 + $0x270] sm:$0xff] }
 0x2b9   :  { %8150 = vmatprep.subr.bf16.mxu1 %v11642_v17  ;;  %v760_v4 = vld [vmem:[#allocation2 + $0x650] sm:$0xff]  ;;  %v11481_v17 = vcombine.low %v640_v0, %v644_v18  ;;  %v11474_v30 = vcombine.high %v632_v36, %v636_v7 }
 0x2ba   :  { %v11602_v31 = vcombine.high %v760_v4, %v764_v5  ;;  %v11601_v40 = vcombine.low %v760_v4, %v764_v5  ;;  %v872_v22 = vld [vmem:[#allocation2 + $0x9d0] sm:$0xff] }
 0x2bb   :  { %8110 = vmatpush2.bf16.msra.mxu0 %v11513_v32  ;;  %v628_v32 = vld [vmem:[#allocation2 + $0x230] sm:$0xff] }
 0x2bc   :  { %8151 = vmatpush2.bf16.msra.mxu1 %v11641_v53  ;;  %8111 = vmatprep.subr.bf16.mxu0 %v11506_v33  ;;  %v752_v53 = vld [vmem:[#allocation2 + $0x610] sm:$0xff]  ;;  %v11466_v24 = vcombine.high %v624_v8, %v628_v32 }
 0x2bd   :  { %8152 = vmatprep.subr.bf16.mxu1 %v11634_v37  ;;  %v756_v33 = vld [vmem:[#allocation2 + $0x630] sm:$0xff]  ;;  %v11473_v37 = vcombine.low %v632_v36, %v636_v7 }
 0x2be   :  { %v11594_v41 = vcombine.high %v752_v53, %v756_v33  ;;  %v11593_v50 = vcombine.low %v752_v53, %v756_v33  ;;  %v864_v12 = vld [vmem:[#allocation2 + $0x990] sm:$0xff] }
 0x2bf   :  { %8112 = vmatpush2.bf16.msra.mxu0 %v11505_v57  ;;  %v876_v57 = vld [vmem:[#allocation2 + $0x9f0] sm:$0xff] }
 0x2c0   :  { %8153 = vmatpush2.bf16.msra.mxu1 %v11633_v42  ;;  %8113 = vmatprep.subr.bf16.mxu0 %v11498_v48  ;;  %v1000_v42 = vld [vmem:[#allocation2 + $0xdd0] sm:$0xff]  ;;  %v11714_v11 = vcombine.high %v872_v22, %v876_v57 }
 0x2c1   :  { %8154 = vmatprep.subr.bf16.mxu1 %v11626_v49  ;;  %v1004_v48 = vld [vmem:[#allocation2 + $0xdf0] sm:$0xff]  ;;  %v11465_v49 = vcombine.low %v624_v8, %v628_v32 }
 0x2c2   :  { %v11842_v51 = vcombine.high %v1000_v42, %v1004_v48  ;;  %v11841_v0 = vcombine.low %v1000_v42, %v1004_v48  ;;  %v856_v44 = vld [vmem:[#allocation2 + $0x950] sm:$0xff] }
 0x2c3   :  { %8114 = vmatpush2.bf16.msra.mxu0 %v11497_v54  ;;  %v868_v54 = vld [vmem:[#allocation2 + $0x9b0] sm:$0xff] }
 0x2c4   :  { %8155 = vmatpush2.bf16.msra.mxu1 %v11625_v61  ;;  %8115 = vmatprep.subr.bf16.mxu0 %v11490_v14  ;;  %v992_v61 = vld [vmem:[#allocation2 + $0xd90] sm:$0xff]  ;;  %v11706_v18 = vcombine.high %v864_v12, %v868_v54  ;;  %v11705_v7 = vcombine.low %v864_v12, %v868_v54 }
 0x2c5   :  { %8156 = vmatprep.subr.bf16.mxu1 %v11618_v34  ;;  %v996_v14 = vld [vmem:[#allocation2 + $0xdb0] sm:$0xff]  ;;  %v11713_v34 = vcombine.low %v872_v22, %v876_v57 }
 0x2c6   :  { %v11834_v21 = vcombine.high %v992_v61, %v996_v14  ;;  %v11833_v5 = vcombine.low %v992_v61, %v996_v14  ;;  %v852_v8 = vld [vmem:[#allocation2 + $0x930] sm:$0xff] }
 0x2c7   :  { %8116 = vmatpush2.bf16.msra.mxu0 %v11489_v3  ;;  %v860_v3 = vld [vmem:[#allocation2 + $0x970] sm:$0xff] }
 0x2c8   :  { %8157 = vmatpush2.bf16.msra.mxu1 %v11617_v55  ;;  %8117 = vmatprep.subr.bf16.mxu0 %v11482_v25  ;;  %v984_v25 = vld [vmem:[#allocation2 + $0xd50] sm:$0xff]  ;;  %v11697_v33 = vcombine.low %v856_v44, %v860_v3 }
 0x2c9   :  { %8158 = vmatprep.subr.bf16.mxu1 %v11610_v47  ;;  %v988_v47 = vld [vmem:[#allocation2 + $0xd70] sm:$0xff] }
 0x2ca   :  { %v976_v32 = vld [vmem:[#allocation2 + $0xd10] sm:$0xff] }
 0x2cb   :  { %8118 = vmatpush2.bf16.msra.mxu0 %v11481_v17  ;;  %v11698_v17 = vcombine.high %v856_v44, %v860_v3  ;;  %v980_v53 = vld [vmem:[#allocation2 + $0xd30] sm:$0xff] }
 0x2cc   :  { %8159 = vmatpush2.bf16.msra.mxu1 %v11609_v29  ;;  %8119 = vmatprep.subr.bf16.mxu0 %v11474_v30  ;;  %v11826_v30 = vcombine.high %v984_v25, %v988_v47  ;;  %v844_v22 = vld [vmem:[#allocation2 + $0x8f0] sm:$0xff] }
 0x2cd   :  { %8160 = vmatprep.subr.bf16.mxu1 %v11602_v31  ;;  %v848_v31 = vld [vmem:[#allocation2 + $0x910] sm:$0xff] }
 0x2ce   :  { %v968_v57 = vld [vmem:[#allocation2 + $0xcd0] sm:$0xff]  ;;  %v11689_v48 = vcombine.low %v848_v31, %v852_v8 }
 0x2cf   :  { %8120 = vmatpush2.bf16.msra.mxu0 %v11473_v37  ;;  %v972_v42 = vld [vmem:[#allocation2 + $0xcf0] sm:$0xff] }
 0x2d0   :  { %8161 = vmatpush2.bf16.msra.mxu1 %v11601_v40  ;;  %8121 = vmatprep.subr.bf16.mxu0 %v11466_v24  ;;  %v11825_v40 = vcombine.low %v984_v25, %v988_v47  ;;  %v11690_v24 = vcombine.high %v848_v31, %v852_v8  ;;  %v836_v12 = vld [vmem:[#allocation2 + $0x8b0] sm:$0xff] }
 0x2d1   :  { %8162 = vmatprep.subr.bf16.mxu1 %v11594_v41  ;;  %v840_v41 = vld [vmem:[#allocation2 + $0x8d0] sm:$0xff] }
 0x2d2   :  { %v960_v54 = vld [vmem:[#allocation2 + $0xc90] sm:$0xff]  ;;  %v11681_v14 = vcombine.low %v840_v41, %v844_v22 }
 0x2d3   :  { %8122 = vmatpush2.bf16.msra.mxu0 %v11465_v49  ;;  %v11817_v49 = vcombine.low %v976_v32, %v980_v53  ;;  %v964_v61 = vld [vmem:[#allocation2 + $0xcb0] sm:$0xff] }
 0x2d4   :  { %8163 = vmatpush2.bf16.msra.mxu1 %v11593_v50  ;;  %8173 = vmatprep.subr.bf16.mxu0 %v11714_v11  ;;  %v11682_v50 = vcombine.high %v840_v41, %v844_v22  ;;  %v11810_v11 = vcombine.high %v968_v57, %v972_v42  ;;  %v828_v44 = vld [vmem:[#allocation2 + $0x870] sm:$0xff]  ;;  %v11801_v47 = vcombine.low %v960_v54, %v964_v61 }
 0x2d5   :  { %8214 = vmatprep.subr.bf16.mxu1 %v11842_v51  ;;  %v832_v51 = vld [vmem:[#allocation2 + $0x890] sm:$0xff] }
 0x2d6   :  { %v7879_v55 = vpop.f32.mrf.mxu0  ;;  %8124 = vmatmul.mubr.bf16.vlgmr.msra.gmra.mxu0 %v13808_v23  ;;  %v952_v3 = vld [vmem:[#allocation2 + $0xc50] sm:$0xff]  ;;  %v11673_v25 = vcombine.low %v832_v51, %v836_v12 }
 0x2d7   :  { %v14230_v36 = vadd.f32 %v7879_v55, %v14223_v62  ;;  %8165 = vmatmul.mubr.bf16.vlgmr.msra.gmra.mxu1 %v13810_v27  ;;  %8174 = vmatpush1.bf16.msra.mxu0 %v11713_v34  ;;  %v11809_v34 = vcombine.low %v968_v57, %v972_v42  ;;  %v956_v55 = vld [vmem:[#allocation2 + $0xc70] sm:$0xff] }
 0x2d8   :  { %8215 = vmatpush1.bf16.msra.mxu1 %v11841_v0  ;;  %v7881_v4 = vpop.f32.mrf.mxu0  ;;  %8175 = vmatprep.subr.bf16.mxu0 %v11706_v18  ;;  %v11674_v0 = vcombine.high %v832_v51, %v836_v12  ;;  %v11802_v18 = vcombine.high %v960_v54, %v964_v61  ;;  %v948_v31 = vld [vmem:[#allocation2 + $0xc30] sm:$0xff] }
 0x2d9   :  { %v14234_v29 = vadd.f32 %v7881_v4, %v14226_v43  ;;  %8216 = vmatprep.subr.bf16.mxu1 %v11834_v21  ;;  %8205 = vmatprep.mubr.bf16.mxu0 %v13851_v58  ;;  %v11818_v43 = vcombine.high %v976_v32, %v980_v53  ;;  %v824_v21 = vld [vmem:[#allocation2 + $0x850] sm:$0xff]  ;;  %v11794_v4 = vcombine.high %v952_v3, %v956_v55 }
 0x2da   :  { %v7883_v62 = vpop.f32.mrf.mxu0  ;;  %8246 = vmatprep.mubr.bf16.mxu1 %v13859_v15  ;;  %v11665_v8 = vcombine.low %v824_v21, %v828_v44  ;;  %v1056_v12 = vld [vmem:[#allocation2 + $0xf90] sm:$0xff] }
 0x2db   :  { %8176 = vmatpush1.bf16.msra.mxu0 %v11705_v7  ;;  %v11666_v7 = vcombine.high %v824_v21, %v828_v44  ;;  %v11793_v62 = vcombine.low %v952_v3, %v956_v55  ;;  %v1060_v54 = vld [vmem:[#allocation2 + $0xfb0] sm:$0xff] }
 0x2dc   :  { %8217 = vmatpush1.bf16.msra.mxu1 %v11833_v5  ;;  %v7884_v37 = vpop.f32.mrf.mxu0  ;;  %8177 = vmatprep.subr.bf16.mxu0 %v11698_v17  ;;  %v816_v5 = vld [vmem:[#allocation2 + $0x810] sm:$0xff] }
 0x2dd   :  { %8218 = vmatprep.subr.bf16.mxu1 %v11826_v30  ;;  %v820_v17 = vld [vmem:[#allocation2 + $0x830] sm:$0xff] }
 0x2de   :  { %v944_v30 = vld [vmem:[#allocation2 + $0xc10] sm:$0xff]  ;;  %v11658_v32 = vcombine.high %v816_v5, %v820_v17  ;;  %v11657_v41 = vcombine.low %v816_v5, %v820_v17 }
 0x2df   :  { %8178 = vmatpush1.bf16.msra.mxu0 %v11697_v33  ;;  %v11786_v53 = vcombine.high %v944_v30, %v948_v31  ;;  %v936_v33 = vld [vmem:[#allocation2 + $0xbd0] sm:$0xff]  ;;  %v11785_v57 = vcombine.low %v944_v30, %v948_v31 }
 0x2e0   :  { %8219 = vmatpush1.bf16.msra.mxu1 %v11825_v40  ;;  %8179 = vmatprep.subr.bf16.mxu0 %v11690_v24  ;;  %v940_v37 = vld [vmem:[#allocation2 + $0xbf0] sm:$0xff] }
 0x2e1   :  { %8220 = vmatprep.subr.bf16.mxu1 %v11818_v43  ;;  %v1064_v40 = vld [vmem:[#allocation2 + $0xfd0] sm:$0xff]  ;;  %v11778_v42 = vcombine.high %v936_v33, %v940_v37 }
 0x2e2   :  { %v1068_v24 = vld [vmem:[#allocation2 + $0xff0] sm:$0xff] }
 0x2e3   :  { %8180 = vmatpush1.bf16.msra.mxu0 %v11689_v48  ;;  %v920_v21 = vld [vmem:[#allocation2 + $0xb50] sm:$0xff] }
 0x2e4   :  { %8221 = vmatpush1.bf16.msra.mxu1 %v11817_v49  ;;  %8181 = vmatprep.subr.bf16.mxu0 %v11682_v50  ;;  %v11906_v49 = vcombine.high %v1064_v40, %v1068_v24  ;;  %v928_v50 = vld [vmem:[#allocation2 + $0xb90] sm:$0xff] }
 0x2e5   :  { %8222 = vmatprep.subr.bf16.mxu1 %v11810_v11  ;;  %v932_v11 = vld [vmem:[#allocation2 + $0xbb0] sm:$0xff] }
 0x2e6   :  { %v924_v44 = vld [vmem:[#allocation2 + $0xb70] sm:$0xff] }
 0x2e7   :  { %8182 = vmatpush1.bf16.msra.mxu0 %v11681_v14  ;;  %v11777_v14 = vcombine.low %v936_v33, %v940_v37  ;;  %v1048_v3 = vld [vmem:[#allocation2 + $0xf50] sm:$0xff]  ;;  %v11761_v31 = vcombine.low %v920_v21, %v924_v44 }
 0x2e8   :  { %8223 = vmatpush1.bf16.msra.mxu1 %v11809_v34  ;;  %8183 = vmatprep.subr.bf16.mxu0 %v11674_v0  ;;  %v11770_v34 = vcombine.high %v928_v50, %v932_v11  ;;  %v1052_v55 = vld [vmem:[#allocation2 + $0xf70] sm:$0xff] }
 0x2e9   :  { %8224 = vmatprep.subr.bf16.mxu1 %v11802_v18  ;;  %v11898_v18 = vcombine.high %v1056_v12, %v1060_v54  ;;  %v916_v5 = vld [vmem:[#allocation2 + $0xb30] sm:$0xff] }
 0x2ea   :  { %v1040_v17 = vld [vmem:[#allocation2 + $0xf10] sm:$0xff] }
 0x2eb   :  { %8184 = vmatpush1.bf16.msra.mxu0 %v11673_v25  ;;  %v11769_v25 = vcombine.low %v928_v50, %v932_v11  ;;  %v1044_v30 = vld [vmem:[#allocation2 + $0xf30] sm:$0xff] }
 0x2ec   :  { %8225 = vmatpush1.bf16.msra.mxu1 %v11801_v47  ;;  %8185 = vmatprep.subr.bf16.mxu0 %v11666_v7  ;;  %v11762_v47 = vcombine.high %v920_v21, %v924_v44  ;;  %v11890_v7 = vcombine.high %v1048_v3, %v1052_v55  ;;  %v908_v33 = vld [vmem:[#allocation2 + $0xaf0] sm:$0xff] }
 0x2ed   :  { %8226 = vmatprep.subr.bf16.mxu1 %v11794_v4  ;;  %v912_v4 = vld [vmem:[#allocation2 + $0xb10] sm:$0xff] }
 0x2ee   :  { %v1032_v37 = vld [vmem:[#allocation2 + $0xed0] sm:$0xff] }
 0x2ef   :  { %v7920_v43 = vpop.f32.mrf.mxu1  ;;  %8186 = vmatpush1.bf16.msra.mxu0 %v11665_v8  ;;  %v11889_v8 = vcombine.low %v1048_v3, %v1052_v55  ;;  %v1028_v50 = vld [vmem:[#allocation2 + $0xeb0] sm:$0xff] }
 0x2f0   :  { %v14239_v22 = vadd.f32 %v7920_v43, %v14230_v36  ;;  %8227 = vmatpush1.bf16.msra.mxu1 %v11793_v62  ;;  %8187 = vmatprep.subr.bf16.mxu0 %v11658_v32  ;;  %v11905_v36 = vcombine.low %v1064_v40, %v1068_v24  ;;  %v11754_v62 = vcombine.high %v912_v4, %v916_v5  ;;  %v1036_v40 = vld [vmem:[#allocation2 + $0xef0] sm:$0xff] }
 0x2f1   :  { %v7922_v48 = vpop.f32.mrf.mxu1  ;;  %8228 = vmatprep.subr.bf16.mxu1 %v11786_v53  ;;  %v11882_v32 = vcombine.high %v1040_v17, %v1044_v30  ;;  %v904_v53 = vld [vmem:[#allocation2 + $0xad0] sm:$0xff]  ;;  %v11753_v24 = vcombine.low %v912_v4, %v916_v5  ;;  %v11881_v43 = vcombine.low %v1040_v17, %v1044_v30 }
 0x2f2   :  { %v14242_v51 = vadd.f32 %v7922_v48, %v14234_v29  ;;  %v11897_v29 = vcombine.low %v1056_v12, %v1060_v54  ;;  %v900_v48 = vld [vmem:[#allocation2 + $0xab0] sm:$0xff]  ;;  %v11745_v11 = vcombine.low %v904_v53, %v908_v33  ;;  %v11873_v12 = vcombine.low %v1032_v37, %v1036_v40 }
 0x2f3   :  { %v7924_v61 = vpop.f32.mrf.mxu1  ;;  %8188 = vmatpush1.bf16.msra.mxu0 %v11657_v41  ;;  %v11746_v41 = vcombine.high %v904_v53, %v908_v33  ;;  %v880_v55 = vld [vmem:[#allocation2 + $0xa10] sm:$0xff] }
 0x2f4   :  { %8229 = vmatpush1.bf16.msra.mxu1 %v11785_v57  ;;  %8189 = vmatprep.subr.bf16.mxu0 %v11778_v42  ;;  %v11874_v57 = vcombine.high %v1032_v37, %v1036_v40  ;;  %v896_v42 = vld [vmem:[#allocation2 + $0xa90] sm:$0xff] }
 0x2f5   :  { %v7925_v0 = vpop.f32.mrf.mxu1  ;;  %8230 = vmatprep.subr.bf16.mxu1 %v11906_v49  ;;  %v1024_v49 = vld [vmem:[#allocation2 + $0xe90] sm:$0xff]  ;;  %v11738_v54 = vcombine.high %v896_v42, %v900_v48 }
 0x2f6   :  { %v11866_v61 = vcombine.high %v1024_v49, %v1028_v50  ;;  %v1020_v0 = vld [vmem:[#allocation2 + $0xe70] sm:$0xff]  ;;  %v11865_v21 = vcombine.low %v1024_v49, %v1028_v50 }
 0x2f7   :  { %8190 = vmatpush2.bf16.msra.mxu0 %v11777_v14  ;;  %v888_v14 = vld [vmem:[#allocation2 + $0xa50] sm:$0xff] }
 0x2f8   :  { %8231 = vmatpush2.bf16.msra.mxu1 %v11905_v36  ;;  %8191 = vmatprep.subr.bf16.mxu0 %v11770_v34  ;;  %v892_v36 = vld [vmem:[#allocation2 + $0xa70] sm:$0xff] }
 0x2f9   :  { %8232 = vmatprep.subr.bf16.mxu1 %v11898_v18  ;;  %v1016_v34 = vld [vmem:[#allocation2 + $0xe50] sm:$0xff]  ;;  %v11737_v18 = vcombine.low %v896_v42, %v900_v48  ;;  %v11730_v44 = vcombine.high %v888_v14, %v892_v36 }
 0x2fa   :  { %v11858_v3 = vcombine.high %v1016_v34, %v1020_v0  ;;  %v11857_v4 = vcombine.low %v1016_v34, %v1020_v0  ;;  %v1128_v30 = vld [vmem:[#allocation2 + $0x11d0] sm:$0xff] }
 0x2fb   :  { %8192 = vmatpush2.bf16.msra.mxu0 %v11769_v25  ;;  %v884_v25 = vld [vmem:[#allocation2 + $0xa30] sm:$0xff] }
 0x2fc   :  { %8233 = vmatpush2.bf16.msra.mxu1 %v11897_v29  ;;  %8193 = vmatprep.subr.bf16.mxu0 %v11762_v47  ;;  %v1008_v29 = vld [vmem:[#allocation2 + $0xe10] sm:$0xff]  ;;  %v11722_v5 = vcombine.high %v880_v55, %v884_v25 }
 0x2fd   :  { %8234 = vmatprep.subr.bf16.mxu1 %v11890_v7  ;;  %v1012_v47 = vld [vmem:[#allocation2 + $0xe30] sm:$0xff]  ;;  %v11729_v7 = vcombine.low %v888_v14, %v892_v36 }
 0x2fe   :  { %v11850_v17 = vcombine.high %v1008_v29, %v1012_v47  ;;  %v11849_v53 = vcombine.low %v1008_v29, %v1012_v47  ;;  %v1120_v40 = vld [vmem:[#allocation2 + $0x1190] sm:$0xff] }
 0x2ff   :  { %8194 = vmatpush2.bf16.msra.mxu0 %v11761_v31  ;;  %v1132_v31 = vld [vmem:[#allocation2 + $0x11f0] sm:$0xff] }
 0x300   :  { %8235 = vmatpush2.bf16.msra.mxu1 %v11889_v8  ;;  %8195 = vmatprep.subr.bf16.mxu0 %v11754_v62  ;;  %v1256_v8 = vld [vmem:[#allocation2 + $0x15d0] sm:$0xff]  ;;  %v11970_v33 = vcombine.high %v1128_v30, %v1132_v31 }
 0x301   :  { %8236 = vmatprep.subr.bf16.mxu1 %v11882_v32  ;;  %v1260_v62 = vld [vmem:[#allocation2 + $0x15f0] sm:$0xff]  ;;  %v11721_v32 = vcombine.low %v880_v55, %v884_v25 }
 0x302   :  { %v12098_v37 = vcombine.high %v1256_v8, %v1260_v62  ;;  %v12097_v42 = vcombine.low %v1256_v8, %v1260_v62  ;;  %v1112_v50 = vld [vmem:[#allocation2 + $0x1150] sm:$0xff] }
 0x303   :  { %8196 = vmatpush2.bf16.msra.mxu0 %v11753_v24  ;;  %v1124_v24 = vld [vmem:[#allocation2 + $0x11b0] sm:$0xff] }
 0x304   :  { %8237 = vmatpush2.bf16.msra.mxu1 %v11881_v43  ;;  %8197 = vmatprep.subr.bf16.mxu0 %v11746_v41  ;;  %v1248_v43 = vld [vmem:[#allocation2 + $0x1590] sm:$0xff]  ;;  %v11962_v48 = vcombine.high %v1120_v40, %v1124_v24  ;;  %v11961_v36 = vcombine.low %v1120_v40, %v1124_v24 }
 0x305   :  { %8238 = vmatprep.subr.bf16.mxu1 %v11874_v57  ;;  %v1252_v41 = vld [vmem:[#allocation2 + $0x15b0] sm:$0xff]  ;;  %v11969_v57 = vcombine.low %v1128_v30, %v1132_v31 }
 0x306   :  { %v12090_v49 = vcombine.high %v1248_v43, %v1252_v41  ;;  %v12089_v0 = vcombine.low %v1248_v43, %v1252_v41  ;;  %v1108_v55 = vld [vmem:[#allocation2 + $0x1130] sm:$0xff] }
 0x307   :  { %8198 = vmatpush2.bf16.msra.mxu0 %v11745_v11  ;;  %v1116_v11 = vld [vmem:[#allocation2 + $0x1170] sm:$0xff] }
 0x308   :  { %8239 = vmatpush2.bf16.msra.mxu1 %v11873_v12  ;;  %8199 = vmatprep.subr.bf16.mxu0 %v11738_v54  ;;  %v1240_v54 = vld [vmem:[#allocation2 + $0x1550] sm:$0xff]  ;;  %v11953_v47 = vcombine.low %v1112_v50, %v1116_v11 }
 0x309   :  { %8240 = vmatprep.subr.bf16.mxu1 %v11866_v61  ;;  %v1244_v61 = vld [vmem:[#allocation2 + $0x1570] sm:$0xff] }
 0x30a   :  { %v1232_v25 = vld [vmem:[#allocation2 + $0x1510] sm:$0xff] }
 0x30b   :  { %8200 = vmatpush2.bf16.msra.mxu0 %v11737_v18  ;;  %v11954_v18 = vcombine.high %v1112_v50, %v1116_v11  ;;  %v1236_v29 = vld [vmem:[#allocation2 + $0x1530] sm:$0xff] }
 0x30c   :  { %8241 = vmatpush2.bf16.msra.mxu1 %v11865_v21  ;;  %8201 = vmatprep.subr.bf16.mxu0 %v11730_v44  ;;  %v12082_v44 = vcombine.high %v1240_v54, %v1244_v61  ;;  %v1100_v30 = vld [vmem:[#allocation2 + $0x10f0] sm:$0xff] }
 0x30d   :  { %8242 = vmatprep.subr.bf16.mxu1 %v11858_v3  ;;  %v1104_v3 = vld [vmem:[#allocation2 + $0x1110] sm:$0xff] }
 0x30e   :  { %v1224_v31 = vld [vmem:[#allocation2 + $0x14d0] sm:$0xff]  ;;  %v11945_v62 = vcombine.low %v1104_v3, %v1108_v55 }
 0x30f   :  { %8202 = vmatpush2.bf16.msra.mxu0 %v11729_v7  ;;  %v1228_v8 = vld [vmem:[#allocation2 + $0x14f0] sm:$0xff] }
 0x310   :  { %8243 = vmatpush2.bf16.msra.mxu1 %v11857_v4  ;;  %8203 = vmatprep.subr.bf16.mxu0 %v11722_v5  ;;  %v12081_v4 = vcombine.low %v1240_v54, %v1244_v61  ;;  %v11946_v5 = vcombine.high %v1104_v3, %v1108_v55  ;;  %v1092_v40 = vld [vmem:[#allocation2 + $0x10b0] sm:$0xff] }
 0x311   :  { %8244 = vmatprep.subr.bf16.mxu1 %v11850_v17  ;;  %v1096_v17 = vld [vmem:[#allocation2 + $0x10d0] sm:$0xff] }
 0x312   :  { %v1216_v24 = vld [vmem:[#allocation2 + $0x1490] sm:$0xff]  ;;  %v11937_v41 = vcombine.low %v1096_v17, %v1100_v30 }
 0x313   :  { %8204 = vmatpush2.bf16.msra.mxu0 %v11721_v32  ;;  %v12073_v32 = vcombine.low %v1232_v25, %v1236_v29  ;;  %v1220_v43 = vld [vmem:[#allocation2 + $0x14b0] sm:$0xff] }
 0x314   :  { %8245 = vmatpush2.bf16.msra.mxu1 %v11849_v53  ;;  %8255 = vmatprep.subr.bf16.mxu0 %v11970_v33  ;;  %v11938_v53 = vcombine.high %v1096_v17, %v1100_v30  ;;  %v12066_v33 = vcombine.high %v1224_v31, %v1228_v8  ;;  %v1084_v50 = vld [vmem:[#allocation2 + $0x1070] sm:$0xff]  ;;  %v12057_v61 = vcombine.low %v1216_v24, %v1220_v43 }
 0x315   :  { %8296 = vmatprep.subr.bf16.mxu1 %v12098_v37  ;;  %v1088_v37 = vld [vmem:[#allocation2 + $0x1090] sm:$0xff] }
 0x316   :  { %v7961_v12 = vpop.f32.mrf.mxu0  ;;  %8206 = vmatmul.mubr.bf16.vlgmr.msra.gmra.mxu0 %v13944_v13  ;;  %v1208_v11 = vld [vmem:[#allocation2 + $0x1450] sm:$0xff]  ;;  %v11929_v54 = vcombine.low %v1088_v37, %v1092_v40 }
 0x317   :  { %v14246_v14 = vadd.f32 %v7961_v12, %v14239_v22  ;;  %8247 = vmatmul.mubr.bf16.vlgmr.msra.gmra.mxu1 %v13947_v16  ;;  %8256 = vmatpush1.bf16.msra.mxu0 %v11969_v57  ;;  %v12065_v57 = vcombine.low %v1224_v31, %v1228_v8  ;;  %v1212_v12 = vld [vmem:[#allocation2 + $0x1470] sm:$0xff] }
 0x318   :  { %8297 = vmatpush1.bf16.msra.mxu1 %v12097_v42  ;;  %v7963_v34 = vpop.f32.mrf.mxu0  ;;  %8257 = vmatprep.subr.bf16.mxu0 %v11962_v48  ;;  %v11930_v42 = vcombine.high %v1088_v37, %v1092_v40  ;;  %v12058_v48 = vcombine.high %v1216_v24, %v1220_v43  ;;  %v1204_v3 = vld [vmem:[#allocation2 + $0x1430] sm:$0xff] }
 0x319   :  { %v14250_v21 = vadd.f32 %v7963_v34, %v14242_v51  ;;  %8298 = vmatprep.subr.bf16.mxu1 %v12090_v49  ;;  %8287 = vmatprep.mubr.bf16.mxu0 %v13950_v46  ;;  %v12074_v51 = vcombine.high %v1232_v25, %v1236_v29  ;;  %v1080_v49 = vld [vmem:[#allocation2 + $0x1050] sm:$0xff]  ;;  %v12050_v34 = vcombine.high %v1208_v11, %v1212_v12 }
 0x31a   :  { %v7965_v22 = vpop.f32.mrf.mxu0  ;;  %8328 = vmatprep.mubr.bf16.mxu1 %v13953_v2  ;;  %v11921_v55 = vcombine.low %v1080_v49, %v1084_v50  ;;  %v1312_v40 = vld [vmem:[#allocation2 + $0x1790] sm:$0xff] }
 0x31b   :  { %8258 = vmatpush1.bf16.msra.mxu0 %v11961_v36  ;;  %v11922_v36 = vcombine.high %v1080_v49, %v1084_v50  ;;  %v12049_v22 = vcombine.low %v1208_v11, %v1212_v12  ;;  %v1316_v24 = vld [vmem:[#allocation2 + $0x17b0] sm:$0xff] }
 0x31c   :  { %8299 = vmatpush1.bf16.msra.mxu1 %v12089_v0  ;;  %v7966_v7 = vpop.f32.mrf.mxu0  ;;  %8259 = vmatprep.subr.bf16.mxu0 %v11954_v18  ;;  %v1072_v0 = vld [vmem:[#allocation2 + $0x1010] sm:$0xff] }
 0x31d   :  { %8300 = vmatprep.subr.bf16.mxu1 %v12082_v44  ;;  %v1076_v18 = vld [vmem:[#allocation2 + $0x1030] sm:$0xff] }
 0x31e   :  { %v1200_v44 = vld [vmem:[#allocation2 + $0x1410] sm:$0xff]  ;;  %v11914_v25 = vcombine.high %v1072_v0, %v1076_v18  ;;  %v11913_v17 = vcombine.low %v1072_v0, %v1076_v18 }
 0x31f   :  { %8260 = vmatpush1.bf16.msra.mxu0 %v11953_v47  ;;  %v12042_v29 = vcombine.high %v1200_v44, %v1204_v3  ;;  %v1192_v47 = vld [vmem:[#allocation2 + $0x13d0] sm:$0xff]  ;;  %v12041_v31 = vcombine.low %v1200_v44, %v1204_v3 }
 0x320   :  { %8301 = vmatpush1.bf16.msra.mxu1 %v12081_v4  ;;  %8261 = vmatprep.subr.bf16.mxu0 %v11946_v5  ;;  %v1196_v7 = vld [vmem:[#allocation2 + $0x13f0] sm:$0xff] }
 0x321   :  { %8302 = vmatprep.subr.bf16.mxu1 %v12074_v51  ;;  %v1320_v4 = vld [vmem:[#allocation2 + $0x17d0] sm:$0xff]  ;;  %v12034_v8 = vcombine.high %v1192_v47, %v1196_v7 }
 0x322   :  { %v1324_v5 = vld [vmem:[#allocation2 + $0x17f0] sm:$0xff] }
 0x323   :  { %8262 = vmatpush1.bf16.msra.mxu0 %v11945_v62  ;;  %v1176_v49 = vld [vmem:[#allocation2 + $0x1350] sm:$0xff] }
 0x324   :  { %8303 = vmatpush1.bf16.msra.mxu1 %v12073_v32  ;;  %8263 = vmatprep.subr.bf16.mxu0 %v11938_v53  ;;  %v12162_v32 = vcombine.high %v1320_v4, %v1324_v5  ;;  %v1184_v53 = vld [vmem:[#allocation2 + $0x1390] sm:$0xff] }
 0x325   :  { %8304 = vmatprep.subr.bf16.mxu1 %v12066_v33  ;;  %v1188_v33 = vld [vmem:[#allocation2 + $0x13b0] sm:$0xff] }
 0x326   :  { %v1180_v50 = vld [vmem:[#allocation2 + $0x1370] sm:$0xff] }
 0x327   :  { %8264 = vmatpush1.bf16.msra.mxu0 %v11937_v41  ;;  %v12033_v41 = vcombine.low %v1192_v47, %v1196_v7  ;;  %v1304_v11 = vld [vmem:[#allocation2 + $0x1750] sm:$0xff]  ;;  %v12017_v3 = vcombine.low %v1176_v49, %v1180_v50 }
 0x328   :  { %8305 = vmatpush1.bf16.msra.mxu1 %v12065_v57  ;;  %8265 = vmatprep.subr.bf16.mxu0 %v11930_v42  ;;  %v12026_v57 = vcombine.high %v1184_v53, %v1188_v33  ;;  %v1308_v12 = vld [vmem:[#allocation2 + $0x1770] sm:$0xff] }
 0x329   :  { %8306 = vmatprep.subr.bf16.mxu1 %v12058_v48  ;;  %v12154_v48 = vcombine.high %v1312_v40, %v1316_v24  ;;  %v1172_v0 = vld [vmem:[#allocation2 + $0x1330] sm:$0xff] }
 0x32a   :  { %v1296_v18 = vld [vmem:[#allocation2 + $0x1710] sm:$0xff] }
 0x32b   :  { %8266 = vmatpush1.bf16.msra.mxu0 %v11929_v54  ;;  %v12025_v54 = vcombine.low %v1184_v53, %v1188_v33  ;;  %v1300_v44 = vld [vmem:[#allocation2 + $0x1730] sm:$0xff] }
 0x32c   :  { %8307 = vmatpush1.bf16.msra.mxu1 %v12057_v61  ;;  %8267 = vmatprep.subr.bf16.mxu0 %v11922_v36  ;;  %v12018_v61 = vcombine.high %v1176_v49, %v1180_v50  ;;  %v12146_v36 = vcombine.high %v1304_v11, %v1308_v12  ;;  %v1164_v47 = vld [vmem:[#allocation2 + $0x12f0] sm:$0xff] }
 0x32d   :  { %8308 = vmatprep.subr.bf16.mxu1 %v12050_v34  ;;  %v1168_v34 = vld [vmem:[#allocation2 + $0x1310] sm:$0xff] }
 0x32e   :  { %v1288_v7 = vld [vmem:[#allocation2 + $0x16d0] sm:$0xff] }
 0x32f   :  { %v8002_v51 = vpop.f32.mrf.mxu1  ;;  %8268 = vmatpush1.bf16.msra.mxu0 %v11921_v55  ;;  %v12145_v55 = vcombine.low %v1304_v11, %v1308_v12  ;;  %v1284_v53 = vld [vmem:[#allocation2 + $0x16b0] sm:$0xff] }
 0x330   :  { %v14255_v30 = vadd.f32 %v8002_v51, %v14246_v14  ;;  %8309 = vmatpush1.bf16.msra.mxu1 %v12049_v22  ;;  %8269 = vmatprep.subr.bf16.mxu0 %v11914_v25  ;;  %v12161_v14 = vcombine.low %v1320_v4, %v1324_v5  ;;  %v12010_v22 = vcombine.high %v1168_v34, %v1172_v0  ;;  %v1292_v4 = vld [vmem:[#allocation2 + $0x16f0] sm:$0xff] }
 0x331   :  { %v8004_v62 = vpop.f32.mrf.mxu1  ;;  %8310 = vmatprep.subr.bf16.mxu1 %v12042_v29  ;;  %v12138_v25 = vcombine.high %v1296_v18, %v1300_v44  ;;  %v1160_v29 = vld [vmem:[#allocation2 + $0x12d0] sm:$0xff]  ;;  %v12009_v5 = vcombine.low %v1168_v34, %v1172_v0  ;;  %v12137_v51 = vcombine.low %v1296_v18, %v1300_v44 }
 0x332   :  { %v14258_v37 = vadd.f32 %v8004_v62, %v14250_v21  ;;  %v12153_v21 = vcombine.low %v1312_v40, %v1316_v24  ;;  %v1156_v62 = vld [vmem:[#allocation2 + $0x12b0] sm:$0xff]  ;;  %v12001_v33 = vcombine.low %v1160_v29, %v1164_v47  ;;  %v12129_v40 = vcombine.low %v1288_v7, %v1292_v4 }
 0x333   :  { %v8006_v43 = vpop.f32.mrf.mxu1  ;;  %8270 = vmatpush1.bf16.msra.mxu0 %v11913_v17  ;;  %v12002_v17 = vcombine.high %v1160_v29, %v1164_v47  ;;  %v1136_v12 = vld [vmem:[#allocation2 + $0x1210] sm:$0xff] }
 0x334   :  { %8311 = vmatpush1.bf16.msra.mxu1 %v12041_v31  ;;  %8271 = vmatprep.subr.bf16.mxu0 %v12034_v8  ;;  %v12130_v31 = vcombine.high %v1288_v7, %v1292_v4  ;;  %v1152_v8 = vld [vmem:[#allocation2 + $0x1290] sm:$0xff] }
 0x335   :  { %v8007_v42 = vpop.f32.mrf.mxu1  ;;  %8312 = vmatprep.subr.bf16.mxu1 %v12162_v32  ;;  %v1280_v32 = vld [vmem:[#allocation2 + $0x1690] sm:$0xff]  ;;  %v11994_v24 = vcombine.high %v1152_v8, %v1156_v62 }
 0x336   :  { %v12122_v43 = vcombine.high %v1280_v32, %v1284_v53  ;;  %v1276_v42 = vld [vmem:[#allocation2 + $0x1670] sm:$0xff]  ;;  %v12121_v49 = vcombine.low %v1280_v32, %v1284_v53 }
 0x337   :  { %8272 = vmatpush2.bf16.msra.mxu0 %v12033_v41  ;;  %v1144_v41 = vld [vmem:[#allocation2 + $0x1250] sm:$0xff] }
 0x338   :  { %8313 = vmatpush2.bf16.msra.mxu1 %v12161_v14  ;;  %8273 = vmatprep.subr.bf16.mxu0 %v12026_v57  ;;  %v1148_v14 = vld [vmem:[#allocation2 + $0x1270] sm:$0xff] }
 0x339   :  { %8314 = vmatprep.subr.bf16.mxu1 %v12154_v48  ;;  %v1272_v57 = vld [vmem:[#allocation2 + $0x1650] sm:$0xff]  ;;  %v11993_v48 = vcombine.low %v1152_v8, %v1156_v62  ;;  %v11986_v50 = vcombine.high %v1144_v41, %v1148_v14 }
 0x33a   :  { %v12114_v11 = vcombine.high %v1272_v57, %v1276_v42  ;;  %v12113_v34 = vcombine.low %v1272_v57, %v1276_v42  ;;  %v1384_v44 = vld [vmem:[#allocation2 + $0x19d0] sm:$0xff] }
 0x33b   :  { %8274 = vmatpush2.bf16.msra.mxu0 %v12025_v54  ;;  %v1140_v54 = vld [vmem:[#allocation2 + $0x1230] sm:$0xff] }
 0x33c   :  { %8315 = vmatpush2.bf16.msra.mxu1 %v12153_v21  ;;  %8275 = vmatprep.subr.bf16.mxu0 %v12018_v61  ;;  %v1264_v21 = vld [vmem:[#allocation2 + $0x1610] sm:$0xff]  ;;  %v11978_v0 = vcombine.high %v1136_v12, %v1140_v54 }
 0x33d   :  { %8316 = vmatprep.subr.bf16.mxu1 %v12146_v36  ;;  %v1268_v61 = vld [vmem:[#allocation2 + $0x1630] sm:$0xff]  ;;  %v11985_v36 = vcombine.low %v1144_v41, %v1148_v14 }
 0x33e   :  { %v12106_v18 = vcombine.high %v1264_v21, %v1268_v61  ;;  %v12105_v29 = vcombine.low %v1264_v21, %v1268_v61  ;;  %v1376_v4 = vld [vmem:[#allocation2 + $0x1990] sm:$0xff] }
 0x33f   :  { %8276 = vmatpush2.bf16.msra.mxu0 %v12017_v3  ;;  %v1388_v3 = vld [vmem:[#allocation2 + $0x19f0] sm:$0xff] }
 0x340   :  { %8317 = vmatpush2.bf16.msra.mxu1 %v12145_v55  ;;  %8277 = vmatprep.subr.bf16.mxu0 %v12010_v22  ;;  %v1512_v55 = vld [vmem:[#allocation2 + $0x1dd0] sm:$0xff]  ;;  %v12226_v47 = vcombine.high %v1384_v44, %v1388_v3 }
 0x341   :  { %8318 = vmatprep.subr.bf16.mxu1 %v12138_v25  ;;  %v1516_v22 = vld [vmem:[#allocation2 + $0x1df0] sm:$0xff]  ;;  %v11977_v25 = vcombine.low %v1136_v12, %v1140_v54 }
 0x342   :  { %v12354_v7 = vcombine.high %v1512_v55, %v1516_v22  ;;  %v12353_v8 = vcombine.low %v1512_v55, %v1516_v22  ;;  %v1368_v53 = vld [vmem:[#allocation2 + $0x1950] sm:$0xff] }
 0x343   :  { %8278 = vmatpush2.bf16.msra.mxu0 %v12009_v5  ;;  %v1380_v5 = vld [vmem:[#allocation2 + $0x19b0] sm:$0xff] }
 0x344   :  { %8319 = vmatpush2.bf16.msra.mxu1 %v12137_v51  ;;  %8279 = vmatprep.subr.bf16.mxu0 %v12002_v17  ;;  %v1504_v51 = vld [vmem:[#allocation2 + $0x1d90] sm:$0xff]  ;;  %v12218_v62 = vcombine.high %v1376_v4, %v1380_v5  ;;  %v12217_v57 = vcombine.low %v1376_v4, %v1380_v5 }
 0x345   :  { %8320 = vmatprep.subr.bf16.mxu1 %v12130_v31  ;;  %v1508_v17 = vld [vmem:[#allocation2 + $0x1db0] sm:$0xff]  ;;  %v12225_v31 = vcombine.low %v1384_v44, %v1388_v3 }
 0x346   :  { %v12346_v32 = vcombine.high %v1504_v51, %v1508_v17  ;;  %v1360_v21 = vld [vmem:[#allocation2 + $0x1910] sm:$0xff] }
 0x347   :  { %8280 = vmatpush2.bf16.msra.mxu0 %v12001_v33  ;;  %v1372_v33 = vld [vmem:[#allocation2 + $0x1970] sm:$0xff] }
 0x348   :  { %8321 = vmatpush2.bf16.msra.mxu1 %v12129_v40  ;;  %8281 = vmatprep.subr.bf16.mxu0 %v11994_v24  ;;  %v1496_v24 = vld [vmem:[#allocation2 + $0x1d50] sm:$0xff]  ;;  %v12209_v44 = vcombine.low %v1368_v53, %v1372_v33 }
 0x349   :  { %8322 = vmatprep.subr.bf16.mxu1 %v12122_v43  ;;  %v1500_v43 = vld [vmem:[#allocation2 + $0x1d70] sm:$0xff] }
 0x34a   :  { %v12338_v54 = vcombine.high %v1496_v24, %v1500_v43  ;;  %v1364_v61 = vld [vmem:[#allocation2 + $0x1930] sm:$0xff] }
 0x34b   :  { %8282 = vmatpush2.bf16.msra.mxu0 %v11993_v48  ;;  %v12345_v48 = vcombine.low %v1504_v51, %v1508_v17  ;;  %v12202_v55 = vcombine.high %v1360_v21, %v1364_v61  ;;  %v1484_v4 = vld [vmem:[#allocation2 + $0x1cf0] sm:$0xff]  ;;  %v12201_v5 = vcombine.low %v1360_v21, %v1364_v61 }
 0x34c   :  { %8323 = vmatpush2.bf16.msra.mxu1 %v12121_v49  ;;  %8283 = vmatprep.subr.bf16.mxu0 %v11986_v50  ;;  %v12210_v49 = vcombine.high %v1368_v53, %v1372_v33  ;;  %v1476_v53 = vld [vmem:[#allocation2 + $0x1cb0] sm:$0xff] }
 0x34d   :  { %8324 = vmatprep.subr.bf16.mxu1 %v12114_v11  ;;  %v1332_v21 = vld [vmem:[#allocation2 + $0x1830] sm:$0xff] }
 0x34e   :  { %v1456_v61 = vld [vmem:[#allocation2 + $0x1c10] sm:$0xff] }
 0x34f   :  { %8284 = vmatpush2.bf16.msra.mxu0 %v11985_v36  ;;  %v1488_v36 = vld [vmem:[#allocation2 + $0x1d10] sm:$0xff] }
 0x350   :  { %8325 = vmatpush2.bf16.msra.mxu1 %v12113_v34  ;;  %8285 = vmatprep.subr.bf16.mxu0 %v11978_v0  ;;  %v1492_v34 = vld [vmem:[#allocation2 + $0x1d30] sm:$0xff] }
 0x351   :  { %8326 = vmatprep.subr.bf16.mxu1 %v12106_v18  ;;  %v12329_v51 = vcombine.low %v1488_v36, %v1492_v34 }
 0x353   :  { %8286 = vmatpush2.bf16.msra.mxu0 %v11977_v25  ;;  %v12330_v25 = vcombine.high %v1488_v36, %v1492_v34 }
 0x354   :  { %8327 = vmatpush2.bf16.msra.mxu1 %v12105_v29  ;;  %8337 = vmatprep.subr.bf16.mxu0 %v12226_v47  ;;  %v1352_v29 = vld [vmem:[#allocation2 + $0x18d0] sm:$0xff] }
 0x355   :  { %8378 = vmatprep.subr.bf16.mxu1 %v12354_v7  ;;  %v1356_v47 = vld [vmem:[#allocation2 + $0x18f0] sm:$0xff] }
 0x356   :  { %v8043_v40 = vpop.f32.mrf.mxu0  ;;  %8288 = vmatmul.mubr.bf16.vlgmr.msra.gmra.mxu0 %v14044_v28  ;;  %v1480_v7 = vld [vmem:[#allocation2 + $0x1cd0] sm:$0xff]  ;;  %v12194_v17 = vcombine.high %v1352_v29, %v1356_v47  ;;  %v12193_v33 = vcombine.low %v1352_v29, %v1356_v47 }
 0x357   :  { %v8044_v41 = vadd.f32 %v8043_v40, %v14255_v30  ;;  %v8084_v14 = vpop.f32.mrf.mxu1  ;;  %8329 = vmatmul.mubr.bf16.vlgmr.msra.gmra.mxu1 %v14047_v6  ;;  %8338 = vmatpush1.bf16.msra.mxu0 %v12225_v31  ;;  %v12322_v31 = vcombine.high %v1480_v7, %v1484_v4  ;;  %v12321_v40 = vcombine.low %v1480_v7, %v1484_v4  ;;  %v1440_v4 = vld [vmem:[#allocation2 + $0x1b90] sm:$0xff] }
 0x358   :  { %8379 = vmatpush1.bf16.msra.mxu1 %v12353_v8  ;;  %v8045_v42 = vpop.f32.mrf.mxu0  ;;  %8339 = vmatprep.subr.bf16.mxu0 %v12218_v62  ;;  %v1344_v8 = vld [vmem:[#allocation2 + $0x1890] sm:$0xff] }
 0x359   :  { %v14263_v50 = vadd.f32 %v8084_v14, %v8044_v41  ;;  %v8046_v11 = vadd.f32 %v8045_v42, %v14258_v37  ;;  %v8086_v12 = vpop.f32.mrf.mxu1  ;;  %8380 = vmatprep.subr.bf16.mxu1 %v12346_v32  ;;  %8369 = vmatprep.mubr.bf16.mxu0 %v14050_v38  ;;  %v12337_v37 = vcombine.low %v1496_v24, %v1500_v43  ;;  %v1348_v62 = vld [vmem:[#allocation2 + $0x18b0] sm:$0xff] }
 0x35a   :  { %v8047_v30 = vpop.f32.mrf.mxu0  ;;  %8410 = vmatprep.mubr.bf16.mxu1 %v14053_v39  ;;  %v1472_v32 = vld [vmem:[#allocation2 + $0x1c90] sm:$0xff]  ;;  %v12186_v24 = vcombine.high %v1344_v8, %v1348_v62 }
 0x35b   :  { %v14268_v0 = vadd.f32 %v8086_v12, %v8046_v11  ;;  %v8088_v18 = vpop.f32.mrf.mxu1  ;;  %8340 = vmatpush1.bf16.msra.mxu0 %v12217_v57  ;;  %v12314_v43 = vcombine.high %v1472_v32, %v1476_v53  ;;  %v1336_v41 = vld [vmem:[#allocation2 + $0x1850] sm:$0xff] }
 0x35c   :  { %8381 = vmatpush1.bf16.msra.mxu1 %v12345_v48  ;;  %v8048_v3 = vpop.f32.mrf.mxu0  ;;  %8341 = vmatprep.subr.bf16.mxu0 %v12210_v49  ;;  %v1340_v14 = vld [vmem:[#allocation2 + $0x1870] sm:$0xff]  ;;  %v12185_v48 = vcombine.low %v1344_v8, %v1348_v62  ;;  %v12313_v49 = vcombine.low %v1472_v32, %v1476_v53 }
 0x35d   :  { %v8089_v22 = vpop.f32.mrf.mxu1  ;;  %8382 = vmatprep.subr.bf16.mxu1 %v12338_v54  ;;  %v1464_v57 = vld [vmem:[#allocation2 + $0x1c50] sm:$0xff]  ;;  %v12178_v11 = vcombine.high %v1336_v41, %v1340_v14  ;;  %v12177_v36 = vcombine.low %v1336_v41, %v1340_v14 }
 0x35e   :  { %v1468_v42 = vld [vmem:[#allocation2 + $0x1c70] sm:$0xff] }
 0x35f   :  { %8342 = vmatpush1.bf16.msra.mxu0 %v12209_v44  ;;  %v12306_v12 = vcombine.high %v1464_v57, %v1468_v42  ;;  %v1328_v54 = vld [vmem:[#allocation2 + $0x1810] sm:$0xff]  ;;  %v12305_v34 = vcombine.low %v1464_v57, %v1468_v42 }
 0x360   :  { %8383 = vmatpush1.bf16.msra.mxu1 %v12337_v37  ;;  %8343 = vmatprep.subr.bf16.mxu0 %v12202_v55  ;;  %v1460_v30 = vld [vmem:[#allocation2 + $0x1c30] sm:$0xff]  ;;  %v12170_v18 = vcombine.high %v1328_v54, %v1332_v21 }
 0x361   :  { %8384 = vmatprep.subr.bf16.mxu1 %v12330_v25  ;;  %v12298_v44 = vcombine.high %v1456_v61, %v1460_v30  ;;  %v1448_v3 = vld [vmem:[#allocation2 + $0x1bd0] sm:$0xff]  ;;  %v12169_v25 = vcombine.low %v1328_v54, %v1332_v21  ;;  %v12297_v29 = vcombine.low %v1456_v61, %v1460_v30 }
 0x362   :  { %v1452_v37 = vld [vmem:[#allocation2 + $0x1bf0] sm:$0xff] }
 0x363   :  { %8344 = vmatpush1.bf16.msra.mxu0 %v12201_v5  ;;  %v1576_v55 = vld [vmem:[#allocation2 + $0x1fd0] sm:$0xff]  ;;  %v12290_v47 = vcombine.high %v1448_v3, %v1452_v37 }
 0x364   :  { %8385 = vmatpush1.bf16.msra.mxu1 %v12329_v51  ;;  %8345 = vmatprep.subr.bf16.mxu0 %v12194_v17  ;;  %v1580_v22 = vld [vmem:[#allocation2 + $0x1ff0] sm:$0xff] }
 0x365   :  { %8386 = vmatprep.subr.bf16.mxu1 %v12322_v31  ;;  %v12418_v7 = vcombine.high %v1576_v55, %v1580_v22  ;;  %v1444_v5 = vld [vmem:[#allocation2 + $0x1bb0] sm:$0xff]  ;;  %v12289_v31 = vcombine.low %v1448_v3, %v1452_v37  ;;  %v12417_v8 = vcombine.low %v1576_v55, %v1580_v22 }
 0x366   :  { %v1568_v51 = vld [vmem:[#allocation2 + $0x1f90] sm:$0xff]  ;;  %v12282_v62 = vcombine.high %v1440_v4, %v1444_v5 }
 0x367   :  { %8346 = vmatpush1.bf16.msra.mxu0 %v12193_v33  ;;  %v1572_v17 = vld [vmem:[#allocation2 + $0x1fb0] sm:$0xff] }
 0x368   :  { %8387 = vmatpush1.bf16.msra.mxu1 %v12321_v40  ;;  %8347 = vmatprep.subr.bf16.mxu0 %v12186_v24  ;;  %v12410_v32 = vcombine.high %v1568_v51, %v1572_v17  ;;  %v1432_v53 = vld [vmem:[#allocation2 + $0x1b50] sm:$0xff]  ;;  %v12409_v41 = vcombine.low %v1568_v51, %v1572_v17 }
 0x369   :  { %8388 = vmatprep.subr.bf16.mxu1 %v12314_v43  ;;  %v1436_v33 = vld [vmem:[#allocation2 + $0x1b70] sm:$0xff]  ;;  %v12281_v43 = vcombine.low %v1440_v4, %v1444_v5 }
 0x36a   :  { %v1560_v40 = vld [vmem:[#allocation2 + $0x1f50] sm:$0xff]  ;;  %v12274_v14 = vcombine.high %v1432_v53, %v1436_v33 }
 0x36b   :  { %8348 = vmatpush1.bf16.msra.mxu0 %v12185_v48  ;;  %v1564_v24 = vld [vmem:[#allocation2 + $0x1f70] sm:$0xff] }
 0x36c   :  { %8389 = vmatpush1.bf16.msra.mxu1 %v12313_v49  ;;  %8349 = vmatprep.subr.bf16.mxu0 %v12178_v11  ;;  %v12402_v57 = vcombine.high %v1560_v40, %v1564_v24  ;;  %v1424_v42 = vld [vmem:[#allocation2 + $0x1b10] sm:$0xff]  ;;  %v12401_v54 = vcombine.low %v1560_v40, %v1564_v24 }
 0x36d   :  { %8390 = vmatprep.subr.bf16.mxu1 %v12306_v12  ;;  %v1428_v48 = vld [vmem:[#allocation2 + $0x1b30] sm:$0xff]  ;;  %v12273_v12 = vcombine.low %v1432_v53, %v1436_v33 }
 0x36e   :  { %v1552_v49 = vld [vmem:[#allocation2 + $0x1f10] sm:$0xff]  ;;  %v12266_v21 = vcombine.high %v1424_v42, %v1428_v48 }
 0x36f   :  { %8350 = vmatpush1.bf16.msra.mxu0 %v12177_v36  ;;  %v1556_v11 = vld [vmem:[#allocation2 + $0x1f30] sm:$0xff] }
 0x370   :  { %8391 = vmatpush1.bf16.msra.mxu1 %v12305_v34  ;;  %8351 = vmatprep.subr.bf16.mxu0 %v12170_v18  ;;  %v12394_v61 = vcombine.high %v1552_v49, %v1556_v11  ;;  %v1416_v30 = vld [vmem:[#allocation2 + $0x1ad0] sm:$0xff]  ;;  %v12393_v3 = vcombine.low %v1552_v49, %v1556_v11 }
 0x371   :  { %8392 = vmatprep.subr.bf16.mxu1 %v12298_v44  ;;  %v1420_v36 = vld [vmem:[#allocation2 + $0x1af0] sm:$0xff]  ;;  %v12265_v44 = vcombine.low %v1424_v42, %v1428_v48 }
 0x372   :  { %v1544_v34 = vld [vmem:[#allocation2 + $0x1ed0] sm:$0xff]  ;;  %v12258_v37 = vcombine.high %v1416_v30, %v1420_v36 }
 0x373   :  { %8352 = vmatpush1.bf16.msra.mxu0 %v12169_v25  ;;  %v1548_v18 = vld [vmem:[#allocation2 + $0x1ef0] sm:$0xff] }
 0x374   :  { %8393 = vmatpush1.bf16.msra.mxu1 %v12297_v29  ;;  %8353 = vmatprep.subr.bf16.mxu0 %v12290_v47  ;;  %v12386_v55 = vcombine.high %v1544_v34, %v1548_v18  ;;  %v1408_v22 = vld [vmem:[#allocation2 + $0x1a90] sm:$0xff]  ;;  %v12385_v4 = vcombine.low %v1544_v34, %v1548_v18 }
 0x375   :  { %8394 = vmatprep.subr.bf16.mxu1 %v12418_v7  ;;  %v1412_v25 = vld [vmem:[#allocation2 + $0x1ab0] sm:$0xff]  ;;  %v12257_v7 = vcombine.low %v1416_v30, %v1420_v36  ;;  %v1682_v30 = vsub.s32 4, %v14128_v52 }
 0x376   :  { %v1536_v29 = vld [vmem:[#allocation2 + $0x1e90] sm:$0xff]  ;;  %v12250_v5 = vcombine.high %v1408_v22, %v1412_v25 }
 0x377   :  { %8354 = vmatpush2.bf16.msra.mxu0 %v12289_v31  ;;  %v1540_v47 = vld [vmem:[#allocation2 + $0x1eb0] sm:$0xff] }
 0x378   :  { %8395 = vmatpush2.bf16.msra.mxu1 %v12417_v8  ;;  %8355 = vmatprep.subr.bf16.mxu0 %v12282_v62  ;;  %v12378_v51 = vcombine.high %v1536_v29, %v1540_v47  ;;  %v1400_v17 = vld [vmem:[#allocation2 + $0x1a50] sm:$0xff]  ;;  %v12377_v53 = vcombine.low %v1536_v29, %v1540_v47 }
 0x379   :  { %8396 = vmatprep.subr.bf16.mxu1 %v12410_v32  ;;  %v1404_v31 = vld [vmem:[#allocation2 + $0x1a70] sm:$0xff]  ;;  %v12249_v32 = vcombine.low %v1408_v22, %v1412_v25  ;;  %v613_v22 = vld [vmem:[#allocation2 + $0x1b8] sm:$0xff]  ;;  %v13367_v25 = vld [vmem:[#allocation5] sm:$0xff] }
 0x37a   :  { %v1528_v8 = vld [vmem:[#allocation2 + $0x1e50] sm:$0xff]  ;;  %v12242_v33 = vcombine.high %v1400_v17, %v1404_v31  ;;  %v1683_v29 = vrot.slane %v13367_v25, %v1682_v30 }
 0x37b   :  { %8356 = vmatpush2.bf16.msra.mxu0 %v12281_v43  ;;  %v1532_v62 = vld [vmem:[#allocation2 + $0x1e70] sm:$0xff] }
 0x37c   :  { %8397 = vmatpush2.bf16.msra.mxu1 %v12409_v41  ;;  %8357 = vmatprep.subr.bf16.mxu0 %v12274_v14  ;;  %v12370_v40 = vcombine.high %v1528_v8, %v1532_v62  ;;  %v1392_v24 = vld [vmem:[#allocation2 + $0x1a10] sm:$0xff]  ;;  %v12369_v42 = vcombine.low %v1528_v8, %v1532_v62  ;;  %v601_v62 = vld [vmem:[#allocation2 + $0x158] sm:$0xff] }
 0x37d   :  { %8398 = vmatprep.subr.bf16.mxu1 %v12402_v57  ;;  %v1396_v43 = vld [vmem:[#allocation2 + $0x1a30] sm:$0xff]  ;;  %v12241_v57 = vcombine.low %v1400_v17, %v1404_v31 }
 0x37e   :  { %v1520_v41 = vld [vmem:[#allocation2 + $0x1e10] sm:$0xff]  ;;  %v12234_v48 = vcombine.high %v1392_v24, %v1396_v43 }
 0x37f   :  { %8358 = vmatpush2.bf16.msra.mxu0 %v12273_v12  ;;  %v1524_v14 = vld [vmem:[#allocation2 + $0x1e30] sm:$0xff] }
 0x380   :  { %8399 = vmatpush2.bf16.msra.mxu1 %v12401_v54  ;;  %8359 = vmatprep.subr.bf16.mxu0 %v12266_v21  ;;  %v12362_v49 = vcombine.high %v1520_v41, %v1524_v14  ;;  %v1640_v11 = vld [vmem:[#allocation2 + $0x21d0] sm:$0xff]  ;;  %v617_v54 = vld [vmem:[#allocation2 + $0x1d8] sm:$0xff]  ;;  %v12361_v36 = vcombine.low %v1520_v41, %v1524_v14 }
 0x381   :  { %8400 = vmatprep.subr.bf16.mxu1 %v12394_v61  ;;  %v1644_v12 = vld [vmem:[#allocation2 + $0x21f0] sm:$0xff]  ;;  %v621_v21 = vld [vmem:[#allocation2 + $0x1f8] sm:$0xff]  ;;  %v12233_v61 = vcombine.low %v1392_v24, %v1396_v43 }
 0x382   :  { %v12482_v34 = vcombine.high %v1640_v11, %v1644_v12  ;;  %v11460_v18 = vcombine.high %v617_v54, %v621_v21  ;;  %v12481_v47 = vcombine.low %v1640_v11, %v1644_v12  ;;  %v1624_v17 = vld [vmem:[#allocation2 + $0x2150] sm:$0xff] }
 0x383   :  { %8360 = vmatpush2.bf16.msra.mxu0 %v12265_v44  ;;  %v1686_v44 = vsub.s32 5, %v14128_v52  ;;  %v1628_v31 = vld [vmem:[#allocation2 + $0x2170] sm:$0xff] }
 0x384   :  { %8401 = vmatpush2.bf16.msra.mxu1 %v12393_v3  ;;  %8361 = vmatprep.subr.bf16.mxu0 %v12258_v37  ;;  %v1632_v3 = vld [vmem:[#allocation2 + $0x2190] sm:$0xff]  ;;  %v12466_v41 = vcombine.high %v1624_v17, %v1628_v31 }
 0x385   :  { %8402 = vmatprep.subr.bf16.mxu1 %v12386_v55  ;;  %v1636_v37 = vld [vmem:[#allocation2 + $0x21b0] sm:$0xff]  ;;  %v609_v55 = vld [vmem:[#allocation2 + $0x198] sm:$0xff] }
 0x386   :  { %v11451_v43 = vcombine.low %v609_v55, %v613_v22  ;;  %v1620_v11 = vld [vmem:[#allocation2 + $0x2130] sm:$0xff] }
 0x387   :  { %8362 = vmatpush2.bf16.msra.mxu0 %v12257_v7  ;;  %v11459_v7 = vcombine.low %v617_v54, %v621_v21  ;;  %v593_v54 = vld [vmem:[#allocation2 + $0x118] sm:$0xff] }
 0x388   :  { %8403 = vmatpush2.bf16.msra.mxu1 %v12385_v4  ;;  %8363 = vmatprep.subr.bf16.mxu0 %v12250_v5  ;;  %v12474_v4 = vcombine.high %v1632_v3, %v1636_v37  ;;  %v1687_v5 = vrot.slane %v13367_v25, %v1686_v44  ;;  %v597_v21 = vld [vmem:[#allocation2 + $0x138] sm:$0xff] }
 0x389   :  { %8404 = vmatprep.subr.bf16.mxu1 %v12378_v51  ;;  %v11452_v51 = vcombine.high %v609_v55, %v613_v22  ;;  %v1608_v55 = vld [vmem:[#allocation2 + $0x20d0] sm:$0xff]  ;;  %v585_v25 = vld [vmem:[#allocation2 + $0xd8] sm:$0xff] }
 0x38a   :  { %v1612_v22 = vld [vmem:[#allocation2 + $0x20f0] sm:$0xff] }
 0x38b   :  { %8364 = vmatpush2.bf16.msra.mxu0 %v12249_v32  ;;  %v605_v32 = vld [vmem:[#allocation2 + $0x178] sm:$0xff] }
 0x38c   :  { %8405 = vmatpush2.bf16.msra.mxu1 %v12377_v53  ;;  %8365 = vmatprep.subr.bf16.mxu0 %v12242_v33 }
 0x38d   :  { %8406 = vmatprep.subr.bf16.mxu1 %v12370_v40  ;;  %v12473_v40 = vcombine.low %v1632_v3, %v1636_v37  ;;  %v11436_v37 = vcombine.high %v593_v54, %v597_v21 }
 0x38f   :  { %8366 = vmatpush2.bf16.msra.mxu0 %v12241_v57 }
 0x390   :  { %8407 = vmatpush2.bf16.msra.mxu1 %v12369_v42  ;;  %8367 = vmatprep.subr.bf16.mxu0 %v12234_v48  ;;  %v11444_v48 = vcombine.high %v601_v62, %v605_v32 }
 0x391   :  { %8408 = vmatprep.subr.bf16.mxu1 %v12362_v49  ;;  %v1616_v49 = vld [vmem:[#allocation2 + $0x2110] sm:$0xff] }
 0x392   :  { %v12458_v44 = vcombine.high %v1616_v49, %v1620_v11 }
 0x393   :  { %8368 = vmatpush2.bf16.msra.mxu0 %v12233_v61 }
 0x394   :  { %8409 = vmatpush2.bf16.msra.mxu1 %v12361_v36  ;;  %8419 = vmatprep.subr.bf16.mxu0 %v12482_v34  ;;  %v12465_v36 = vcombine.low %v1624_v17, %v1628_v31  ;;  %v577_v17 = vld [vmem:[#allocation2 + $0x98] sm:$0xff] }
 0x395   :  { %8460 = vmatprep.subr.bf16.mxu1 %v11460_v18  ;;  %v11443_v18 = vcombine.low %v601_v62, %v605_v32  ;;  %v581_v31 = vld [vmem:[#allocation2 + $0xb8] sm:$0xff] }
 0x396   :  { %v8125_v8 = vpop.f32.mrf.mxu0  ;;  %8370 = vmatmul.mubr.bf16.vlgmr.msra.gmra.mxu0 %v14140_v10 }
 0x397   :  { %v8126_v53 = vadd.f32 %v8125_v8, %v1683_v29  ;;  %v8166_v33 = vpop.f32.mrf.mxu1  ;;  %8411 = vmatmul.mubr.bf16.vlgmr.msra.gmra.mxu1 %v14144_v19  ;;  %8420 = vmatpush1.bf16.msra.mxu0 %v12481_v47  ;;  %v589_v29 = vld [vmem:[#allocation2 + $0xf8] sm:$0xff]  ;;  %v12457_v47 = vcombine.low %v1616_v49, %v1620_v11  ;;  %v12449_v8 = vcombine.low %v1608_v55, %v1612_v22  ;;  %v1584_v49 = vld [vmem:[#allocation2 + $0x2010] sm:$0xff] }
 0x398   :  { %8461 = vmatpush1.bf16.msra.mxu1 %v11459_v7  ;;  %v8127_v24 = vpop.f32.mrf.mxu0  ;;  %8421 = vmatprep.subr.bf16.mxu0 %v12474_v4  ;;  %v12450_v7 = vcombine.high %v1608_v55, %v1612_v22  ;;  %v11428_v4 = vcombine.high %v585_v25, %v589_v29  ;;  %v11427_v62 = vcombine.low %v585_v25, %v589_v29  ;;  %v1588_v11 = vld [vmem:[#allocation2 + $0x2030] sm:$0xff] }
 0x399   :  { %v14274_v14 = vadd.f32 %v8166_v33, %v8126_v53  ;;  %v8128_v57 = vadd.f32 %v8127_v24, %v1687_v5  ;;  %v8168_v42 = vpop.f32.mrf.mxu1  ;;  %8462 = vmatprep.subr.bf16.mxu1 %v11452_v51  ;;  %12503 = vmatprep.mubr.msk.bf16.mxu0 %vm384_vm1, %v14147_v26  ;;  %v1600_v5 = vld [vmem:[#allocation2 + $0x2090] sm:$0xff]  ;;  %v11420_v53 = vcombine.high %v577_v17, %v581_v31  ;;  %v569_v24 = vld [vmem:[#allocation2 + $0x58] sm:$0xff] }
 0x39a   :  { %v8129_v12 = vpop.f32.mrf.mxu0  ;;  %8492 = vmatprep.mubr.bf16.mxu1 %v13775_v20  ;;  %v11435_v20 = vcombine.low %v593_v54, %v597_v21  ;;  %v1604_v51 = vld [vmem:[#allocation2 + $0x20b0] sm:$0xff]  ;;  %v565_v54 = vld [vmem:[#allocation2 + $0x38] sm:$0xff]  ;;  %v12425_v55 = vcombine.low %v1584_v49, %v1588_v11 }
 0x39b   :  { %v14279_v61 = vadd.f32 %v8168_v42, %v8128_v57  ;;  %v8170_v30 = vpop.f32.mrf.mxu1  ;;  %8422 = vmatpush1.bf16.msra.mxu0 %v12473_v40  ;;  %v12442_v32 = vcombine.high %v1600_v5, %v1604_v51  ;;  %v1592_v33 = vld [vmem:[#allocation2 + $0x2050] sm:$0xff]  ;;  %v11419_v57 = vcombine.low %v577_v17, %v581_v31  ;;  %v561_v12 = vld [vmem:[#allocation2 + $0x18] sm:$0xff] }
 0x39c   :  { %8463 = vmatpush1.bf16.msra.mxu1 %v11451_v43  ;;  %v8130_v34 = vpop.f32.mrf.mxu0  ;;  %8423 = vmatprep.subr.bf16.mxu0 %v12466_v41  ;;  %v1596_v40 = vld [vmem:[#allocation2 + $0x2070] sm:$0xff]  ;;  %v573_v43 = vld [vmem:[#allocation2 + $0x78] sm:$0xff]  ;;  %v12441_v41 = vcombine.low %v1600_v5, %v1604_v51  ;;  %v11403_v22 = vcombine.low %v561_v12, %v565_v54 }
 0x39d   :  { %v8171_v3 = vpop.f32.mrf.mxu1  ;;  %8464 = vmatprep.subr.bf16.mxu1 %v11444_v48  ;;  %v12434_v42 = vcombine.high %v1592_v33, %v1596_v40  ;;  %v11412_v48 = vcombine.high %v569_v24, %v573_v43  ;;  %v12433_v21 = vcombine.low %v1592_v33, %v1596_v40  ;;  %v11411_v30 = vcombine.low %v569_v24, %v573_v43 }
 0x39e   :  { %v11404_v34 = vcombine.high %v561_v12, %v565_v54  ;;  %v681_v3 = vld [vmem:[#allocation2 + $0x3d8] sm:$0xff] }
 0x39f   :  { %8424 = vmatpush1.bf16.msra.mxu0 %v12465_v36  ;;  %v12426_v36 = vcombine.high %v1584_v49, %v1588_v11 }
 0x3a0   :  { %8465 = vmatpush1.bf16.msra.mxu1 %v11443_v18  ;;  %8425 = vmatprep.subr.bf16.mxu0 %v12458_v44  ;;  %v1656_v18 = vld [vmem:[#allocation2 + $0x2250] sm:$0xff] }
 0x3a1   :  { %8466 = vmatprep.subr.bf16.mxu1 %v11436_v37  ;;  %v1660_v44 = vld [vmem:[#allocation2 + $0x2270] sm:$0xff]  ;;  %v685_v37 = vld [vmem:[#allocation2 + $0x3f8] sm:$0xff] }
 0x3a2   :  { %v12498_v25 = vcombine.high %v1656_v18, %v1660_v44  ;;  %v11524_v29 = vcombine.high %v681_v3, %v685_v37  ;;  %v12497_v5 = vcombine.low %v1656_v18, %v1660_v44  ;;  %v11523_v51 = vcombine.low %v681_v3, %v685_v37 }
 0x3a3   :  { %8426 = vmatpush1.bf16.msra.mxu0 %v12457_v47  ;;  %v1648_v47 = vld [vmem:[#allocation2 + $0x2210] sm:$0xff] }
 0x3a4   :  { %8467 = vmatpush1.bf16.msra.mxu1 %v11435_v20  ;;  %8427 = vmatprep.subr.bf16.mxu0 %v12450_v7  ;;  %v1652_v20 = vld [vmem:[#allocation2 + $0x2230] sm:$0xff]  ;;  %v673_v7 = vld [vmem:[#allocation2 + $0x398] sm:$0xff] }
 0x3a5   :  { %8468 = vmatprep.subr.bf16.mxu1 %v11428_v4  ;;  %v677_v4 = vld [vmem:[#allocation2 + $0x3b8] sm:$0xff]  ;;  %v12490_v17 = vcombine.high %v1648_v47, %v1652_v20  ;;  %v12489_v33 = vcombine.low %v1648_v47, %v1652_v20 }
 0x3a6   :  { %v11516_v31 = vcombine.high %v673_v7, %v677_v4  ;;  %v11515_v40 = vcombine.low %v673_v7, %v677_v4 }
 0x3a7   :  { %8428 = vmatpush1.bf16.msra.mxu0 %v12449_v8  ;;  %v745_v8 = vld [vmem:[#allocation2 + $0x5d8] sm:$0xff] }
 0x3a8   :  { %8469 = vmatpush1.bf16.msra.mxu1 %v11427_v62  ;;  %8429 = vmatprep.subr.bf16.mxu0 %v12442_v32  ;;  %v749_v62 = vld [vmem:[#allocation2 + $0x5f8] sm:$0xff] }
 0x3a9   :  { %8470 = vmatprep.subr.bf16.mxu1 %v11420_v53  ;;  %v665_v32 = vld [vmem:[#allocation2 + $0x358] sm:$0xff]  ;;  %v11588_v24 = vcombine.high %v745_v8, %v749_v62  ;;  %v11587_v49 = vcombine.low %v745_v8, %v749_v62 }
 0x3aa   :  { %v669_v53 = vld [vmem:[#allocation2 + $0x378] sm:$0xff] }
 0x3ab   :  { %8430 = vmatpush1.bf16.msra.mxu0 %v12441_v41  ;;  %v11508_v43 = vcombine.high %v665_v32, %v669_v53  ;;  %v737_v41 = vld [vmem:[#allocation2 + $0x598] sm:$0xff]  ;;  %v11507_v11 = vcombine.low %v665_v32, %v669_v53 }
 0x3ac   :  { %8471 = vmatpush1.bf16.msra.mxu1 %v11419_v57  ;;  %8431 = vmatprep.subr.bf16.mxu0 %v12434_v42  ;;  %v741_v57 = vld [vmem:[#allocation2 + $0x5b8] sm:$0xff] }
 0x3ad   :  { %8472 = vmatprep.subr.bf16.mxu1 %v11412_v48  ;;  %v657_v42 = vld [vmem:[#allocation2 + $0x318] sm:$0xff]  ;;  %v11580_v12 = vcombine.high %v737_v41, %v741_v57  ;;  %v11579_v18 = vcombine.low %v737_v41, %v741_v57 }
 0x3ae   :  { %v661_v48 = vld [vmem:[#allocation2 + $0x338] sm:$0xff] }
 0x3af   :  { %8432 = vmatpush1.bf16.msra.mxu0 %v12433_v21  ;;  %v11500_v54 = vcombine.high %v657_v42, %v661_v48  ;;  %v729_v21 = vld [vmem:[#allocation2 + $0x558] sm:$0xff]  ;;  %v11499_v44 = vcombine.low %v657_v42, %v661_v48 }
 0x3b0   :  { %8473 = vmatpush1.bf16.msra.mxu1 %v11411_v30  ;;  %8433 = vmatprep.subr.bf16.mxu0 %v12426_v36  ;;  %v733_v30 = vld [vmem:[#allocation2 + $0x578] sm:$0xff] }
 0x3b1   :  { %8474 = vmatprep.subr.bf16.mxu1 %v11404_v34  ;;  %v649_v36 = vld [vmem:[#allocation2 + $0x2d8] sm:$0xff]  ;;  %v11572_v3 = vcombine.high %v729_v21, %v733_v30  ;;  %v11571_v47 = vcombine.low %v729_v21, %v733_v30 }
 0x3b2   :  { %v653_v34 = vld [vmem:[#allocation2 + $0x2f8] sm:$0xff] }
 0x3b3   :  { %8434 = vmatpush1.bf16.msra.mxu0 %v12425_v55  ;;  %v11492_v37 = vcombine.high %v649_v36, %v653_v34  ;;  %v721_v55 = vld [vmem:[#allocation2 + $0x518] sm:$0xff]  ;;  %v11491_v20 = vcombine.low %v649_v36, %v653_v34 }
 0x3b4   :  { %8475 = vmatpush1.bf16.msra.mxu1 %v11403_v22  ;;  %8447 = vmatprep.subr.bf16.mxu0 %v12498_v25  ;;  %v725_v22 = vld [vmem:[#allocation2 + $0x538] sm:$0xff] }
 0x3b5   :  { %8476 = vmatprep.subr.bf16.mxu1 %v11524_v29  ;;  %v641_v25 = vld [vmem:[#allocation2 + $0x298] sm:$0xff]  ;;  %v11564_v7 = vcombine.high %v721_v55, %v725_v22 }
 0x3b6   :  { %v645_v29 = vld [vmem:[#allocation2 + $0x2b8] sm:$0xff] }
 0x3b7   :  { %8448 = vmatpush2.bf16.msra.mxu0 %v12497_v5  ;;  %v11484_v4 = vcombine.high %v641_v25, %v645_v29  ;;  %v713_v5 = vld [vmem:[#allocation2 + $0x4d8] sm:$0xff]  ;;  %v11483_v8 = vcombine.low %v641_v25, %v645_v29 }
 0x3b8   :  { %8477 = vmatpush2.bf16.msra.mxu1 %v11523_v51  ;;  %8449 = vmatprep.subr.bf16.mxu0 %v12490_v17  ;;  %v633_v51 = vld [vmem:[#allocation2 + $0x258] sm:$0xff] }
 0x3b9   :  { %8478 = vmatprep.subr.bf16.mxu1 %v11516_v31  ;;  %v637_v17 = vld [vmem:[#allocation2 + $0x278] sm:$0xff]  ;;  %v11563_v31 = vcombine.low %v721_v55, %v725_v22 }
 0x3ba   :  { %v11476_v32 = vcombine.high %v633_v51, %v637_v17  ;;  %v705_v53 = vld [vmem:[#allocation2 + $0x498] sm:$0xff]  ;;  %v11475_v41 = vcombine.low %v633_v51, %v637_v17 }
 0x3bb   :  { %8450 = vmatpush2.bf16.msra.mxu0 %v12489_v33  ;;  %v709_v33 = vld [vmem:[#allocation2 + $0x4b8] sm:$0xff] }
 0x3bc   :  { %8479 = vmatpush2.bf16.msra.mxu1 %v11515_v40  ;;  %8501 = vmatprep.subr.bf16.mxu0 %v11588_v24  ;;  %v625_v40 = vld [vmem:[#allocation2 + $0x218] sm:$0xff]  ;;  %v11548_v57 = vcombine.high %v705_v53, %v709_v33 }
 0x3bd   :  { %8480 = vmatprep.subr.bf16.mxu1 %v11508_v43  ;;  %v629_v24 = vld [vmem:[#allocation2 + $0x238] sm:$0xff] }
 0x3be   :  { %8452 = vmatmul.mubr.bf16.vlgmr.msra.gmra.mxu0 %v14159_v35  ;;  %v11468_v42 = vcombine.high %v625_v40, %v629_v24  ;;  %v697_v48 = vld [vmem:[#allocation2 + $0x458] sm:$0xff]  ;;  %v11467_v21 = vcombine.low %v625_v40, %v629_v24 }
 0x3bf   :  { %8502 = vmatpush1.bf16.msra.mxu0 %v11587_v49  ;;  %8533 = vmatprep.mubr.bf16.mxu0 %v13778_v63  ;;  %v717_v63 = vld [vmem:[#allocation2 + $0x4f8] sm:$0xff] }
 0x3c0   :  { %8481 = vmatpush2.bf16.msra.mxu1 %v11507_v11  ;;  %8503 = vmatprep.subr.bf16.mxu0 %v11580_v12  ;;  %v11556_v62 = vcombine.high %v713_v5, %v717_v63  ;;  %v11555_v43 = vcombine.low %v713_v5, %v717_v63  ;;  %v701_v49 = vld [vmem:[#allocation2 + $0x478] sm:$0xff] }
 0x3c1   :  { %8482 = vmatprep.subr.bf16.mxu1 %v11500_v54  ;;  %v873_v11 = vld [vmem:[#allocation2 + $0x9d8] sm:$0xff]  ;;  %v11547_v54 = vcombine.low %v705_v53, %v709_v33  ;;  %v11540_v30 = vcombine.high %v697_v48, %v701_v49 }
 0x3c2   :  { %v877_v12 = vld [vmem:[#allocation2 + $0x9f8] sm:$0xff] }
 0x3c3   :  { %8504 = vmatpush1.bf16.msra.mxu0 %v11579_v18  ;;  %v11716_v36 = vcombine.high %v873_v11, %v877_v12  ;;  %v689_v34 = vld [vmem:[#allocation2 + $0x418] sm:$0xff]  ;;  %v11715_v55 = vcombine.low %v873_v11, %v877_v12 }
 0x3c4   :  { %8483 = vmatpush2.bf16.msra.mxu1 %v11499_v44  ;;  %8505 = vmatprep.subr.bf16.mxu0 %v11572_v3  ;;  %v693_v18 = vld [vmem:[#allocation2 + $0x438] sm:$0xff] }
 0x3c5   :  { %8484 = vmatprep.subr.bf16.mxu1 %v11492_v37  ;;  %v865_v44 = vld [vmem:[#allocation2 + $0x998] sm:$0xff]  ;;  %v11539_v37 = vcombine.low %v697_v48, %v701_v49  ;;  %v11532_v22 = vcombine.high %v689_v34, %v693_v18  ;;  %v11531_v51 = vcombine.low %v689_v34, %v693_v18 }
 0x3c6   :  { %v869_v3 = vld [vmem:[#allocation2 + $0x9b8] sm:$0xff] }
 0x3c7   :  { %8506 = vmatpush1.bf16.msra.mxu0 %v11571_v47  ;;  %v11708_v25 = vcombine.high %v865_v44, %v869_v3  ;;  %v809_v29 = vld [vmem:[#allocation2 + $0x7d8] sm:$0xff] }
 0x3c8   :  { %8485 = vmatpush2.bf16.msra.mxu1 %v11491_v20  ;;  %8507 = vmatprep.subr.bf16.mxu0 %v11564_v7  ;;  %v813_v47 = vld [vmem:[#allocation2 + $0x7f8] sm:$0xff] }
 0x3c9   :  { %8486 = vmatprep.subr.bf16.mxu1 %v11484_v4  ;;  %v857_v7 = vld [vmem:[#allocation2 + $0x958] sm:$0xff] }
 0x3ca   :  { %v861_v4 = vld [vmem:[#allocation2 + $0x978] sm:$0xff] }
 0x3cb   :  { %8508 = vmatpush1.bf16.msra.mxu0 %v11563_v31  ;;  %v11707_v31 = vcombine.low %v865_v44, %v869_v3  ;;  %v11700_v33 = vcombine.high %v857_v7, %v861_v4  ;;  %v801_v40 = vld [vmem:[#allocation2 + $0x798] sm:$0xff]  ;;  %v11699_v49 = vcombine.low %v857_v7, %v861_v4 }
 0x3cc   :  { %8487 = vmatpush2.bf16.msra.mxu1 %v11483_v8  ;;  %8509 = vmatprep.subr.bf16.mxu0 %v11556_v62  ;;  %v11652_v8 = vcombine.high %v809_v29, %v813_v47  ;;  %v805_v24 = vld [vmem:[#allocation2 + $0x7b8] sm:$0xff] }
 0x3cd   :  { %8488 = vmatprep.subr.bf16.mxu1 %v11476_v32  ;;  %v785_v3 = vld [vmem:[#allocation2 + $0x718] sm:$0xff] }
 0x3ce   :  { %v777_v7 = vld [vmem:[#allocation2 + $0x6d8] sm:$0xff] }
 0x3cf   :  { %8510 = vmatpush1.bf16.msra.mxu0 %v11555_v43  ;;  %v853_v43 = vld [vmem:[#allocation2 + $0x938] sm:$0xff] }
 0x3d0   :  { %8489 = vmatpush2.bf16.msra.mxu1 %v11475_v41  ;;  %8511 = vmatprep.subr.bf16.mxu0 %v11548_v57  ;;  %v781_v4 = vld [vmem:[#allocation2 + $0x6f8] sm:$0xff] }
 0x3d1   :  { %8490 = vmatprep.subr.bf16.mxu1 %v11468_v42  ;;  %v11651_v42 = vcombine.low %v809_v29, %v813_v47 }
 0x3d3   :  { %8512 = vmatpush1.bf16.msra.mxu0 %v11547_v54  ;;  %v793_v54 = vld [vmem:[#allocation2 + $0x758] sm:$0xff] }
 0x3d4   :  { %8491 = vmatpush2.bf16.msra.mxu1 %v11467_v21  ;;  %8513 = vmatprep.subr.bf16.mxu0 %v11540_v30  ;;  %v797_v21 = vld [vmem:[#allocation2 + $0x778] sm:$0xff] }
 0x3d5   :  { %8542 = vmatprep.subr.bf16.mxu1 %v11716_v36  ;;  %v841_v30 = vld [vmem:[#allocation2 + $0x8d8] sm:$0xff]  ;;  %v11643_v36 = vcombine.low %v801_v40, %v805_v24  ;;  %v11636_v18 = vcombine.high %v793_v54, %v797_v21 }
 0x3d6   :  { %v8207_v20 = vpop.f32.mrf.mxu0 }
 0x3d7   :  { %v8208_v5 = vadd.f32 %v8207_v20, %v14274_v14  ;;  %v8248_v63 = vpop.f32.mrf.mxu1  ;;  %8493 = vmatmul.mubr.bf16.vlgmr.msra.gmra.mxu1 %v13808_v23  ;;  %8514 = vmatpush1.bf16.msra.mxu0 %v11539_v37  ;;  %v849_v23 = vld [vmem:[#allocation2 + $0x918] sm:$0xff] }
 0x3d8   :  { %8543 = vmatpush1.bf16.msra.mxu1 %v11715_v55  ;;  %v8209_v17 = vpop.f32.mrf.mxu0  ;;  %8515 = vmatprep.subr.bf16.mxu0 %v11532_v22  ;;  %v11692_v12 = vcombine.high %v849_v23, %v853_v43  ;;  %v11691_v34 = vcombine.low %v849_v23, %v853_v43  ;;  %v789_v37 = vld [vmem:[#allocation2 + $0x738] sm:$0xff] }
 0x3d9   :  { %v14285_v62 = vadd.f32 %v8248_v63, %v8208_v5  ;;  %v8210_v32 = vadd.f32 %v8209_v17, %v14279_v61  ;;  %v8250_v53 = vpop.f32.mrf.mxu1  ;;  %8544 = vmatprep.subr.bf16.mxu1 %v11708_v25  ;;  %8574 = vmatprep.mubr.bf16.mxu1 %v13851_v58  ;;  %v11644_v61 = vcombine.high %v801_v40, %v805_v24  ;;  %v845_v58 = vld [vmem:[#allocation2 + $0x8f8] sm:$0xff] }
 0x3da   :  { %v8211_v14 = vpop.f32.mrf.mxu0  ;;  %v11684_v44 = vcombine.high %v841_v30, %v845_v58  ;;  %v833_v55 = vld [vmem:[#allocation2 + $0x898] sm:$0xff]  ;;  %v11635_v25 = vcombine.low %v793_v54, %v797_v21  ;;  %v11683_v29 = vcombine.low %v841_v30, %v845_v58  ;;  %v11628_v47 = vcombine.high %v785_v3, %v789_v37 }
 0x3db   :  { %v14289_v41 = vadd.f32 %v8250_v53, %v8210_v32  ;;  %v8252_v57 = vpop.f32.mrf.mxu1  ;;  %8516 = vmatpush1.bf16.msra.mxu0 %v11531_v51  ;;  %v837_v22 = vld [vmem:[#allocation2 + $0x8b8] sm:$0xff]  ;;  %v11627_v51 = vcombine.low %v785_v3, %v789_v37  ;;  %v11619_v24 = vcombine.low %v777_v7, %v781_v4 }
 0x3dc   :  { %8545 = vmatpush1.bf16.msra.mxu1 %v11707_v31  ;;  %v8212_v48 = vpop.f32.mrf.mxu0  ;;  %8517 = vmatprep.subr.bf16.mxu0 %v11652_v8  ;;  %v11676_v20 = vcombine.high %v833_v55, %v837_v22  ;;  %v825_v5 = vld [vmem:[#allocation2 + $0x858] sm:$0xff]  ;;  %v11675_v17 = vcombine.low %v833_v55, %v837_v22  ;;  %v11620_v31 = vcombine.high %v777_v7, %v781_v4 }
 0x3dd   :  { %v8253_v11 = vpop.f32.mrf.mxu1  ;;  %8546 = vmatprep.subr.bf16.mxu1 %v11700_v33  ;;  %v829_v63 = vld [vmem:[#allocation2 + $0x878] sm:$0xff] }
 0x3de   :  { %v11668_v8 = vcombine.high %v825_v5, %v829_v63  ;;  %v769_v32 = vld [vmem:[#allocation2 + $0x698] sm:$0xff]  ;;  %v11667_v14 = vcombine.low %v825_v5, %v829_v63 }
 0x3df   :  { %8518 = vmatpush2.bf16.msra.mxu0 %v11651_v42  ;;  %v773_v53 = vld [vmem:[#allocation2 + $0x6b8] sm:$0xff] }
 0x3e0   :  { %8547 = vmatpush1.bf16.msra.mxu1 %v11699_v49  ;;  %8519 = vmatprep.subr.bf16.mxu0 %v11644_v61  ;;  %v817_v33 = vld [vmem:[#allocation2 + $0x818] sm:$0xff]  ;;  %v11612_v23 = vcombine.high %v769_v32, %v773_v53  ;;  %v11611_v61 = vcombine.low %v769_v32, %v773_v53 }
 0x3e1   :  { %8548 = vmatprep.subr.bf16.mxu1 %v11692_v12  ;;  %v821_v40 = vld [vmem:[#allocation2 + $0x838] sm:$0xff] }
 0x3e2   :  { %v11660_v43 = vcombine.high %v817_v33, %v821_v40  ;;  %v761_v57 = vld [vmem:[#allocation2 + $0x658] sm:$0xff]  ;;  %v11659_v11 = vcombine.low %v817_v33, %v821_v40 }
 0x3e3   :  { %8520 = vmatpush2.bf16.msra.mxu0 %v11643_v36  ;;  %v765_v42 = vld [vmem:[#allocation2 + $0x678] sm:$0xff] }
 0x3e4   :  { %8549 = vmatpush1.bf16.msra.mxu1 %v11691_v34  ;;  %8521 = vmatprep.subr.bf16.mxu0 %v11636_v18  ;;  %v937_v48 = vld [vmem:[#allocation2 + $0xbd8] sm:$0xff]  ;;  %v11604_v12 = vcombine.high %v761_v57, %v765_v42  ;;  %v11603_v34 = vcombine.low %v761_v57, %v765_v42 }
 0x3e5   :  { %8550 = vmatprep.subr.bf16.mxu1 %v11684_v44  ;;  %v941_v49 = vld [vmem:[#allocation2 + $0xbf8] sm:$0xff] }
 0x3e6   :  { %v11780_v54 = vcombine.high %v937_v48, %v941_v49  ;;  %v753_v21 = vld [vmem:[#allocation2 + $0x618] sm:$0xff]  ;;  %v11779_v18 = vcombine.low %v937_v48, %v941_v49 }
 0x3e7   :  { %8522 = vmatpush2.bf16.msra.mxu0 %v11635_v25  ;;  %v757_v30 = vld [vmem:[#allocation2 + $0x638] sm:$0xff] }
 0x3e8   :  { %8551 = vmatpush1.bf16.msra.mxu1 %v11683_v29  ;;  %8523 = vmatprep.subr.bf16.mxu0 %v11628_v47  ;;  %v929_v58 = vld [vmem:[#allocation2 + $0xb98] sm:$0xff]  ;;  %v11596_v44 = vcombine.high %v753_v21, %v757_v30  ;;  %v11595_v29 = vcombine.low %v753_v21, %v757_v30 }
 0x3e9   :  { %8552 = vmatprep.subr.bf16.mxu1 %v11676_v20  ;;  %v933_v36 = vld [vmem:[#allocation2 + $0xbb8] sm:$0xff] }
 0x3ea   :  { %v11772_v3 = vcombine.high %v929_v58, %v933_v36  ;;  %v1001_v37 = vld [vmem:[#allocation2 + $0xdd8] sm:$0xff]  ;;  %v11771_v47 = vcombine.low %v929_v58, %v933_v36 }
 0x3eb   :  { %8524 = vmatpush2.bf16.msra.mxu0 %v11627_v51  ;;  %v1005_v55 = vld [vmem:[#allocation2 + $0xdf8] sm:$0xff] }
 0x3ec   :  { %8553 = vmatpush1.bf16.msra.mxu1 %v11675_v17  ;;  %8525 = vmatprep.subr.bf16.mxu0 %v11620_v31  ;;  %v921_v22 = vld [vmem:[#allocation2 + $0xb58] sm:$0xff]  ;;  %v11844_v20 = vcombine.high %v1001_v37, %v1005_v55  ;;  %v11843_v17 = vcombine.low %v1001_v37, %v1005_v55 }
 0x3ed   :  { %8554 = vmatprep.subr.bf16.mxu1 %v11668_v8  ;;  %v925_v25 = vld [vmem:[#allocation2 + $0xb78] sm:$0xff] }
 0x3ee   :  { %v11764_v7 = vcombine.high %v921_v22, %v925_v25  ;;  %v993_v4 = vld [vmem:[#allocation2 + $0xd98] sm:$0xff]  ;;  %v11763_v31 = vcombine.low %v921_v22, %v925_v25 }
 0x3ef   :  { %8526 = vmatpush2.bf16.msra.mxu0 %v11619_v24  ;;  %v997_v5 = vld [vmem:[#allocation2 + $0xdb8] sm:$0xff] }
 0x3f0   :  { %8555 = vmatpush1.bf16.msra.mxu1 %v11667_v14  ;;  %8527 = vmatprep.subr.bf16.mxu0 %v11612_v23  ;;  %v913_v63 = vld [vmem:[#allocation2 + $0xb18] sm:$0xff]  ;;  %v11836_v8 = vcombine.high %v993_v4, %v997_v5  ;;  %v11835_v14 = vcombine.low %v993_v4, %v997_v5 }
 0x3f1   :  { %8556 = vmatprep.subr.bf16.mxu1 %v11660_v43  ;;  %v917_v51 = vld [vmem:[#allocation2 + $0xb38] sm:$0xff] }
 0x3f2   :  { %v11756_v32 = vcombine.high %v913_v63, %v917_v51  ;;  %v985_v53 = vld [vmem:[#allocation2 + $0xd58] sm:$0xff]  ;;  %v11755_v23 = vcombine.low %v913_v63, %v917_v51 }
 0x3f3   :  { %8528 = vmatpush2.bf16.msra.mxu0 %v11611_v61  ;;  %v989_v33 = vld [vmem:[#allocation2 + $0xd78] sm:$0xff] }
 0x3f4   :  { %8557 = vmatpush1.bf16.msra.mxu1 %v11659_v11  ;;  %8529 = vmatprep.subr.bf16.mxu0 %v11604_v12  ;;  %v905_v40 = vld [vmem:[#allocation2 + $0xad8] sm:$0xff]  ;;  %v11828_v43 = vcombine.high %v985_v53, %v989_v33  ;;  %v11827_v11 = vcombine.low %v985_v53, %v989_v33 }
 0x3f5   :  { %8558 = vmatprep.subr.bf16.mxu1 %v11780_v54  ;;  %v909_v24 = vld [vmem:[#allocation2 + $0xaf8] sm:$0xff] }
 0x3f6   :  { %v11748_v57 = vcombine.high %v905_v40, %v909_v24  ;;  %v977_v42 = vld [vmem:[#allocation2 + $0xd18] sm:$0xff] }
 0x3f7   :  { %8530 = vmatpush2.bf16.msra.mxu0 %v11603_v34  ;;  %v981_v48 = vld [vmem:[#allocation2 + $0xd38] sm:$0xff] }
 0x3f8   :  { %8559 = vmatpush2.bf16.msra.mxu1 %v11779_v18  ;;  %8531 = vmatprep.subr.bf16.mxu0 %v11596_v44  ;;  %v897_v49 = vld [vmem:[#allocation2 + $0xa98] sm:$0xff]  ;;  %v11820_v12 = vcombine.high %v977_v42, %v981_v48  ;;  %v11819_v36 = vcombine.low %v977_v42, %v981_v48 }
 0x3f9   :  { %8560 = vmatprep.subr.bf16.mxu1 %v11772_v3  ;;  %v901_v61 = vld [vmem:[#allocation2 + $0xab8] sm:$0xff] }
 0x3fa   :  { %v11740_v54 = vcombine.high %v897_v49, %v901_v61  ;;  %v969_v21 = vld [vmem:[#allocation2 + $0xcd8] sm:$0xff]  ;;  %v11739_v34 = vcombine.low %v897_v49, %v901_v61 }
 0x3fb   :  { %8532 = vmatpush2.bf16.msra.mxu0 %v11595_v29  ;;  %v889_v30 = vld [vmem:[#allocation2 + $0xa58] sm:$0xff] }
 0x3fc   :  { %8561 = vmatpush2.bf16.msra.mxu1 %v11771_v47  ;;  %8583 = vmatprep.subr.bf16.mxu0 %v11844_v20  ;;  %v893_v58 = vld [vmem:[#allocation2 + $0xa78] sm:$0xff] }
 0x3fd   :  { %8562 = vmatprep.subr.bf16.mxu1 %v11764_v7  ;;  %v11732_v44 = vcombine.high %v889_v30, %v893_v58  ;;  %v961_v3 = vld [vmem:[#allocation2 + $0xc98] sm:$0xff]  ;;  %v11731_v29 = vcombine.low %v889_v30, %v893_v58 }
 0x3fe   :  { %8534 = vmatmul.mubr.bf16.vlgmr.msra.gmra.mxu0 %v13810_v27  ;;  %v11747_v27 = vcombine.low %v905_v40, %v909_v24  ;;  %v965_v37 = vld [vmem:[#allocation2 + $0xcb8] sm:$0xff] }
 0x3ff   :  { %8584 = vmatpush1.bf16.msra.mxu0 %v11843_v17  ;;  %8615 = vmatprep.mubr.bf16.mxu0 %v13859_v15  ;;  %v973_v15 = vld [vmem:[#allocation2 + $0xcf8] sm:$0xff]  ;;  %v11804_v47 = vcombine.high %v961_v3, %v965_v37  ;;  %v11803_v51 = vcombine.low %v961_v3, %v965_v37 }
 0x400   :  { %8563 = vmatpush2.bf16.msra.mxu1 %v11763_v31  ;;  %8585 = vmatprep.subr.bf16.mxu0 %v11836_v8  ;;  %v11812_v18 = vcombine.high %v969_v21, %v973_v15  ;;  %v881_v55 = vld [vmem:[#allocation2 + $0xa18] sm:$0xff]  ;;  %v11811_v25 = vcombine.low %v969_v21, %v973_v15 }
 0x401   :  { %8564 = vmatprep.subr.bf16.mxu1 %v11756_v32  ;;  %v885_v22 = vld [vmem:[#allocation2 + $0xa38] sm:$0xff] }
 0x402   :  { %v11724_v20 = vcombine.high %v881_v55, %v885_v22  ;;  %v953_v7 = vld [vmem:[#allocation2 + $0xc58] sm:$0xff]  ;;  %v11723_v17 = vcombine.low %v881_v55, %v885_v22 }
 0x403   :  { %8586 = vmatpush1.bf16.msra.mxu0 %v11835_v14  ;;  %v957_v4 = vld [vmem:[#allocation2 + $0xc78] sm:$0xff] }
 0x404   :  { %8565 = vmatpush2.bf16.msra.mxu1 %v11755_v23  ;;  %8587 = vmatprep.subr.bf16.mxu0 %v11828_v43  ;;  %v1129_v5 = vld [vmem:[#allocation2 + $0x11d8] sm:$0xff]  ;;  %v11796_v31 = vcombine.high %v953_v7, %v957_v4  ;;  %v11795_v24 = vcombine.low %v953_v7, %v957_v4 }
 0x405   :  { %8566 = vmatprep.subr.bf16.mxu1 %v11748_v57  ;;  %v1133_v63 = vld [vmem:[#allocation2 + $0x11f8] sm:$0xff] }
 0x406   :  { %v11972_v8 = vcombine.high %v1129_v5, %v1133_v63  ;;  %v945_v32 = vld [vmem:[#allocation2 + $0xc18] sm:$0xff]  ;;  %v11971_v14 = vcombine.low %v1129_v5, %v1133_v63 }
 0x407   :  { %8588 = vmatpush1.bf16.msra.mxu0 %v11827_v11  ;;  %v949_v53 = vld [vmem:[#allocation2 + $0xc38] sm:$0xff] }
 0x408   :  { %8567 = vmatpush2.bf16.msra.mxu1 %v11747_v27  ;;  %8589 = vmatprep.subr.bf16.mxu0 %v11820_v12  ;;  %v1121_v33 = vld [vmem:[#allocation2 + $0x1198] sm:$0xff]  ;;  %v11788_v23 = vcombine.high %v945_v32, %v949_v53  ;;  %v11787_v12 = vcombine.low %v945_v32, %v949_v53 }
 0x409   :  { %8568 = vmatprep.subr.bf16.mxu1 %v11740_v54  ;;  %v1125_v40 = vld [vmem:[#allocation2 + $0x11b8] sm:$0xff] }
 0x40a   :  { %v11964_v43 = vcombine.high %v1121_v33, %v1125_v40  ;;  %v1065_v57 = vld [vmem:[#allocation2 + $0xfd8] sm:$0xff]  ;;  %v11963_v21 = vcombine.low %v1121_v33, %v1125_v40 }
 0x40b   :  { %8590 = vmatpush1.bf16.msra.mxu0 %v11819_v36  ;;  %v1069_v42 = vld [vmem:[#allocation2 + $0xff8] sm:$0xff] }
 0x40c   :  { %8569 = vmatpush2.bf16.msra.mxu1 %v11739_v34  ;;  %8591 = vmatprep.subr.bf16.mxu0 %v11812_v18  ;;  %v1113_v49 = vld [vmem:[#allocation2 + $0x1158] sm:$0xff]  ;;  %v11908_v15 = vcombine.high %v1065_v57, %v1069_v42  ;;  %v11907_v22 = vcombine.low %v1065_v57, %v1069_v42 }
 0x40d   :  { %8570 = vmatprep.subr.bf16.mxu1 %v11732_v44  ;;  %v1117_v61 = vld [vmem:[#allocation2 + $0x1178] sm:$0xff] }
 0x40e   :  { %v11956_v34 = vcombine.high %v1113_v49, %v1117_v61  ;;  %v1057_v18 = vld [vmem:[#allocation2 + $0xf98] sm:$0xff] }
 0x40f   :  { %8592 = vmatpush1.bf16.msra.mxu0 %v11811_v25  ;;  %v1061_v44 = vld [vmem:[#allocation2 + $0xfb8] sm:$0xff] }
 0x410   :  { %8571 = vmatpush2.bf16.msra.mxu1 %v11731_v29  ;;  %8593 = vmatprep.subr.bf16.mxu0 %v11804_v47  ;;  %v1109_v3 = vld [vmem:[#allocation2 + $0x1138] sm:$0xff]  ;;  %v11955_v29 = vcombine.low %v1113_v49, %v1117_v61  ;;  %v11899_v63 = vcombine.low %v1057_v18, %v1061_v44 }
 0x411   :  { %8572 = vmatprep.subr.bf16.mxu1 %v11724_v20  ;;  %v1049_v7 = vld [vmem:[#allocation2 + $0xf58] sm:$0xff] }
 0x412   :  { %v1053_v4 = vld [vmem:[#allocation2 + $0xf78] sm:$0xff] }
 0x413   :  { %8594 = vmatpush1.bf16.msra.mxu0 %v11803_v51  ;;  %v1097_v5 = vld [vmem:[#allocation2 + $0x10d8] sm:$0xff]  ;;  %v11891_v40 = vcombine.low %v1049_v7, %v1053_v4 }
 0x414   :  { %8573 = vmatpush2.bf16.msra.mxu1 %v11723_v17  ;;  %8595 = vmatprep.subr.bf16.mxu0 %v11796_v31  ;;  %v11892_v17 = vcombine.high %v1049_v7, %v1053_v4  ;;  %v1045_v32 = vld [vmem:[#allocation2 + $0xf38] sm:$0xff] }
 0x415   :  { %8624 = vmatprep.subr.bf16.mxu1 %v11972_v8  ;;  %v1041_v8 = vld [vmem:[#allocation2 + $0xf18] sm:$0xff] }
 0x416   :  { %v8289_v48 = vpop.f32.mrf.mxu0  ;;  %v1089_v53 = vld [vmem:[#allocation2 + $0x1098] sm:$0xff]  ;;  %v11883_v49 = vcombine.low %v1041_v8, %v1045_v32 }
 0x417   :  { %v8290_v11 = vadd.f32 %v8289_v48, %v14285_v62  ;;  %v8330_v27 = vpop.f32.mrf.mxu1  ;;  %8575 = vmatmul.mubr.bf16.vlgmr.msra.gmra.mxu1 %v13944_v13  ;;  %8596 = vmatpush1.bf16.msra.mxu0 %v11795_v24  ;;  %v1105_v13 = vld [vmem:[#allocation2 + $0x1118] sm:$0xff] }
 0x418   :  { %8625 = vmatpush1.bf16.msra.mxu1 %v11971_v14  ;;  %v8291_v54 = vpop.f32.mrf.mxu0  ;;  %8597 = vmatprep.subr.bf16.mxu0 %v11788_v23  ;;  %v11948_v20 = vcombine.high %v1105_v13, %v1109_v3  ;;  %v11947_v51 = vcombine.low %v1105_v13, %v1109_v3  ;;  %v1093_v33 = vld [vmem:[#allocation2 + $0x10b8] sm:$0xff]  ;;  %v11884_v14 = vcombine.high %v1041_v8, %v1045_v32 }
 0x419   :  { %v14295_v30 = vadd.f32 %v8330_v27, %v8290_v11  ;;  %v8292_v58 = vadd.f32 %v8291_v54, %v14289_v41  ;;  %v8332_v36 = vpop.f32.mrf.mxu1  ;;  %8626 = vmatprep.subr.bf16.mxu1 %v11964_v43  ;;  %8656 = vmatprep.mubr.bf16.mxu1 %v13950_v46  ;;  %v11900_v41 = vcombine.high %v1057_v18, %v1061_v44  ;;  %v1101_v46 = vld [vmem:[#allocation2 + $0x10f8] sm:$0xff] }
 0x41a   :  { %v8293_v62 = vpop.f32.mrf.mxu0  ;;  %v11940_v31 = vcombine.high %v1097_v5, %v1101_v46  ;;  %v11939_v24 = vcombine.low %v1097_v5, %v1101_v46  ;;  %v11932_v23 = vcombine.high %v1089_v53, %v1093_v33  ;;  %v1033_v43 = vld [vmem:[#allocation2 + $0xed8] sm:$0xff]  ;;  %v11931_v61 = vcombine.low %v1089_v53, %v1093_v33 }
 0x41b   :  { %v14299_v37 = vadd.f32 %v8332_v36, %v8292_v58  ;;  %v8334_v55 = vpop.f32.mrf.mxu1  ;;  %8598 = vmatpush1.bf16.msra.mxu0 %v11787_v12  ;;  %v1037_v57 = vld [vmem:[#allocation2 + $0xef8] sm:$0xff] }
 0x41c   :  { %8627 = vmatpush1.bf16.msra.mxu1 %v11963_v21  ;;  %v8294_v25 = vpop.f32.mrf.mxu0  ;;  %8599 = vmatprep.subr.bf16.mxu0 %v11908_v15  ;;  %v1081_v42 = vld [vmem:[#allocation2 + $0x1058] sm:$0xff]  ;;  %v11876_v11 = vcombine.high %v1033_v43, %v1037_v57  ;;  %v11875_v58 = vcombine.low %v1033_v43, %v1037_v57 }
 0x41d   :  { %v8335_v47 = vpop.f32.mrf.mxu1  ;;  %8628 = vmatprep.subr.bf16.mxu1 %v11956_v34  ;;  %v1085_v48 = vld [vmem:[#allocation2 + $0x1078] sm:$0xff] }
 0x41e   :  { %v11924_v27 = vcombine.high %v1081_v42, %v1085_v48  ;;  %v1025_v12 = vld [vmem:[#allocation2 + $0xe98] sm:$0xff]  ;;  %v11923_v36 = vcombine.low %v1081_v42, %v1085_v48 }
 0x41f   :  { %8600 = vmatpush2.bf16.msra.mxu0 %v11907_v22  ;;  %v1029_v54 = vld [vmem:[#allocation2 + $0xeb8] sm:$0xff] }
 0x420   :  { %8629 = vmatpush1.bf16.msra.mxu1 %v11955_v29  ;;  %8601 = vmatprep.subr.bf16.mxu0 %v11900_v41  ;;  %v1073_v21 = vld [vmem:[#allocation2 + $0x1018] sm:$0xff]  ;;  %v11868_v34 = vcombine.high %v1025_v12, %v1029_v54  ;;  %v11867_v55 = vcombine.low %v1025_v12, %v1029_v54 }
 0x421   :  { %8630 = vmatprep.subr.bf16.mxu1 %v11948_v20  ;;  %v1077_v15 = vld [vmem:[#allocation2 + $0x1038] sm:$0xff] }
 0x422   :  { %v11916_v18 = vcombine.high %v1073_v21, %v1077_v15  ;;  %v1017_v44 = vld [vmem:[#allocation2 + $0xe58] sm:$0xff]  ;;  %v11915_v22 = vcombine.low %v1073_v21, %v1077_v15 }
 0x423   :  { %8602 = vmatpush2.bf16.msra.mxu0 %v11899_v63  ;;  %v1021_v62 = vld [vmem:[#allocation2 + $0xe78] sm:$0xff] }
 0x424   :  { %8631 = vmatpush1.bf16.msra.mxu1 %v11947_v51  ;;  %8603 = vmatprep.subr.bf16.mxu0 %v11892_v17  ;;  %v1193_v13 = vld [vmem:[#allocation2 + $0x13d8] sm:$0xff]  ;;  %v11860_v25 = vcombine.high %v1017_v44, %v1021_v62  ;;  %v11859_v4 = vcombine.low %v1017_v44, %v1021_v62 }
 0x425   :  { %8632 = vmatprep.subr.bf16.mxu1 %v11940_v31  ;;  %v1197_v3 = vld [vmem:[#allocation2 + $0x13f8] sm:$0xff] }
 0x426   :  { %v12036_v29 = vcombine.high %v1193_v13, %v1197_v3  ;;  %v1009_v41 = vld [vmem:[#allocation2 + $0xe18] sm:$0xff]  ;;  %v12035_v5 = vcombine.low %v1193_v13, %v1197_v3 }
 0x427   :  { %8604 = vmatpush2.bf16.msra.mxu0 %v11891_v40  ;;  %v1013_v47 = vld [vmem:[#allocation2 + $0xe38] sm:$0xff] }
 0x428   :  { %8633 = vmatpush1.bf16.msra.mxu1 %v11939_v24  ;;  %8605 = vmatprep.subr.bf16.mxu0 %v11884_v14  ;;  %v1185_v20 = vld [vmem:[#allocation2 + $0x1398] sm:$0xff]  ;;  %v11852_v46 = vcombine.high %v1009_v41, %v1013_v47  ;;  %v11851_v32 = vcombine.low %v1009_v41, %v1013_v47 }
 0x429   :  { %8634 = vmatprep.subr.bf16.mxu1 %v11932_v23  ;;  %v1189_v7 = vld [vmem:[#allocation2 + $0x13b8] sm:$0xff] }
 0x42a   :  { %v12028_v63 = vcombine.high %v1185_v20, %v1189_v7  ;;  %v1257_v51 = vld [vmem:[#allocation2 + $0x15d8] sm:$0xff]  ;;  %v12027_v53 = vcombine.low %v1185_v20, %v1189_v7 }
 0x42b   :  { %8606 = vmatpush2.bf16.msra.mxu0 %v11883_v49  ;;  %v1261_v17 = vld [vmem:[#allocation2 + $0x15f8] sm:$0xff] }
 0x42c   :  { %8635 = vmatpush1.bf16.msra.mxu1 %v11931_v61  ;;  %8607 = vmatprep.subr.bf16.mxu0 %v11876_v11  ;;  %v1177_v31 = vld [vmem:[#allocation2 + $0x1358] sm:$0xff]  ;;  %v12100_v33 = vcombine.high %v1257_v51, %v1261_v17  ;;  %v12099_v57 = vcombine.low %v1257_v51, %v1261_v17 }
 0x42d   :  { %8636 = vmatprep.subr.bf16.mxu1 %v11924_v27  ;;  %v1181_v8 = vld [vmem:[#allocation2 + $0x1378] sm:$0xff] }
 0x42e   :  { %v12020_v40 = vcombine.high %v1177_v31, %v1181_v8  ;;  %v1249_v24 = vld [vmem:[#allocation2 + $0x1598] sm:$0xff]  ;;  %v12019_v42 = vcombine.low %v1177_v31, %v1181_v8 }
 0x42f   :  { %8608 = vmatpush2.bf16.msra.mxu0 %v11875_v58  ;;  %v1253_v14 = vld [vmem:[#allocation2 + $0x15b8] sm:$0xff] }
 0x430   :  { %8637 = vmatpush1.bf16.msra.mxu1 %v11923_v36  ;;  %8609 = vmatprep.subr.bf16.mxu0 %v11868_v34  ;;  %v1169_v23 = vld [vmem:[#allocation2 + $0x1318] sm:$0xff]  ;;  %v12092_v48 = vcombine.high %v1249_v24, %v1253_v14  ;;  %v12091_v54 = vcombine.low %v1249_v24, %v1253_v14 }
 0x431   :  { %8638 = vmatprep.subr.bf16.mxu1 %v11916_v18  ;;  %v1173_v43 = vld [vmem:[#allocation2 + $0x1338] sm:$0xff] }
 0x432   :  { %v12012_v49 = vcombine.high %v1169_v23, %v1173_v43  ;;  %v1241_v61 = vld [vmem:[#allocation2 + $0x1558] sm:$0xff]  ;;  %v12011_v21 = vcombine.low %v1169_v23, %v1173_v43 }
 0x433   :  { %8610 = vmatpush2.bf16.msra.mxu0 %v11867_v55  ;;  %v1245_v11 = vld [vmem:[#allocation2 + $0x1578] sm:$0xff] }
 0x434   :  { %8639 = vmatpush1.bf16.msra.mxu1 %v11915_v22  ;;  %8611 = vmatprep.subr.bf16.mxu0 %v11860_v25  ;;  %v1161_v27 = vld [vmem:[#allocation2 + $0x12d8] sm:$0xff]  ;;  %v12084_v15 = vcombine.high %v1241_v61, %v1245_v11  ;;  %v12083_v62 = vcombine.low %v1241_v61, %v1245_v11 }
 0x435   :  { %8640 = vmatprep.subr.bf16.mxu1 %v12036_v29  ;;  %v1165_v12 = vld [vmem:[#allocation2 + $0x12f8] sm:$0xff] }
 0x436   :  { %v12004_v58 = vcombine.high %v1161_v27, %v1165_v12  ;;  %v1233_v36 = vld [vmem:[#allocation2 + $0x1518] sm:$0xff] }
 0x437   :  { %8612 = vmatpush2.bf16.msra.mxu0 %v11859_v4  ;;  %v1237_v34 = vld [vmem:[#allocation2 + $0x1538] sm:$0xff] }
 0x438   :  { %8641 = vmatpush2.bf16.msra.mxu1 %v12035_v5  ;;  %8613 = vmatprep.subr.bf16.mxu0 %v11852_v46  ;;  %v1153_v18 = vld [vmem:[#allocation2 + $0x1298] sm:$0xff]  ;;  %v12076_v13 = vcombine.high %v1233_v36, %v1237_v34  ;;  %v12075_v29 = vcombine.low %v1233_v36, %v1237_v34 }
 0x439   :  { %8642 = vmatprep.subr.bf16.mxu1 %v12028_v63  ;;  %v1157_v44 = vld [vmem:[#allocation2 + $0x12b8] sm:$0xff] }
 0x43a   :  { %v11996_v3 = vcombine.high %v1153_v18, %v1157_v44  ;;  %v1225_v55 = vld [vmem:[#allocation2 + $0x14d8] sm:$0xff]  ;;  %v11995_v41 = vcombine.low %v1153_v18, %v1157_v44 }
 0x43b   :  { %8614 = vmatpush2.bf16.msra.mxu0 %v11851_v32  ;;  %v1145_v22 = vld [vmem:[#allocation2 + $0x1258] sm:$0xff] }
 0x43c   :  { %8643 = vmatpush2.bf16.msra.mxu1 %v12027_v53  ;;  %8665 = vmatprep.subr.bf16.mxu0 %v12100_v33  ;;  %v1149_v25 = vld [vmem:[#allocation2 + $0x1278] sm:$0xff] }
 0x43d   :  { %8644 = vmatprep.subr.bf16.mxu1 %v12020_v40  ;;  %v11988_v20 = vcombine.high %v1145_v22, %v1149_v25  ;;  %v1217_v7 = vld [vmem:[#allocation2 + $0x1498] sm:$0xff]  ;;  %v11987_v51 = vcombine.low %v1145_v22, %v1149_v25 }
 0x43e   :  { %8616 = vmatmul.mubr.bf16.vlgmr.msra.gmra.mxu0 %v13947_v16  ;;  %v12003_v16 = vcombine.low %v1161_v27, %v1165_v12  ;;  %v1221_v4 = vld [vmem:[#allocation2 + $0x14b8] sm:$0xff] }
 0x43f   :  { %8666 = vmatpush1.bf16.msra.mxu0 %v12099_v57  ;;  %8697 = vmatprep.mubr.bf16.mxu0 %v13953_v2  ;;  %v1229_v2 = vld [vmem:[#allocation2 + $0x14f8] sm:$0xff]  ;;  %v12060_v17 = vcombine.high %v1217_v7, %v1221_v4  ;;  %v12059_v40 = vcombine.low %v1217_v7, %v1221_v4 }
 0x440   :  { %8645 = vmatpush2.bf16.msra.mxu1 %v12019_v42  ;;  %8667 = vmatprep.subr.bf16.mxu0 %v12092_v48  ;;  %v12068_v47 = vcombine.high %v1225_v55, %v1229_v2  ;;  %v1137_v5 = vld [vmem:[#allocation2 + $0x1218] sm:$0xff]  ;;  %v12067_v63 = vcombine.low %v1225_v55, %v1229_v2 }
 0x441   :  { %8646 = vmatprep.subr.bf16.mxu1 %v12012_v49  ;;  %v1141_v46 = vld [vmem:[#allocation2 + $0x1238] sm:$0xff] }
 0x442   :  { %v11980_v31 = vcombine.high %v1137_v5, %v1141_v46  ;;  %v1209_v8 = vld [vmem:[#allocation2 + $0x1458] sm:$0xff]  ;;  %v11979_v24 = vcombine.low %v1137_v5, %v1141_v46 }
 0x443   :  { %8668 = vmatpush1.bf16.msra.mxu0 %v12091_v54  ;;  %v1213_v32 = vld [vmem:[#allocation2 + $0x1478] sm:$0xff] }
 0x444   :  { %8647 = vmatpush2.bf16.msra.mxu1 %v12011_v21  ;;  %8669 = vmatprep.subr.bf16.mxu0 %v12084_v15  ;;  %v1385_v53 = vld [vmem:[#allocation2 + $0x19d8] sm:$0xff]  ;;  %v12052_v14 = vcombine.high %v1209_v8, %v1213_v32  ;;  %v12051_v49 = vcombine.low %v1209_v8, %v1213_v32 }
 0x445   :  { %8648 = vmatprep.subr.bf16.mxu1 %v12004_v58  ;;  %v1389_v33 = vld [vmem:[#allocation2 + $0x19f8] sm:$0xff] }
 0x446   :  { %v12228_v23 = vcombine.high %v1385_v53, %v1389_v33  ;;  %v1201_v43 = vld [vmem:[#allocation2 + $0x1418] sm:$0xff]  ;;  %v12227_v61 = vcombine.low %v1385_v53, %v1389_v33 }
 0x447   :  { %8670 = vmatpush1.bf16.msra.mxu0 %v12083_v62  ;;  %v1205_v57 = vld [vmem:[#allocation2 + $0x1438] sm:$0xff] }
 0x448   :  { %8649 = vmatpush2.bf16.msra.mxu1 %v12003_v16  ;;  %8671 = vmatprep.subr.bf16.mxu0 %v12076_v13  ;;  %v1377_v42 = vld [vmem:[#allocation2 + $0x1998] sm:$0xff]  ;;  %v12044_v11 = vcombine.high %v1201_v43, %v1205_v57  ;;  %v12043_v18 = vcombine.low %v1201_v43, %v1205_v57 }
 0x449   :  { %8650 = vmatprep.subr.bf16.mxu1 %v11996_v3  ;;  %v1381_v48 = vld [vmem:[#allocation2 + $0x19b8] sm:$0xff] }
 0x44a   :  { %v12220_v27 = vcombine.high %v1377_v42, %v1381_v48  ;;  %v1321_v12 = vld [vmem:[#allocation2 + $0x17d8] sm:$0xff]  ;;  %v12219_v62 = vcombine.low %v1377_v42, %v1381_v48 }
 0x44b   :  { %8672 = vmatpush1.bf16.msra.mxu0 %v12075_v29  ;;  %v1325_v54 = vld [vmem:[#allocation2 + $0x17f8] sm:$0xff] }
 0x44c   :  { %8651 = vmatpush2.bf16.msra.mxu1 %v11995_v41  ;;  %8673 = vmatprep.subr.bf16.mxu0 %v12068_v47  ;;  %v1369_v15 = vld [vmem:[#allocation2 + $0x1958] sm:$0xff]  ;;  %v12164_v16 = vcombine.high %v1321_v12, %v1325_v54 }
 0x44d   :  { %8652 = vmatprep.subr.bf16.mxu1 %v11988_v20  ;;  %v1373_v58 = vld [vmem:[#allocation2 + $0x1978] sm:$0xff]  ;;  %v12163_v20 = vcombine.low %v1321_v12, %v1325_v54 }
 0x44e   :  { %v12212_v2 = vcombine.high %v1369_v15, %v1373_v58  ;;  %v1313_v22 = vld [vmem:[#allocation2 + $0x1798] sm:$0xff]  ;;  %v12211_v4 = vcombine.low %v1369_v15, %v1373_v58 }
 0x44f   :  { %8674 = vmatpush1.bf16.msra.mxu0 %v12067_v63  ;;  %v1317_v25 = vld [vmem:[#allocation2 + $0x17b8] sm:$0xff] }
 0x450   :  { %8653 = vmatpush2.bf16.msra.mxu1 %v11987_v51  ;;  %8675 = vmatprep.subr.bf16.mxu0 %v12060_v17  ;;  %v1365_v29 = vld [vmem:[#allocation2 + $0x1938] sm:$0xff] }
 0x451   :  { %8654 = vmatprep.subr.bf16.mxu1 %v11980_v31  ;;  %v1305_v63 = vld [vmem:[#allocation2 + $0x1758] sm:$0xff]  ;;  %v12155_v31 = vcombine.low %v1313_v22, %v1317_v25 }
 0x452   :  { %v1309_v51 = vld [vmem:[#allocation2 + $0x1778] sm:$0xff] }
 0x453   :  { %8676 = vmatpush1.bf16.msra.mxu0 %v12059_v40  ;;  %v1353_v17 = vld [vmem:[#allocation2 + $0x18d8] sm:$0xff]  ;;  %v12148_v32 = vcombine.high %v1305_v63, %v1309_v51 }
 0x454   :  { %8655 = vmatpush2.bf16.msra.mxu1 %v11979_v24  ;;  %8677 = vmatprep.subr.bf16.mxu0 %v12052_v14  ;;  %v1297_v33 = vld [vmem:[#allocation2 + $0x1718] sm:$0xff] }
 0x455   :  { %8706 = vmatprep.subr.bf16.mxu1 %v12228_v23  ;;  %v1301_v40 = vld [vmem:[#allocation2 + $0x1738] sm:$0xff]  ;;  %v12147_v23 = vcombine.low %v1305_v63, %v1309_v51 }
 0x456   :  { %v8371_v21 = vpop.f32.mrf.mxu0  ;;  %v1345_v24 = vld [vmem:[#allocation2 + $0x1898] sm:$0xff]  ;;  %v12140_v57 = vcombine.high %v1297_v33, %v1301_v40 }
 0x457   :  { %v8372_v36 = vadd.f32 %v8371_v21, %v14295_v30  ;;  %v8412_v34 = vpop.f32.mrf.mxu1  ;;  %8657 = vmatmul.mubr.bf16.vlgmr.msra.gmra.mxu1 %v14044_v28  ;;  %8678 = vmatpush1.bf16.msra.mxu0 %v12051_v49  ;;  %v1361_v28 = vld [vmem:[#allocation2 + $0x1918] sm:$0xff] }
 0x458   :  { %8707 = vmatpush1.bf16.msra.mxu1 %v12227_v61  ;;  %v8373_v44 = vpop.f32.mrf.mxu0  ;;  %8679 = vmatprep.subr.bf16.mxu0 %v12044_v11  ;;  %v12204_v46 = vcombine.high %v1361_v28, %v1365_v29  ;;  %v12203_v8 = vcombine.low %v1361_v28, %v1365_v29  ;;  %v1349_v14 = vld [vmem:[#allocation2 + $0x18b8] sm:$0xff] }
 0x459   :  { %v14305_v13 = vadd.f32 %v8412_v34, %v8372_v36  ;;  %v8374_v3 = vadd.f32 %v8373_v44, %v14299_v37  ;;  %v8414_v55 = vpop.f32.mrf.mxu1  ;;  %8708 = vmatprep.subr.bf16.mxu1 %v12220_v27  ;;  %8738 = vmatprep.mubr.bf16.mxu1 %v14050_v38  ;;  %v12156_v37 = vcombine.high %v1313_v22, %v1317_v25  ;;  %v1357_v38 = vld [vmem:[#allocation2 + $0x18f8] sm:$0xff] }
 0x45a   :  { %v8375_v30 = vpop.f32.mrf.mxu0  ;;  %v12196_v53 = vcombine.high %v1353_v17, %v1357_v38  ;;  %v12195_v43 = vcombine.low %v1353_v17, %v1357_v38  ;;  %v12188_v42 = vcombine.high %v1345_v24, %v1349_v14  ;;  %v1289_v48 = vld [vmem:[#allocation2 + $0x16d8] sm:$0xff]  ;;  %v12139_v27 = vcombine.low %v1297_v33, %v1301_v40 }
 0x45b   :  { %v14309_v41 = vadd.f32 %v8414_v55, %v8374_v3  ;;  %v8416_v47 = vpop.f32.mrf.mxu1  ;;  %8680 = vmatpush1.bf16.msra.mxu0 %v12043_v18  ;;  %v1293_v49 = vld [vmem:[#allocation2 + $0x16f8] sm:$0xff]  ;;  %v12187_v12 = vcombine.low %v1345_v24, %v1349_v14 }
 0x45c   :  { %8709 = vmatpush1.bf16.msra.mxu1 %v12219_v62  ;;  %v8376_v7 = vpop.f32.mrf.mxu0  ;;  %8681 = vmatprep.subr.bf16.mxu0 %v12164_v16  ;;  %v1337_v61 = vld [vmem:[#allocation2 + $0x1858] sm:$0xff]  ;;  %v12132_v54 = vcombine.high %v1289_v48, %v1293_v49  ;;  %v12131_v18 = vcombine.low %v1289_v48, %v1293_v49 }
 0x45d   :  { %v8417_v5 = vpop.f32.mrf.mxu1  ;;  %8710 = vmatprep.subr.bf16.mxu1 %v12212_v2  ;;  %v1341_v11 = vld [vmem:[#allocation2 + $0x1878] sm:$0xff] }
 0x45e   :  { %v12180_v21 = vcombine.high %v1337_v61, %v1341_v11  ;;  %v1281_v15 = vld [vmem:[#allocation2 + $0x1698] sm:$0xff]  ;;  %v12179_v44 = vcombine.low %v1337_v61, %v1341_v11 }
 0x45f   :  { %8682 = vmatpush2.bf16.msra.mxu0 %v12163_v20  ;;  %v1285_v58 = vld [vmem:[#allocation2 + $0x16b8] sm:$0xff] }
 0x460   :  { %8711 = vmatpush1.bf16.msra.mxu1 %v12211_v4  ;;  %8683 = vmatprep.subr.bf16.mxu0 %v12156_v37  ;;  %v1329_v36 = vld [vmem:[#allocation2 + $0x1818] sm:$0xff]  ;;  %v12124_v62 = vcombine.high %v1281_v15, %v1285_v58  ;;  %v12123_v25 = vcombine.low %v1281_v15, %v1285_v58 }
 0x461   :  { %8712 = vmatprep.subr.bf16.mxu1 %v12204_v46  ;;  %v1333_v34 = vld [vmem:[#allocation2 + $0x1838] sm:$0xff] }
 0x462   :  { %v12172_v16 = vcombine.high %v1329_v36, %v1333_v34  ;;  %v1273_v3 = vld [vmem:[#allocation2 + $0x1658] sm:$0xff]  ;;  %v12171_v30 = vcombine.low %v1329_v36, %v1333_v34 }
 0x463   :  { %8684 = vmatpush2.bf16.msra.mxu0 %v12155_v31  ;;  %v1277_v55 = vld [vmem:[#allocation2 + $0x1678] sm:$0xff] }
 0x464   :  { %8713 = vmatpush1.bf16.msra.mxu1 %v12203_v8  ;;  %8685 = vmatprep.subr.bf16.mxu0 %v12148_v32  ;;  %v1449_v2 = vld [vmem:[#allocation2 + $0x1bd8] sm:$0xff]  ;;  %v12116_v28 = vcombine.high %v1273_v3, %v1277_v55  ;;  %v12115_v37 = vcombine.low %v1273_v3, %v1277_v55 }
 0x465   :  { %8714 = vmatprep.subr.bf16.mxu1 %v12196_v53  ;;  %v1453_v22 = vld [vmem:[#allocation2 + $0x1bf8] sm:$0xff] }
 0x466   :  { %v12292_v29 = vcombine.high %v1449_v2, %v1453_v22  ;;  %v1265_v47 = vld [vmem:[#allocation2 + $0x1618] sm:$0xff]  ;;  %v12291_v5 = vcombine.low %v1449_v2, %v1453_v22 }
 0x467   :  { %8686 = vmatpush2.bf16.msra.mxu0 %v12147_v23  ;;  %v1269_v20 = vld [vmem:[#allocation2 + $0x1638] sm:$0xff] }
 0x468   :  { %8715 = vmatpush1.bf16.msra.mxu1 %v12195_v43  ;;  %8687 = vmatprep.subr.bf16.mxu0 %v12140_v57  ;;  %v1441_v7 = vld [vmem:[#allocation2 + $0x1b98] sm:$0xff]  ;;  %v12108_v46 = vcombine.high %v1265_v47, %v1269_v20  ;;  %v12107_v8 = vcombine.low %v1265_v47, %v1269_v20 }
 0x469   :  { %8716 = vmatprep.subr.bf16.mxu1 %v12188_v42  ;;  %v1445_v4 = vld [vmem:[#allocation2 + $0x1bb8] sm:$0xff] }
 0x46a   :  { %v12284_v63 = vcombine.high %v1441_v7, %v1445_v4  ;;  %v1513_v51 = vld [vmem:[#allocation2 + $0x1dd8] sm:$0xff]  ;;  %v12283_v32 = vcombine.low %v1441_v7, %v1445_v4 }
 0x46b   :  { %8688 = vmatpush2.bf16.msra.mxu0 %v12139_v27  ;;  %v1517_v17 = vld [vmem:[#allocation2 + $0x1df8] sm:$0xff] }
 0x46c   :  { %8717 = vmatpush1.bf16.msra.mxu1 %v12187_v12  ;;  %8689 = vmatprep.subr.bf16.mxu0 %v12132_v54  ;;  %v1433_v38 = vld [vmem:[#allocation2 + $0x1b58] sm:$0xff]  ;;  %v12356_v53 = vcombine.high %v1513_v51, %v1517_v17  ;;  %v12355_v43 = vcombine.low %v1513_v51, %v1517_v17 }
 0x46d   :  { %8718 = vmatprep.subr.bf16.mxu1 %v12180_v21  ;;  %v1437_v31 = vld [vmem:[#allocation2 + $0x1b78] sm:$0xff] }
 0x46e   :  { %v12276_v33 = vcombine.high %v1433_v38, %v1437_v31  ;;  %v1505_v40 = vld [vmem:[#allocation2 + $0x1d98] sm:$0xff]  ;;  %v12275_v57 = vcombine.low %v1433_v38, %v1437_v31 }
 0x46f   :  { %8690 = vmatpush2.bf16.msra.mxu0 %v12131_v18  ;;  %v1509_v24 = vld [vmem:[#allocation2 + $0x1db8] sm:$0xff] }
 0x470   :  { %8719 = vmatpush1.bf16.msra.mxu1 %v12179_v44  ;;  %8691 = vmatprep.subr.bf16.mxu0 %v12124_v62  ;;  %v1425_v14 = vld [vmem:[#allocation2 + $0x1b18] sm:$0xff]  ;;  %v12348_v42 = vcombine.high %v1505_v40, %v1509_v24  ;;  %v12347_v21 = vcombine.low %v1505_v40, %v1509_v24 }
 0x471   :  { %8720 = vmatprep.subr.bf16.mxu1 %v12172_v16  ;;  %v1429_v23 = vld [vmem:[#allocation2 + $0x1b38] sm:$0xff] }
 0x472   :  { %v12268_v48 = vcombine.high %v1425_v14, %v1429_v23  ;;  %v1497_v49 = vld [vmem:[#allocation2 + $0x1d58] sm:$0xff]  ;;  %v12267_v58 = vcombine.low %v1425_v14, %v1429_v23 }
 0x473   :  { %8692 = vmatpush2.bf16.msra.mxu0 %v12123_v25  ;;  %v1501_v61 = vld [vmem:[#allocation2 + $0x1d78] sm:$0xff] }
 0x474   :  { %8721 = vmatpush1.bf16.msra.mxu1 %v12171_v30  ;;  %8693 = vmatprep.subr.bf16.mxu0 %v12116_v28  ;;  %v1417_v27 = vld [vmem:[#allocation2 + $0x1ad8] sm:$0xff]  ;;  %v12340_v36 = vcombine.high %v1497_v49, %v1501_v61  ;;  %v12339_v3 = vcombine.low %v1497_v49, %v1501_v61 }
 0x475   :  { %8722 = vmatprep.subr.bf16.mxu1 %v12292_v29  ;;  %v1421_v12 = vld [vmem:[#allocation2 + $0x1af8] sm:$0xff] }
 0x476   :  { %v12260_v18 = vcombine.high %v1417_v27, %v1421_v12  ;;  %v1493_v44 = vld [vmem:[#allocation2 + $0x1d38] sm:$0xff] }
 0x477   :  { %8694 = vmatpush2.bf16.msra.mxu0 %v12115_v37  ;;  %v1409_v16 = vld [vmem:[#allocation2 + $0x1a98] sm:$0xff] }
 0x478   :  { %8723 = vmatpush2.bf16.msra.mxu1 %v12291_v5  ;;  %8695 = vmatprep.subr.bf16.mxu0 %v12108_v46  ;;  %v1481_v25 = vld [vmem:[#allocation2 + $0x1cd8] sm:$0xff] }
 0x479   :  { %8724 = vmatprep.subr.bf16.mxu1 %v12284_v63  ;;  %v1485_v30 = vld [vmem:[#allocation2 + $0x1cf8] sm:$0xff] }
 0x47a   :  { %v1405_v28 = vld [vmem:[#allocation2 + $0x1a78] sm:$0xff]  ;;  %v12324_v20 = vcombine.high %v1481_v25, %v1485_v30  ;;  %v12323_v63 = vcombine.low %v1481_v25, %v1485_v30 }
 0x47b   :  { %8696 = vmatpush2.bf16.msra.mxu0 %v12107_v8  ;;  %v1473_v4 = vld [vmem:[#allocation2 + $0x1c98] sm:$0xff] }
 0x47c   :  { %8725 = vmatpush2.bf16.msra.mxu1 %v12283_v32  ;;  %8747 = vmatprep.subr.bf16.mxu0 %v12356_v53  ;;  %v1477_v37 = vld [vmem:[#allocation2 + $0x1cb8] sm:$0xff] }
 0x47d   :  { %8726 = vmatprep.subr.bf16.mxu1 %v12276_v33  ;;  %v1393_v5 = vld [vmem:[#allocation2 + $0x1a18] sm:$0xff]  ;;  %v12316_v17 = vcombine.high %v1473_v4, %v1477_v37  ;;  %v12315_v33 = vcombine.low %v1473_v4, %v1477_v37 }
 0x47e   :  { %v8453_v11 = vpop.f32.mrf.mxu0  ;;  %8698 = vmatmul.mubr.bf16.vlgmr.msra.gmra.mxu0 %v14047_v6  ;;  %v1489_v6 = vld [vmem:[#allocation2 + $0x1d18] sm:$0xff] }
 0x47f   :  { %v14313_v54 = vadd.f32 %v8453_v11, %v14305_v13  ;;  %8748 = vmatpush1.bf16.msra.mxu0 %v12355_v43  ;;  %8779 = vmatprep.mubr.bf16.mxu0 %v14053_v39  ;;  %v1413_v13 = vld [vmem:[#allocation2 + $0x1ab8] sm:$0xff]  ;;  %v12259_v39 = vcombine.low %v1417_v27, %v1421_v12  ;;  %v12332_v2 = vcombine.high %v1489_v6, %v1493_v44 }
 0x480   :  { %8727 = vmatpush2.bf16.msra.mxu1 %v12275_v57  ;;  %v8455_v15 = vpop.f32.mrf.mxu0  ;;  %8749 = vmatprep.subr.bf16.mxu0 %v12348_v42  ;;  %v12252_v22 = vcombine.high %v1409_v16, %v1413_v13  ;;  %v12331_v29 = vcombine.low %v1489_v6, %v1493_v44  ;;  %v12251_v47 = vcombine.low %v1409_v16, %v1413_v13  ;;  %v1397_v46 = vld [vmem:[#allocation2 + $0x1a38] sm:$0xff] }
 0x481   :  { %v14317_v34 = vadd.f32 %v8455_v15, %v14309_v41  ;;  %8728 = vmatprep.subr.bf16.mxu1 %v12268_v48  ;;  %v1401_v41 = vld [vmem:[#allocation2 + $0x1a58] sm:$0xff]  ;;  %v12236_v38 = vcombine.high %v1393_v5, %v1397_v46  ;;  %v12235_v40 = vcombine.low %v1393_v5, %v1397_v46 }
 0x482   :  { %v8457_v62 = vpop.f32.mrf.mxu0  ;;  %v12244_v7 = vcombine.high %v1401_v41, %v1405_v28  ;;  %v12243_v51 = vcombine.low %v1401_v41, %v1405_v28  ;;  %v1465_v31 = vld [vmem:[#allocation2 + $0x1c58] sm:$0xff] }
 0x483   :  { %8750 = vmatpush1.bf16.msra.mxu0 %v12347_v21  ;;  %v1469_v8 = vld [vmem:[#allocation2 + $0x1c78] sm:$0xff] }
 0x484   :  { %8729 = vmatpush2.bf16.msra.mxu1 %v12267_v58  ;;  %v8458_v55 = vpop.f32.mrf.mxu0  ;;  %8751 = vmatprep.subr.bf16.mxu0 %v12340_v36  ;;  %v1641_v32 = vld [vmem:[#allocation2 + $0x21d8] sm:$0xff]  ;;  %v12308_v24 = vcombine.high %v1465_v31, %v1469_v8  ;;  %v12307_v48 = vcombine.low %v1465_v31, %v1469_v8 }
 0x485   :  { %8730 = vmatprep.subr.bf16.mxu1 %v12260_v18  ;;  %v1645_v53 = vld [vmem:[#allocation2 + $0x21f8] sm:$0xff] }
 0x486   :  { %v12484_v14 = vcombine.high %v1641_v32, %v1645_v53  ;;  %v1457_v23 = vld [vmem:[#allocation2 + $0x1c18] sm:$0xff]  ;;  %v12483_v49 = vcombine.low %v1641_v32, %v1645_v53 }
 0x487   :  { %8752 = vmatpush1.bf16.msra.mxu0 %v12339_v3  ;;  %v1461_v43 = vld [vmem:[#allocation2 + $0x1c38] sm:$0xff] }
 0x488   :  { %8731 = vmatpush2.bf16.msra.mxu1 %v12259_v39  ;;  %8753 = vmatprep.subr.bf16.mxu0 %v12332_v2  ;;  %v1633_v57 = vld [vmem:[#allocation2 + $0x2198] sm:$0xff]  ;;  %v12300_v61 = vcombine.high %v1457_v23, %v1461_v43  ;;  %v12299_v36 = vcombine.low %v1457_v23, %v1461_v43 }
 0x489   :  { %8732 = vmatprep.subr.bf16.mxu1 %v12252_v22  ;;  %v1637_v42 = vld [vmem:[#allocation2 + $0x21b8] sm:$0xff] }
 0x48a   :  { %v12476_v11 = vcombine.high %v1633_v57, %v1637_v42  ;;  %v1577_v27 = vld [vmem:[#allocation2 + $0x1fd8] sm:$0xff]  ;;  %v12475_v18 = vcombine.low %v1633_v57, %v1637_v42 }
 0x48b   :  { %8754 = vmatpush1.bf16.msra.mxu0 %v12331_v29  ;;  %v1581_v12 = vld [vmem:[#allocation2 + $0x1ff8] sm:$0xff] }
 0x48c   :  { %8733 = vmatpush2.bf16.msra.mxu1 %v12251_v47  ;;  %8755 = vmatprep.subr.bf16.mxu0 %v12324_v20  ;;  %v1625_v21 = vld [vmem:[#allocation2 + $0x2158] sm:$0xff]  ;;  %v12420_v6 = vcombine.high %v1577_v27, %v1581_v12 }
 0x48d   :  { %8734 = vmatprep.subr.bf16.mxu1 %v12244_v7  ;;  %v1629_v15 = vld [vmem:[#allocation2 + $0x2178] sm:$0xff] }
 0x48e   :  { %v12468_v62 = vcombine.high %v1625_v21, %v1629_v15  ;;  %v1569_v16 = vld [vmem:[#allocation2 + $0x1f98] sm:$0xff]  ;;  %v12467_v2 = vcombine.low %v1625_v21, %v1629_v15 }
 0x48f   :  { %8756 = vmatpush1.bf16.msra.mxu0 %v12323_v63  ;;  %v1573_v13 = vld [vmem:[#allocation2 + $0x1fb8] sm:$0xff] }
 0x490   :  { %8735 = vmatpush2.bf16.msra.mxu1 %v12243_v51  ;;  %8757 = vmatprep.subr.bf16.mxu0 %v12316_v17  ;;  %v1617_v3 = vld [vmem:[#allocation2 + $0x2118] sm:$0xff]  ;;  %v12412_v22 = vcombine.high %v1569_v16, %v1573_v13  ;;  %v12411_v20 = vcombine.low %v1569_v16, %v1573_v13 }
 0x491   :  { %8736 = vmatprep.subr.bf16.mxu1 %v12236_v38  ;;  %v1621_v55 = vld [vmem:[#allocation2 + $0x2138] sm:$0xff] }
 0x492   :  { %v12460_v30 = vcombine.high %v1617_v3, %v1621_v55  ;;  %v1561_v41 = vld [vmem:[#allocation2 + $0x1f58] sm:$0xff] }
 0x493   :  { %8758 = vmatpush1.bf16.msra.mxu0 %v12315_v33  ;;  %v1565_v28 = vld [vmem:[#allocation2 + $0x1f78] sm:$0xff] }
 0x494   :  { %8737 = vmatpush2.bf16.msra.mxu1 %v12235_v40  ;;  %8759 = vmatprep.subr.bf16.mxu0 %v12308_v24  ;;  %v1609_v29 = vld [vmem:[#allocation2 + $0x20d8] sm:$0xff]  ;;  %v12404_v7 = vcombine.high %v1561_v41, %v1565_v28  ;;  %v12403_v51 = vcombine.low %v1561_v41, %v1565_v28  ;;  %v1694_v41 = vsub.s32 7, %v14128_v52 }
 0x495   :  { %8788 = vmatprep.subr.bf16.mxu1 %v12484_v14  ;;  %v1613_v47 = vld [vmem:[#allocation2 + $0x20f8] sm:$0xff] }
 0x496   :  { %v12452_v4 = vcombine.high %v1609_v29, %v1613_v47  ;;  %v1553_v37 = vld [vmem:[#allocation2 + $0x1f18] sm:$0xff]  ;;  %v12451_v17 = vcombine.low %v1609_v29, %v1613_v47 }
 0x497   :  { %v14319_v58 = vpop.f32.mrf.mxu1  ;;  %8739 = vmatmul.mubr.bf16.vlgmr.msra.gmra.mxu1 %v14140_v10  ;;  %8760 = vmatpush1.bf16.msra.mxu0 %v12307_v48  ;;  %v12419_v10 = vcombine.low %v1577_v27, %v1581_v12  ;;  %v1557_v5 = vld [vmem:[#allocation2 + $0x1f38] sm:$0xff] }
 0x498   :  { %8789 = vmatpush1.bf16.msra.mxu1 %v12483_v49  ;;  %8761 = vmatprep.subr.bf16.mxu0 %v12300_v61  ;;  %v1601_v46 = vld [vmem:[#allocation2 + $0x2098] sm:$0xff]  ;;  %v12396_v38 = vcombine.high %v1553_v37, %v1557_v5  ;;  %v12395_v40 = vcombine.low %v1553_v37, %v1557_v5  ;;  %v8832_v37 = vmax.f32 %v14268_v0, 0.0 }
 0x499   :  { %v14322_v44 = vpop.f32.mrf.mxu1  ;;  %8790 = vmatprep.subr.bf16.mxu1 %v12476_v11  ;;  %12504 = vmatprep.mubr.msk.bf16.mxu1 %vm384_vm1, %v14147_v26  ;;  %v12459_v26 = vcombine.low %v1617_v3, %v1621_v55  ;;  %v1605_v63 = vld [vmem:[#allocation2 + $0x20b8] sm:$0xff] }
 0x49a   :  { %v12444_v31 = vcombine.high %v1601_v46, %v1605_v63  ;;  %v1545_v8 = vld [vmem:[#allocation2 + $0x1ed8] sm:$0xff]  ;;  %v12443_v24 = vcombine.low %v1601_v46, %v1605_v63 }
 0x49b   :  { %v8498_v39 = vpop.f32.mrf.mxu1  ;;  %8762 = vmatpush1.bf16.msra.mxu0 %v12299_v36  ;;  %v1549_v32 = vld [vmem:[#allocation2 + $0x1ef8] sm:$0xff] }
 0x49c   :  { %8791 = vmatpush1.bf16.msra.mxu1 %v12475_v18  ;;  %8763 = vmatprep.subr.bf16.mxu0 %v12420_v6  ;;  %v1593_v53 = vld [vmem:[#allocation2 + $0x2058] sm:$0xff]  ;;  %v12388_v14 = vcombine.high %v1545_v8, %v1549_v32  ;;  %v12387_v49 = vcombine.low %v1545_v8, %v1549_v32  ;;  %v14334_v32 = vpack.c.bf16 %v8832_v37, %v8832_v37 }
 0x49d   :  { %v8499_v25 = vpop.f32.mrf.mxu1  ;;  %8792 = vmatprep.subr.bf16.mxu1 %v12468_v62  ;;  %v1597_v33 = vld [vmem:[#allocation2 + $0x2078] sm:$0xff] }
 0x49e   :  { %v12436_v23 = vcombine.high %v1593_v53, %v1597_v33  ;;  %v1537_v43 = vld [vmem:[#allocation2 + $0x1e98] sm:$0xff]  ;;  %v12435_v61 = vcombine.low %v1593_v53, %v1597_v33  ;;  %v1690_v25 = vsub.s32 6, %v14128_v52 }
 0x49f   :  { %8764 = vmatpush2.bf16.msra.mxu0 %v12419_v10  ;;  %v1541_v57 = vld [vmem:[#allocation2 + $0x1eb8] sm:$0xff] }
 0x4a0   :  { %8793 = vmatpush1.bf16.msra.mxu1 %v12467_v2  ;;  %8765 = vmatprep.subr.bf16.mxu0 %v12412_v22  ;;  %v1585_v42 = vld [vmem:[#allocation2 + $0x2018] sm:$0xff]  ;;  %v12380_v11 = vcombine.high %v1537_v43, %v1541_v57  ;;  %v12379_v18 = vcombine.low %v1537_v43, %v1541_v57 }
 0x4a1   :  { %8794 = vmatprep.subr.bf16.mxu1 %v12460_v30  ;;  %v1589_v48 = vld [vmem:[#allocation2 + $0x2038] sm:$0xff] }
 0x4a2   :  { %v12428_v27 = vcombine.high %v1585_v42, %v1589_v48  ;;  %v1529_v12 = vld [vmem:[#allocation2 + $0x1e58] sm:$0xff]  ;;  %v12427_v6 = vcombine.low %v1585_v42, %v1589_v48 }
 0x4a3   :  { %8766 = vmatpush2.bf16.msra.mxu0 %v12411_v20  ;;  %v1533_v21 = vld [vmem:[#allocation2 + $0x1e78] sm:$0xff]  ;;  %v13368_v20 = vld [vmem:[#allocation5] sm:$0xff] }
 0x4a4   :  { %8795 = vmatpush1.bf16.msra.mxu1 %v12459_v26  ;;  %8767 = vmatprep.subr.bf16.mxu0 %v12404_v7  ;;  %v1657_v15 = vld [vmem:[#allocation2 + $0x2258] sm:$0xff]  ;;  %v12372_v62 = vcombine.high %v1529_v12, %v1533_v21  ;;  %v12371_v10 = vcombine.low %v1529_v12, %v1533_v21  ;;  %v1691_v26 = vrot.slane %v13368_v20, %v1690_v25 }
 0x4a5   :  { %8796 = vmatprep.subr.bf16.mxu1 %v12452_v4  ;;  %v1661_v36 = vld [vmem:[#allocation2 + $0x2278] sm:$0xff]  ;;  %v8830_v4 = vmax.f32 %v14197_v1, 0.0  ;;  %v1695_v5 = vrot.slane %v13368_v20, %v1694_v41 }
 0x4a6   :  { %v12500_v16 = vcombine.high %v1657_v15, %v1661_v36  ;;  %v1521_v13 = vld [vmem:[#allocation2 + $0x1e18] sm:$0xff]  ;;  %v12499_v2 = vcombine.low %v1657_v15, %v1661_v36 }
 0x4a7   :  { %8768 = vmatpush2.bf16.msra.mxu0 %v12403_v51  ;;  %v1525_v3 = vld [vmem:[#allocation2 + $0x1e38] sm:$0xff]  ;;  %v8495_v51 = vadd.f32 %v14319_v58, %v1691_v26  ;;  %v8497_v1 = vadd.f32 %v14322_v44, %v1695_v5 }
 0x4a8   :  { %8797 = vmatpush1.bf16.msra.mxu1 %v12451_v17  ;;  %8769 = vmatprep.subr.bf16.mxu0 %v12396_v38  ;;  %v1649_v55 = vld [vmem:[#allocation2 + $0x2218] sm:$0xff]  ;;  %v12364_v22 = vcombine.high %v1521_v13, %v1525_v3  ;;  %v12363_v28 = vcombine.low %v1521_v13, %v1525_v3  ;;  %v14331_v38 = vpack.c.bf16 %v8830_v4, %v8830_v4 }
 0x4a9   :  { %8798 = vmatprep.subr.bf16.mxu1 %v12444_v31  ;;  %v1653_v39 = vld [vmem:[#allocation2 + $0x2238] sm:$0xff] }
 0x4aa   :  { %v12492_v30 = vcombine.high %v1649_v55, %v1653_v39  ;;  %v12491_v29 = vcombine.low %v1649_v55, %v1653_v39  ;;  %v12880_v47 = vld [vmem:[#allocation7 + $0xe4] ss:$16 sps:$4 sm:$0xff]   ;;  %v12878_v46 = vld [vmem:[#allocation7 + $0xe0] ss:$16 sps:$4 sm:$0xff]  }
 0x4ab   :  { %8770 = vmatpush2.bf16.msra.mxu0 %v12395_v40  ;;  %v12883_v7 = vld [vmem:[#allocation7 + $0x2e4] ss:$16 sps:$4 sm:$0xff]   ;;  %v12881_v63 = vld [vmem:[#allocation7 + $0x2e0] ss:$16 sps:$4 sm:$0xff]  }
 0x4ac   :  { %8799 = vmatpush1.bf16.msra.mxu1 %v12443_v24  ;;  %8771 = vmatprep.subr.bf16.mxu0 %v12388_v14  ;;  %v12886_v17 = vld [vmem:[#allocation7 + $0xc4] ss:$16 sps:$4 sm:$0xff]   ;;  %v12884_v53 = vld [vmem:[#allocation7 + $0xc0] ss:$16 sps:$4 sm:$0xff]  }
 0x4ad   :  { %8800 = vmatprep.subr.bf16.mxu1 %v12436_v23  ;;  %v12889_v8 = vld [vmem:[#allocation7 + $0x2c4] ss:$16 sps:$4 sm:$0xff]   ;;  %v12887_v33 = vld [vmem:[#allocation7 + $0x2c0] ss:$16 sps:$4 sm:$0xff]  }
 0x4ae   :  { %v12892_v40 = vld [vmem:[#allocation7 + $0xa4] ss:$16 sps:$4 sm:$0xff]   ;;  %v12890_v44 = vld [vmem:[#allocation7 + $0xa0] ss:$16 sps:$4 sm:$0xff]  }
 0x4af   :  { %8772 = vmatpush2.bf16.msra.mxu0 %v12387_v49  ;;  %v12898_v43 = vld [vmem:[#allocation7 + $0x84] ss:$16 sps:$4 sm:$0xff]   ;;  %v12896_v42 = vld [vmem:[#allocation7 + $0x80] ss:$16 sps:$4 sm:$0xff]  }
 0x4b0   :  { %8801 = vmatpush1.bf16.msra.mxu1 %v12435_v61  ;;  %8773 = vmatprep.subr.bf16.mxu0 %v12380_v11  ;;  %v12901_v57 = vld [vmem:[#allocation7 + $0x284] ss:$16 sps:$4 sm:$0xff]   ;;  %v12899_v48 = vld [vmem:[#allocation7 + $0x280] ss:$16 sps:$4 sm:$0xff]  }
 0x4b1   :  { %8802 = vmatprep.subr.bf16.mxu1 %v12428_v27  ;;  %v12904_v49 = vld [vmem:[#allocation7 + $0x64] ss:$16 sps:$4 sm:$0xff]   ;;  %v12902_v11 = vld [vmem:[#allocation7 + $0x60] ss:$16 sps:$4 sm:$0xff]  }
 0x4b2   :  { %v12907_v61 = vld [vmem:[#allocation7 + $0x264] ss:$16 sps:$4 sm:$0xff]   ;;  %v12905_v27 = vld [vmem:[#allocation7 + $0x260] ss:$16 sps:$4 sm:$0xff]  }
 0x4b3   :  { %8774 = vmatpush2.bf16.msra.mxu0 %v12379_v18  ;;  %v12910_v12 = vld [vmem:[#allocation7 + $0x44] ss:$16 sps:$4 sm:$0xff]   ;;  %v12908_v15 = vld [vmem:[#allocation7 + $0x40] ss:$16 sps:$4 sm:$0xff]  }
 0x4b4   :  { %8803 = vmatpush1.bf16.msra.mxu1 %v12427_v6  ;;  %8775 = vmatprep.subr.bf16.mxu0 %v12372_v62  ;;  %v12913_v21 = vld [vmem:[#allocation7 + $0x244] ss:$16 sps:$4 sm:$0xff]   ;;  %v12911_v36 = vld [vmem:[#allocation7 + $0x240] ss:$16 sps:$4 sm:$0xff]  }
 0x4b5   :  { %8816 = vmatprep.subr.bf16.mxu1 %v12500_v16  ;;  %v12916_v18 = vld [vmem:[#allocation7 + $0x24] ss:$16 sps:$4 sm:$0xff]   ;;  %v12914_v62 = vld [vmem:[#allocation7 + $0x20] ss:$16 sps:$4 sm:$0xff]  }
 0x4b6   :  { %v12919_v6 = vld [vmem:[#allocation7 + $0x224] ss:$16 sps:$4 sm:$0xff]   ;;  %v12917_v16 = vld [vmem:[#allocation7 + $0x220] ss:$16 sps:$4 sm:$0xff]  }
 0x4b7   :  { %8776 = vmatpush2.bf16.msra.mxu0 %v12371_v10  ;;  %v12922_v13 = vld [vmem:[#allocation7 + $0x4] ss:$16 sps:$4 sm:$0xff]   ;;  %v12920_v39 = vld [vmem:[#allocation7] ss:$16 sps:$4 sm:$0xff]  }
 0x4b8   :  { %8817 = vmatpush2.bf16.msra.mxu1 %v12499_v2  ;;  %8777 = vmatprep.subr.bf16.mxu0 %v12364_v22  ;;  %v12925_v3 = vld [vmem:[#allocation7 + $0x204] ss:$16 sps:$4 sm:$0xff]   ;;  %v12923_v2 = vld [vmem:[#allocation7 + $0x200] ss:$16 sps:$4 sm:$0xff]  }
 0x4b9   :  { %8818 = vmatprep.subr.bf16.mxu1 %v12492_v30  ;;  %v12928_v22 = vld [vmem:[#allocation7 + $0x1e4] ss:$16 sps:$4 sm:$0xff]   ;;  %v12932_v4 = vld [vmem:[#allocation7 + $0x1c0] ss:$16 sps:$4 sm:$0xff]  }
 0x4ba   :  { %v12931_v30 = vld [vmem:[#allocation7 + $0x3e4] ss:$16 sps:$4 sm:$0xff]   ;;  %v12935_v37 = vld [vmem:[#allocation7 + $0x3c0] ss:$16 sps:$4 sm:$0xff]  }
 0x4bb   :  { %8778 = vmatpush2.bf16.msra.mxu0 %v12363_v28  ;;  %v12934_v20 = vld [vmem:[#allocation7 + $0x1c4] ss:$16 sps:$4 sm:$0xff]  }
 0x4bc   :  { %8819 = vmatpush2.bf16.msra.mxu1 %v12491_v29  ;;  %10384 = vmatprep.subr.bf16.mxu0 %v12880_v47  ;;  %v12926_v29 = vld [vmem:[#allocation7 + $0x1e0] ss:$16 sps:$4 sm:$0xff]   ;;  %v12940_v5 = vld [vmem:[#allocation7 + $0x1a4] ss:$16 sps:$4 sm:$0xff]  }
 0x4bd   :  { %10425 = vmatprep.subr.bf16.mxu1 %v12883_v7  ;;  %v12929_v47 = vld [vmem:[#allocation7 + $0x3e0] ss:$16 sps:$4 sm:$0xff]   ;;  %v12937_v7 = vld [vmem:[#allocation7 + $0x3c4] ss:$16 sps:$4 sm:$0xff]  }
 0x4be   :  { %v8535_v31 = vpop.f32.mrf.mxu0  ;;  %8780 = vmatmul.mubr.bf16.vlgmr.msra.gmra.mxu0 %v14144_v19  ;;  %v12895_v19 = vld [vmem:[#allocation7 + $0x2a4] ss:$16 sps:$4 sm:$0xff]  }
 0x4bf   :  { %v8536_v0 = vadd.f32 %v8535_v31, %v8495_v51  ;;  %8821 = vmatmul.mubr.bf16.vlgmr.msra.gmra.mxu1 %v14159_v35  ;;  %10385 = vmatpush1.bf16.msra.mxu0 %v12878_v46  ;;  %v12893_v35 = vld [vmem:[#allocation7 + $0x2a0] ss:$16 sps:$4 sm:$0xff]   ;;  %v12943_v46 = vld [vmem:[#allocation7 + $0x3a4] ss:$16 sps:$4 sm:$0xff]  }
 0x4c0   :  { %10416 = vmatprep.mubr.bf16.mxu0 %v14331_v38  ;;  %10426 = vmatpush1.bf16.msra.mxu1 %v12881_v63  ;;  %v8537_v58 = vpop.f32.mrf.mxu0  ;;  %v12938_v63 = vld [vmem:[#allocation7 + $0x1a0] ss:$16 sps:$4 sm:$0xff]   ;;  %v12949_v31 = vld [vmem:[#allocation7 + $0x384] ss:$16 sps:$4 sm:$0xff]  }
 0x4c1   :  { %10457 = vmatprep.mubr.bf16.mxu1 %v14334_v32  ;;  %v8538_v24 = vadd.f32 %v8537_v58, %v8497_v1  ;;  %10386 = vmatprep.subr.bf16.mxu0 %v12886_v17  ;;  %v12941_v51 = vld [vmem:[#allocation7 + $0x3a0] ss:$16 sps:$4 sm:$0xff]   ;;  %v12946_v17 = vld [vmem:[#allocation7 + $0x184] ss:$16 sps:$4 sm:$0xff]  }
 0x4c2   :  { %v8539_v14 = vpop.f32.mrf.mxu0  ;;  %10427 = vmatprep.subr.bf16.mxu1 %v12889_v8  ;;  %v12944_v8 = vld [vmem:[#allocation7 + $0x180] ss:$16 sps:$4 sm:$0xff]  }
 0x4c3   :  { %10387 = vmatpush1.bf16.msra.mxu0 %v12884_v53  ;;  %v12947_v1 = vld [vmem:[#allocation7 + $0x380] ss:$16 sps:$4 sm:$0xff]   ;;  %v12955_v53 = vld [vmem:[#allocation7 + $0x364] ss:$16 sps:$4 sm:$0xff]  }
 0x4c4   :  { %10428 = vmatpush1.bf16.msra.mxu1 %v12887_v33  ;;  %v8540_v23 = vpop.f32.mrf.mxu0  ;;  %10388 = vmatprep.subr.bf16.mxu0 %v12892_v40  ;;  %v12950_v58 = vld [vmem:[#allocation7 + $0x160] ss:$16 sps:$4 sm:$0xff]   ;;  %v12958_v40 = vld [vmem:[#allocation7 + $0x144] ss:$16 sps:$4 sm:$0xff]  }
 0x4c5   :  { %10429 = vmatprep.subr.bf16.mxu1 %v12895_v19  ;;  %v12953_v33 = vld [vmem:[#allocation7 + $0x360] ss:$16 sps:$4 sm:$0xff]   ;;  %v12967_v23 = vld [vmem:[#allocation7 + $0x324] ss:$16 sps:$4 sm:$0xff]  }
 0x4c6   :  { %v12956_v19 = vld [vmem:[#allocation7 + $0x140] ss:$16 sps:$4 sm:$0xff]  }
 0x4c7   :  { %10389 = vmatpush1.bf16.msra.mxu0 %v12890_v44  ;;  %v12959_v14 = vld [vmem:[#allocation7 + $0x340] ss:$16 sps:$4 sm:$0xff]   ;;  %v12964_v44 = vld [vmem:[#allocation7 + $0x124] ss:$16 sps:$4 sm:$0xff]  }
 0x4c8   :  { %10430 = vmatpush1.bf16.msra.mxu1 %v12893_v35  ;;  %10390 = vmatprep.subr.bf16.mxu0 %v12898_v43  ;;  %v12962_v35 = vld [vmem:[#allocation7 + $0x120] ss:$16 sps:$4 sm:$0xff]  }
 0x4c9   :  { %10431 = vmatprep.subr.bf16.mxu1 %v12901_v57  ;;  %v12965_v43 = vld [vmem:[#allocation7 + $0x320] ss:$16 sps:$4 sm:$0xff]   ;;  %v12970_v57 = vld [vmem:[#allocation7 + $0x104] ss:$16 sps:$4 sm:$0xff]  }
 0x4cb   :  { %10391 = vmatpush1.bf16.msra.mxu0 %v12896_v42  ;;  %v12973_v42 = vld [vmem:[#allocation7 + $0x304] ss:$16 sps:$4 sm:$0xff]  }
 0x4cc   :  { %10432 = vmatpush1.bf16.msra.mxu1 %v12899_v48  ;;  %10392 = vmatprep.subr.bf16.mxu0 %v12904_v49  ;;  %v12968_v48 = vld [vmem:[#allocation7 + $0x100] ss:$16 sps:$4 sm:$0xff]   ;;  %v8829_v49 = vmax.f32 %v14193_v60, 0.0 }
 0x4cd   :  { %10433 = vmatprep.subr.bf16.mxu1 %v12907_v61  ;;  %v12971_v61 = vld [vmem:[#allocation7 + $0x300] ss:$16 sps:$4 sm:$0xff]  }
 0x4ce   :  { %v13034_v60 = vld [vmem:[#allocation7 + $0x6e0] ss:$16 sps:$4 sm:$0xff]  }
 0x4cf   :  { %10393 = vmatpush1.bf16.msra.mxu0 %v12902_v11  ;;  %v12976_v11 = vld [vmem:[#allocation7 + $0x4e4] ss:$16 sps:$4 sm:$0xff]  }
 0x4d0   :  { %10434 = vmatpush1.bf16.msra.mxu1 %v12905_v27  ;;  %10394 = vmatprep.subr.bf16.mxu0 %v12910_v12  ;;  %v8831_v27 = vmax.f32 %v14263_v50, 0.0  ;;  %v13036_v12 = vld [vmem:[#allocation7 + $0x6e4] ss:$16 sps:$4 sm:$0xff]  }
 0x4d1   :  { %10435 = vmatprep.subr.bf16.mxu1 %v12913_v21  ;;  %v8834_v21 = vmax.f32 %v14317_v34, 0.0  ;;  %v13042_v50 = vld [vmem:[#allocation7 + $0x6c4] ss:$16 sps:$4 sm:$0xff]   ;;  %v12977_v34 = vld [vmem:[#allocation7 + $0x4c0] ss:$16 sps:$4 sm:$0xff]  }
 0x4d3   :  { %10395 = vmatpush1.bf16.msra.mxu0 %v12908_v15  ;;  %v12974_v15 = vld [vmem:[#allocation7 + $0x4e0] ss:$16 sps:$4 sm:$0xff]  }
 0x4d4   :  { %10436 = vmatpush1.bf16.msra.mxu1 %v12911_v36  ;;  %10396 = vmatprep.subr.bf16.mxu0 %v12916_v18  ;;  %v14347_v36 = vpack.c.bf16 %v8829_v49, %v8829_v49  ;;  %v12979_v18 = vld [vmem:[#allocation7 + $0x4c4] ss:$16 sps:$4 sm:$0xff]  }
 0x4d5   :  { %10437 = vmatprep.subr.bf16.mxu1 %v12919_v6  ;;  %v14349_v6 = vpack.c.bf16 %v8831_v27, %v8831_v27  ;;  %v13001_v27 = vld [vmem:[#allocation7 + $0x5c0] ss:$16 sps:$4 sm:$0xff]  }
 0x4d7   :  { %v8576_v55 = vpop.f32.mrf.mxu1  ;;  %10397 = vmatpush1.bf16.msra.mxu0 %v12914_v62  ;;  %v14351_v62 = vpack.c.bf16 %v8834_v21, %v8834_v21  ;;  %v13087_v21 = vld [vmem:[#allocation7 + $0x7a0] ss:$16 sps:$4 sm:$0xff]  }
 0x4d8   :  { %v14340_v10 = vadd.f32 %v8576_v55, %v8536_v0  ;;  %10438 = vmatpush1.bf16.msra.mxu1 %v12917_v16  ;;  %10398 = vmatprep.subr.bf16.mxu0 %v12922_v13  ;;  %v12952_v0 = vld [vmem:[#allocation7 + $0x164] ss:$16 sps:$4 sm:$0xff]  }
 0x4d9   :  { %v8578_v25 = vpop.f32.mrf.mxu1  ;;  %10439 = vmatprep.subr.bf16.mxu1 %v12925_v3  ;;  %v12982_v55 = vld [vmem:[#allocation7 + $0x4a4] ss:$16 sps:$4 sm:$0xff]  }
 0x4da   :  { %v14342_v41 = vadd.f32 %v8578_v25, %v8538_v24  ;;  %v12961_v24 = vld [vmem:[#allocation7 + $0x344] ss:$16 sps:$4 sm:$0xff]  }
 0x4db   :  { %v8580_v28 = vpop.f32.mrf.mxu1  ;;  %10399 = vmatpush1.bf16.msra.mxu0 %v12920_v39  ;;  %v13048_v25 = vld [vmem:[#allocation7 + $0x6a4] ss:$16 sps:$4 sm:$0xff]  }
 0x4dc   :  { %10440 = vmatpush1.bf16.msra.mxu1 %v12923_v2  ;;  %10400 = vmatprep.subr.bf16.mxu0 %v12928_v22  ;;  %v13040_v2 = vld [vmem:[#allocation7 + $0x6c0] ss:$16 sps:$4 sm:$0xff]  }
 0x4dd   :  { %v8581_v26 = vpop.f32.mrf.mxu1  ;;  %10441 = vmatprep.subr.bf16.mxu1 %v12931_v30  ;;  %v12980_v30 = vld [vmem:[#allocation7 + $0x4a0] ss:$16 sps:$4 sm:$0xff]  }
 0x4de   :  { %v12988_v26 = vld [vmem:[#allocation7 + $0x464] ss:$16 sps:$4 sm:$0xff]  }
 0x4df   :  { %10401 = vmatpush2.bf16.msra.mxu0 %v12926_v29  ;;  %v13046_v29 = vld [vmem:[#allocation7 + $0x6a0] ss:$16 sps:$4 sm:$0xff]  }
 0x4e0   :  { %10442 = vmatpush2.bf16.msra.mxu1 %v12929_v47  ;;  %10402 = vmatprep.subr.bf16.mxu0 %v12934_v20  ;;  %v13054_v47 = vld [vmem:[#allocation7 + $0x684] ss:$16 sps:$4 sm:$0xff]   ;;  %v12983_v20 = vld [vmem:[#allocation7 + $0x480] ss:$16 sps:$4 sm:$0xff]  }
 0x4e1   :  { %10443 = vmatprep.subr.bf16.mxu1 %v12937_v7  ;;  %v13060_v7 = vld [vmem:[#allocation7 + $0x664] ss:$16 sps:$4 sm:$0xff]  }
 0x4e3   :  { %10403 = vmatpush2.bf16.msra.mxu0 %v12932_v4  ;;  %v12986_v4 = vld [vmem:[#allocation7 + $0x460] ss:$16 sps:$4 sm:$0xff]  }
 0x4e4   :  { %10444 = vmatpush2.bf16.msra.mxu1 %v12935_v37  ;;  %10404 = vmatprep.subr.bf16.mxu0 %v12940_v5  ;;  %v12991_v37 = vld [vmem:[#allocation7 + $0x444] ss:$16 sps:$4 sm:$0xff]   ;;  %v13058_v5 = vld [vmem:[#allocation7 + $0x660] ss:$16 sps:$4 sm:$0xff]  }
 0x4e5   :  { %10445 = vmatprep.subr.bf16.mxu1 %v12943_v46  ;;  %v13066_v46 = vld [vmem:[#allocation7 + $0x644] ss:$16 sps:$4 sm:$0xff]  }
 0x4e7   :  { %10405 = vmatpush2.bf16.msra.mxu0 %v12938_v63  ;;  %v12989_v63 = vld [vmem:[#allocation7 + $0x440] ss:$16 sps:$4 sm:$0xff]  }
 0x4e8   :  { %10446 = vmatpush2.bf16.msra.mxu1 %v12941_v51  ;;  %10406 = vmatprep.subr.bf16.mxu0 %v12946_v17  ;;  %v12994_v51 = vld [vmem:[#allocation7 + $0x424] ss:$16 sps:$4 sm:$0xff]   ;;  %v13064_v17 = vld [vmem:[#allocation7 + $0x640] ss:$16 sps:$4 sm:$0xff]  }
 0x4e9   :  { %10447 = vmatprep.subr.bf16.mxu1 %v12949_v31  ;;  %v13072_v31 = vld [vmem:[#allocation7 + $0x624] ss:$16 sps:$4 sm:$0xff]  }
 0x4eb   :  { %10407 = vmatpush2.bf16.msra.mxu0 %v12944_v8  ;;  %v12992_v8 = vld [vmem:[#allocation7 + $0x420] ss:$16 sps:$4 sm:$0xff]  }
 0x4ec   :  { %10448 = vmatpush2.bf16.msra.mxu1 %v12947_v1  ;;  %10408 = vmatprep.subr.bf16.mxu0 %v12952_v0  ;;  %v12997_v1 = vld [vmem:[#allocation7 + $0x404] ss:$16 sps:$4 sm:$0xff]   ;;  %v13070_v0 = vld [vmem:[#allocation7 + $0x620] ss:$16 sps:$4 sm:$0xff]  }
 0x4ed   :  { %10449 = vmatprep.subr.bf16.mxu1 %v12955_v53  ;;  %v13078_v53 = vld [vmem:[#allocation7 + $0x604] ss:$16 sps:$4 sm:$0xff]  }
 0x4ef   :  { %10409 = vmatpush2.bf16.msra.mxu0 %v12950_v58 }
 0x4f0   :  { %10450 = vmatpush2.bf16.msra.mxu1 %v12953_v33  ;;  %10410 = vmatprep.subr.bf16.mxu0 %v12958_v40  ;;  %v12995_v33 = vld [vmem:[#allocation7 + $0x400] ss:$16 sps:$4 sm:$0xff]  }
 0x4f1   :  { %10451 = vmatprep.subr.bf16.mxu1 %v12961_v24  ;;  %v9093_v40 = vld [vmem:[#allocation7 + $0x7c0] sm:$0xff] }
 0x4f3   :  { %10411 = vmatpush2.bf16.msra.mxu0 %v12956_v19  ;;  %v13000_v19 = vld [vmem:[#allocation7 + $0x5e4] ss:$16 sps:$4 sm:$0xff]  }
 0x4f4   :  { %10452 = vmatpush2.bf16.msra.mxu1 %v12959_v14  ;;  %10412 = vmatprep.subr.bf16.mxu0 %v12964_v44  ;;  %v13076_v44 = vld [vmem:[#allocation7 + $0x600] ss:$16 sps:$4 sm:$0xff]  }
 0x4f5   :  { %10453 = vmatprep.subr.bf16.mxu1 %v12967_v23 }
 0x4f7   :  { %10413 = vmatpush2.bf16.msra.mxu0 %v12962_v35  ;;  %v12754_v35 = vcombine.high %v9093_v40, %v9093_v40 }
 0x4f8   :  { %10454 = vmatpush2.bf16.msra.mxu1 %v12965_v43  ;;  %10414 = vmatprep.subr.bf16.mxu0 %v12970_v57  ;;  %v12753_v43 = vcombine.low %v9093_v40, %v9093_v40  ;;  %v13037_v40 = vld [vmem:[#allocation7 + $0x268] ss:$16 sps:$4 sm:$0xff]  }
 0x4f9   :  { %10455 = vmatprep.subr.bf16.mxu1 %v12973_v42  ;;  %v12998_v42 = vld [vmem:[#allocation7 + $0x5e0] ss:$16 sps:$4 sm:$0xff]  }
 0x4fb   :  { %10415 = vmatpush2.bf16.msra.mxu0 %v12968_v48  ;;  %v13003_v48 = vld [vmem:[#allocation7 + $0x5c4] ss:$16 sps:$4 sm:$0xff]  }
 0x4fc   :  { %10456 = vmatpush2.bf16.msra.mxu1 %v12971_v61  ;;  %10466 = vmatprep.subr.bf16.mxu0 %v12976_v11  ;;  %v10373_v61 = vsel %vm10371_vm2, %v12753_v43, 0  ;;  %v13089_v11 = vld [vmem:[#allocation7 + $0x7a4] ss:$16 sps:$4 sm:$0xff]  }
 0x4fd   :  { %10507 = vmatprep.subr.bf16.mxu1 %v13036_v12  ;;  %v13006_v12 = vld [vmem:[#allocation7 + $0x5a4] ss:$16 sps:$4 sm:$0xff]  }
 0x4fe   :  { %v8617_v16 = vpop.f32.mrf.mxu0  ;;  %10417 = vmatmul.mubr.bf16.vlgmr.msra.gmra.mxu0 %v14347_v36 }
 0x4ff   :  { %v8618_v13 = vadd.f32 %v8617_v16, %v14340_v10  ;;  %10458 = vmatmul.mubr.bf16.vlgmr.msra.gmra.mxu1 %v14349_v6  ;;  %10467 = vmatpush1.bf16.msra.mxu0 %v12974_v15  ;;  %v12985_v10 = vld [vmem:[#allocation7 + $0x484] ss:$16 sps:$4 sm:$0xff]   ;;  %v13093_v16 = vld [vmem:[#allocation7 + $0x780] ss:$16 sps:$4 sm:$0xff]  }
 0x500   :  { %10498 = vmatprep.mubr.bf16.mxu0 %v14351_v62  ;;  %v8619_v3 = vpop.f32.mrf.mxu0  ;;  %10468 = vmatprep.subr.bf16.mxu0 %v12979_v18  ;;  %v13095_v15 = vld [vmem:[#allocation7 + $0x784] ss:$16 sps:$4 sm:$0xff]   ;;  %v13004_v18 = vld [vmem:[#allocation7 + $0x5a0] ss:$16 sps:$4 sm:$0xff]  }
 0x501   :  { %v8620_v39 = vadd.f32 %v8619_v3, %v14342_v41  ;;  %10508 = vmatpush1.bf16.msra.mxu1 %v13034_v60  ;;  %v13052_v41 = vld [vmem:[#allocation7 + $0x680] ss:$16 sps:$4 sm:$0xff]   ;;  %v13009_v60 = vld [vmem:[#allocation7 + $0x584] ss:$16 sps:$4 sm:$0xff]  }
 0x502   :  { %v8621_v22 = vpop.f32.mrf.mxu0  ;;  %10509 = vmatprep.subr.bf16.mxu1 %v13042_v50  ;;  %v13101_v50 = vld [vmem:[#allocation7 + $0x764] ss:$16 sps:$4 sm:$0xff]   ;;  %v13099_v3 = vld [vmem:[#allocation7 + $0x760] ss:$16 sps:$4 sm:$0xff]  }
 0x503   :  { %10469 = vmatpush1.bf16.msra.mxu0 %v12977_v34  ;;  %v13012_v34 = vld [vmem:[#allocation7 + $0x564] ss:$16 sps:$4 sm:$0xff]   ;;  %v13105_v22 = vld [vmem:[#allocation7 + $0x740] ss:$16 sps:$4 sm:$0xff]  }
 0x504   :  { %v8622_v28 = vpop.f32.mrf.mxu0  ;;  %10470 = vmatprep.subr.bf16.mxu0 %v12982_v55  ;;  %v13107_v55 = vld [vmem:[#allocation7 + $0x744] ss:$16 sps:$4 sm:$0xff]  }
 0x505   :  { %10510 = vmatpush1.bf16.msra.mxu1 %v13040_v2  ;;  %v13015_v2 = vld [vmem:[#allocation7 + $0x544] ss:$16 sps:$4 sm:$0xff]  }
 0x506   :  { %10511 = vmatprep.subr.bf16.mxu1 %v13048_v25  ;;  %v13113_v25 = vld [vmem:[#allocation7 + $0x724] ss:$16 sps:$4 sm:$0xff]  }
 0x507   :  { %10471 = vmatpush1.bf16.msra.mxu0 %v12980_v30  ;;  %v13013_v30 = vld [vmem:[#allocation7 + $0x540] ss:$16 sps:$4 sm:$0xff]   ;;  %v13018_v28 = vld [vmem:[#allocation7 + $0x524] ss:$16 sps:$4 sm:$0xff]  }
 0x508   :  { %10472 = vmatprep.subr.bf16.mxu0 %v12985_v10  ;;  %v13111_v10 = vld [vmem:[#allocation7 + $0x720] ss:$16 sps:$4 sm:$0xff]  }
 0x509   :  { %10512 = vmatpush1.bf16.msra.mxu1 %v13046_v29  ;;  %v13119_v29 = vld [vmem:[#allocation7 + $0x704] ss:$16 sps:$4 sm:$0xff]  }
 0x50a   :  { %10513 = vmatprep.subr.bf16.mxu1 %v13054_v47  ;;  %v13016_v47 = vld [vmem:[#allocation7 + $0x520] ss:$16 sps:$4 sm:$0xff]  }
 0x50b   :  { %10473 = vmatpush1.bf16.msra.mxu0 %v12983_v20  ;;  %v13021_v20 = vld [vmem:[#allocation7 + $0x504] ss:$16 sps:$4 sm:$0xff]  }
 0x50c   :  { %10474 = vmatprep.subr.bf16.mxu0 %v12988_v26  ;;  %v13117_v26 = vld [vmem:[#allocation7 + $0x700] ss:$16 sps:$4 sm:$0xff]  }
 0x50d   :  { %10514 = vmatpush1.bf16.msra.mxu1 %v13052_v41  ;;  %v13125_v41 = vld [vmem:[#allocation7 + $0xec] ss:$16 sps:$4 sm:$0xff]  }
 0x50e   :  { %10515 = vmatprep.subr.bf16.mxu1 %v13060_v7  ;;  %v13019_v7 = vld [vmem:[#allocation7 + $0x500] ss:$16 sps:$4 sm:$0xff]  }
 0x50f   :  { %10475 = vmatpush1.bf16.msra.mxu0 %v12986_v4  ;;  %v8833_v4 = vmax.f32 %v14313_v54, 0.0  ;;  %v13030_v54 = vld [vmem:[#allocation7 + $0x2ac] ss:$16 sps:$4 sm:$0xff]  }
 0x510   :  { %10476 = vmatprep.subr.bf16.mxu0 %v12991_v37  ;;  %v13024_v37 = vld [vmem:[#allocation7 + $0x2ec] ss:$16 sps:$4 sm:$0xff]  }
 0x511   :  { %10516 = vmatpush1.bf16.msra.mxu1 %v13058_v5  ;;  %v13022_v5 = vld [vmem:[#allocation7 + $0x2e8] ss:$16 sps:$4 sm:$0xff]  }
 0x512   :  { %10517 = vmatprep.subr.bf16.mxu1 %v13066_v46  ;;  %v14365_v46 = vpack.c.bf16 %v8833_v4, %v8833_v4 }
 0x513   :  { %10477 = vmatpush1.bf16.msra.mxu0 %v12989_v63  ;;  %v13027_v63 = vld [vmem:[#allocation7 + $0x2cc] ss:$16 sps:$4 sm:$0xff]  }
 0x514   :  { %10478 = vmatprep.subr.bf16.mxu0 %v12994_v51 }
 0x515   :  { %10518 = vmatpush1.bf16.msra.mxu1 %v13064_v17  ;;  %v13025_v17 = vld [vmem:[#allocation7 + $0x2c8] ss:$16 sps:$4 sm:$0xff]  }
 0x516   :  { %10519 = vmatprep.subr.bf16.mxu1 %v13072_v31 }
 0x517   :  { %v8658_v58 = vpop.f32.mrf.mxu1  ;;  %10479 = vmatpush1.bf16.msra.mxu0 %v12992_v8 }
 0x518   :  { %v14358_v24 = vadd.f32 %v8658_v58, %v8618_v13  ;;  %10480 = vmatprep.subr.bf16.mxu0 %v12997_v1  ;;  %v13007_v13 = vld [vmem:[#allocation7 + $0x580] ss:$16 sps:$4 sm:$0xff]   ;;  %v13028_v1 = vld [vmem:[#allocation7 + $0x2a8] ss:$16 sps:$4 sm:$0xff]  }
 0x519   :  { %v8660_v14 = vpop.f32.mrf.mxu1  ;;  %10520 = vmatpush1.bf16.msra.mxu1 %v13070_v0  ;;  %v13031_v58 = vld [vmem:[#allocation7 + $0x288] ss:$16 sps:$4 sm:$0xff]  }
 0x51a   :  { %v14360_v23 = vadd.f32 %v8660_v14, %v8620_v39  ;;  %10521 = vmatprep.subr.bf16.mxu1 %v13078_v53  ;;  %v13010_v39 = vld [vmem:[#allocation7 + $0x560] ss:$16 sps:$4 sm:$0xff]   ;;  %v13033_v53 = vld [vmem:[#allocation7 + $0x28c] ss:$16 sps:$4 sm:$0xff]  }
 0x51b   :  { %v8662_v57 = vpop.f32.mrf.mxu1  ;;  %10481 = vmatpush1.bf16.msra.mxu0 %v12995_v33  ;;  %v13039_v33 = vld [vmem:[#allocation7 + $0x26c] ss:$16 sps:$4 sm:$0xff]  }
 0x51c   :  { %10482 = vmatprep.subr.bf16.mxu0 %v13000_v19  ;;  %v13045_v19 = vld [vmem:[#allocation7 + $0x24c] ss:$16 sps:$4 sm:$0xff]   ;;  %v13055_v57 = vld [vmem:[#allocation7 + $0x208] ss:$16 sps:$4 sm:$0xff]  }
 0x51d   :  { %v8663_v49 = vpop.f32.mrf.mxu1  ;;  %10522 = vmatpush1.bf16.msra.mxu1 %v13076_v44  ;;  %v13051_v14 = vld [vmem:[#allocation7 + $0x22c] ss:$16 sps:$4 sm:$0xff]   ;;  %v13049_v44 = vld [vmem:[#allocation7 + $0x228] ss:$16 sps:$4 sm:$0xff]  }
 0x51e   :  { %12757 = vmatprep.subr.msk.bf16.mxu1 %vm10371_vm2, %v12754_v35  ;;  %v13057_v35 = vld [vmem:[#allocation7 + $0x20c] ss:$16 sps:$4 sm:$0xff]  }
 0x51f   :  { %10483 = vmatpush2.bf16.msra.mxu0 %v12998_v42  ;;  %v13063_v42 = vld [vmem:[#allocation7 + $0x3ec] ss:$16 sps:$4 sm:$0xff]  }
 0x520   :  { %10484 = vmatprep.subr.bf16.mxu0 %v13003_v48 }
 0x521   :  { %10526 = vmatpush2.bf16.msra.mxu1 %v10373_v61  ;;  %v13061_v61 = vld [vmem:[#allocation7 + $0x3e8] ss:$16 sps:$4 sm:$0xff]  }
 0x522   :  { %10527 = vmatprep.subr.bf16.mxu1 %v13089_v11  ;;  %v13069_v11 = vld [vmem:[#allocation7 + $0x3cc] ss:$16 sps:$4 sm:$0xff]  }
 0x523   :  { %10485 = vmatpush2.bf16.msra.mxu0 %v13001_v27 }
 0x524   :  { %10486 = vmatprep.subr.bf16.mxu0 %v13006_v12  ;;  %v13067_v12 = vld [vmem:[#allocation7 + $0x3c8] ss:$16 sps:$4 sm:$0xff]  }
 0x525   :  { %10528 = vmatpush2.bf16.msra.mxu1 %v13087_v21  ;;  %v13075_v21 = vld [vmem:[#allocation7 + $0x3ac] ss:$16 sps:$4 sm:$0xff]  }
 0x526   :  { %10529 = vmatprep.subr.bf16.mxu1 %v13095_v15  ;;  %v13073_v15 = vld [vmem:[#allocation7 + $0x3a8] ss:$16 sps:$4 sm:$0xff]  }
 0x527   :  { %10487 = vmatpush2.bf16.msra.mxu0 %v13004_v18  ;;  %v13081_v18 = vld [vmem:[#allocation7 + $0x38c] ss:$16 sps:$4 sm:$0xff]  }
 0x528   :  { %10488 = vmatprep.subr.bf16.mxu0 %v13009_v60  ;;  %v13079_v60 = vld [vmem:[#allocation7 + $0x388] ss:$16 sps:$4 sm:$0xff]  }
 0x529   :  { %10530 = vmatpush2.bf16.msra.mxu1 %v13093_v16  ;;  %v13086_v16 = vld [vmem:[#allocation7 + $0x36c] ss:$16 sps:$4 sm:$0xff]  }
 0x52a   :  { %10531 = vmatprep.subr.bf16.mxu1 %v13101_v50  ;;  %v13084_v50 = vld [vmem:[#allocation7 + $0x368] ss:$16 sps:$4 sm:$0xff]  }
 0x52b   :  { %10489 = vmatpush2.bf16.msra.mxu0 %v13007_v13  ;;  %v13092_v13 = vld [vmem:[#allocation7 + $0x34c] ss:$16 sps:$4 sm:$0xff]  }
 0x52c   :  { %10490 = vmatprep.subr.bf16.mxu0 %v13012_v34  ;;  %v13090_v34 = vld [vmem:[#allocation7 + $0x348] ss:$16 sps:$4 sm:$0xff]  }
 0x52d   :  { %10532 = vmatpush2.bf16.msra.mxu1 %v13099_v3  ;;  %v13098_v3 = vld [vmem:[#allocation7 + $0x32c] ss:$16 sps:$4 sm:$0xff]  }
 0x52e   :  { %10533 = vmatprep.subr.bf16.mxu1 %v13107_v55  ;;  %v13096_v55 = vld [vmem:[#allocation7 + $0x328] ss:$16 sps:$4 sm:$0xff]  }
 0x52f   :  { %10491 = vmatpush2.bf16.msra.mxu0 %v13010_v39  ;;  %v13104_v39 = vld [vmem:[#allocation7 + $0x30c] ss:$16 sps:$4 sm:$0xff]  }
 0x530   :  { %10492 = vmatprep.subr.bf16.mxu0 %v13015_v2  ;;  %v13102_v2 = vld [vmem:[#allocation7 + $0x308] ss:$16 sps:$4 sm:$0xff]  }
 0x531   :  { %10534 = vmatpush2.bf16.msra.mxu1 %v13105_v22  ;;  %v13110_v22 = vld [vmem:[#allocation7 + $0x6ec] ss:$16 sps:$4 sm:$0xff]  }
 0x532   :  { %10535 = vmatprep.subr.bf16.mxu1 %v13113_v25 }
 0x533   :  { %10493 = vmatpush2.bf16.msra.mxu0 %v13013_v30  ;;  %v13108_v30 = vld [vmem:[#allocation7 + $0x6e8] ss:$16 sps:$4 sm:$0xff]  }
 0x534   :  { %10494 = vmatprep.subr.bf16.mxu0 %v13018_v28  ;;  %v13116_v28 = vld [vmem:[#allocation7 + $0x6cc] ss:$16 sps:$4 sm:$0xff]  }
 0x535   :  { %10536 = vmatpush2.bf16.msra.mxu1 %v13111_v10 }
 0x536   :  { %10537 = vmatprep.subr.bf16.mxu1 %v13119_v29 }
 0x537   :  { %10495 = vmatpush2.bf16.msra.mxu0 %v13016_v47 }
 0x538   :  { %10496 = vmatprep.subr.bf16.mxu0 %v13021_v20 }
 0x539   :  { %10538 = vmatpush2.bf16.msra.mxu1 %v13117_v26 }
 0x53a   :  { %10548 = vmatprep.subr.bf16.mxu1 %v13125_v41 }
 0x53b   :  { %10497 = vmatpush2.bf16.msra.mxu0 %v13019_v7  ;;  %v13114_v7 = vld [vmem:[#allocation7 + $0x6c8] ss:$16 sps:$4 sm:$0xff]  }
 0x53c   :  { %10589 = vmatprep.subr.bf16.mxu0 %v13024_v37  ;;  %v13122_v37 = vld [vmem:[#allocation7 + $0x6ac] ss:$16 sps:$4 sm:$0xff]  }
 0x53e   :  { %v14367_v51 = vpop.f32.mrf.mxu0  ;;  %10499 = vmatmul.mubr.bf16.vlgmr.msra.gmra.mxu0 %v14365_v46 }
 0x53f   :  { %10590 = vmatpush1.bf16.msra.mxu0 %v13022_v5  ;;  %10621 = vmatprep.mubr.bf16.mxu0 %v14334_v32  ;;  %v13043_v32 = vld [vmem:[#allocation7 + $0x248] ss:$16 sps:$4 sm:$0xff]   ;;  %v8700_v25 = vadd.f32 %v14367_v51, %v14358_v24 }
 0x540   :  { %v14371_v31 = vpop.f32.mrf.mxu0  ;;  %10591 = vmatprep.subr.bf16.mxu0 %v13027_v63 }
 0x541   :  { %v8702_v10 = vadd.f32 %v14371_v31, %v14360_v23  ;;  %v13120_v23 = vld [vmem:[#allocation7 + $0x6a8] ss:$16 sps:$4 sm:$0xff]  }
 0x542   :  { %v8703_v8 = vpop.f32.mrf.mxu0 }
 0x543   :  { %10592 = vmatpush1.bf16.msra.mxu0 %v13025_v17 }
 0x544   :  { %v8704_v0 = vpop.f32.mrf.mxu0  ;;  %10593 = vmatprep.subr.bf16.mxu0 %v13030_v54 }
 0x547   :  { %10594 = vmatpush1.bf16.msra.mxu0 %v13028_v1 }
 0x548   :  { %10595 = vmatprep.subr.bf16.mxu0 %v13033_v53 }
 0x54b   :  { %10596 = vmatpush1.bf16.msra.mxu0 %v13031_v58  ;;  %v13123_v58 = vld [vmem:[#allocation7 + $0xe8] ss:$16 sps:$4 sm:$0xff]  }
 0x54c   :  { %10597 = vmatprep.subr.bf16.mxu0 %v13039_v33 }
 0x54f   :  { %10598 = vmatpush1.bf16.msra.mxu0 %v13037_v40  ;;  %v13126_v40 = vld [vmem:[#allocation7 + $0x688] ss:$16 sps:$4 sm:$0xff]  }
 0x550   :  { %10599 = vmatprep.subr.bf16.mxu0 %v13045_v19  ;;  %v13131_v19 = vld [vmem:[#allocation7 + $0xcc] ss:$16 sps:$4 sm:$0xff]  }
 0x553   :  { %10600 = vmatpush1.bf16.msra.mxu0 %v13043_v32  ;;  %v13134_v32 = vld [vmem:[#allocation7 + $0x66c] ss:$16 sps:$4 sm:$0xff]  }
 0x554   :  { %10601 = vmatprep.subr.bf16.mxu0 %v13051_v14  ;;  %v13129_v14 = vld [vmem:[#allocation7 + $0xc8] ss:$16 sps:$4 sm:$0xff]  }
 0x557   :  { %v8740_v43 = vpop.f32.mrf.mxu1  ;;  %10602 = vmatpush1.bf16.msra.mxu0 %v13049_v44  ;;  %v13132_v44 = vld [vmem:[#allocation7 + $0x668] ss:$16 sps:$4 sm:$0xff]  }
 0x558   :  { %10603 = vmatprep.subr.bf16.mxu0 %v13057_v35  ;;  %v8741_v29 = vadd.f32 %v8740_v43, %v8700_v25  ;;  %v13137_v35 = vld [vmem:[#allocation7 + $0xac] ss:$16 sps:$4 sm:$0xff]   ;;  %v13164_v25 = vld [vmem:[#allocation7 + $0x8] ss:$16 sps:$4 sm:$0xff]  }
 0x559   :  { %v8742_v48 = vpop.f32.mrf.mxu1  ;;  %v13140_v43 = vld [vmem:[#allocation7 + $0x64c] ss:$16 sps:$4 sm:$0xff]  }
 0x55a   :  { %v8743_v20 = vadd.f32 %v8742_v48, %v8702_v10  ;;  %v13143_v48 = vld [vmem:[#allocation7 + $0x8c] ss:$16 sps:$4 sm:$0xff]  }
 0x55b   :  { %v8744_v49 = vpop.f32.mrf.mxu1  ;;  %10604 = vmatpush1.bf16.msra.mxu0 %v13055_v57  ;;  %v13135_v57 = vld [vmem:[#allocation7 + $0xa8] ss:$16 sps:$4 sm:$0xff]   ;;  %v13175_v10 = vld [vmem:[#allocation7 + $0x76c] ss:$16 sps:$4 sm:$0xff]  }
 0x55c   :  { %10605 = vmatprep.subr.bf16.mxu0 %v13063_v42  ;;  %v13138_v42 = vld [vmem:[#allocation7 + $0x648] ss:$16 sps:$4 sm:$0xff]   ;;  %v13146_v49 = vld [vmem:[#allocation7 + $0x62c] ss:$16 sps:$4 sm:$0xff]  }
 0x55d   :  { %v8745_v27 = vpop.f32.mrf.mxu1 }
 0x55e   :  { %v13152_v27 = vld [vmem:[#allocation7 + $0x60c] ss:$16 sps:$4 sm:$0xff]  }
 0x55f   :  { %10606 = vmatpush2.bf16.msra.mxu0 %v13061_v61  ;;  %v13141_v61 = vld [vmem:[#allocation7 + $0x88] ss:$16 sps:$4 sm:$0xff]  }
 0x560   :  { %10607 = vmatprep.subr.bf16.mxu0 %v13069_v11  ;;  %v13149_v11 = vld [vmem:[#allocation7 + $0x6c] ss:$16 sps:$4 sm:$0xff]  }
 0x563   :  { %10608 = vmatpush2.bf16.msra.mxu0 %v13067_v12  ;;  %v9094_v12 = vld [vmem:[#allocation7 + $0x7c8] sm:$0xff] }
 0x564   :  { %10609 = vmatprep.subr.bf16.mxu0 %v13075_v21  ;;  %v13147_v21 = vld [vmem:[#allocation7 + $0x68] ss:$16 sps:$4 sm:$0xff]  }
 0x567   :  { %10610 = vmatpush2.bf16.msra.mxu0 %v13073_v15  ;;  %v13150_v15 = vld [vmem:[#allocation7 + $0x608] ss:$16 sps:$4 sm:$0xff]  }
 0x568   :  { %10611 = vmatprep.subr.bf16.mxu0 %v13081_v18  ;;  %v13155_v18 = vld [vmem:[#allocation7 + $0x4c] ss:$16 sps:$4 sm:$0xff]  }
 0x56b   :  { %10612 = vmatpush2.bf16.msra.mxu0 %v13079_v60  ;;  %v12756_v60 = vcombine.high %v9094_v12, %v9094_v12 }
 0x56c   :  { %10613 = vmatprep.subr.bf16.mxu0 %v13086_v16  ;;  %v12755_v16 = vcombine.low %v9094_v12, %v9094_v12 }
 0x56f   :  { %10614 = vmatpush2.bf16.msra.mxu0 %v13084_v50  ;;  %v13153_v50 = vld [vmem:[#allocation7 + $0x48] ss:$16 sps:$4 sm:$0xff]  }
 0x570   :  { %10615 = vmatprep.subr.bf16.mxu0 %v13092_v13  ;;  %v13160_v13 = vld [vmem:[#allocation7 + $0x2c] ss:$16 sps:$4 sm:$0xff]  }
 0x573   :  { %10616 = vmatpush2.bf16.msra.mxu0 %v13090_v34  ;;  %v10379_v34 = vsel %vm10371_vm2, %v12755_v16, 0  ;;  %v13208_v16 = vld [vmem:[#allocation7 + $0x4ec] ss:$16 sps:$4 sm:$0xff]  }
 0x574   :  { %10617 = vmatprep.subr.bf16.mxu0 %v13098_v3  ;;  %v13163_v3 = vld [vmem:[#allocation7 + $0x7ac] ss:$16 sps:$4 sm:$0xff]  }
 0x577   :  { %10618 = vmatpush2.bf16.msra.mxu0 %v13096_v55  ;;  %v13158_v55 = vld [vmem:[#allocation7 + $0x28] ss:$16 sps:$4 sm:$0xff]  }
 0x578   :  { %10619 = vmatprep.subr.bf16.mxu0 %v13104_v39  ;;  %v13161_v39 = vld [vmem:[#allocation7 + $0x7a8] ss:$16 sps:$4 sm:$0xff]  }
 0x57b   :  { %10620 = vmatpush2.bf16.msra.mxu0 %v13102_v2  ;;  %v13166_v2 = vld [vmem:[#allocation7 + $0xc] ss:$16 sps:$4 sm:$0xff]  }
 0x57c   :  { %10671 = vmatprep.subr.bf16.mxu0 %v13110_v22  ;;  %v13169_v22 = vld [vmem:[#allocation7 + $0x78c] ss:$16 sps:$4 sm:$0xff]  }
 0x57e   :  { %v8781_v47 = vpop.f32.mrf.mxu0  ;;  %10622 = vmatmul.mubr.bf16.vlgmr.msra.gmra.mxu0 %v14349_v6  ;;  %v13128_v6 = vld [vmem:[#allocation7 + $0x68c] ss:$16 sps:$4 sm:$0xff]  }
 0x57f   :  { %v8782_v26 = vadd.f32 %v8781_v47, %v8741_v29  ;;  %v8822_v41 = vpop.f32.mrf.mxu1  ;;  %10672 = vmatpush1.bf16.msra.mxu0 %v13108_v30  ;;  %v13167_v30 = vld [vmem:[#allocation7 + $0x788] ss:$16 sps:$4 sm:$0xff]  }
 0x580   :  { %v8783_v4 = vpop.f32.mrf.mxu0  ;;  %10673 = vmatprep.subr.bf16.mxu0 %v13116_v28  ;;  %v13172_v28 = vld [vmem:[#allocation7 + $0x1ec] ss:$16 sps:$4 sm:$0xff]   ;;  %v13170_v29 = vld [vmem:[#allocation7 + $0x1e8] ss:$16 sps:$4 sm:$0xff]  }
 0x581   :  { %v8823_v24 = vadd.f32 %v8822_v41, %v8782_v26  ;;  %v8784_v5 = vadd.f32 %v8783_v4, %v8743_v20  ;;  %v8824_v63 = vpop.f32.mrf.mxu1  ;;  %v13173_v47 = vld [vmem:[#allocation7 + $0x768] ss:$16 sps:$4 sm:$0xff]   ;;  %v13178_v20 = vld [vmem:[#allocation7 + $0x1cc] ss:$16 sps:$4 sm:$0xff]  }
 0x582   :  { %v8785_v51 = vpop.f32.mrf.mxu0  ;;  %v13181_v26 = vld [vmem:[#allocation7 + $0x74c] ss:$16 sps:$4 sm:$0xff]   ;;  %v13176_v41 = vld [vmem:[#allocation7 + $0x1c8] ss:$16 sps:$4 sm:$0xff]  }
 0x583   :  { %v8825_v17 = vadd.f32 %v8824_v63, %v8784_v5  ;;  %v8826_v54 = vpop.f32.mrf.mxu1  ;;  %10674 = vmatpush1.bf16.msra.mxu0 %v13114_v7  ;;  %v8835_v31 = vmax.f32 %v8823_v24, 0.0  ;;  %v13179_v7 = vld [vmem:[#allocation7 + $0x748] ss:$16 sps:$4 sm:$0xff]   ;;  %v13184_v4 = vld [vmem:[#allocation7 + $0x1ac] ss:$16 sps:$4 sm:$0xff]  }
 0x584   :  { %v8786_v8 = vpop.f32.mrf.mxu0  ;;  %10675 = vmatprep.subr.bf16.mxu0 %v13122_v37  ;;  %v13187_v37 = vld [vmem:[#allocation7 + $0x72c] ss:$16 sps:$4 sm:$0xff]   ;;  %v13182_v24 = vld [vmem:[#allocation7 + $0x1a8] ss:$16 sps:$4 sm:$0xff]  }
 0x585   :  { %v8836_v1 = vmax.f32 %v8825_v17, 0.0  ;;  %v8827_v0 = vpop.f32.mrf.mxu1  ;;  %v14378_v33 = vpack.c.bf16 %v8835_v31, %v8835_v31  ;;  %v13185_v5 = vld [vmem:[#allocation7 + $0x728] ss:$16 sps:$4 sm:$0xff]   ;;  %v13190_v63 = vld [vmem:[#allocation7 + $0x18c] ss:$16 sps:$4 sm:$0xff]  }
 0x586   :  { %v13193_v51 = vld [vmem:[#allocation7 + $0x70c] ss:$16 sps:$4 sm:$0xff]   ;;  %v13188_v17 = vld [vmem:[#allocation7 + $0x188] ss:$16 sps:$4 sm:$0xff]  }
 0x587   :  { %v8844_v53 = vpack.c.bf16 %v8836_v1, %v8836_v1  ;;  %10676 = vmatpush1.bf16.msra.mxu0 %v13120_v23  ;;  %v13191_v54 = vld [vmem:[#allocation7 + $0x708] ss:$16 sps:$4 sm:$0xff]   ;;  %v13196_v23 = vld [vmem:[#allocation7 + $0x16c] ss:$16 sps:$4 sm:$0xff]   ;;  %v14384_v1 = vld [vmem:[#allocation8] sm:$0xf] }
 0x588   :  { %10677 = vmatprep.subr.bf16.mxu0 %v13128_v6  ;;  %v13256_v31 = vld [vmem:[#allocation10 + $0x74] ss:$8 sps:$4 sm:$0xff]   ;;  %v13199_v6 = vld [vmem:[#allocation7 + $0x14c] ss:$16 sps:$4 sm:$0xff]  }
 0x589   :  { %12758 = vmatprep.mubr.msk.bf16.mxu1 %vm10367_vm3, %v8844_v53  ;;  %12760 = vmatprep.mubr.msk.bf16.mxu0 %vm10367_vm3, %v8844_v53  ;;  %v13194_v8 = vld [vmem:[#allocation7 + $0x168] ss:$16 sps:$4 sm:$0xff]   ;;  %v13254_v0 = vld [vmem:[#allocation10 + $0x70] ss:$8 sps:$4 sm:$0xff]  }
 0x58a   :  { %10540 = vmatmul.mubr.bf16.vlgmr.msra.gmra.mxu1 %v14378_v33  ;;  %v13259_v53 = vld [vmem:[#allocation10 + $0x64] ss:$8 sps:$4 sm:$0xff]  }
 0x58b   :  { %10549 = vmatpush1.bf16.msra.mxu1 %v13123_v58  ;;  %10580 = vmatprep.mubr.bf16.mxu1 %v14331_v38  ;;  %v13144_v38 = vld [vmem:[#allocation7 + $0x628] ss:$16 sps:$4 sm:$0xff]  }
 0x58c   :  { %10678 = vmatpush1.bf16.msra.mxu0 %v13126_v40  ;;  %10550 = vmatprep.subr.bf16.mxu1 %v13131_v19  ;;  %v13197_v58 = vld [vmem:[#allocation7 + $0x148] ss:$16 sps:$4 sm:$0xff]   ;;  %v9100_v40 = vrot.slane %v14384_v1, %v14133_v45  ;;  %v13202_v19 = vld [vmem:[#allocation7 + $0x12c] ss:$16 sps:$4 sm:$0xff]  }
 0x58d   :  { %10679 = vmatprep.subr.bf16.mxu0 %v13134_v32  ;;  %v13257_v32 = vld [vmem:[#allocation10 + $0x60] ss:$8 sps:$4 sm:$0xff]  }
 0x58f   :  { %10551 = vmatpush1.bf16.msra.mxu1 %v13129_v14  ;;  %v9104_v14 = vrot.slane %v14384_v1, %v14138_v9 }
 0x590   :  { %10680 = vmatpush1.bf16.msra.mxu0 %v13132_v44  ;;  %10552 = vmatprep.subr.bf16.mxu1 %v13137_v35  ;;  %v13262_v44 = vld [vmem:[#allocation10 + $0x54] ss:$8 sps:$4 sm:$0xff]  }
 0x591   :  { %10681 = vmatprep.subr.bf16.mxu0 %v13140_v43 }
 0x593   :  { %10553 = vmatpush1.bf16.msra.mxu1 %v13135_v57 }
 0x594   :  { %10682 = vmatpush1.bf16.msra.mxu0 %v13138_v42  ;;  %10554 = vmatprep.subr.bf16.mxu1 %v13143_v48  ;;  %v13200_v42 = vld [vmem:[#allocation7 + $0x128] ss:$16 sps:$4 sm:$0xff]  }
 0x595   :  { %10683 = vmatprep.subr.bf16.mxu0 %v13146_v49  ;;  %v13260_v49 = vld [vmem:[#allocation10 + $0x50] ss:$8 sps:$4 sm:$0xff]  }
 0x597   :  { %10555 = vmatpush1.bf16.msra.mxu1 %v13141_v61 }
 0x598   :  { %10684 = vmatpush1.bf16.msra.mxu0 %v13144_v38  ;;  %10556 = vmatprep.subr.bf16.mxu1 %v13149_v11 }
 0x599   :  { %10685 = vmatprep.subr.bf16.mxu0 %v13152_v27  ;;  %v13265_v27 = vld [vmem:[#allocation10 + $0x44] ss:$8 sps:$4 sm:$0xff]  }
 0x59b   :  { %10557 = vmatpush1.bf16.msra.mxu1 %v13147_v21 }
 0x59c   :  { %10686 = vmatpush1.bf16.msra.mxu0 %v13150_v15  ;;  %10558 = vmatprep.subr.bf16.mxu1 %v13155_v18  ;;  %v13203_v18 = vld [vmem:[#allocation7 + $0x108] ss:$16 sps:$4 sm:$0xff]  }
 0x59d   :  { %12759 = vmatprep.subr.msk.bf16.mxu0 %vm10371_vm2, %v12756_v60 }
 0x59f   :  { %10559 = vmatpush1.bf16.msra.mxu1 %v13153_v50  ;;  %v13263_v50 = vld [vmem:[#allocation10 + $0x40] ss:$8 sps:$4 sm:$0xff]  }
 0x5a0   :  { %10690 = vmatpush2.bf16.msra.mxu0 %v10379_v34  ;;  %10560 = vmatprep.subr.bf16.mxu1 %v13160_v13  ;;  %v13268_v34 = vld [vmem:[#allocation10 + $0x34] ss:$8 sps:$4 sm:$0xff]  }
 0x5a1   :  { %10691 = vmatprep.subr.bf16.mxu0 %v13163_v3  ;;  %v13206_v3 = vld [vmem:[#allocation7 + $0x4e8] ss:$16 sps:$4 sm:$0xff]  }
 0x5a3   :  { %10561 = vmatpush1.bf16.msra.mxu1 %v13158_v55  ;;  %v13211_v55 = vld [vmem:[#allocation7 + $0x4cc] ss:$16 sps:$4 sm:$0xff]  }
 0x5a4   :  { %10692 = vmatpush2.bf16.msra.mxu0 %v13161_v39  ;;  %10562 = vmatprep.subr.bf16.mxu1 %v13166_v2  ;;  %v13266_v39 = vld [vmem:[#allocation10 + $0x30] ss:$8 sps:$4 sm:$0xff]   ;;  %v13271_v2 = vld [vmem:[#allocation10 + $0x24] ss:$8 sps:$4 sm:$0xff]  }
 0x5a5   :  { %10693 = vmatprep.subr.bf16.mxu0 %v13169_v22  ;;  %v13209_v22 = vld [vmem:[#allocation7 + $0x4c8] ss:$16 sps:$4 sm:$0xff]  }
 0x5a7   :  { %10563 = vmatpush1.bf16.msra.mxu1 %v13164_v25  ;;  %v13214_v25 = vld [vmem:[#allocation7 + $0x4ac] ss:$16 sps:$4 sm:$0xff]  }
 0x5a8   :  { %10694 = vmatpush2.bf16.msra.mxu0 %v13167_v30  ;;  %10564 = vmatprep.subr.bf16.mxu1 %v13172_v28  ;;  %v13269_v30 = vld [vmem:[#allocation10 + $0x20] ss:$8 sps:$4 sm:$0xff]   ;;  %v13274_v28 = vld [vmem:[#allocation10 + $0x14] ss:$8 sps:$4 sm:$0xff]  }
 0x5a9   :  { %10695 = vmatprep.subr.bf16.mxu0 %v13175_v10  ;;  %v13212_v10 = vld [vmem:[#allocation7 + $0x4a8] ss:$16 sps:$4 sm:$0xff]  }
 0x5ab   :  { %10565 = vmatpush2.bf16.msra.mxu1 %v13170_v29  ;;  %v13217_v29 = vld [vmem:[#allocation7 + $0x48c] ss:$16 sps:$4 sm:$0xff]  }
 0x5ac   :  { %10696 = vmatpush2.bf16.msra.mxu0 %v13173_v47  ;;  %10566 = vmatprep.subr.bf16.mxu1 %v13178_v20  ;;  %v13272_v47 = vld [vmem:[#allocation10 + $0x10] ss:$8 sps:$4 sm:$0xff]   ;;  %v13277_v20 = vld [vmem:[#allocation10 + $0x4] ss:$8 sps:$4 sm:$0xff]  }
 0x5ad   :  { %10697 = vmatprep.subr.bf16.mxu0 %v13181_v26  ;;  %v13220_v26 = vld [vmem:[#allocation7 + $0x46c] ss:$16 sps:$4 sm:$0xff]  }
 0x5af   :  { %10567 = vmatpush2.bf16.msra.mxu1 %v13176_v41  ;;  %v13280_v41 = vld [vmem:[#allocation10 + $0xf4] ss:$8 sps:$4 sm:$0xff]  }
 0x5b0   :  { %10698 = vmatpush2.bf16.msra.mxu0 %v13179_v7  ;;  %10568 = vmatprep.subr.bf16.mxu1 %v13184_v4  ;;  %v13218_v7 = vld [vmem:[#allocation7 + $0x468] ss:$16 sps:$4 sm:$0xff]   ;;  %v13223_v4 = vld [vmem:[#allocation7 + $0x44c] ss:$16 sps:$4 sm:$0xff]  }
 0x5b1   :  { %10699 = vmatprep.subr.bf16.mxu0 %v13187_v37  ;;  %v13278_v37 = vld [vmem:[#allocation10 + $0xf0] ss:$8 sps:$4 sm:$0xff]  }
 0x5b3   :  { %10569 = vmatpush2.bf16.msra.mxu1 %v13182_v24  ;;  %v13283_v24 = vld [vmem:[#allocation10 + $0xe4] ss:$8 sps:$4 sm:$0xff]  }
 0x5b4   :  { %10700 = vmatpush2.bf16.msra.mxu0 %v13185_v5  ;;  %10570 = vmatprep.subr.bf16.mxu1 %v13190_v63  ;;  %v13221_v5 = vld [vmem:[#allocation7 + $0x448] ss:$16 sps:$4 sm:$0xff]   ;;  %v13226_v63 = vld [vmem:[#allocation7 + $0x42c] ss:$16 sps:$4 sm:$0xff]  }
 0x5b5   :  { %10701 = vmatprep.subr.bf16.mxu0 %v13193_v51  ;;  %v13281_v51 = vld [vmem:[#allocation10 + $0xe0] ss:$8 sps:$4 sm:$0xff]  }
 0x5b7   :  { %10571 = vmatpush2.bf16.msra.mxu1 %v13188_v17  ;;  %v13286_v17 = vld [vmem:[#allocation10 + $0xd4] ss:$8 sps:$4 sm:$0xff]  }
 0x5b8   :  { %10702 = vmatpush2.bf16.msra.mxu0 %v13191_v54  ;;  %10572 = vmatprep.subr.bf16.mxu1 %v13196_v23  ;;  %v13224_v54 = vld [vmem:[#allocation7 + $0x428] ss:$16 sps:$4 sm:$0xff]   ;;  %v13229_v23 = vld [vmem:[#allocation7 + $0x40c] ss:$16 sps:$4 sm:$0xff]  }
 0x5b9   :  { %11116 = vmatprep.subr.bf16.mxu0 %v13256_v31  ;;  %v13284_v31 = vld [vmem:[#allocation10 + $0xd0] ss:$8 sps:$4 sm:$0xff]  }
 0x5bb   :  { %10573 = vmatpush2.bf16.msra.mxu1 %v13194_v8  ;;  %10704 = vmatmul.mubr.bf16.vlgmr.msra.gmra.mxu0 %v14378_v33  ;;  %v13205_v33 = vld [vmem:[#allocation7 + $0x10c] ss:$16 sps:$4 sm:$0xff]   ;;  %v13289_v8 = vld [vmem:[#allocation10 + $0xc4] ss:$8 sps:$4 sm:$0xff]  }
 0x5bc   :  { %10574 = vmatprep.subr.bf16.mxu1 %v13199_v6  ;;  %11117 = vmatpush1.bf16.msra.mxu0 %v13254_v0  ;;  %v13227_v6 = vld [vmem:[#allocation7 + $0x408] ss:$16 sps:$4 sm:$0xff]   ;;  %v13232_v0 = vld [vmem:[#allocation7 + $0x5ec] ss:$16 sps:$4 sm:$0xff]  }
 0x5bd   :  { %11118 = vmatprep.subr.bf16.mxu0 %v13259_v53  ;;  %v13287_v53 = vld [vmem:[#allocation10 + $0xc0] ss:$8 sps:$4 sm:$0xff]  }
 0x5be   :  { %v10418_v35 = vpop.f32.mrf.mxu0 }
 0x5bf   :  { %v10419_v43 = vadd.f32 %v10418_v35, %v9100_v40  ;;  %v10459_v57 = vpop.f32.mrf.mxu1  ;;  %10575 = vmatpush2.bf16.msra.mxu1 %v13197_v58  ;;  %v13292_v58 = vld [vmem:[#allocation10 + $0xb4] ss:$8 sps:$4 sm:$0xff]   ;;  %v13238_v35 = vld [vmem:[#allocation7 + $0x5ac] ss:$16 sps:$4 sm:$0xff]  }
 0x5c0   :  { %v10420_v48 = vpop.f32.mrf.mxu0  ;;  %10576 = vmatprep.subr.bf16.mxu1 %v13202_v19  ;;  %11119 = vmatpush1.bf16.msra.mxu0 %v13257_v32  ;;  %v13230_v40 = vld [vmem:[#allocation7 + $0x5e8] ss:$16 sps:$4 sm:$0xff]   ;;  %v13235_v19 = vld [vmem:[#allocation7 + $0x5cc] ss:$16 sps:$4 sm:$0xff]  }
 0x5c1   :  { %v14391_v61 = vadd.f32 %v10459_v57, %v10419_v43  ;;  %v10421_v38 = vadd.f32 %v10420_v48, %v9104_v14  ;;  %v10461_v11 = vpop.f32.mrf.mxu1  ;;  %11120 = vmatprep.subr.bf16.mxu0 %v13262_v44  ;;  %v13290_v32 = vld [vmem:[#allocation10 + $0xb0] ss:$8 sps:$4 sm:$0xff]   ;;  %v13295_v14 = vld [vmem:[#allocation10 + $0xa4] ss:$8 sps:$4 sm:$0xff]   ;;  %v13293_v43 = vld [vmem:[#allocation10 + $0xa0] ss:$8 sps:$4 sm:$0xff]  }
 0x5c2   :  { %v10422_v12 = vpop.f32.mrf.mxu0  ;;  %v13233_v44 = vld [vmem:[#allocation7 + $0x5c8] ss:$16 sps:$4 sm:$0xff]   ;;  %v13241_v48 = vld [vmem:[#allocation7 + $0x58c] ss:$16 sps:$4 sm:$0xff]  }
 0x5c3   :  { %v14393_v21 = vadd.f32 %v10461_v11, %v10421_v38  ;;  %v10463_v15 = vpop.f32.mrf.mxu1  ;;  %10577 = vmatpush2.bf16.msra.mxu1 %v13200_v42  ;;  %v13298_v57 = vld [vmem:[#allocation10 + $0x94] ss:$8 sps:$4 sm:$0xff]   ;;  %v13244_v11 = vld [vmem:[#allocation7 + $0x56c] ss:$16 sps:$4 sm:$0xff]  }
 0x5c4   :  { %v10423_v60 = vpop.f32.mrf.mxu0  ;;  %10578 = vmatprep.subr.bf16.mxu1 %v13205_v33  ;;  %11121 = vmatpush1.bf16.msra.mxu0 %v13260_v49  ;;  %v13236_v42 = vld [vmem:[#allocation7 + $0x5a8] ss:$16 sps:$4 sm:$0xff]   ;;  %v13296_v33 = vld [vmem:[#allocation10 + $0x90] ss:$8 sps:$4 sm:$0xff]  }
 0x5c5   :  { %v10464_v13 = vpop.f32.mrf.mxu1  ;;  %11122 = vmatprep.subr.bf16.mxu0 %v13265_v27  ;;  %v13301_v49 = vld [vmem:[#allocation10 + $0x84] ss:$8 sps:$4 sm:$0xff]   ;;  %v13299_v27 = vld [vmem:[#allocation10 + $0x80] ss:$8 sps:$4 sm:$0xff]  }
 0x5c6   :  { %v13239_v38 = vld [vmem:[#allocation7 + $0x588] ss:$16 sps:$4 sm:$0xff]   ;;  %v13247_v15 = vld [vmem:[#allocation7 + $0x54c] ss:$16 sps:$4 sm:$0xff]  }
 0x5c7   :  { %10579 = vmatpush2.bf16.msra.mxu1 %v13203_v18  ;;  %v13242_v12 = vld [vmem:[#allocation7 + $0x568] ss:$16 sps:$4 sm:$0xff]   ;;  %v13250_v60 = vld [vmem:[#allocation7 + $0x52c] ss:$16 sps:$4 sm:$0xff]  }
 0x5c8   :  { %10630 = vmatprep.subr.bf16.mxu1 %v13208_v16  ;;  %11123 = vmatpush1.bf16.msra.mxu0 %v13263_v50  ;;  %v13245_v18 = vld [vmem:[#allocation7 + $0x548] ss:$16 sps:$4 sm:$0xff]  }
 0x5c9   :  { %11124 = vmatprep.subr.bf16.mxu0 %v13268_v34  ;;  %v13248_v13 = vld [vmem:[#allocation7 + $0x528] ss:$16 sps:$4 sm:$0xff]  }
 0x5ca   :  { %10581 = vmatmul.mubr.bf16.vlgmr.msra.gmra.mxu1 %v14347_v36  ;;  %v13215_v36 = vld [vmem:[#allocation7 + $0x488] ss:$16 sps:$4 sm:$0xff]  }
 0x5cb   :  { %10631 = vmatpush1.bf16.msra.mxu1 %v13206_v3  ;;  %10662 = vmatprep.mubr.bf16.mxu1 %v14351_v62  ;;  %v13275_v62 = vld [vmem:[#allocation10] ss:$8 sps:$4 sm:$0xff]  }
 0x5cc   :  { %10632 = vmatprep.subr.bf16.mxu1 %v13211_v55  ;;  %11125 = vmatpush1.bf16.msra.mxu0 %v13266_v39  ;;  %v13253_v3 = vld [vmem:[#allocation7 + $0x50c] ss:$16 sps:$4 sm:$0xff]  }
 0x5cd   :  { %11126 = vmatprep.subr.bf16.mxu0 %v13271_v2  ;;  %v13251_v2 = vld [vmem:[#allocation7 + $0x508] ss:$16 sps:$4 sm:$0xff]  }
 0x5cf   :  { %10633 = vmatpush1.bf16.msra.mxu1 %v13209_v22 }
 0x5d0   :  { %10634 = vmatprep.subr.bf16.mxu1 %v13214_v25  ;;  %11127 = vmatpush1.bf16.msra.mxu0 %v13269_v30  ;;  %v13302_v25 = vld [vmem:[#allocation10 + $0x170] ss:$8 sps:$4 sm:$0xff]   ;;  %v13304_v30 = vld [vmem:[#allocation10 + $0x174] ss:$8 sps:$4 sm:$0xff]  }
 0x5d1   :  { %11128 = vmatprep.subr.bf16.mxu0 %v13274_v28  ;;  %v13305_v28 = vld [vmem:[#allocation10 + $0x160] ss:$8 sps:$4 sm:$0xff]  }
 0x5d3   :  { %10635 = vmatpush1.bf16.msra.mxu1 %v13212_v10  ;;  %v13310_v10 = vld [vmem:[#allocation10 + $0x154] ss:$8 sps:$4 sm:$0xff]  }
 0x5d4   :  { %10636 = vmatprep.subr.bf16.mxu1 %v13217_v29  ;;  %11129 = vmatpush1.bf16.msra.mxu0 %v13272_v47  ;;  %v13308_v29 = vld [vmem:[#allocation10 + $0x150] ss:$8 sps:$4 sm:$0xff]   ;;  %v13311_v47 = vld [vmem:[#allocation10 + $0x140] ss:$8 sps:$4 sm:$0xff]  }
 0x5d5   :  { %11130 = vmatprep.subr.bf16.mxu0 %v13277_v20  ;;  %v13316_v20 = vld [vmem:[#allocation10 + $0x134] ss:$8 sps:$4 sm:$0xff]  }
 0x5d7   :  { %10637 = vmatpush1.bf16.msra.mxu1 %v13215_v36  ;;  %v13314_v36 = vld [vmem:[#allocation10 + $0x130] ss:$8 sps:$4 sm:$0xff]  }
 0x5d8   :  { %10638 = vmatprep.subr.bf16.mxu1 %v13220_v26  ;;  %11131 = vmatpush1.bf16.msra.mxu0 %v13275_v62  ;;  %v13317_v26 = vld [vmem:[#allocation10 + $0x120] ss:$8 sps:$4 sm:$0xff]   ;;  %v13322_v62 = vld [vmem:[#allocation10 + $0x114] ss:$8 sps:$4 sm:$0xff]  }
 0x5d9   :  { %11132 = vmatprep.subr.bf16.mxu0 %v13280_v41  ;;  %v13320_v41 = vld [vmem:[#allocation10 + $0x110] ss:$8 sps:$4 sm:$0xff]  }
 0x5db   :  { %10639 = vmatpush1.bf16.msra.mxu1 %v13218_v7  ;;  %v13325_v7 = vld [vmem:[#allocation10 + $0x104] ss:$8 sps:$4 sm:$0xff]  }
 0x5dc   :  { %10640 = vmatprep.subr.bf16.mxu1 %v13223_v4  ;;  %11133 = vmatpush2.bf16.msra.mxu0 %v13278_v37  ;;  %v13323_v4 = vld [vmem:[#allocation10 + $0x100] ss:$8 sps:$4 sm:$0xff]   ;;  %v13328_v37 = vld [vmem:[#allocation10 + $0x1f4] ss:$8 sps:$4 sm:$0xff]  }
 0x5dd   :  { %11134 = vmatprep.subr.bf16.mxu0 %v13283_v24  ;;  %v13326_v24 = vld [vmem:[#allocation10 + $0x1f0] ss:$8 sps:$4 sm:$0xff]  }
 0x5df   :  { %10641 = vmatpush1.bf16.msra.mxu1 %v13221_v5  ;;  %v13331_v5 = vld [vmem:[#allocation10 + $0x1e4] ss:$8 sps:$4 sm:$0xff]  }
 0x5e0   :  { %10642 = vmatprep.subr.bf16.mxu1 %v13226_v63  ;;  %11135 = vmatpush2.bf16.msra.mxu0 %v13281_v51  ;;  %v13329_v63 = vld [vmem:[#allocation10 + $0x1e0] ss:$8 sps:$4 sm:$0xff]   ;;  %v13334_v51 = vld [vmem:[#allocation10 + $0x1d4] ss:$8 sps:$4 sm:$0xff]  }
 0x5e1   :  { %11136 = vmatprep.subr.bf16.mxu0 %v13286_v17  ;;  %v13332_v17 = vld [vmem:[#allocation10 + $0x1d0] ss:$8 sps:$4 sm:$0xff]  }
 0x5e3   :  { %10643 = vmatpush1.bf16.msra.mxu1 %v13224_v54  ;;  %v13337_v54 = vld [vmem:[#allocation10 + $0x1c4] ss:$8 sps:$4 sm:$0xff]  }
 0x5e4   :  { %10644 = vmatprep.subr.bf16.mxu1 %v13229_v23  ;;  %11137 = vmatpush2.bf16.msra.mxu0 %v13284_v31  ;;  %v13335_v23 = vld [vmem:[#allocation10 + $0x1c0] ss:$8 sps:$4 sm:$0xff]   ;;  %v13340_v31 = vld [vmem:[#allocation10 + $0x1b4] ss:$8 sps:$4 sm:$0xff]  }
 0x5e5   :  { %11138 = vmatprep.subr.bf16.mxu0 %v13289_v8 }
 0x5e7   :  { %10645 = vmatpush1.bf16.msra.mxu1 %v13227_v6  ;;  %v13338_v6 = vld [vmem:[#allocation10 + $0x1b0] ss:$8 sps:$4 sm:$0xff]  }
 0x5e8   :  { %10646 = vmatprep.subr.bf16.mxu1 %v13232_v0  ;;  %11139 = vmatpush2.bf16.msra.mxu0 %v13287_v53 }
 0x5e9   :  { %11140 = vmatprep.subr.bf16.mxu0 %v13292_v58 }
 0x5eb   :  { %10647 = vmatpush2.bf16.msra.mxu1 %v13230_v40  ;;  %v13343_v40 = vld [vmem:[#allocation10 + $0x1a4] ss:$8 sps:$4 sm:$0xff]  }
 0x5ec   :  { %10648 = vmatprep.subr.bf16.mxu1 %v13235_v19  ;;  %11141 = vmatpush2.bf16.msra.mxu0 %v13290_v32  ;;  %v13341_v32 = vld [vmem:[#allocation10 + $0x1a0] ss:$8 sps:$4 sm:$0xff]  }
 0x5ed   :  { %11142 = vmatprep.subr.bf16.mxu0 %v13295_v14 }
 0x5ef   :  { %10649 = vmatpush2.bf16.msra.mxu1 %v13233_v44 }
 0x5f0   :  { %10650 = vmatprep.subr.bf16.mxu1 %v13238_v35  ;;  %11143 = vmatpush2.bf16.msra.mxu0 %v13293_v43  ;;  %v13346_v43 = vld [vmem:[#allocation10 + $0x194] ss:$8 sps:$4 sm:$0xff]  }
 0x5f1   :  { %11144 = vmatprep.subr.bf16.mxu0 %v13298_v57 }
 0x5f3   :  { %10651 = vmatpush2.bf16.msra.mxu1 %v13236_v42 }
 0x5f4   :  { %10652 = vmatprep.subr.bf16.mxu1 %v13241_v48  ;;  %11145 = vmatpush2.bf16.msra.mxu0 %v13296_v33  ;;  %v13344_v48 = vld [vmem:[#allocation10 + $0x190] ss:$8 sps:$4 sm:$0xff]  }
 0x5f5   :  { %11146 = vmatprep.subr.bf16.mxu0 %v13301_v49 }
 0x5f7   :  { %10653 = vmatpush2.bf16.msra.mxu1 %v13239_v38 }
 0x5f8   :  { %10654 = vmatprep.subr.bf16.mxu1 %v13244_v11  ;;  %11147 = vmatpush2.bf16.msra.mxu0 %v13299_v27  ;;  %v13349_v11 = vld [vmem:[#allocation10 + $0x184] ss:$8 sps:$4 sm:$0xff]  }
 0x5fb   :  { %10655 = vmatpush2.bf16.msra.mxu1 %v13242_v12  ;;  %v13347_v12 = vld [vmem:[#allocation10 + $0x180] ss:$8 sps:$4 sm:$0xff]  }
 0x5fc   :  { %10656 = vmatprep.subr.bf16.mxu1 %v13247_v15 }
 0x5fe   :  { %v10500_v16 = vpop.f32.mrf.mxu0 }
 0x5ff   :  { %v14398_v50 = vadd.f32 %v10500_v16, %v14391_v61  ;;  %10657 = vmatpush2.bf16.msra.mxu1 %v13245_v18  ;;  %v13307_v61 = vld [vmem:[#allocation10 + $0x164] ss:$8 sps:$4 sm:$0xff]  }
 0x600   :  { %v10502_v34 = vpop.f32.mrf.mxu0  ;;  %10658 = vmatprep.subr.bf16.mxu1 %v13250_v60 }
 0x601   :  { %v14401_v55 = vadd.f32 %v10502_v34, %v14393_v21  ;;  %v13313_v21 = vld [vmem:[#allocation10 + $0x144] ss:$8 sps:$4 sm:$0xff]  }
 0x602   :  { %v10504_v39 = vpop.f32.mrf.mxu0 }
 0x603   :  { %10659 = vmatpush2.bf16.msra.mxu1 %v13248_v13  ;;  %v13351_v39 = vld [vmem:[%s14478_s7 + $0x38] sm:$0xff]  }
 0x604   :  { %v10505_v22 = vpop.f32.mrf.mxu0  ;;  %10660 = vmatprep.subr.bf16.mxu1 %v13253_v3 }
 0x605   :  { %v13353_v22 = vld [vmem:[%s14478_s7 + $0x30] sm:$0xff]  }
 0x607   :  { %10661 = vmatpush2.bf16.msra.mxu1 %v13251_v2  ;;  %v13352_v2 = vld [vmem:[%s14478_s7 + $0x70] sm:$0xff]  }
 0x608   :  { %11157 = vmatprep.subr.bf16.mxu1 %v13304_v30  ;;  %v13355_v30 = vld [vmem:[%s14478_s7 + $0x28] sm:$0xff]  }
 0x60a   :  { %10663 = vmatmul.mubr.bf16.vlgmr.msra.gmra.mxu1 %v14365_v46  ;;  %v13319_v46 = vld [vmem:[#allocation10 + $0x124] ss:$8 sps:$4 sm:$0xff]  }
 0x60b   :  { %11158 = vmatpush1.bf16.msra.mxu1 %v13302_v25  ;;  %v13354_v25 = vld [vmem:[%s14478_s7 + $0x68] sm:$0xff]  }
 0x60c   :  { %11159 = vmatprep.subr.bf16.mxu1 %v13307_v61  ;;  %v13356_v61 = vld [vmem:[%s14478_s7 + $0x60] sm:$0xff]  }
 0x60f   :  { %11160 = vmatpush1.bf16.msra.mxu1 %v13305_v28  ;;  %v13357_v28 = vld [vmem:[%s14478_s7 + $0x20] sm:$0xff]  }
 0x610   :  { %11161 = vmatprep.subr.bf16.mxu1 %v13310_v10  ;;  %v13358_v10 = vld [vmem:[%s14478_s7 + $0x58] sm:$0xff]  }
 0x613   :  { %11162 = vmatpush1.bf16.msra.mxu1 %v13308_v29  ;;  %v13359_v29 = vld [vmem:[%s14478_s7 + $0x18] sm:$0xff]  }
 0x614   :  { %11163 = vmatprep.subr.bf16.mxu1 %v13313_v21  ;;  %v13360_v21 = vld [vmem:[%s14478_s7 + $0x50] sm:$0xff]  }
 0x617   :  { %11164 = vmatpush1.bf16.msra.mxu1 %v13311_v47  ;;  %v13361_v47 = vld [vmem:[%s14478_s7 + $0x10] sm:$0xff]  }
 0x618   :  { %11165 = vmatprep.subr.bf16.mxu1 %v13316_v20  ;;  %v9108_v20 = vrot.slane %v14384_v1, %v1674_v59 }
 0x61b   :  { %11166 = vmatpush1.bf16.msra.mxu1 %v13314_v36  ;;  %v9112_v36 = vrot.slane %v14384_v1, %v1678_v56 }
 0x61c   :  { %11167 = vmatprep.subr.bf16.mxu1 %v13319_v46 }
 0x61f   :  { %11168 = vmatpush1.bf16.msra.mxu1 %v13317_v26 }
 0x620   :  { %11169 = vmatprep.subr.bf16.mxu1 %v13322_v62 }
 0x623   :  { %11170 = vmatpush1.bf16.msra.mxu1 %v13320_v41 }
 0x624   :  { %11171 = vmatprep.subr.bf16.mxu1 %v13325_v7 }
 0x627   :  { %11172 = vmatpush1.bf16.msra.mxu1 %v13323_v4 }
 0x628   :  { %11173 = vmatprep.subr.bf16.mxu1 %v13328_v37 }
 0x62b   :  { %11174 = vmatpush2.bf16.msra.mxu1 %v13326_v24 }
 0x62c   :  { %11175 = vmatprep.subr.bf16.mxu1 %v13331_v5 }
 0x62f   :  { %11176 = vmatpush2.bf16.msra.mxu1 %v13329_v63 }
 0x630   :  { %11177 = vmatprep.subr.bf16.mxu1 %v13334_v51 }
 0x633   :  { %11178 = vmatpush2.bf16.msra.mxu1 %v13332_v17 }
 0x634   :  { %11179 = vmatprep.subr.bf16.mxu1 %v13337_v54 }
 0x637   :  { %11180 = vmatpush2.bf16.msra.mxu1 %v13335_v23 }
 0x638   :  { %11181 = vmatprep.subr.bf16.mxu1 %v13340_v31  ;;  %v13362_v31 = vld [vmem:[%s14478_s7 + $0x48] sm:$0xff]  }
 0x63b   :  { %11182 = vmatpush2.bf16.msra.mxu1 %v13338_v6  ;;  %v13363_v6 = vld [vmem:[%s14478_s7 + $0x8] sm:$0xff]  }
 0x63c   :  { %11183 = vmatprep.subr.bf16.mxu1 %v13343_v40  ;;  %v10784_v40 = vld [vmem:[#allocation11] sm:$0x3] }
 0x63e   :  { %v14404_v8 = vpop.f32.mrf.mxu0 }
 0x63f   :  { %11184 = vmatpush2.bf16.msra.mxu1 %v13341_v32  ;;  %v10793_v32 = vrot.slane %v10784_v40, %v14138_v9 }
 0x640   :  { %v14406_v0 = vpop.f32.mrf.mxu0  ;;  %11185 = vmatprep.subr.bf16.mxu1 %v13346_v43 }
 0x642   :  { %v10627_v53 = vpop.f32.mrf.mxu0 }
 0x643   :  { %11186 = vmatpush2.bf16.msra.mxu1 %v13344_v48  ;;  %v13364_v53 = vld [vmem:[%s14478_s7 + $0x40] sm:$0xff]  }
 0x644   :  { %v10628_v58 = vpop.f32.mrf.mxu0  ;;  %11187 = vmatprep.subr.bf16.mxu1 %v13349_v11 }
 0x645   :  { %v13365_v58 = vld [vmem:[%s14478_s7] sm:$0xff]  }
 0x647   :  { %11188 = vmatpush2.bf16.msra.mxu1 %v13347_v12 }
 0x64a   :  { %v10541_v19 = vpop.f32.mrf.mxu1 }
 0x64b   :  { %v10542_v14 = vadd.f32 %v10541_v19, %v14398_v50  ;;  %v10789_v19 = vrot.slane %v10784_v40, %v14133_v45 }
 0x64c   :  { %v10543_v44 = vpop.f32.mrf.mxu1 }
 0x64d   :  { %v10544_v35 = vadd.f32 %v10543_v44, %v14401_v55  ;;  %v10712_v57 = vmax.f32 %v10542_v14, 0.0  ;;  %v13350_v55 = vld [vmem:[%s14478_s7 + $0x78] sm:$0xff]   ;;  %s13552_s7 = smov [#allocation14]  }
 0x64e   :  { %v10545_v42 = vpop.f32.mrf.mxu1  ;;  %12842 = vmatprep.subr.bf16.mxu0 %v13350_v55  ;;  %s11385_s27 = sshll.u32 %s13552_s7, 4  ;;  %s11386_s27 = int_to_ptr.vmem [resolvable:$true] %s11385_s27 }
 0x64f   :  { %v10713_v33 = vmax.f32 %v10544_v35, 0.0  ;;  %v10716_v27 = vpack.c.bf16 %v10712_v57, %v10712_v57  ;;  %s13509_s28 = scalar_lea.vmem %s11386_s27, 32  ;;  %p13514_p8 = scmp.lt.s32.totalorder %s11386_s27, %s11386_s27 }
 0x650   :  { %v10546_v49 = vpop.f32.mrf.mxu1  ;;  %p13510_p7 = scmp.ne.s32.totalorder %s11386_s27, %s13509_s28  ;;  %p13515_p9 = scmp.lt.s32.totalorder %s13509_s28, %s13509_s28 }
 0x651   :  { %v10717_v38 = vpack.c.bf16 %v10713_v33, %v10713_v33 }
 0x652   :  { %p13516_p10 = por %p13515_p9, %p13514_p8 }
 0x653   :  { %11148 = vmatprep.mubr.bf16.mxu0 %v10717_v38 }
 0x654   :  { %11149 = vmatmul.mubr.bf16.vlgmr.msra.gmra.mxu0 %v10716_v27  ;;  %p13517_p11 = pnand %p13516_p10, %p13510_p7 }
 0x655   :  { %12843 = vmatpush3.bf16.msra.mxu0 %v13351_v39 }
 0x656   :  { %12844 = vmatprep.subr.bf16.mxu0 %v13352_v2 }
 0x659   :  { %12845 = vmatpush3.bf16.msra.mxu0 %v13353_v22 }
 0x65a   :  { %12846 = vmatprep.subr.bf16.mxu0 %v13354_v25 }
 0x65d   :  { %12847 = vmatpush3.bf16.msra.mxu0 %v13355_v30 }
 0x65e   :  { %12848 = vmatprep.subr.bf16.mxu0 %v13356_v61 }
 0x661   :  { %12849 = vmatpush3.bf16.msra.mxu0 %v13357_v28 }
 0x662   :  { %12850 = vmatprep.subr.bf16.mxu0 %v13358_v10 }
 0x665   :  { %12851 = vmatpush3.bf16.msra.mxu0 %v13359_v29 }
 0x666   :  { %12852 = vmatprep.subr.bf16.mxu0 %v13360_v21 }
 0x669   :  { %12853 = vmatpush3.bf16.msra.mxu0 %v13361_v47 }
 0x66a   :  { %12854 = vmatprep.subr.bf16.mxu0 %v13362_v31 }
 0x66d   :  { %12855 = vmatpush3.bf16.msra.mxu0 %v13363_v6 }
 0x66e   :  { %12856 = vmatprep.subr.bf16.mxu0 %v13364_v53 }
 0x671   :  { %12857 = vmatpush3.bf16.msra.mxu0 %v13365_v58 }
 0x67b   :  { %v10705_v15 = vpop.f32.mrf.mxu0 }
 0x67d   :  { %v10707_v18 = vpop.f32.mrf.mxu0 }
 0x67f   :  { %v10709_v60 = vpop.f32.mrf.mxu0 }
 0x681   :  { %v10710_v16 = vpop.f32.mrf.mxu0 }
 0x68a   :  { %v10582_v50 = vpop.f32.mrf.mxu1 }
 0x68b   :  { %v10583_v46 = vadd.f32 %v10582_v50, %v9108_v20 }
 0x68c   :  { %v10584_v13 = vpop.f32.mrf.mxu1 }
 0x68d   :  { %v10585_v26 = vadd.f32 %v10584_v13, %v9112_v36  ;;  %v10624_v62 = vadd.f32 %v14404_v8, %v10583_v46 }
 0x68e   :  { %v10586_v34 = vpop.f32.mrf.mxu1 }
 0x68f   :  { %v10626_v4 = vadd.f32 %v14406_v0, %v10585_v26 }
 0x690   :  { %v10587_v3 = vpop.f32.mrf.mxu1 }
 0x6ca   :  { %v10664_v41 = vpop.f32.mrf.mxu1 }
 0x6cb   :  { %v10665_v7 = vadd.f32 %v10664_v41, %v10624_v62 }
 0x6cc   :  { %v10666_v37 = vpop.f32.mrf.mxu1 }
 0x6cd   :  { %v10706_v24 = vadd.f32 %v10705_v15, %v10665_v7  ;;  %v10667_v5 = vadd.f32 %v10666_v37, %v10626_v4  ;;  %v12825_v15 = vld [vmem:[#allocation13] ss:$0 sm:$0xff] }
 0x6ce   :  { %v10668_v63 = vpop.f32.mrf.mxu1 }
 0x6cf   :  { %v10708_v51 = vadd.f32 %v10707_v18, %v10667_v5  ;;  %v10714_v17 = vmax.f32 %v10706_v24, 0.0 }
 0x6d0   :  { %v10669_v54 = vpop.f32.mrf.mxu1 }
 0x6d1   :  { %v10715_v59 = vmax.f32 %v10708_v51, 0.0  ;;  %v10718_v52 = vpack.c.bf16 %v10714_v17, %v10714_v17 }
 0x6d3   :  { %v10719_v23 = vpack.c.bf16 %v10715_v59, %v10715_v59 }
 0x6d5   :  { %11189 = vmatprep.mubr.bf16.mxu1 %v10719_v23 }
 0x6d6   :  { %11190 = vmatmul.mubr.bf16.vlgmr.msra.gmra.mxu1 %v10718_v52 }
 0x714   :  { %v11150_v56 = vpop.f32.mrf.mxu0 }
 0x715   :  { %v11151_v14 = vadd.f32 %v11150_v56, %v10789_v19 }
 0x716   :  { %v11152_v1 = vpop.f32.mrf.mxu0 }
 0x717   :  { %v11153_v35 = vadd.f32 %v11152_v1, %v10793_v32 }
 0x718   :  { %v11154_v8 = vpop.f32.mrf.mxu0 }
 0x71a   :  { %v11155_v0 = vpop.f32.mrf.mxu0 }
 0x796   :  { %v11191_v44 = vpop.f32.mrf.mxu1 }
 0x797   :  { %v11192_v43 = vadd.f32 %v11191_v44, %v11151_v14 }
 0x798   :  { %v11193_v57 = vpop.f32.mrf.mxu1 }
 0x799   :  { %v11194_v42 = vadd.f32 %v11193_v57, %v11153_v35  ;;  %v11198_v48 = vmax.f32 %v11192_v43, 0.0 }
 0x79a   :  { %v11195_v33 = vpop.f32.mrf.mxu1 }
 0x79b   :  { %v11199_v49 = vmax.f32 %v11194_v42, 0.0  ;;  %v11200_v27 = vpack.c.bf16 %v11198_v48, %v11198_v48 }
 0x79c   :  { %v11196_v38 = vpop.f32.mrf.mxu1 }
 0x79d   :  { %v11201_v11 = vpack.c.bf16 %v11199_v49, %v11199_v49 }
 0x79f   :  { %11369 = vmatprep.mubr.bf16.mxu0 %v11201_v11 }
 0x7a0   :  { %11370 = vmatmul.mubr.bf16.vlgmr.msra.gmra.mxu0 %v11200_v27 }
 0x860   :  { %v12858_v12 = vpop.f32.mrf.mxu0 }
 0x862   :  { %v12859_v18 = vpop.f32.mrf.mxu0 }
 0x863   :  { %v12860_v45 = vadd.f32 %v12859_v18, %v12858_v12 }
 0x864   :  { %v12861_v9 = vpop.f32.mrf.mxu0 }
 0x865   :  { %v11372_v60 = vadd.f32 %v12860_v45, %v12825_v15 }
 0x866   :  { %v12862_v16 = vpop.f32.mrf.mxu0 }
 0x867   :  { %11378 = vst.msk [vmem:[#allocation14] sm:$0x3] %vm11377_vm4, %v11372_v60 }
 0x868   :  { %13520 = shalt.err (!%p13517_p11)
}
 0x869   :  { %11388 = dma.vmem_to_hbm [thread:$0]  %s11386_s27, 32, %s14480_s9, [#allocation4]  }
 0x86a   :  { %13537 = dma.done.wait [#allocation4], 32  }
 0x86b   :  { %13538 = vsyncadd [#allocation4], 4294967264 }
 0x86c   :  { %11392 = vsyncpa [#allocation3], 1 }
 0x86d   :  { %11393 = vsyncpa [#allocation6], 1 }
 0x86e   :  { %11394 = vsyncpa [#allocation9], 1 }
 0x86f   :  { %11395 = vsyncpa [#allocation12], 1 }
 0x870   :  { %11396 = vsyncpa [#allocation4], 1 }

</bundles_post_ra>
